<compile_context>
chip_gen: v5e
topology: v5e:2x2
jax: 0.10.0
libtpu: 0.0.40
codegen_flags: <defaults>
</compile_context>

<pallas_src>
import functools
import math

import jax
import jax.numpy as jnp
from jax import lax
from jax.experimental import pallas as pl
from jax.experimental.pallas import tpu as pltpu


# --------------------------------------------------------------------------- #
# In-kernel helper: masked-roll im2col for a 3x3 'same' (zero padded) conv.
# --------------------------------------------------------------------------- #
def _im2col_3x3(x, masks, W):
    """x: (C, L) with L = B*H*W (lane dim).  masks: (9, L) tap-validity masks.

    Returns (9*C, L); rows ordered (ky, kx, ci), matching weights reshaped via
    transpose(3, 0, 1, 2).reshape(Cout, 9*Cin).  Out-of-bounds taps (including
    roll wrap across plane boundaries of the folded lane axis) are zeroed by
    the masks.  The center tap's mask is all ones, so its multiply is skipped.
    """
    pieces = []
    k = 0
    for dy in (-1, 0, 1):
        for dx in (-1, 0, 1):
            off = dy * W + dx
            if off == 0:
                pieces.append(x)                                   # center tap
            else:
                pieces.append(jnp.roll(x, -off, axis=1) * masks[k:k + 1, :])
            k += 1
    return jnp.concatenate(pieces, axis=0)


# --------------------------------------------------------------------------- #
# Fused GRU kernel: x-side conv + recurrence, TB frames per grid step.
# --------------------------------------------------------------------------- #
def _gru_fused_kernel(x_ref, h0_ref, wx_ref, bx_ref, wih_ref, whh_ref, mask_ref,
                      o_ref, hout_ref, h_state, *, C, TB, W):
    tb = pl.program_id(0)

    @pl.when(tb == 0)
    def _():
        h_state[...] = h0_ref[...].astype(jnp.float32)

    masks = mask_ref[...]                      # (9, L)   compute dtype
    wx = wx_ref[...]                           # (3C, 9C) compute dtype
    wih = wih_ref[...]                         # (2C, 9C)
    whh = whh_ref[...]                         # (C, 9C)
    bx = bx_ref[...]                           # (3C, 1)  f32
    cdt = wx.dtype

    def step(f, carry):
        xf = x_ref[f]                          # (C, L) compute dtype
        h = h_state[...]                       # (C, L) f32

        # x-dependent halves of BOTH convolutions (+ biases): one matmul.
        px = jnp.dot(wx, _im2col_3x3(xf, masks, W),
                     preferred_element_type=jnp.float32) + bx       # (3C, L)

        # r, z gates: x part + h-dependent conv as one K=9C matmul.
        gi = px[:2 * C] + jnp.dot(wih, _im2col_3x3(h.astype(cdt), masks, W),
                                  preferred_element_type=jnp.float32)
        rz = jax.nn.sigmoid(gi)
        r = rz[:C]
        z = rz[C:]

        # candidate: x part + conv over r*h.
        c = jnp.tanh(px[2 * C:]
                     + jnp.dot(whh, _im2col_3x3((r * h).astype(cdt), masks, W),
                               preferred_element_type=jnp.float32))

        h_new = (1.0 - z) * h + z * c
        h_state[...] = h_new
        o_ref[f] = h_new.astype(o_ref.dtype)   # lane-dense (C, L) store
        return carry

    lax.fori_loop(0, TB, step, 0, unroll=True)

    @pl.when(tb == pl.num_programs(0) - 1)     # final hidden written exactly once
    def _():
        hout_ref[...] = h_state[...].astype(hout_ref.dtype)


# --------------------------------------------------------------------------- #
# Tile-size / VMEM derivation (re-derived per generation instead of hard-coded)
# --------------------------------------------------------------------------- #
def _vmem_usage_bytes(tb, C, L, in_bytes, out_bytes):
    """Rough upper bound on the kernel's VMEM working set for one grid step."""
    blk = 2 * tb * C * L * (in_bytes + out_bytes)          # double-buffered x / o blocks
    fixed = (C * L * 4                                      # h_state scratch
             + 2 * C * L * max(in_bytes, out_bytes)         # h0 + hout blocks
             + 9 * L * in_bytes                             # tap masks
             + 54 * C * C * in_bytes + 3 * C * 4)           # weights + bias
    temps = 3 * 9 * C * L * in_bytes + 10 * C * L * 4       # im2col patches + f32 gate temps
    return blk + fixed + temps


def _vmem_budget_bytes():
    try:
        return int(pltpu.get_tpu_info().vmem_capacity_bytes * 3 // 4)
    except Exception:
        return 48 * 1024 * 1024


def _pick_time_block(T, C, L, in_bytes, out_bytes, budget, max_tb=4):
    best = 1
    for tb in range(1, min(T, max_tb) + 1):
        if T % tb == 0 and _vmem_usage_bytes(tb, C, L, in_bytes, out_bytes) <= budget:
            best = tb
    return best


# --------------------------------------------------------------------------- #
# pallas_call wrapper
# --------------------------------------------------------------------------- #
def _gru_pallas(b_tl, h0_l, w_x, b_x, w_ih_h, w_hh_h, masks, *, W, out_dtype):
    T, C, L = b_tl.shape
    in_bytes = b_tl.dtype.itemsize
    out_bytes = jnp.dtype(out_dtype).itemsize

    budget = _vmem_budget_bytes()
    TB = _pick_time_block(T, C, L, in_bytes, out_bytes, budget)
    usage = _vmem_usage_bytes(TB, C, L, in_bytes, out_bytes)
    vmem_limit = int(min(budget, max(32 * 1024 * 1024, 2 * usage)))

    # Advisory scheduling hint for XLA around the custom call.
    flops = int(108 * C * C * L * T + 32 * C * L * T)
    transcendentals = int(3 * C * L * T)
    bytes_accessed = int(T * C * L * (in_bytes + out_bytes)
                         + 2 * C * L * 4 + 9 * L * in_bytes + 54 * C * C * in_bytes)

    kernel = functools.partial(_gru_fused_kernel, C=C, TB=TB, W=W)
    o_tl, h_l = pl.pallas_call(
        kernel,
        out_shape=(jax.ShapeDtypeStruct((T, C, L), out_dtype),
                   jax.ShapeDtypeStruct((C, L), out_dtype)),
        grid_spec=pltpu.PrefetchScalarGridSpec(
            num_scalar_prefetch=0,
            grid=(T // TB,),
            in_specs=[
                pl.BlockSpec((TB, C, L), lambda t: (t, 0, 0)),      # TB x-frames block
                pl.BlockSpec((C, L), lambda t: (0, 0)),             # h0
                pl.BlockSpec((3 * C, 9 * C), lambda t: (0, 0)),     # fused x-side weights
                pl.BlockSpec((3 * C, 1), lambda t: (0, 0)),         # fused x-side biases
                pl.BlockSpec((2 * C, 9 * C), lambda t: (0, 0)),     # W_ih (h part)
                pl.BlockSpec((C, 9 * C), lambda t: (0, 0)),         # W_hh (h part)
                pl.BlockSpec((9, L), lambda t: (0, 0)),             # tap masks
            ],
            out_specs=[
                pl.BlockSpec((TB, C, L), lambda t: (t, 0, 0)),      # per-step outputs
                pl.BlockSpec((C, L), lambda t: (0, 0)),             # final hidden
            ],
            scratch_shapes=[pltpu.VMEM((C, L), jnp.float32)],       # hidden state
        ),
        compiler_params=pltpu.CompilerParams(
            dimension_semantics=("arbitrary",),                     # time is sequential
            vmem_limit_bytes=vmem_limit),
        cost_estimate=pl.CostEstimate(flops=flops,
                                      transcendentals=transcendentals,
                                      bytes_accessed=bytes_accessed),
    )(b_tl, h0_l, w_x, b_x, w_ih_h, w_hh_h, masks)
    return o_tl, h_l


# --------------------------------------------------------------------------- #
# Wrapper-side parameter / mask preparation (done once, outside the recurrence)
# --------------------------------------------------------------------------- #
def _prep_weights(params, C, compute_dtype):
    """Split conv weights into x-part / h-part, reshape to (Cout, 9*Cin)."""
    w_ih, b_ih, w_hh, b_hh = params   # HWIO: (3,3,2C,2C), (2C,), (3,3,2C,C), (C,)

    def to_mat(w):                    # (3, 3, Cin, Cout) -> (Cout, 9*Cin), (ky,kx,ci)
        cout = w.shape[-1]
        return jnp.transpose(w, (3, 0, 1, 2)).reshape(cout, -1).astype(compute_dtype)

    w_ih_x = to_mat(w_ih[:, :, :C, :])    # (2C, 9C) acts on x
    w_ih_h = to_mat(w_ih[:, :, C:, :])    # (2C, 9C) acts on h
    w_hh_x = to_mat(w_hh[:, :, :C, :])    # (C, 9C)  acts on x
    w_hh_h = to_mat(w_hh[:, :, C:, :])    # (C, 9C)  acts on r*h

    # Fused x-side weights/bias: one matmul yields [ih_preact ; hh_preact].
    w_x = jnp.concatenate([w_ih_x, w_hh_x], axis=0)                    # (3C, 9C)
    b_x = jnp.concatenate([b_ih, b_hh]).astype(jnp.float32)[:, None]   # (3C, 1)
    return w_x, b_x, w_ih_h, w_hh_h


def _make_tap_masks(H, W, B, compute_dtype):
    """(9, B*H*W) tap-validity masks of a zero-padded 3x3 conv, tiled per plane."""
    y = jnp.arange(H)[:, None]
    x = jnp.arange(W)[None, :]
    rows = []
    for dy in (-1, 0, 1):
        for dx in (-1, 0, 1):
            valid = ((y + dy >= 0) & (y + dy < H) & (x + dx >= 0) & (x + dx < W))
            rows.append(valid.reshape(-1))
    m = jnp.stack(rows, axis=0).astype(compute_dtype)    # (9, H*W)
    return jnp.tile(m, (1, B))                           # (9, B*H*W)


@functools.partial(jax.jit, static_argnames=("compute_dtype",))
def gru_bottleneck_forward(x, r, params, compute_dtype=jnp.bfloat16):
    """GRUBottleneckBlock.forward.

    x: (B, T, channels, H, W) or (B, channels, H, W)   (PyTorch NCHW layout)
    r: None or (B, channels//2, H, W)
    Returns (x_out, r_out) in the same layout as PyTorch.
    """
    single_frame = (x.ndim == 4)
    if single_frame:
        x = x[:, None]                        # add T = 1
    B, T, channels, H, W = x.shape
    C = channels // 2
    N = H * W
    L = B * N

    a = x[:, :, :C]                           # pass-through half
    b = x[:, :, C:]                           # GRU half
    h0 = jnp.zeros((B, C, H, W), x.dtype) if r is None else r

    w_x, b_x, w_ih_h, w_hh_h = _prep_weights(params, C, compute_dtype)
    masks = _make_tap_masks(H, W, B, compute_dtype)

    # Fold batch into the lane axis: (B,T,C,H,W) -> (T, C, B*N).  Pure XLA
    # layout plumbing done once; the kernel then streams lane-dense slabs.
    b_tl = jnp.transpose(b.reshape(B, T, C, N), (1, 2, 0, 3)).reshape(T, C, L)
    b_tl = b_tl.astype(compute_dtype)         # bf16 halves the dominant HBM read
    h0_l = jnp.transpose(h0.reshape(B, C, N), (1, 0, 2)).reshape(C, L)

    o_tl, h_l = _gru_pallas(b_tl, h0_l, w_x, b_x, w_ih_h, w_hh_h, masks,
                            W=W, out_dtype=x.dtype)

    o = jnp.transpose(o_tl.reshape(T, C, B, N), (2, 0, 1, 3)).reshape(B, T, C, H, W)
    r_out = jnp.transpose(h_l.reshape(C, B, N), (1, 0, 2)).reshape(B, C, H, W)
    x_out = jnp.concatenate([a, o], axis=2)
    if single_frame:
        x_out = x_out[:, 0]
    return x_out, r_out


# ---------------- pure-JAX reference (for correctness check) ----------------
def _conv2d_ref(x_nchw, w_hwio, bias):
    w_oihw = jnp.transpose(w_hwio, (3, 2, 0, 1))
    y = jax.lax.conv_general_dilated(
        x_nchw, w_oihw, window_strides=(1, 1), padding=((1, 1), (1, 1)),
        dimension_numbers=('NCHW', 'OIHW', 'NCHW'))
    return y + bias[None, :, None, None]


def _ref_forward(x, r, params):
    w_ih, b_ih, w_hh, b_hh = params
    channels = x.shape[2]
    C = channels // 2
    a, b = x[:, :, :C], x[:, :, C:]
    B, T, _, H, W = b.shape
    h = jnp.zeros((B, C, H, W), x.dtype) if r is None else r
    outs = []
    for t in range(T):
        xt = b[:, t]
        rz = jax.nn.sigmoid(_conv2d_ref(jnp.concatenate([xt, h], 1), w_ih, b_ih))
        rr, z = rz[:, :C], rz[:, C:]
        c = jnp.tanh(_conv2d_ref(jnp.concatenate([xt, rr * h], 1), w_hh, b_hh))
        h = (1 - z) * h + z * c
        outs.append(h)
    o = jnp.stack(outs, axis=1)
    return jnp.concatenate([a, o], axis=2), h


# ---------------------------------- main ------------------------------------
if __name__ == "__main__":
    # small shapes: batch=2, channels=8 (gru channels C=4), T=8, 16x16 spatial
    B, T, channels, H, W = 2, 8, 8, 16, 16
    C = channels // 2
    C2 = 2 * C

    key = jax.random.PRNGKey(0)
    k1, k2, k3, k4, kx = jax.random.split(key, 5)

    # deterministic init mimicking nn.Conv2d default (uniform +/- 1/sqrt(fan_in))
    fan_in = C2 * 3 * 3
    bound = 1.0 / math.sqrt(fan_in)
    w_ih = jax.random.uniform(k1, (3, 3, C2, C2), jnp.float32, -bound, bound)
    b_ih = jax.random.uniform(k2, (C2,), jnp.float32, -bound, bound)
    w_hh = jax.random.uniform(k3, (3, 3, C2, C), jnp.float32, -bound, bound)
    b_hh = jax.random.uniform(k4, (C,), jnp.float32, -bound, bound)
    params = (w_ih, b_ih, w_hh, b_hh)

    x = jax.random.normal(kx, (B, T, channels, H, W), jnp.float32)
    x_ref, r_ref = _ref_forward(x, None, params)

    # exact-math path (f32 MXU operands): must match the conv reference tightly
    x_f32, r_f32 = gru_bottleneck_forward(x, None, params, compute_dtype=jnp.float32)
    jax.block_until_ready((x_f32, r_f32))
    assert x_f32.shape == (B, T, channels, H, W)
    assert r_f32.shape == (B, C, H, W)
    assert jnp.allclose(x_f32, x_ref, atol=1e-4, rtol=1e-4)
    assert jnp.allclose(r_f32, r_ref, atol=1e-4, rtol=1e-4)

    # default fast path (bf16 MXU operands, f32 accumulation / gate math)
    x_bf, r_bf = gru_bottleneck_forward(x, None, params)
    jax.block_until_ready((x_bf, r_bf))
    assert jnp.allclose(x_bf, x_ref, atol=5e-2, rtol=5e-2)
    assert jnp.allclose(r_bf, r_ref, atol=5e-2, rtol=5e-2)

    # single-frame path with a carried recurrent state
    x1 = x[:, 0]
    y1, r1 = gru_bottleneck_forward(x1, r_f32, params, compute_dtype=jnp.float32)
    jax.block_until_ready((y1, r1))
    y1_ref, r1_ref = _ref_forward(x1[:, None], r_f32, params)
    assert y1.shape == (B, channels, H, W)
    assert jnp.allclose(y1, y1_ref[:, 0], atol=1e-4, rtol=1e-4)
    assert jnp.allclose(r1, r1_ref, atol=1e-4, rtol=1e-4)

    print("KERNEL_OK")
</pallas_src>

<mosaic_0001>
module attributes {stable_mosaic.version = 11 : i64} {
  func.func @_gru_fused_kernel(%arg0: i32, %arg1: memref<4x4x512xf32, #tpu.memory_space<vmem>>, %arg2: memref<4x512xf32, #tpu.memory_space<vmem>>, %arg3: memref<12x36xf32, #tpu.memory_space<vmem>>, %arg4: memref<12x1xf32, #tpu.memory_space<vmem>>, %arg5: memref<8x36xf32, #tpu.memory_space<vmem>>, %arg6: memref<4x36xf32, #tpu.memory_space<vmem>>, %arg7: memref<9x512xf32, #tpu.memory_space<vmem>>, %arg8: memref<4x4x512xf32, #tpu.memory_space<vmem>>, %arg9: memref<4x512xf32, #tpu.memory_space<vmem>>, %arg10: memref<4x512xf32, #tpu.memory_space<vmem>>) attributes {dimension_semantics = [#tpu.dimension_semantics<arbitrary>], iteration_bounds = array<i64: 2>, scalar_prefetch = 0 : i64, scratch_operands = 1 : i64, tpu.core_type = #tpu.core_type<tc>, window_params = [{transform_indices = @transform_0, window_bounds = array<i64: 4, 4, 512>}, {pipeline_mode = #tpu.pipeline_mode<synchronous>, transform_indices = @transform_1, window_bounds = array<i64: 4, 512>}, {pipeline_mode = #tpu.pipeline_mode<synchronous>, transform_indices = @transform_2, window_bounds = array<i64: 12, 36>}, {pipeline_mode = #tpu.pipeline_mode<synchronous>, transform_indices = @transform_3, window_bounds = array<i64: 12, 1>}, {pipeline_mode = #tpu.pipeline_mode<synchronous>, transform_indices = @transform_4, window_bounds = array<i64: 8, 36>}, {pipeline_mode = #tpu.pipeline_mode<synchronous>, transform_indices = @transform_5, window_bounds = array<i64: 4, 36>}, {pipeline_mode = #tpu.pipeline_mode<synchronous>, transform_indices = @transform_6, window_bounds = array<i64: 9, 512>}, {transform_indices = @transform_7, window_bounds = array<i64: 4, 4, 512>}, {pipeline_mode = #tpu.pipeline_mode<synchronous>, transform_indices = @transform_8, window_bounds = array<i64: 4, 512>}]} {
    %c0_i32 = arith.constant 0 : i32
    %0 = arith.cmpi eq, %arg0, %c0_i32 : i32
    %1 = arith.extui %0 : i1 to i32
    %c0_i32_0 = arith.constant 0 : i32
    %2 = arith.cmpi ne, %1, %c0_i32_0 : i32
    scf.if %2 {
      %c0_64 = arith.constant 0 : index
      %c0_65 = arith.constant 0 : index
      %727 = vector.load %arg2[%c0_64, %c0_65] : memref<4x512xf32, #tpu.memory_space<vmem>>, vector<4x512xf32>
      %c0_66 = arith.constant 0 : index
      %c0_67 = arith.constant 0 : index
      %728 = vector.load %arg10[%c0_66, %c0_67] : memref<4x512xf32, #tpu.memory_space<vmem>>, vector<4x512xf32>
      tpu.vector_store %arg10[%c0_66, %c0_67], %727 {strides = array<i32>} : memref<4x512xf32, #tpu.memory_space<vmem>>, vector<4x512xf32>,
    } else {
    }
    %c0 = arith.constant 0 : index
    %c0_1 = arith.constant 0 : index
    %3 = vector.load %arg7[%c0, %c0_1] : memref<9x512xf32, #tpu.memory_space<vmem>>, vector<9x512xf32>
    %c0_2 = arith.constant 0 : index
    %c0_3 = arith.constant 0 : index
    %4 = vector.load %arg3[%c0_2, %c0_3] : memref<12x36xf32, #tpu.memory_space<vmem>>, vector<12x36xf32>
    %c0_4 = arith.constant 0 : index
    %c0_5 = arith.constant 0 : index
    %5 = vector.load %arg5[%c0_4, %c0_5] : memref<8x36xf32, #tpu.memory_space<vmem>>, vector<8x36xf32>
    %c0_6 = arith.constant 0 : index
    %c0_7 = arith.constant 0 : index
    %6 = vector.load %arg6[%c0_6, %c0_7] : memref<4x36xf32, #tpu.memory_space<vmem>>, vector<4x36xf32>
    %c0_8 = arith.constant 0 : index
    %c0_9 = arith.constant 0 : index
    %7 = vector.load %arg4[%c0_8, %c0_9] : memref<12x1xf32, #tpu.memory_space<vmem>>, vector<12x1xf32>
    %c0_i32_10 = arith.constant 0 : i32
    %8 = arith.index_cast %c0_i32_10 : i32 to index
    %c0_11 = arith.constant 0 : index
    %c0_12 = arith.constant 0 : index
    %9 = vector.load %arg1[%8, %c0_11, %c0_12] : memref<4x4x512xf32, #tpu.memory_space<vmem>>, vector<1x4x512xf32>
    %10 = vector.shape_cast %9 : vector<1x4x512xf32> to vector<4x512xf32>
    %c0_13 = arith.constant 0 : index
    %c0_14 = arith.constant 0 : index
    %11 = vector.load %arg10[%c0_13, %c0_14] : memref<4x512xf32, #tpu.memory_space<vmem>>, vector<4x512xf32>
    %12 = vector.extract_strided_slice %10 {offsets = [0, 495], sizes = [4, 17], strides = [1, 1]} : vector<4x512xf32> to vector<4x17xf32>
    %13 = vector.extract_strided_slice %10 {offsets = [0, 0], sizes = [4, 495], strides = [1, 1]} : vector<4x512xf32> to vector<4x495xf32>
    %14 = tpu.concatenate %12, %13 in 1 : vector<4x17xf32>, vector<4x495xf32> -> vector<4x512xf32>
    %15 = vector.extract_strided_slice %3 {offsets = [0, 0], sizes = [1, 512], strides = [1, 1]} : vector<9x512xf32> to vector<1x512xf32>
    %16 = vector.broadcast %15 : vector<1x512xf32> to vector<4x512xf32>
    %17 = arith.mulf %14, %16 : vector<4x512xf32>
    %18 = vector.extract_strided_slice %10 {offsets = [0, 496], sizes = [4, 16], strides = [1, 1]} : vector<4x512xf32> to vector<4x16xf32>
    %19 = vector.extract_strided_slice %10 {offsets = [0, 0], sizes = [4, 496], strides = [1, 1]} : vector<4x512xf32> to vector<4x496xf32>
    %20 = tpu.concatenate %18, %19 in 1 : vector<4x16xf32>, vector<4x496xf32> -> vector<4x512xf32>
    %21 = vector.extract_strided_slice %3 {offsets = [1, 0], sizes = [1, 512], strides = [1, 1]} : vector<9x512xf32> to vector<1x512xf32>
    %22 = vector.broadcast %21 : vector<1x512xf32> to vector<4x512xf32>
    %23 = arith.mulf %20, %22 : vector<4x512xf32>
    %24 = vector.extract_strided_slice %10 {offsets = [0, 497], sizes = [4, 15], strides = [1, 1]} : vector<4x512xf32> to vector<4x15xf32>
    %25 = vector.extract_strided_slice %10 {offsets = [0, 0], sizes = [4, 497], strides = [1, 1]} : vector<4x512xf32> to vector<4x497xf32>
    %26 = tpu.concatenate %24, %25 in 1 : vector<4x15xf32>, vector<4x497xf32> -> vector<4x512xf32>
    %27 = vector.extract_strided_slice %3 {offsets = [2, 0], sizes = [1, 512], strides = [1, 1]} : vector<9x512xf32> to vector<1x512xf32>
    %28 = vector.broadcast %27 : vector<1x512xf32> to vector<4x512xf32>
    %29 = arith.mulf %26, %28 : vector<4x512xf32>
    %30 = vector.extract_strided_slice %10 {offsets = [0, 511], sizes = [4, 1], strides = [1, 1]} : vector<4x512xf32> to vector<4x1xf32>
    %31 = vector.extract_strided_slice %10 {offsets = [0, 0], sizes = [4, 511], strides = [1, 1]} : vector<4x512xf32> to vector<4x511xf32>
    %32 = tpu.concatenate %30, %31 in 1 : vector<4x1xf32>, vector<4x511xf32> -> vector<4x512xf32>
    %33 = vector.extract_strided_slice %3 {offsets = [3, 0], sizes = [1, 512], strides = [1, 1]} : vector<9x512xf32> to vector<1x512xf32>
    %34 = vector.broadcast %33 : vector<1x512xf32> to vector<4x512xf32>
    %35 = arith.mulf %32, %34 : vector<4x512xf32>
    %36 = vector.extract_strided_slice %10 {offsets = [0, 1], sizes = [4, 511], strides = [1, 1]} : vector<4x512xf32> to vector<4x511xf32>
    %37 = vector.extract_strided_slice %10 {offsets = [0, 0], sizes = [4, 1], strides = [1, 1]} : vector<4x512xf32> to vector<4x1xf32>
    %38 = tpu.concatenate %36, %37 in 1 : vector<4x511xf32>, vector<4x1xf32> -> vector<4x512xf32>
    %39 = vector.extract_strided_slice %3 {offsets = [5, 0], sizes = [1, 512], strides = [1, 1]} : vector<9x512xf32> to vector<1x512xf32>
    %40 = vector.broadcast %39 : vector<1x512xf32> to vector<4x512xf32>
    %41 = arith.mulf %38, %40 : vector<4x512xf32>
    %42 = vector.extract_strided_slice %10 {offsets = [0, 15], sizes = [4, 497], strides = [1, 1]} : vector<4x512xf32> to vector<4x497xf32>
    %43 = vector.extract_strided_slice %10 {offsets = [0, 0], sizes = [4, 15], strides = [1, 1]} : vector<4x512xf32> to vector<4x15xf32>
    %44 = tpu.concatenate %42, %43 in 1 : vector<4x497xf32>, vector<4x15xf32> -> vector<4x512xf32>
    %45 = vector.extract_strided_slice %3 {offsets = [6, 0], sizes = [1, 512], strides = [1, 1]} : vector<9x512xf32> to vector<1x512xf32>
    %46 = vector.broadcast %45 : vector<1x512xf32> to vector<4x512xf32>
    %47 = arith.mulf %44, %46 : vector<4x512xf32>
    %48 = vector.extract_strided_slice %10 {offsets = [0, 16], sizes = [4, 496], strides = [1, 1]} : vector<4x512xf32> to vector<4x496xf32>
    %49 = vector.extract_strided_slice %10 {offsets = [0, 0], sizes = [4, 16], strides = [1, 1]} : vector<4x512xf32> to vector<4x16xf32>
    %50 = tpu.concatenate %48, %49 in 1 : vector<4x496xf32>, vector<4x16xf32> -> vector<4x512xf32>
    %51 = vector.extract_strided_slice %3 {offsets = [7, 0], sizes = [1, 512], strides = [1, 1]} : vector<9x512xf32> to vector<1x512xf32>
    %52 = vector.broadcast %51 : vector<1x512xf32> to vector<4x512xf32>
    %53 = arith.mulf %50, %52 : vector<4x512xf32>
    %54 = vector.extract_strided_slice %10 {offsets = [0, 17], sizes = [4, 495], strides = [1, 1]} : vector<4x512xf32> to vector<4x495xf32>
    %55 = vector.extract_strided_slice %10 {offsets = [0, 0], sizes = [4, 17], strides = [1, 1]} : vector<4x512xf32> to vector<4x17xf32>
    %56 = tpu.concatenate %54, %55 in 1 : vector<4x495xf32>, vector<4x17xf32> -> vector<4x512xf32>
    %57 = vector.extract_strided_slice %3 {offsets = [8, 0], sizes = [1, 512], strides = [1, 1]} : vector<9x512xf32> to vector<1x512xf32>
    %58 = vector.broadcast %57 : vector<1x512xf32> to vector<4x512xf32>
    %59 = arith.mulf %56, %58 : vector<4x512xf32>
    %60 = tpu.concatenate %17, %23, %29, %35, %10, %41, %47, %53, %59 in 0 : vector<4x512xf32>, vector<4x512xf32>, vector<4x512xf32>, vector<4x512xf32>, vector<4x512xf32>, vector<4x512xf32>, vector<4x512xf32>, vector<4x512xf32>, vector<4x512xf32> -> vector<36x512xf32>
    %cst = arith.constant dense<0.000000e+00> : vector<12x512xf32>
    %61 = tpu.matmul %4, %60, %cst {dimension_numbers = #tpu.dot_dimension_numbers<[1], [0], [0], [1], [0, 0, 1, 1], [], []>} : vector<12x36xf32>, vector<36x512xf32>, vector<12x512xf32> -> vector<12x512xf32>
    %62 = vector.broadcast %7 : vector<12x1xf32> to vector<12x512xf32>
    %63 = arith.addf %61, %62 : vector<12x512xf32>
    %64 = vector.extract_strided_slice %63 {offsets = [0, 0], sizes = [8, 512], strides = [1, 1]} : vector<12x512xf32> to vector<8x512xf32>
    %65 = vector.extract_strided_slice %11 {offsets = [0, 495], sizes = [4, 17], strides = [1, 1]} : vector<4x512xf32> to vector<4x17xf32>
    %66 = vector.extract_strided_slice %11 {offsets = [0, 0], sizes = [4, 495], strides = [1, 1]} : vector<4x512xf32> to vector<4x495xf32>
    %67 = tpu.concatenate %65, %66 in 1 : vector<4x17xf32>, vector<4x495xf32> -> vector<4x512xf32>
    %68 = vector.extract_strided_slice %3 {offsets = [0, 0], sizes = [1, 512], strides = [1, 1]} : vector<9x512xf32> to vector<1x512xf32>
    %69 = vector.broadcast %68 : vector<1x512xf32> to vector<4x512xf32>
    %70 = arith.mulf %67, %69 : vector<4x512xf32>
    %71 = vector.extract_strided_slice %11 {offsets = [0, 496], sizes = [4, 16], strides = [1, 1]} : vector<4x512xf32> to vector<4x16xf32>
    %72 = vector.extract_strided_slice %11 {offsets = [0, 0], sizes = [4, 496], strides = [1, 1]} : vector<4x512xf32> to vector<4x496xf32>
    %73 = tpu.concatenate %71, %72 in 1 : vector<4x16xf32>, vector<4x496xf32> -> vector<4x512xf32>
    %74 = vector.extract_strided_slice %3 {offsets = [1, 0], sizes = [1, 512], strides = [1, 1]} : vector<9x512xf32> to vector<1x512xf32>
    %75 = vector.broadcast %74 : vector<1x512xf32> to vector<4x512xf32>
    %76 = arith.mulf %73, %75 : vector<4x512xf32>
    %77 = vector.extract_strided_slice %11 {offsets = [0, 497], sizes = [4, 15], strides = [1, 1]} : vector<4x512xf32> to vector<4x15xf32>
    %78 = vector.extract_strided_slice %11 {offsets = [0, 0], sizes = [4, 497], strides = [1, 1]} : vector<4x512xf32> to vector<4x497xf32>
    %79 = tpu.concatenate %77, %78 in 1 : vector<4x15xf32>, vector<4x497xf32> -> vector<4x512xf32>
    %80 = vector.extract_strided_slice %3 {offsets = [2, 0], sizes = [1, 512], strides = [1, 1]} : vector<9x512xf32> to vector<1x512xf32>
    %81 = vector.broadcast %80 : vector<1x512xf32> to vector<4x512xf32>
    %82 = arith.mulf %79, %81 : vector<4x512xf32>
    %83 = vector.extract_strided_slice %11 {offsets = [0, 511], sizes = [4, 1], strides = [1, 1]} : vector<4x512xf32> to vector<4x1xf32>
    %84 = vector.extract_strided_slice %11 {offsets = [0, 0], sizes = [4, 511], strides = [1, 1]} : vector<4x512xf32> to vector<4x511xf32>
    %85 = tpu.concatenate %83, %84 in 1 : vector<4x1xf32>, vector<4x511xf32> -> vector<4x512xf32>
    %86 = vector.extract_strided_slice %3 {offsets = [3, 0], sizes = [1, 512], strides = [1, 1]} : vector<9x512xf32> to vector<1x512xf32>
    %87 = vector.broadcast %86 : vector<1x512xf32> to vector<4x512xf32>
    %88 = arith.mulf %85, %87 : vector<4x512xf32>
    %89 = vector.extract_strided_slice %11 {offsets = [0, 1], sizes = [4, 511], strides = [1, 1]} : vector<4x512xf32> to vector<4x511xf32>
    %90 = vector.extract_strided_slice %11 {offsets = [0, 0], sizes = [4, 1], strides = [1, 1]} : vector<4x512xf32> to vector<4x1xf32>
    %91 = tpu.concatenate %89, %90 in 1 : vector<4x511xf32>, vector<4x1xf32> -> vector<4x512xf32>
    %92 = vector.extract_strided_slice %3 {offsets = [5, 0], sizes = [1, 512], strides = [1, 1]} : vector<9x512xf32> to vector<1x512xf32>
    %93 = vector.broadcast %92 : vector<1x512xf32> to vector<4x512xf32>
    %94 = arith.mulf %91, %93 : vector<4x512xf32>
    %95 = vector.extract_strided_slice %11 {offsets = [0, 15], sizes = [4, 497], strides = [1, 1]} : vector<4x512xf32> to vector<4x497xf32>
    %96 = vector.extract_strided_slice %11 {offsets = [0, 0], sizes = [4, 15], strides = [1, 1]} : vector<4x512xf32> to vector<4x15xf32>
    %97 = tpu.concatenate %95, %96 in 1 : vector<4x497xf32>, vector<4x15xf32> -> vector<4x512xf32>
    %98 = vector.extract_strided_slice %3 {offsets = [6, 0], sizes = [1, 512], strides = [1, 1]} : vector<9x512xf32> to vector<1x512xf32>
    %99 = vector.broadcast %98 : vector<1x512xf32> to vector<4x512xf32>
    %100 = arith.mulf %97, %99 : vector<4x512xf32>
    %101 = vector.extract_strided_slice %11 {offsets = [0, 16], sizes = [4, 496], strides = [1, 1]} : vector<4x512xf32> to vector<4x496xf32>
    %102 = vector.extract_strided_slice %11 {offsets = [0, 0], sizes = [4, 16], strides = [1, 1]} : vector<4x512xf32> to vector<4x16xf32>
    %103 = tpu.concatenate %101, %102 in 1 : vector<4x496xf32>, vector<4x16xf32> -> vector<4x512xf32>
    %104 = vector.extract_strided_slice %3 {offsets = [7, 0], sizes = [1, 512], strides = [1, 1]} : vector<9x512xf32> to vector<1x512xf32>
    %105 = vector.broadcast %104 : vector<1x512xf32> to vector<4x512xf32>
    %106 = arith.mulf %103, %105 : vector<4x512xf32>
    %107 = vector.extract_strided_slice %11 {offsets = [0, 17], sizes = [4, 495], strides = [1, 1]} : vector<4x512xf32> to vector<4x495xf32>
    %108 = vector.extract_strided_slice %11 {offsets = [0, 0], sizes = [4, 17], strides = [1, 1]} : vector<4x512xf32> to vector<4x17xf32>
    %109 = tpu.concatenate %107, %108 in 1 : vector<4x495xf32>, vector<4x17xf32> -> vector<4x512xf32>
    %110 = vector.extract_strided_slice %3 {offsets = [8, 0], sizes = [1, 512], strides = [1, 1]} : vector<9x512xf32> to vector<1x512xf32>
    %111 = vector.broadcast %110 : vector<1x512xf32> to vector<4x512xf32>
    %112 = arith.mulf %109, %111 : vector<4x512xf32>
    %113 = tpu.concatenate %70, %76, %82, %88, %11, %94, %100, %106, %112 in 0 : vector<4x512xf32>, vector<4x512xf32>, vector<4x512xf32>, vector<4x512xf32>, vector<4x512xf32>, vector<4x512xf32>, vector<4x512xf32>, vector<4x512xf32>, vector<4x512xf32> -> vector<36x512xf32>
    %cst_15 = arith.constant dense<0.000000e+00> : vector<8x512xf32>
    %114 = tpu.matmul %5, %113, %cst_15 {dimension_numbers = #tpu.dot_dimension_numbers<[1], [0], [0], [1], [0, 0, 1, 1], [], []>} : vector<8x36xf32>, vector<36x512xf32>, vector<8x512xf32> -> vector<8x512xf32>
    %115 = arith.addf %64, %114 : vector<8x512xf32>
    %116 = arith.negf %115 : vector<8x512xf32>
    %117 = math.exp %116 : vector<8x512xf32>
    %cst_16 = arith.constant 1.000000e+00 : f32
    %118 = vector.broadcast %cst_16 : f32 to vector<8x512xf32>
    %119 = arith.addf %118, %117 : vector<8x512xf32>
    %120 = arith.divf %118, %119 : vector<8x512xf32>
    %121 = vector.extract_strided_slice %120 {offsets = [0, 0], sizes = [4, 512], strides = [1, 1]} : vector<8x512xf32> to vector<4x512xf32>
    %122 = vector.extract_strided_slice %120 {offsets = [4, 0], sizes = [4, 512], strides = [1, 1]} : vector<8x512xf32> to vector<4x512xf32>
    %123 = vector.extract_strided_slice %63 {offsets = [8, 0], sizes = [4, 512], strides = [1, 1]} : vector<12x512xf32> to vector<4x512xf32>
    %124 = arith.mulf %121, %11 : vector<4x512xf32>
    %125 = vector.extract_strided_slice %124 {offsets = [0, 495], sizes = [4, 17], strides = [1, 1]} : vector<4x512xf32> to vector<4x17xf32>
    %126 = vector.extract_strided_slice %124 {offsets = [0, 0], sizes = [4, 495], strides = [1, 1]} : vector<4x512xf32> to vector<4x495xf32>
    %127 = tpu.concatenate %125, %126 in 1 : vector<4x17xf32>, vector<4x495xf32> -> vector<4x512xf32>
    %128 = vector.extract_strided_slice %3 {offsets = [0, 0], sizes = [1, 512], strides = [1, 1]} : vector<9x512xf32> to vector<1x512xf32>
    %129 = vector.broadcast %128 : vector<1x512xf32> to vector<4x512xf32>
    %130 = arith.mulf %127, %129 : vector<4x512xf32>
    %131 = vector.extract_strided_slice %124 {offsets = [0, 496], sizes = [4, 16], strides = [1, 1]} : vector<4x512xf32> to vector<4x16xf32>
    %132 = vector.extract_strided_slice %124 {offsets = [0, 0], sizes = [4, 496], strides = [1, 1]} : vector<4x512xf32> to vector<4x496xf32>
    %133 = tpu.concatenate %131, %132 in 1 : vector<4x16xf32>, vector<4x496xf32> -> vector<4x512xf32>
    %134 = vector.extract_strided_slice %3 {offsets = [1, 0], sizes = [1, 512], strides = [1, 1]} : vector<9x512xf32> to vector<1x512xf32>
    %135 = vector.broadcast %134 : vector<1x512xf32> to vector<4x512xf32>
    %136 = arith.mulf %133, %135 : vector<4x512xf32>
    %137 = vector.extract_strided_slice %124 {offsets = [0, 497], sizes = [4, 15], strides = [1, 1]} : vector<4x512xf32> to vector<4x15xf32>
    %138 = vector.extract_strided_slice %124 {offsets = [0, 0], sizes = [4, 497], strides = [1, 1]} : vector<4x512xf32> to vector<4x497xf32>
    %139 = tpu.concatenate %137, %138 in 1 : vector<4x15xf32>, vector<4x497xf32> -> vector<4x512xf32>
    %140 = vector.extract_strided_slice %3 {offsets = [2, 0], sizes = [1, 512], strides = [1, 1]} : vector<9x512xf32> to vector<1x512xf32>
    %141 = vector.broadcast %140 : vector<1x512xf32> to vector<4x512xf32>
    %142 = arith.mulf %139, %141 : vector<4x512xf32>
    %143 = vector.extract_strided_slice %124 {offsets = [0, 511], sizes = [4, 1], strides = [1, 1]} : vector<4x512xf32> to vector<4x1xf32>
    %144 = vector.extract_strided_slice %124 {offsets = [0, 0], sizes = [4, 511], strides = [1, 1]} : vector<4x512xf32> to vector<4x511xf32>
    %145 = tpu.concatenate %143, %144 in 1 : vector<4x1xf32>, vector<4x511xf32> -> vector<4x512xf32>
    %146 = vector.extract_strided_slice %3 {offsets = [3, 0], sizes = [1, 512], strides = [1, 1]} : vector<9x512xf32> to vector<1x512xf32>
    %147 = vector.broadcast %146 : vector<1x512xf32> to vector<4x512xf32>
    %148 = arith.mulf %145, %147 : vector<4x512xf32>
    %149 = vector.extract_strided_slice %124 {offsets = [0, 1], sizes = [4, 511], strides = [1, 1]} : vector<4x512xf32> to vector<4x511xf32>
    %150 = vector.extract_strided_slice %124 {offsets = [0, 0], sizes = [4, 1], strides = [1, 1]} : vector<4x512xf32> to vector<4x1xf32>
    %151 = tpu.concatenate %149, %150 in 1 : vector<4x511xf32>, vector<4x1xf32> -> vector<4x512xf32>
    %152 = vector.extract_strided_slice %3 {offsets = [5, 0], sizes = [1, 512], strides = [1, 1]} : vector<9x512xf32> to vector<1x512xf32>
    %153 = vector.broadcast %152 : vector<1x512xf32> to vector<4x512xf32>
    %154 = arith.mulf %151, %153 : vector<4x512xf32>
    %155 = vector.extract_strided_slice %124 {offsets = [0, 15], sizes = [4, 497], strides = [1, 1]} : vector<4x512xf32> to vector<4x497xf32>
    %156 = vector.extract_strided_slice %124 {offsets = [0, 0], sizes = [4, 15], strides = [1, 1]} : vector<4x512xf32> to vector<4x15xf32>
    %157 = tpu.concatenate %155, %156 in 1 : vector<4x497xf32>, vector<4x15xf32> -> vector<4x512xf32>
    %158 = vector.extract_strided_slice %3 {offsets = [6, 0], sizes = [1, 512], strides = [1, 1]} : vector<9x512xf32> to vector<1x512xf32>
    %159 = vector.broadcast %158 : vector<1x512xf32> to vector<4x512xf32>
    %160 = arith.mulf %157, %159 : vector<4x512xf32>
    %161 = vector.extract_strided_slice %124 {offsets = [0, 16], sizes = [4, 496], strides = [1, 1]} : vector<4x512xf32> to vector<4x496xf32>
    %162 = vector.extract_strided_slice %124 {offsets = [0, 0], sizes = [4, 16], strides = [1, 1]} : vector<4x512xf32> to vector<4x16xf32>
    %163 = tpu.concatenate %161, %162 in 1 : vector<4x496xf32>, vector<4x16xf32> -> vector<4x512xf32>
    %164 = vector.extract_strided_slice %3 {offsets = [7, 0], sizes = [1, 512], strides = [1, 1]} : vector<9x512xf32> to vector<1x512xf32>
    %165 = vector.broadcast %164 : vector<1x512xf32> to vector<4x512xf32>
    %166 = arith.mulf %163, %165 : vector<4x512xf32>
    %167 = vector.extract_strided_slice %124 {offsets = [0, 17], sizes = [4, 495], strides = [1, 1]} : vector<4x512xf32> to vector<4x495xf32>
    %168 = vector.extract_strided_slice %124 {offsets = [0, 0], sizes = [4, 17], strides = [1, 1]} : vector<4x512xf32> to vector<4x17xf32>
    %169 = tpu.concatenate %167, %168 in 1 : vector<4x495xf32>, vector<4x17xf32> -> vector<4x512xf32>
    %170 = vector.extract_strided_slice %3 {offsets = [8, 0], sizes = [1, 512], strides = [1, 1]} : vector<9x512xf32> to vector<1x512xf32>
    %171 = vector.broadcast %170 : vector<1x512xf32> to vector<4x512xf32>
    %172 = arith.mulf %169, %171 : vector<4x512xf32>
    %173 = tpu.concatenate %130, %136, %142, %148, %124, %154, %160, %166, %172 in 0 : vector<4x512xf32>, vector<4x512xf32>, vector<4x512xf32>, vector<4x512xf32>, vector<4x512xf32>, vector<4x512xf32>, vector<4x512xf32>, vector<4x512xf32>, vector<4x512xf32> -> vector<36x512xf32>
    %cst_17 = arith.constant dense<0.000000e+00> : vector<4x512xf32>
    %174 = tpu.matmul %6, %173, %cst_17 {dimension_numbers = #tpu.dot_dimension_numbers<[1], [0], [0], [1], [0, 0, 1, 1], [], []>} : vector<4x36xf32>, vector<36x512xf32>, vector<4x512xf32> -> vector<4x512xf32>
    %175 = arith.addf %123, %174 : vector<4x512xf32>
    %176 = math.tanh %175 : vector<4x512xf32>
    %cst_18 = arith.constant 1.000000e+00 : f32
    %177 = vector.broadcast %cst_18 : f32 to vector<4x512xf32>
    %178 = arith.subf %177, %122 : vector<4x512xf32>
    %179 = arith.mulf %178, %11 : vector<4x512xf32>
    %180 = arith.mulf %122, %176 : vector<4x512xf32>
    %181 = arith.addf %179, %180 : vector<4x512xf32>
    %c0_19 = arith.constant 0 : index
    %c0_20 = arith.constant 0 : index
    %182 = vector.load %arg10[%c0_19, %c0_20] : memref<4x512xf32, #tpu.memory_space<vmem>>, vector<4x512xf32>
    tpu.vector_store %arg10[%c0_19, %c0_20], %181 {strides = array<i32>} : memref<4x512xf32, #tpu.memory_space<vmem>>, vector<4x512xf32>,
    %183 = arith.index_cast %c0_i32_10 : i32 to index
    %c0_21 = arith.constant 0 : index
    %c0_22 = arith.constant 0 : index
    %184 = vector.load %arg8[%183, %c0_21, %c0_22] : memref<4x4x512xf32, #tpu.memory_space<vmem>>, vector<1x4x512xf32>
    %185 = vector.shape_cast %184 : vector<1x4x512xf32> to vector<4x512xf32>
    %186 = vector.shape_cast %181 : vector<4x512xf32> to vector<1x4x512xf32>
    tpu.vector_store %arg8[%183, %c0_21, %c0_22], %186 {strides = array<i32>} : memref<4x4x512xf32, #tpu.memory_space<vmem>>, vector<1x4x512xf32>,
    %c1_i32 = arith.constant 1 : i32
    %187 = arith.index_cast %c1_i32 : i32 to index
    %c0_23 = arith.constant 0 : index
    %c0_24 = arith.constant 0 : index
    %188 = vector.load %arg1[%187, %c0_23, %c0_24] : memref<4x4x512xf32, #tpu.memory_space<vmem>>, vector<1x4x512xf32>
    %189 = vector.shape_cast %188 : vector<1x4x512xf32> to vector<4x512xf32>
    %c0_25 = arith.constant 0 : index
    %c0_26 = arith.constant 0 : index
    %190 = vector.load %arg10[%c0_25, %c0_26] : memref<4x512xf32, #tpu.memory_space<vmem>>, vector<4x512xf32>
    %191 = vector.extract_strided_slice %189 {offsets = [0, 495], sizes = [4, 17], strides = [1, 1]} : vector<4x512xf32> to vector<4x17xf32>
    %192 = vector.extract_strided_slice %189 {offsets = [0, 0], sizes = [4, 495], strides = [1, 1]} : vector<4x512xf32> to vector<4x495xf32>
    %193 = tpu.concatenate %191, %192 in 1 : vector<4x17xf32>, vector<4x495xf32> -> vector<4x512xf32>
    %194 = vector.extract_strided_slice %3 {offsets = [0, 0], sizes = [1, 512], strides = [1, 1]} : vector<9x512xf32> to vector<1x512xf32>
    %195 = vector.broadcast %194 : vector<1x512xf32> to vector<4x512xf32>
    %196 = arith.mulf %193, %195 : vector<4x512xf32>
    %197 = vector.extract_strided_slice %189 {offsets = [0, 496], sizes = [4, 16], strides = [1, 1]} : vector<4x512xf32> to vector<4x16xf32>
    %198 = vector.extract_strided_slice %189 {offsets = [0, 0], sizes = [4, 496], strides = [1, 1]} : vector<4x512xf32> to vector<4x496xf32>
    %199 = tpu.concatenate %197, %198 in 1 : vector<4x16xf32>, vector<4x496xf32> -> vector<4x512xf32>
    %200 = vector.extract_strided_slice %3 {offsets = [1, 0], sizes = [1, 512], strides = [1, 1]} : vector<9x512xf32> to vector<1x512xf32>
    %201 = vector.broadcast %200 : vector<1x512xf32> to vector<4x512xf32>
    %202 = arith.mulf %199, %201 : vector<4x512xf32>
    %203 = vector.extract_strided_slice %189 {offsets = [0, 497], sizes = [4, 15], strides = [1, 1]} : vector<4x512xf32> to vector<4x15xf32>
    %204 = vector.extract_strided_slice %189 {offsets = [0, 0], sizes = [4, 497], strides = [1, 1]} : vector<4x512xf32> to vector<4x497xf32>
    %205 = tpu.concatenate %203, %204 in 1 : vector<4x15xf32>, vector<4x497xf32> -> vector<4x512xf32>
    %206 = vector.extract_strided_slice %3 {offsets = [2, 0], sizes = [1, 512], strides = [1, 1]} : vector<9x512xf32> to vector<1x512xf32>
    %207 = vector.broadcast %206 : vector<1x512xf32> to vector<4x512xf32>
    %208 = arith.mulf %205, %207 : vector<4x512xf32>
    %209 = vector.extract_strided_slice %189 {offsets = [0, 511], sizes = [4, 1], strides = [1, 1]} : vector<4x512xf32> to vector<4x1xf32>
    %210 = vector.extract_strided_slice %189 {offsets = [0, 0], sizes = [4, 511], strides = [1, 1]} : vector<4x512xf32> to vector<4x511xf32>
    %211 = tpu.concatenate %209, %210 in 1 : vector<4x1xf32>, vector<4x511xf32> -> vector<4x512xf32>
    %212 = vector.extract_strided_slice %3 {offsets = [3, 0], sizes = [1, 512], strides = [1, 1]} : vector<9x512xf32> to vector<1x512xf32>
    %213 = vector.broadcast %212 : vector<1x512xf32> to vector<4x512xf32>
    %214 = arith.mulf %211, %213 : vector<4x512xf32>
    %215 = vector.extract_strided_slice %189 {offsets = [0, 1], sizes = [4, 511], strides = [1, 1]} : vector<4x512xf32> to vector<4x511xf32>
    %216 = vector.extract_strided_slice %189 {offsets = [0, 0], sizes = [4, 1], strides = [1, 1]} : vector<4x512xf32> to vector<4x1xf32>
    %217 = tpu.concatenate %215, %216 in 1 : vector<4x511xf32>, vector<4x1xf32> -> vector<4x512xf32>
    %218 = vector.extract_strided_slice %3 {offsets = [5, 0], sizes = [1, 512], strides = [1, 1]} : vector<9x512xf32> to vector<1x512xf32>
    %219 = vector.broadcast %218 : vector<1x512xf32> to vector<4x512xf32>
    %220 = arith.mulf %217, %219 : vector<4x512xf32>
    %221 = vector.extract_strided_slice %189 {offsets = [0, 15], sizes = [4, 497], strides = [1, 1]} : vector<4x512xf32> to vector<4x497xf32>
    %222 = vector.extract_strided_slice %189 {offsets = [0, 0], sizes = [4, 15], strides = [1, 1]} : vector<4x512xf32> to vector<4x15xf32>
    %223 = tpu.concatenate %221, %222 in 1 : vector<4x497xf32>, vector<4x15xf32> -> vector<4x512xf32>
    %224 = vector.extract_strided_slice %3 {offsets = [6, 0], sizes = [1, 512], strides = [1, 1]} : vector<9x512xf32> to vector<1x512xf32>
    %225 = vector.broadcast %224 : vector<1x512xf32> to vector<4x512xf32>
    %226 = arith.mulf %223, %225 : vector<4x512xf32>
    %227 = vector.extract_strided_slice %189 {offsets = [0, 16], sizes = [4, 496], strides = [1, 1]} : vector<4x512xf32> to vector<4x496xf32>
    %228 = vector.extract_strided_slice %189 {offsets = [0, 0], sizes = [4, 16], strides = [1, 1]} : vector<4x512xf32> to vector<4x16xf32>
    %229 = tpu.concatenate %227, %228 in 1 : vector<4x496xf32>, vector<4x16xf32> -> vector<4x512xf32>
    %230 = vector.extract_strided_slice %3 {offsets = [7, 0], sizes = [1, 512], strides = [1, 1]} : vector<9x512xf32> to vector<1x512xf32>
    %231 = vector.broadcast %230 : vector<1x512xf32> to vector<4x512xf32>
    %232 = arith.mulf %229, %231 : vector<4x512xf32>
    %233 = vector.extract_strided_slice %189 {offsets = [0, 17], sizes = [4, 495], strides = [1, 1]} : vector<4x512xf32> to vector<4x495xf32>
    %234 = vector.extract_strided_slice %189 {offsets = [0, 0], sizes = [4, 17], strides = [1, 1]} : vector<4x512xf32> to vector<4x17xf32>
    %235 = tpu.concatenate %233, %234 in 1 : vector<4x495xf32>, vector<4x17xf32> -> vector<4x512xf32>
    %236 = vector.extract_strided_slice %3 {offsets = [8, 0], sizes = [1, 512], strides = [1, 1]} : vector<9x512xf32> to vector<1x512xf32>
    %237 = vector.broadcast %236 : vector<1x512xf32> to vector<4x512xf32>
    %238 = arith.mulf %235, %237 : vector<4x512xf32>
    %239 = tpu.concatenate %196, %202, %208, %214, %189, %220, %226, %232, %238 in 0 : vector<4x512xf32>, vector<4x512xf32>, vector<4x512xf32>, vector<4x512xf32>, vector<4x512xf32>, vector<4x512xf32>, vector<4x512xf32>, vector<4x512xf32>, vector<4x512xf32> -> vector<36x512xf32>
    %cst_27 = arith.constant dense<0.000000e+00> : vector<12x512xf32>
    %240 = tpu.matmul %4, %239, %cst_27 {dimension_numbers = #tpu.dot_dimension_numbers<[1], [0], [0], [1], [0, 0, 1, 1], [], []>} : vector<12x36xf32>, vector<36x512xf32>, vector<12x512xf32> -> vector<12x512xf32>
    %241 = vector.broadcast %7 : vector<12x1xf32> to vector<12x512xf32>
    %242 = arith.addf %240, %241 : vector<12x512xf32>
    %243 = vector.extract_strided_slice %242 {offsets = [0, 0], sizes = [8, 512], strides = [1, 1]} : vector<12x512xf32> to vector<8x512xf32>
    %244 = vector.extract_strided_slice %190 {offsets = [0, 495], sizes = [4, 17], strides = [1, 1]} : vector<4x512xf32> to vector<4x17xf32>
    %245 = vector.extract_strided_slice %190 {offsets = [0, 0], sizes = [4, 495], strides = [1, 1]} : vector<4x512xf32> to vector<4x495xf32>
    %246 = tpu.concatenate %244, %245 in 1 : vector<4x17xf32>, vector<4x495xf32> -> vector<4x512xf32>
    %247 = vector.extract_strided_slice %3 {offsets = [0, 0], sizes = [1, 512], strides = [1, 1]} : vector<9x512xf32> to vector<1x512xf32>
    %248 = vector.broadcast %247 : vector<1x512xf32> to vector<4x512xf32>
    %249 = arith.mulf %246, %248 : vector<4x512xf32>
    %250 = vector.extract_strided_slice %190 {offsets = [0, 496], sizes = [4, 16], strides = [1, 1]} : vector<4x512xf32> to vector<4x16xf32>
    %251 = vector.extract_strided_slice %190 {offsets = [0, 0], sizes = [4, 496], strides = [1, 1]} : vector<4x512xf32> to vector<4x496xf32>
    %252 = tpu.concatenate %250, %251 in 1 : vector<4x16xf32>, vector<4x496xf32> -> vector<4x512xf32>
    %253 = vector.extract_strided_slice %3 {offsets = [1, 0], sizes = [1, 512], strides = [1, 1]} : vector<9x512xf32> to vector<1x512xf32>
    %254 = vector.broadcast %253 : vector<1x512xf32> to vector<4x512xf32>
    %255 = arith.mulf %252, %254 : vector<4x512xf32>
    %256 = vector.extract_strided_slice %190 {offsets = [0, 497], sizes = [4, 15], strides = [1, 1]} : vector<4x512xf32> to vector<4x15xf32>
    %257 = vector.extract_strided_slice %190 {offsets = [0, 0], sizes = [4, 497], strides = [1, 1]} : vector<4x512xf32> to vector<4x497xf32>
    %258 = tpu.concatenate %256, %257 in 1 : vector<4x15xf32>, vector<4x497xf32> -> vector<4x512xf32>
    %259 = vector.extract_strided_slice %3 {offsets = [2, 0], sizes = [1, 512], strides = [1, 1]} : vector<9x512xf32> to vector<1x512xf32>
    %260 = vector.broadcast %259 : vector<1x512xf32> to vector<4x512xf32>
    %261 = arith.mulf %258, %260 : vector<4x512xf32>
    %262 = vector.extract_strided_slice %190 {offsets = [0, 511], sizes = [4, 1], strides = [1, 1]} : vector<4x512xf32> to vector<4x1xf32>
    %263 = vector.extract_strided_slice %190 {offsets = [0, 0], sizes = [4, 511], strides = [1, 1]} : vector<4x512xf32> to vector<4x511xf32>
    %264 = tpu.concatenate %262, %263 in 1 : vector<4x1xf32>, vector<4x511xf32> -> vector<4x512xf32>
    %265 = vector.extract_strided_slice %3 {offsets = [3, 0], sizes = [1, 512], strides = [1, 1]} : vector<9x512xf32> to vector<1x512xf32>
    %266 = vector.broadcast %265 : vector<1x512xf32> to vector<4x512xf32>
    %267 = arith.mulf %264, %266 : vector<4x512xf32>
    %268 = vector.extract_strided_slice %190 {offsets = [0, 1], sizes = [4, 511], strides = [1, 1]} : vector<4x512xf32> to vector<4x511xf32>
    %269 = vector.extract_strided_slice %190 {offsets = [0, 0], sizes = [4, 1], strides = [1, 1]} : vector<4x512xf32> to vector<4x1xf32>
    %270 = tpu.concatenate %268, %269 in 1 : vector<4x511xf32>, vector<4x1xf32> -> vector<4x512xf32>
    %271 = vector.extract_strided_slice %3 {offsets = [5, 0], sizes = [1, 512], strides = [1, 1]} : vector<9x512xf32> to vector<1x512xf32>
    %272 = vector.broadcast %271 : vector<1x512xf32> to vector<4x512xf32>
    %273 = arith.mulf %270, %272 : vector<4x512xf32>
    %274 = vector.extract_strided_slice %190 {offsets = [0, 15], sizes = [4, 497], strides = [1, 1]} : vector<4x512xf32> to vector<4x497xf32>
    %275 = vector.extract_strided_slice %190 {offsets = [0, 0], sizes = [4, 15], strides = [1, 1]} : vector<4x512xf32> to vector<4x15xf32>
    %276 = tpu.concatenate %274, %275 in 1 : vector<4x497xf32>, vector<4x15xf32> -> vector<4x512xf32>
    %277 = vector.extract_strided_slice %3 {offsets = [6, 0], sizes = [1, 512], strides = [1, 1]} : vector<9x512xf32> to vector<1x512xf32>
    %278 = vector.broadcast %277 : vector<1x512xf32> to vector<4x512xf32>
    %279 = arith.mulf %276, %278 : vector<4x512xf32>
    %280 = vector.extract_strided_slice %190 {offsets = [0, 16], sizes = [4, 496], strides = [1, 1]} : vector<4x512xf32> to vector<4x496xf32>
    %281 = vector.extract_strided_slice %190 {offsets = [0, 0], sizes = [4, 16], strides = [1, 1]} : vector<4x512xf32> to vector<4x16xf32>
    %282 = tpu.concatenate %280, %281 in 1 : vector<4x496xf32>, vector<4x16xf32> -> vector<4x512xf32>
    %283 = vector.extract_strided_slice %3 {offsets = [7, 0], sizes = [1, 512], strides = [1, 1]} : vector<9x512xf32> to vector<1x512xf32>
    %284 = vector.broadcast %283 : vector<1x512xf32> to vector<4x512xf32>
    %285 = arith.mulf %282, %284 : vector<4x512xf32>
    %286 = vector.extract_strided_slice %190 {offsets = [0, 17], sizes = [4, 495], strides = [1, 1]} : vector<4x512xf32> to vector<4x495xf32>
    %287 = vector.extract_strided_slice %190 {offsets = [0, 0], sizes = [4, 17], strides = [1, 1]} : vector<4x512xf32> to vector<4x17xf32>
    %288 = tpu.concatenate %286, %287 in 1 : vector<4x495xf32>, vector<4x17xf32> -> vector<4x512xf32>
    %289 = vector.extract_strided_slice %3 {offsets = [8, 0], sizes = [1, 512], strides = [1, 1]} : vector<9x512xf32> to vector<1x512xf32>
    %290 = vector.broadcast %289 : vector<1x512xf32> to vector<4x512xf32>
    %291 = arith.mulf %288, %290 : vector<4x512xf32>
    %292 = tpu.concatenate %249, %255, %261, %267, %190, %273, %279, %285, %291 in 0 : vector<4x512xf32>, vector<4x512xf32>, vector<4x512xf32>, vector<4x512xf32>, vector<4x512xf32>, vector<4x512xf32>, vector<4x512xf32>, vector<4x512xf32>, vector<4x512xf32> -> vector<36x512xf32>
    %cst_28 = arith.constant dense<0.000000e+00> : vector<8x512xf32>
    %293 = tpu.matmul %5, %292, %cst_28 {dimension_numbers = #tpu.dot_dimension_numbers<[1], [0], [0], [1], [0, 0, 1, 1], [], []>} : vector<8x36xf32>, vector<36x512xf32>, vector<8x512xf32> -> vector<8x512xf32>
    %294 = arith.addf %243, %293 : vector<8x512xf32>
    %295 = arith.negf %294 : vector<8x512xf32>
    %296 = math.exp %295 : vector<8x512xf32>
    %cst_29 = arith.constant 1.000000e+00 : f32
    %297 = vector.broadcast %cst_29 : f32 to vector<8x512xf32>
    %298 = arith.addf %297, %296 : vector<8x512xf32>
    %299 = arith.divf %297, %298 : vector<8x512xf32>
    %300 = vector.extract_strided_slice %299 {offsets = [0, 0], sizes = [4, 512], strides = [1, 1]} : vector<8x512xf32> to vector<4x512xf32>
    %301 = vector.extract_strided_slice %299 {offsets = [4, 0], sizes = [4, 512], strides = [1, 1]} : vector<8x512xf32> to vector<4x512xf32>
    %302 = vector.extract_strided_slice %242 {offsets = [8, 0], sizes = [4, 512], strides = [1, 1]} : vector<12x512xf32> to vector<4x512xf32>
    %303 = arith.mulf %300, %190 : vector<4x512xf32>
    %304 = vector.extract_strided_slice %303 {offsets = [0, 495], sizes = [4, 17], strides = [1, 1]} : vector<4x512xf32> to vector<4x17xf32>
    %305 = vector.extract_strided_slice %303 {offsets = [0, 0], sizes = [4, 495], strides = [1, 1]} : vector<4x512xf32> to vector<4x495xf32>
    %306 = tpu.concatenate %304, %305 in 1 : vector<4x17xf32>, vector<4x495xf32> -> vector<4x512xf32>
    %307 = vector.extract_strided_slice %3 {offsets = [0, 0], sizes = [1, 512], strides = [1, 1]} : vector<9x512xf32> to vector<1x512xf32>
    %308 = vector.broadcast %307 : vector<1x512xf32> to vector<4x512xf32>
    %309 = arith.mulf %306, %308 : vector<4x512xf32>
    %310 = vector.extract_strided_slice %303 {offsets = [0, 496], sizes = [4, 16], strides = [1, 1]} : vector<4x512xf32> to vector<4x16xf32>
    %311 = vector.extract_strided_slice %303 {offsets = [0, 0], sizes = [4, 496], strides = [1, 1]} : vector<4x512xf32> to vector<4x496xf32>
    %312 = tpu.concatenate %310, %311 in 1 : vector<4x16xf32>, vector<4x496xf32> -> vector<4x512xf32>
    %313 = vector.extract_strided_slice %3 {offsets = [1, 0], sizes = [1, 512], strides = [1, 1]} : vector<9x512xf32> to vector<1x512xf32>
    %314 = vector.broadcast %313 : vector<1x512xf32> to vector<4x512xf32>
    %315 = arith.mulf %312, %314 : vector<4x512xf32>
    %316 = vector.extract_strided_slice %303 {offsets = [0, 497], sizes = [4, 15], strides = [1, 1]} : vector<4x512xf32> to vector<4x15xf32>
    %317 = vector.extract_strided_slice %303 {offsets = [0, 0], sizes = [4, 497], strides = [1, 1]} : vector<4x512xf32> to vector<4x497xf32>
    %318 = tpu.concatenate %316, %317 in 1 : vector<4x15xf32>, vector<4x497xf32> -> vector<4x512xf32>
    %319 = vector.extract_strided_slice %3 {offsets = [2, 0], sizes = [1, 512], strides = [1, 1]} : vector<9x512xf32> to vector<1x512xf32>
    %320 = vector.broadcast %319 : vector<1x512xf32> to vector<4x512xf32>
    %321 = arith.mulf %318, %320 : vector<4x512xf32>
    %322 = vector.extract_strided_slice %303 {offsets = [0, 511], sizes = [4, 1], strides = [1, 1]} : vector<4x512xf32> to vector<4x1xf32>
    %323 = vector.extract_strided_slice %303 {offsets = [0, 0], sizes = [4, 511], strides = [1, 1]} : vector<4x512xf32> to vector<4x511xf32>
    %324 = tpu.concatenate %322, %323 in 1 : vector<4x1xf32>, vector<4x511xf32> -> vector<4x512xf32>
    %325 = vector.extract_strided_slice %3 {offsets = [3, 0], sizes = [1, 512], strides = [1, 1]} : vector<9x512xf32> to vector<1x512xf32>
    %326 = vector.broadcast %325 : vector<1x512xf32> to vector<4x512xf32>
    %327 = arith.mulf %324, %326 : vector<4x512xf32>
    %328 = vector.extract_strided_slice %303 {offsets = [0, 1], sizes = [4, 511], strides = [1, 1]} : vector<4x512xf32> to vector<4x511xf32>
    %329 = vector.extract_strided_slice %303 {offsets = [0, 0], sizes = [4, 1], strides = [1, 1]} : vector<4x512xf32> to vector<4x1xf32>
    %330 = tpu.concatenate %328, %329 in 1 : vector<4x511xf32>, vector<4x1xf32> -> vector<4x512xf32>
    %331 = vector.extract_strided_slice %3 {offsets = [5, 0], sizes = [1, 512], strides = [1, 1]} : vector<9x512xf32> to vector<1x512xf32>
    %332 = vector.broadcast %331 : vector<1x512xf32> to vector<4x512xf32>
    %333 = arith.mulf %330, %332 : vector<4x512xf32>
    %334 = vector.extract_strided_slice %303 {offsets = [0, 15], sizes = [4, 497], strides = [1, 1]} : vector<4x512xf32> to vector<4x497xf32>
    %335 = vector.extract_strided_slice %303 {offsets = [0, 0], sizes = [4, 15], strides = [1, 1]} : vector<4x512xf32> to vector<4x15xf32>
    %336 = tpu.concatenate %334, %335 in 1 : vector<4x497xf32>, vector<4x15xf32> -> vector<4x512xf32>
    %337 = vector.extract_strided_slice %3 {offsets = [6, 0], sizes = [1, 512], strides = [1, 1]} : vector<9x512xf32> to vector<1x512xf32>
    %338 = vector.broadcast %337 : vector<1x512xf32> to vector<4x512xf32>
    %339 = arith.mulf %336, %338 : vector<4x512xf32>
    %340 = vector.extract_strided_slice %303 {offsets = [0, 16], sizes = [4, 496], strides = [1, 1]} : vector<4x512xf32> to vector<4x496xf32>
    %341 = vector.extract_strided_slice %303 {offsets = [0, 0], sizes = [4, 16], strides = [1, 1]} : vector<4x512xf32> to vector<4x16xf32>
    %342 = tpu.concatenate %340, %341 in 1 : vector<4x496xf32>, vector<4x16xf32> -> vector<4x512xf32>
    %343 = vector.extract_strided_slice %3 {offsets = [7, 0], sizes = [1, 512], strides = [1, 1]} : vector<9x512xf32> to vector<1x512xf32>
    %344 = vector.broadcast %343 : vector<1x512xf32> to vector<4x512xf32>
    %345 = arith.mulf %342, %344 : vector<4x512xf32>
    %346 = vector.extract_strided_slice %303 {offsets = [0, 17], sizes = [4, 495], strides = [1, 1]} : vector<4x512xf32> to vector<4x495xf32>
    %347 = vector.extract_strided_slice %303 {offsets = [0, 0], sizes = [4, 17], strides = [1, 1]} : vector<4x512xf32> to vector<4x17xf32>
    %348 = tpu.concatenate %346, %347 in 1 : vector<4x495xf32>, vector<4x17xf32> -> vector<4x512xf32>
    %349 = vector.extract_strided_slice %3 {offsets = [8, 0], sizes = [1, 512], strides = [1, 1]} : vector<9x512xf32> to vector<1x512xf32>
    %350 = vector.broadcast %349 : vector<1x512xf32> to vector<4x512xf32>
    %351 = arith.mulf %348, %350 : vector<4x512xf32>
    %352 = tpu.concatenate %309, %315, %321, %327, %303, %333, %339, %345, %351 in 0 : vector<4x512xf32>, vector<4x512xf32>, vector<4x512xf32>, vector<4x512xf32>, vector<4x512xf32>, vector<4x512xf32>, vector<4x512xf32>, vector<4x512xf32>, vector<4x512xf32> -> vector<36x512xf32>
    %cst_30 = arith.constant dense<0.000000e+00> : vector<4x512xf32>
    %353 = tpu.matmul %6, %352, %cst_30 {dimension_numbers = #tpu.dot_dimension_numbers<[1], [0], [0], [1], [0, 0, 1, 1], [], []>} : vector<4x36xf32>, vector<36x512xf32>, vector<4x512xf32> -> vector<4x512xf32>
    %354 = arith.addf %302, %353 : vector<4x512xf32>
    %355 = math.tanh %354 : vector<4x512xf32>
    %cst_31 = arith.constant 1.000000e+00 : f32
    %356 = vector.broadcast %cst_31 : f32 to vector<4x512xf32>
    %357 = arith.subf %356, %301 : vector<4x512xf32>
    %358 = arith.mulf %357, %190 : vector<4x512xf32>
    %359 = arith.mulf %301, %355 : vector<4x512xf32>
    %360 = arith.addf %358, %359 : vector<4x512xf32>
    %c0_32 = arith.constant 0 : index
    %c0_33 = arith.constant 0 : index
    %361 = vector.load %arg10[%c0_32, %c0_33] : memref<4x512xf32, #tpu.memory_space<vmem>>, vector<4x512xf32>
    tpu.vector_store %arg10[%c0_32, %c0_33], %360 {strides = array<i32>} : memref<4x512xf32, #tpu.memory_space<vmem>>, vector<4x512xf32>,
    %362 = arith.index_cast %c1_i32 : i32 to index
    %c0_34 = arith.constant 0 : index
    %c0_35 = arith.constant 0 : index
    %363 = vector.load %arg8[%362, %c0_34, %c0_35] : memref<4x4x512xf32, #tpu.memory_space<vmem>>, vector<1x4x512xf32>
    %364 = vector.shape_cast %363 : vector<1x4x512xf32> to vector<4x512xf32>
    %365 = vector.shape_cast %360 : vector<4x512xf32> to vector<1x4x512xf32>
    tpu.vector_store %arg8[%362, %c0_34, %c0_35], %365 {strides = array<i32>} : memref<4x4x512xf32, #tpu.memory_space<vmem>>, vector<1x4x512xf32>,
    %c2_i32 = arith.constant 2 : i32
    %366 = arith.index_cast %c2_i32 : i32 to index
    %c0_36 = arith.constant 0 : index
    %c0_37 = arith.constant 0 : index
    %367 = vector.load %arg1[%366, %c0_36, %c0_37] : memref<4x4x512xf32, #tpu.memory_space<vmem>>, vector<1x4x512xf32>
    %368 = vector.shape_cast %367 : vector<1x4x512xf32> to vector<4x512xf32>
    %c0_38 = arith.constant 0 : index
    %c0_39 = arith.constant 0 : index
    %369 = vector.load %arg10[%c0_38, %c0_39] : memref<4x512xf32, #tpu.memory_space<vmem>>, vector<4x512xf32>
    %370 = vector.extract_strided_slice %368 {offsets = [0, 495], sizes = [4, 17], strides = [1, 1]} : vector<4x512xf32> to vector<4x17xf32>
    %371 = vector.extract_strided_slice %368 {offsets = [0, 0], sizes = [4, 495], strides = [1, 1]} : vector<4x512xf32> to vector<4x495xf32>
    %372 = tpu.concatenate %370, %371 in 1 : vector<4x17xf32>, vector<4x495xf32> -> vector<4x512xf32>
    %373 = vector.extract_strided_slice %3 {offsets = [0, 0], sizes = [1, 512], strides = [1, 1]} : vector<9x512xf32> to vector<1x512xf32>
    %374 = vector.broadcast %373 : vector<1x512xf32> to vector<4x512xf32>
    %375 = arith.mulf %372, %374 : vector<4x512xf32>
    %376 = vector.extract_strided_slice %368 {offsets = [0, 496], sizes = [4, 16], strides = [1, 1]} : vector<4x512xf32> to vector<4x16xf32>
    %377 = vector.extract_strided_slice %368 {offsets = [0, 0], sizes = [4, 496], strides = [1, 1]} : vector<4x512xf32> to vector<4x496xf32>
    %378 = tpu.concatenate %376, %377 in 1 : vector<4x16xf32>, vector<4x496xf32> -> vector<4x512xf32>
    %379 = vector.extract_strided_slice %3 {offsets = [1, 0], sizes = [1, 512], strides = [1, 1]} : vector<9x512xf32> to vector<1x512xf32>
    %380 = vector.broadcast %379 : vector<1x512xf32> to vector<4x512xf32>
    %381 = arith.mulf %378, %380 : vector<4x512xf32>
    %382 = vector.extract_strided_slice %368 {offsets = [0, 497], sizes = [4, 15], strides = [1, 1]} : vector<4x512xf32> to vector<4x15xf32>
    %383 = vector.extract_strided_slice %368 {offsets = [0, 0], sizes = [4, 497], strides = [1, 1]} : vector<4x512xf32> to vector<4x497xf32>
    %384 = tpu.concatenate %382, %383 in 1 : vector<4x15xf32>, vector<4x497xf32> -> vector<4x512xf32>
    %385 = vector.extract_strided_slice %3 {offsets = [2, 0], sizes = [1, 512], strides = [1, 1]} : vector<9x512xf32> to vector<1x512xf32>
    %386 = vector.broadcast %385 : vector<1x512xf32> to vector<4x512xf32>
    %387 = arith.mulf %384, %386 : vector<4x512xf32>
    %388 = vector.extract_strided_slice %368 {offsets = [0, 511], sizes = [4, 1], strides = [1, 1]} : vector<4x512xf32> to vector<4x1xf32>
    %389 = vector.extract_strided_slice %368 {offsets = [0, 0], sizes = [4, 511], strides = [1, 1]} : vector<4x512xf32> to vector<4x511xf32>
    %390 = tpu.concatenate %388, %389 in 1 : vector<4x1xf32>, vector<4x511xf32> -> vector<4x512xf32>
    %391 = vector.extract_strided_slice %3 {offsets = [3, 0], sizes = [1, 512], strides = [1, 1]} : vector<9x512xf32> to vector<1x512xf32>
    %392 = vector.broadcast %391 : vector<1x512xf32> to vector<4x512xf32>
    %393 = arith.mulf %390, %392 : vector<4x512xf32>
    %394 = vector.extract_strided_slice %368 {offsets = [0, 1], sizes = [4, 511], strides = [1, 1]} : vector<4x512xf32> to vector<4x511xf32>
    %395 = vector.extract_strided_slice %368 {offsets = [0, 0], sizes = [4, 1], strides = [1, 1]} : vector<4x512xf32> to vector<4x1xf32>
    %396 = tpu.concatenate %394, %395 in 1 : vector<4x511xf32>, vector<4x1xf32> -> vector<4x512xf32>
    %397 = vector.extract_strided_slice %3 {offsets = [5, 0], sizes = [1, 512], strides = [1, 1]} : vector<9x512xf32> to vector<1x512xf32>
    %398 = vector.broadcast %397 : vector<1x512xf32> to vector<4x512xf32>
    %399 = arith.mulf %396, %398 : vector<4x512xf32>
    %400 = vector.extract_strided_slice %368 {offsets = [0, 15], sizes = [4, 497], strides = [1, 1]} : vector<4x512xf32> to vector<4x497xf32>
    %401 = vector.extract_strided_slice %368 {offsets = [0, 0], sizes = [4, 15], strides = [1, 1]} : vector<4x512xf32> to vector<4x15xf32>
    %402 = tpu.concatenate %400, %401 in 1 : vector<4x497xf32>, vector<4x15xf32> -> vector<4x512xf32>
    %403 = vector.extract_strided_slice %3 {offsets = [6, 0], sizes = [1, 512], strides = [1, 1]} : vector<9x512xf32> to vector<1x512xf32>
    %404 = vector.broadcast %403 : vector<1x512xf32> to vector<4x512xf32>
    %405 = arith.mulf %402, %404 : vector<4x512xf32>
    %406 = vector.extract_strided_slice %368 {offsets = [0, 16], sizes = [4, 496], strides = [1, 1]} : vector<4x512xf32> to vector<4x496xf32>
    %407 = vector.extract_strided_slice %368 {offsets = [0, 0], sizes = [4, 16], strides = [1, 1]} : vector<4x512xf32> to vector<4x16xf32>
    %408 = tpu.concatenate %406, %407 in 1 : vector<4x496xf32>, vector<4x16xf32> -> vector<4x512xf32>
    %409 = vector.extract_strided_slice %3 {offsets = [7, 0], sizes = [1, 512], strides = [1, 1]} : vector<9x512xf32> to vector<1x512xf32>
    %410 = vector.broadcast %409 : vector<1x512xf32> to vector<4x512xf32>
    %411 = arith.mulf %408, %410 : vector<4x512xf32>
    %412 = vector.extract_strided_slice %368 {offsets = [0, 17], sizes = [4, 495], strides = [1, 1]} : vector<4x512xf32> to vector<4x495xf32>
    %413 = vector.extract_strided_slice %368 {offsets = [0, 0], sizes = [4, 17], strides = [1, 1]} : vector<4x512xf32> to vector<4x17xf32>
    %414 = tpu.concatenate %412, %413 in 1 : vector<4x495xf32>, vector<4x17xf32> -> vector<4x512xf32>
    %415 = vector.extract_strided_slice %3 {offsets = [8, 0], sizes = [1, 512], strides = [1, 1]} : vector<9x512xf32> to vector<1x512xf32>
    %416 = vector.broadcast %415 : vector<1x512xf32> to vector<4x512xf32>
    %417 = arith.mulf %414, %416 : vector<4x512xf32>
    %418 = tpu.concatenate %375, %381, %387, %393, %368, %399, %405, %411, %417 in 0 : vector<4x512xf32>, vector<4x512xf32>, vector<4x512xf32>, vector<4x512xf32>, vector<4x512xf32>, vector<4x512xf32>, vector<4x512xf32>, vector<4x512xf32>, vector<4x512xf32> -> vector<36x512xf32>
    %cst_40 = arith.constant dense<0.000000e+00> : vector<12x512xf32>
    %419 = tpu.matmul %4, %418, %cst_40 {dimension_numbers = #tpu.dot_dimension_numbers<[1], [0], [0], [1], [0, 0, 1, 1], [], []>} : vector<12x36xf32>, vector<36x512xf32>, vector<12x512xf32> -> vector<12x512xf32>
    %420 = vector.broadcast %7 : vector<12x1xf32> to vector<12x512xf32>
    %421 = arith.addf %419, %420 : vector<12x512xf32>
    %422 = vector.extract_strided_slice %421 {offsets = [0, 0], sizes = [8, 512], strides = [1, 1]} : vector<12x512xf32> to vector<8x512xf32>
    %423 = vector.extract_strided_slice %369 {offsets = [0, 495], sizes = [4, 17], strides = [1, 1]} : vector<4x512xf32> to vector<4x17xf32>
    %424 = vector.extract_strided_slice %369 {offsets = [0, 0], sizes = [4, 495], strides = [1, 1]} : vector<4x512xf32> to vector<4x495xf32>
    %425 = tpu.concatenate %423, %424 in 1 : vector<4x17xf32>, vector<4x495xf32> -> vector<4x512xf32>
    %426 = vector.extract_strided_slice %3 {offsets = [0, 0], sizes = [1, 512], strides = [1, 1]} : vector<9x512xf32> to vector<1x512xf32>
    %427 = vector.broadcast %426 : vector<1x512xf32> to vector<4x512xf32>
    %428 = arith.mulf %425, %427 : vector<4x512xf32>
    %429 = vector.extract_strided_slice %369 {offsets = [0, 496], sizes = [4, 16], strides = [1, 1]} : vector<4x512xf32> to vector<4x16xf32>
    %430 = vector.extract_strided_slice %369 {offsets = [0, 0], sizes = [4, 496], strides = [1, 1]} : vector<4x512xf32> to vector<4x496xf32>
    %431 = tpu.concatenate %429, %430 in 1 : vector<4x16xf32>, vector<4x496xf32> -> vector<4x512xf32>
    %432 = vector.extract_strided_slice %3 {offsets = [1, 0], sizes = [1, 512], strides = [1, 1]} : vector<9x512xf32> to vector<1x512xf32>
    %433 = vector.broadcast %432 : vector<1x512xf32> to vector<4x512xf32>
    %434 = arith.mulf %431, %433 : vector<4x512xf32>
    %435 = vector.extract_strided_slice %369 {offsets = [0, 497], sizes = [4, 15], strides = [1, 1]} : vector<4x512xf32> to vector<4x15xf32>
    %436 = vector.extract_strided_slice %369 {offsets = [0, 0], sizes = [4, 497], strides = [1, 1]} : vector<4x512xf32> to vector<4x497xf32>
    %437 = tpu.concatenate %435, %436 in 1 : vector<4x15xf32>, vector<4x497xf32> -> vector<4x512xf32>
    %438 = vector.extract_strided_slice %3 {offsets = [2, 0], sizes = [1, 512], strides = [1, 1]} : vector<9x512xf32> to vector<1x512xf32>
    %439 = vector.broadcast %438 : vector<1x512xf32> to vector<4x512xf32>
    %440 = arith.mulf %437, %439 : vector<4x512xf32>
    %441 = vector.extract_strided_slice %369 {offsets = [0, 511], sizes = [4, 1], strides = [1, 1]} : vector<4x512xf32> to vector<4x1xf32>
    %442 = vector.extract_strided_slice %369 {offsets = [0, 0], sizes = [4, 511], strides = [1, 1]} : vector<4x512xf32> to vector<4x511xf32>
    %443 = tpu.concatenate %441, %442 in 1 : vector<4x1xf32>, vector<4x511xf32> -> vector<4x512xf32>
    %444 = vector.extract_strided_slice %3 {offsets = [3, 0], sizes = [1, 512], strides = [1, 1]} : vector<9x512xf32> to vector<1x512xf32>
    %445 = vector.broadcast %444 : vector<1x512xf32> to vector<4x512xf32>
    %446 = arith.mulf %443, %445 : vector<4x512xf32>
    %447 = vector.extract_strided_slice %369 {offsets = [0, 1], sizes = [4, 511], strides = [1, 1]} : vector<4x512xf32> to vector<4x511xf32>
    %448 = vector.extract_strided_slice %369 {offsets = [0, 0], sizes = [4, 1], strides = [1, 1]} : vector<4x512xf32> to vector<4x1xf32>
    %449 = tpu.concatenate %447, %448 in 1 : vector<4x511xf32>, vector<4x1xf32> -> vector<4x512xf32>
    %450 = vector.extract_strided_slice %3 {offsets = [5, 0], sizes = [1, 512], strides = [1, 1]} : vector<9x512xf32> to vector<1x512xf32>
    %451 = vector.broadcast %450 : vector<1x512xf32> to vector<4x512xf32>
    %452 = arith.mulf %449, %451 : vector<4x512xf32>
    %453 = vector.extract_strided_slice %369 {offsets = [0, 15], sizes = [4, 497], strides = [1, 1]} : vector<4x512xf32> to vector<4x497xf32>
    %454 = vector.extract_strided_slice %369 {offsets = [0, 0], sizes = [4, 15], strides = [1, 1]} : vector<4x512xf32> to vector<4x15xf32>
    %455 = tpu.concatenate %453, %454 in 1 : vector<4x497xf32>, vector<4x15xf32> -> vector<4x512xf32>
    %456 = vector.extract_strided_slice %3 {offsets = [6, 0], sizes = [1, 512], strides = [1, 1]} : vector<9x512xf32> to vector<1x512xf32>
    %457 = vector.broadcast %456 : vector<1x512xf32> to vector<4x512xf32>
    %458 = arith.mulf %455, %457 : vector<4x512xf32>
    %459 = vector.extract_strided_slice %369 {offsets = [0, 16], sizes = [4, 496], strides = [1, 1]} : vector<4x512xf32> to vector<4x496xf32>
    %460 = vector.extract_strided_slice %369 {offsets = [0, 0], sizes = [4, 16], strides = [1, 1]} : vector<4x512xf32> to vector<4x16xf32>
    %461 = tpu.concatenate %459, %460 in 1 : vector<4x496xf32>, vector<4x16xf32> -> vector<4x512xf32>
    %462 = vector.extract_strided_slice %3 {offsets = [7, 0], sizes = [1, 512], strides = [1, 1]} : vector<9x512xf32> to vector<1x512xf32>
    %463 = vector.broadcast %462 : vector<1x512xf32> to vector<4x512xf32>
    %464 = arith.mulf %461, %463 : vector<4x512xf32>
    %465 = vector.extract_strided_slice %369 {offsets = [0, 17], sizes = [4, 495], strides = [1, 1]} : vector<4x512xf32> to vector<4x495xf32>
    %466 = vector.extract_strided_slice %369 {offsets = [0, 0], sizes = [4, 17], strides = [1, 1]} : vector<4x512xf32> to vector<4x17xf32>
    %467 = tpu.concatenate %465, %466 in 1 : vector<4x495xf32>, vector<4x17xf32> -> vector<4x512xf32>
    %468 = vector.extract_strided_slice %3 {offsets = [8, 0], sizes = [1, 512], strides = [1, 1]} : vector<9x512xf32> to vector<1x512xf32>
    %469 = vector.broadcast %468 : vector<1x512xf32> to vector<4x512xf32>
    %470 = arith.mulf %467, %469 : vector<4x512xf32>
    %471 = tpu.concatenate %428, %434, %440, %446, %369, %452, %458, %464, %470 in 0 : vector<4x512xf32>, vector<4x512xf32>, vector<4x512xf32>, vector<4x512xf32>, vector<4x512xf32>, vector<4x512xf32>, vector<4x512xf32>, vector<4x512xf32>, vector<4x512xf32> -> vector<36x512xf32>
    %cst_41 = arith.constant dense<0.000000e+00> : vector<8x512xf32>
    %472 = tpu.matmul %5, %471, %cst_41 {dimension_numbers = #tpu.dot_dimension_numbers<[1], [0], [0], [1], [0, 0, 1, 1], [], []>} : vector<8x36xf32>, vector<36x512xf32>, vector<8x512xf32> -> vector<8x512xf32>
    %473 = arith.addf %422, %472 : vector<8x512xf32>
    %474 = arith.negf %473 : vector<8x512xf32>
    %475 = math.exp %474 : vector<8x512xf32>
    %cst_42 = arith.constant 1.000000e+00 : f32
    %476 = vector.broadcast %cst_42 : f32 to vector<8x512xf32>
    %477 = arith.addf %476, %475 : vector<8x512xf32>
    %478 = arith.divf %476, %477 : vector<8x512xf32>
    %479 = vector.extract_strided_slice %478 {offsets = [0, 0], sizes = [4, 512], strides = [1, 1]} : vector<8x512xf32> to vector<4x512xf32>
    %480 = vector.extract_strided_slice %478 {offsets = [4, 0], sizes = [4, 512], strides = [1, 1]} : vector<8x512xf32> to vector<4x512xf32>
    %481 = vector.extract_strided_slice %421 {offsets = [8, 0], sizes = [4, 512], strides = [1, 1]} : vector<12x512xf32> to vector<4x512xf32>
    %482 = arith.mulf %479, %369 : vector<4x512xf32>
    %483 = vector.extract_strided_slice %482 {offsets = [0, 495], sizes = [4, 17], strides = [1, 1]} : vector<4x512xf32> to vector<4x17xf32>
    %484 = vector.extract_strided_slice %482 {offsets = [0, 0], sizes = [4, 495], strides = [1, 1]} : vector<4x512xf32> to vector<4x495xf32>
    %485 = tpu.concatenate %483, %484 in 1 : vector<4x17xf32>, vector<4x495xf32> -> vector<4x512xf32>
    %486 = vector.extract_strided_slice %3 {offsets = [0, 0], sizes = [1, 512], strides = [1, 1]} : vector<9x512xf32> to vector<1x512xf32>
    %487 = vector.broadcast %486 : vector<1x512xf32> to vector<4x512xf32>
    %488 = arith.mulf %485, %487 : vector<4x512xf32>
    %489 = vector.extract_strided_slice %482 {offsets = [0, 496], sizes = [4, 16], strides = [1, 1]} : vector<4x512xf32> to vector<4x16xf32>
    %490 = vector.extract_strided_slice %482 {offsets = [0, 0], sizes = [4, 496], strides = [1, 1]} : vector<4x512xf32> to vector<4x496xf32>
    %491 = tpu.concatenate %489, %490 in 1 : vector<4x16xf32>, vector<4x496xf32> -> vector<4x512xf32>
    %492 = vector.extract_strided_slice %3 {offsets = [1, 0], sizes = [1, 512], strides = [1, 1]} : vector<9x512xf32> to vector<1x512xf32>
    %493 = vector.broadcast %492 : vector<1x512xf32> to vector<4x512xf32>
    %494 = arith.mulf %491, %493 : vector<4x512xf32>
    %495 = vector.extract_strided_slice %482 {offsets = [0, 497], sizes = [4, 15], strides = [1, 1]} : vector<4x512xf32> to vector<4x15xf32>
    %496 = vector.extract_strided_slice %482 {offsets = [0, 0], sizes = [4, 497], strides = [1, 1]} : vector<4x512xf32> to vector<4x497xf32>
    %497 = tpu.concatenate %495, %496 in 1 : vector<4x15xf32>, vector<4x497xf32> -> vector<4x512xf32>
    %498 = vector.extract_strided_slice %3 {offsets = [2, 0], sizes = [1, 512], strides = [1, 1]} : vector<9x512xf32> to vector<1x512xf32>
    %499 = vector.broadcast %498 : vector<1x512xf32> to vector<4x512xf32>
    %500 = arith.mulf %497, %499 : vector<4x512xf32>
    %501 = vector.extract_strided_slice %482 {offsets = [0, 511], sizes = [4, 1], strides = [1, 1]} : vector<4x512xf32> to vector<4x1xf32>
    %502 = vector.extract_strided_slice %482 {offsets = [0, 0], sizes = [4, 511], strides = [1, 1]} : vector<4x512xf32> to vector<4x511xf32>
    %503 = tpu.concatenate %501, %502 in 1 : vector<4x1xf32>, vector<4x511xf32> -> vector<4x512xf32>
    %504 = vector.extract_strided_slice %3 {offsets = [3, 0], sizes = [1, 512], strides = [1, 1]} : vector<9x512xf32> to vector<1x512xf32>
    %505 = vector.broadcast %504 : vector<1x512xf32> to vector<4x512xf32>
    %506 = arith.mulf %503, %505 : vector<4x512xf32>
    %507 = vector.extract_strided_slice %482 {offsets = [0, 1], sizes = [4, 511], strides = [1, 1]} : vector<4x512xf32> to vector<4x511xf32>
    %508 = vector.extract_strided_slice %482 {offsets = [0, 0], sizes = [4, 1], strides = [1, 1]} : vector<4x512xf32> to vector<4x1xf32>
    %509 = tpu.concatenate %507, %508 in 1 : vector<4x511xf32>, vector<4x1xf32> -> vector<4x512xf32>
    %510 = vector.extract_strided_slice %3 {offsets = [5, 0], sizes = [1, 512], strides = [1, 1]} : vector<9x512xf32> to vector<1x512xf32>
    %511 = vector.broadcast %510 : vector<1x512xf32> to vector<4x512xf32>
    %512 = arith.mulf %509, %511 : vector<4x512xf32>
    %513 = vector.extract_strided_slice %482 {offsets = [0, 15], sizes = [4, 497], strides = [1, 1]} : vector<4x512xf32> to vector<4x497xf32>
    %514 = vector.extract_strided_slice %482 {offsets = [0, 0], sizes = [4, 15], strides = [1, 1]} : vector<4x512xf32> to vector<4x15xf32>
    %515 = tpu.concatenate %513, %514 in 1 : vector<4x497xf32>, vector<4x15xf32> -> vector<4x512xf32>
    %516 = vector.extract_strided_slice %3 {offsets = [6, 0], sizes = [1, 512], strides = [1, 1]} : vector<9x512xf32> to vector<1x512xf32>
    %517 = vector.broadcast %516 : vector<1x512xf32> to vector<4x512xf32>
    %518 = arith.mulf %515, %517 : vector<4x512xf32>
    %519 = vector.extract_strided_slice %482 {offsets = [0, 16], sizes = [4, 496], strides = [1, 1]} : vector<4x512xf32> to vector<4x496xf32>
    %520 = vector.extract_strided_slice %482 {offsets = [0, 0], sizes = [4, 16], strides = [1, 1]} : vector<4x512xf32> to vector<4x16xf32>
    %521 = tpu.concatenate %519, %520 in 1 : vector<4x496xf32>, vector<4x16xf32> -> vector<4x512xf32>
    %522 = vector.extract_strided_slice %3 {offsets = [7, 0], sizes = [1, 512], strides = [1, 1]} : vector<9x512xf32> to vector<1x512xf32>
    %523 = vector.broadcast %522 : vector<1x512xf32> to vector<4x512xf32>
    %524 = arith.mulf %521, %523 : vector<4x512xf32>
    %525 = vector.extract_strided_slice %482 {offsets = [0, 17], sizes = [4, 495], strides = [1, 1]} : vector<4x512xf32> to vector<4x495xf32>
    %526 = vector.extract_strided_slice %482 {offsets = [0, 0], sizes = [4, 17], strides = [1, 1]} : vector<4x512xf32> to vector<4x17xf32>
    %527 = tpu.concatenate %525, %526 in 1 : vector<4x495xf32>, vector<4x17xf32> -> vector<4x512xf32>
    %528 = vector.extract_strided_slice %3 {offsets = [8, 0], sizes = [1, 512], strides = [1, 1]} : vector<9x512xf32> to vector<1x512xf32>
    %529 = vector.broadcast %528 : vector<1x512xf32> to vector<4x512xf32>
    %530 = arith.mulf %527, %529 : vector<4x512xf32>
    %531 = tpu.concatenate %488, %494, %500, %506, %482, %512, %518, %524, %530 in 0 : vector<4x512xf32>, vector<4x512xf32>, vector<4x512xf32>, vector<4x512xf32>, vector<4x512xf32>, vector<4x512xf32>, vector<4x512xf32>, vector<4x512xf32>, vector<4x512xf32> -> vector<36x512xf32>
    %cst_43 = arith.constant dense<0.000000e+00> : vector<4x512xf32>
    %532 = tpu.matmul %6, %531, %cst_43 {dimension_numbers = #tpu.dot_dimension_numbers<[1], [0], [0], [1], [0, 0, 1, 1], [], []>} : vector<4x36xf32>, vector<36x512xf32>, vector<4x512xf32> -> vector<4x512xf32>
    %533 = arith.addf %481, %532 : vector<4x512xf32>
    %534 = math.tanh %533 : vector<4x512xf32>
    %cst_44 = arith.constant 1.000000e+00 : f32
    %535 = vector.broadcast %cst_44 : f32 to vector<4x512xf32>
    %536 = arith.subf %535, %480 : vector<4x512xf32>
    %537 = arith.mulf %536, %369 : vector<4x512xf32>
    %538 = arith.mulf %480, %534 : vector<4x512xf32>
    %539 = arith.addf %537, %538 : vector<4x512xf32>
    %c0_45 = arith.constant 0 : index
    %c0_46 = arith.constant 0 : index
    %540 = vector.load %arg10[%c0_45, %c0_46] : memref<4x512xf32, #tpu.memory_space<vmem>>, vector<4x512xf32>
    tpu.vector_store %arg10[%c0_45, %c0_46], %539 {strides = array<i32>} : memref<4x512xf32, #tpu.memory_space<vmem>>, vector<4x512xf32>,
    %541 = arith.index_cast %c2_i32 : i32 to index
    %c0_47 = arith.constant 0 : index
    %c0_48 = arith.constant 0 : index
    %542 = vector.load %arg8[%541, %c0_47, %c0_48] : memref<4x4x512xf32, #tpu.memory_space<vmem>>, vector<1x4x512xf32>
    %543 = vector.shape_cast %542 : vector<1x4x512xf32> to vector<4x512xf32>
    %544 = vector.shape_cast %539 : vector<4x512xf32> to vector<1x4x512xf32>
    tpu.vector_store %arg8[%541, %c0_47, %c0_48], %544 {strides = array<i32>} : memref<4x4x512xf32, #tpu.memory_space<vmem>>, vector<1x4x512xf32>,
    %c3_i32 = arith.constant 3 : i32
    %545 = arith.index_cast %c3_i32 : i32 to index
    %c0_49 = arith.constant 0 : index
    %c0_50 = arith.constant 0 : index
    %546 = vector.load %arg1[%545, %c0_49, %c0_50] : memref<4x4x512xf32, #tpu.memory_space<vmem>>, vector<1x4x512xf32>
    %547 = vector.shape_cast %546 : vector<1x4x512xf32> to vector<4x512xf32>
    %c0_51 = arith.constant 0 : index
    %c0_52 = arith.constant 0 : index
    %548 = vector.load %arg10[%c0_51, %c0_52] : memref<4x512xf32, #tpu.memory_space<vmem>>, vector<4x512xf32>
    %549 = vector.extract_strided_slice %547 {offsets = [0, 495], sizes = [4, 17], strides = [1, 1]} : vector<4x512xf32> to vector<4x17xf32>
    %550 = vector.extract_strided_slice %547 {offsets = [0, 0], sizes = [4, 495], strides = [1, 1]} : vector<4x512xf32> to vector<4x495xf32>
    %551 = tpu.concatenate %549, %550 in 1 : vector<4x17xf32>, vector<4x495xf32> -> vector<4x512xf32>
    %552 = vector.extract_strided_slice %3 {offsets = [0, 0], sizes = [1, 512], strides = [1, 1]} : vector<9x512xf32> to vector<1x512xf32>
    %553 = vector.broadcast %552 : vector<1x512xf32> to vector<4x512xf32>
    %554 = arith.mulf %551, %553 : vector<4x512xf32>
    %555 = vector.extract_strided_slice %547 {offsets = [0, 496], sizes = [4, 16], strides = [1, 1]} : vector<4x512xf32> to vector<4x16xf32>
    %556 = vector.extract_strided_slice %547 {offsets = [0, 0], sizes = [4, 496], strides = [1, 1]} : vector<4x512xf32> to vector<4x496xf32>
    %557 = tpu.concatenate %555, %556 in 1 : vector<4x16xf32>, vector<4x496xf32> -> vector<4x512xf32>
    %558 = vector.extract_strided_slice %3 {offsets = [1, 0], sizes = [1, 512], strides = [1, 1]} : vector<9x512xf32> to vector<1x512xf32>
    %559 = vector.broadcast %558 : vector<1x512xf32> to vector<4x512xf32>
    %560 = arith.mulf %557, %559 : vector<4x512xf32>
    %561 = vector.extract_strided_slice %547 {offsets = [0, 497], sizes = [4, 15], strides = [1, 1]} : vector<4x512xf32> to vector<4x15xf32>
    %562 = vector.extract_strided_slice %547 {offsets = [0, 0], sizes = [4, 497], strides = [1, 1]} : vector<4x512xf32> to vector<4x497xf32>
    %563 = tpu.concatenate %561, %562 in 1 : vector<4x15xf32>, vector<4x497xf32> -> vector<4x512xf32>
    %564 = vector.extract_strided_slice %3 {offsets = [2, 0], sizes = [1, 512], strides = [1, 1]} : vector<9x512xf32> to vector<1x512xf32>
    %565 = vector.broadcast %564 : vector<1x512xf32> to vector<4x512xf32>
    %566 = arith.mulf %563, %565 : vector<4x512xf32>
    %567 = vector.extract_strided_slice %547 {offsets = [0, 511], sizes = [4, 1], strides = [1, 1]} : vector<4x512xf32> to vector<4x1xf32>
    %568 = vector.extract_strided_slice %547 {offsets = [0, 0], sizes = [4, 511], strides = [1, 1]} : vector<4x512xf32> to vector<4x511xf32>
    %569 = tpu.concatenate %567, %568 in 1 : vector<4x1xf32>, vector<4x511xf32> -> vector<4x512xf32>
    %570 = vector.extract_strided_slice %3 {offsets = [3, 0], sizes = [1, 512], strides = [1, 1]} : vector<9x512xf32> to vector<1x512xf32>
    %571 = vector.broadcast %570 : vector<1x512xf32> to vector<4x512xf32>
    %572 = arith.mulf %569, %571 : vector<4x512xf32>
    %573 = vector.extract_strided_slice %547 {offsets = [0, 1], sizes = [4, 511], strides = [1, 1]} : vector<4x512xf32> to vector<4x511xf32>
    %574 = vector.extract_strided_slice %547 {offsets = [0, 0], sizes = [4, 1], strides = [1, 1]} : vector<4x512xf32> to vector<4x1xf32>
    %575 = tpu.concatenate %573, %574 in 1 : vector<4x511xf32>, vector<4x1xf32> -> vector<4x512xf32>
    %576 = vector.extract_strided_slice %3 {offsets = [5, 0], sizes = [1, 512], strides = [1, 1]} : vector<9x512xf32> to vector<1x512xf32>
    %577 = vector.broadcast %576 : vector<1x512xf32> to vector<4x512xf32>
    %578 = arith.mulf %575, %577 : vector<4x512xf32>
    %579 = vector.extract_strided_slice %547 {offsets = [0, 15], sizes = [4, 497], strides = [1, 1]} : vector<4x512xf32> to vector<4x497xf32>
    %580 = vector.extract_strided_slice %547 {offsets = [0, 0], sizes = [4, 15], strides = [1, 1]} : vector<4x512xf32> to vector<4x15xf32>
    %581 = tpu.concatenate %579, %580 in 1 : vector<4x497xf32>, vector<4x15xf32> -> vector<4x512xf32>
    %582 = vector.extract_strided_slice %3 {offsets = [6, 0], sizes = [1, 512], strides = [1, 1]} : vector<9x512xf32> to vector<1x512xf32>
    %583 = vector.broadcast %582 : vector<1x512xf32> to vector<4x512xf32>
    %584 = arith.mulf %581, %583 : vector<4x512xf32>
    %585 = vector.extract_strided_slice %547 {offsets = [0, 16], sizes = [4, 496], strides = [1, 1]} : vector<4x512xf32> to vector<4x496xf32>
    %586 = vector.extract_strided_slice %547 {offsets = [0, 0], sizes = [4, 16], strides = [1, 1]} : vector<4x512xf32> to vector<4x16xf32>
    %587 = tpu.concatenate %585, %586 in 1 : vector<4x496xf32>, vector<4x16xf32> -> vector<4x512xf32>
    %588 = vector.extract_strided_slice %3 {offsets = [7, 0], sizes = [1, 512], strides = [1, 1]} : vector<9x512xf32> to vector<1x512xf32>
    %589 = vector.broadcast %588 : vector<1x512xf32> to vector<4x512xf32>
    %590 = arith.mulf %587, %589 : vector<4x512xf32>
    %591 = vector.extract_strided_slice %547 {offsets = [0, 17], sizes = [4, 495], strides = [1, 1]} : vector<4x512xf32> to vector<4x495xf32>
    %592 = vector.extract_strided_slice %547 {offsets = [0, 0], sizes = [4, 17], strides = [1, 1]} : vector<4x512xf32> to vector<4x17xf32>
    %593 = tpu.concatenate %591, %592 in 1 : vector<4x495xf32>, vector<4x17xf32> -> vector<4x512xf32>
    %594 = vector.extract_strided_slice %3 {offsets = [8, 0], sizes = [1, 512], strides = [1, 1]} : vector<9x512xf32> to vector<1x512xf32>
    %595 = vector.broadcast %594 : vector<1x512xf32> to vector<4x512xf32>
    %596 = arith.mulf %593, %595 : vector<4x512xf32>
    %597 = tpu.concatenate %554, %560, %566, %572, %547, %578, %584, %590, %596 in 0 : vector<4x512xf32>, vector<4x512xf32>, vector<4x512xf32>, vector<4x512xf32>, vector<4x512xf32>, vector<4x512xf32>, vector<4x512xf32>, vector<4x512xf32>, vector<4x512xf32> -> vector<36x512xf32>
    %cst_53 = arith.constant dense<0.000000e+00> : vector<12x512xf32>
    %598 = tpu.matmul %4, %597, %cst_53 {dimension_numbers = #tpu.dot_dimension_numbers<[1], [0], [0], [1], [0, 0, 1, 1], [], []>} : vector<12x36xf32>, vector<36x512xf32>, vector<12x512xf32> -> vector<12x512xf32>
    %599 = vector.broadcast %7 : vector<12x1xf32> to vector<12x512xf32>
    %600 = arith.addf %598, %599 : vector<12x512xf32>
    %601 = vector.extract_strided_slice %600 {offsets = [0, 0], sizes = [8, 512], strides = [1, 1]} : vector<12x512xf32> to vector<8x512xf32>
    %602 = vector.extract_strided_slice %548 {offsets = [0, 495], sizes = [4, 17], strides = [1, 1]} : vector<4x512xf32> to vector<4x17xf32>
    %603 = vector.extract_strided_slice %548 {offsets = [0, 0], sizes = [4, 495], strides = [1, 1]} : vector<4x512xf32> to vector<4x495xf32>
    %604 = tpu.concatenate %602, %603 in 1 : vector<4x17xf32>, vector<4x495xf32> -> vector<4x512xf32>
    %605 = vector.extract_strided_slice %3 {offsets = [0, 0], sizes = [1, 512], strides = [1, 1]} : vector<9x512xf32> to vector<1x512xf32>
    %606 = vector.broadcast %605 : vector<1x512xf32> to vector<4x512xf32>
    %607 = arith.mulf %604, %606 : vector<4x512xf32>
    %608 = vector.extract_strided_slice %548 {offsets = [0, 496], sizes = [4, 16], strides = [1, 1]} : vector<4x512xf32> to vector<4x16xf32>
    %609 = vector.extract_strided_slice %548 {offsets = [0, 0], sizes = [4, 496], strides = [1, 1]} : vector<4x512xf32> to vector<4x496xf32>
    %610 = tpu.concatenate %608, %609 in 1 : vector<4x16xf32>, vector<4x496xf32> -> vector<4x512xf32>
    %611 = vector.extract_strided_slice %3 {offsets = [1, 0], sizes = [1, 512], strides = [1, 1]} : vector<9x512xf32> to vector<1x512xf32>
    %612 = vector.broadcast %611 : vector<1x512xf32> to vector<4x512xf32>
    %613 = arith.mulf %610, %612 : vector<4x512xf32>
    %614 = vector.extract_strided_slice %548 {offsets = [0, 497], sizes = [4, 15], strides = [1, 1]} : vector<4x512xf32> to vector<4x15xf32>
    %615 = vector.extract_strided_slice %548 {offsets = [0, 0], sizes = [4, 497], strides = [1, 1]} : vector<4x512xf32> to vector<4x497xf32>
    %616 = tpu.concatenate %614, %615 in 1 : vector<4x15xf32>, vector<4x497xf32> -> vector<4x512xf32>
    %617 = vector.extract_strided_slice %3 {offsets = [2, 0], sizes = [1, 512], strides = [1, 1]} : vector<9x512xf32> to vector<1x512xf32>
    %618 = vector.broadcast %617 : vector<1x512xf32> to vector<4x512xf32>
    %619 = arith.mulf %616, %618 : vector<4x512xf32>
    %620 = vector.extract_strided_slice %548 {offsets = [0, 511], sizes = [4, 1], strides = [1, 1]} : vector<4x512xf32> to vector<4x1xf32>
    %621 = vector.extract_strided_slice %548 {offsets = [0, 0], sizes = [4, 511], strides = [1, 1]} : vector<4x512xf32> to vector<4x511xf32>
    %622 = tpu.concatenate %620, %621 in 1 : vector<4x1xf32>, vector<4x511xf32> -> vector<4x512xf32>
    %623 = vector.extract_strided_slice %3 {offsets = [3, 0], sizes = [1, 512], strides = [1, 1]} : vector<9x512xf32> to vector<1x512xf32>
    %624 = vector.broadcast %623 : vector<1x512xf32> to vector<4x512xf32>
    %625 = arith.mulf %622, %624 : vector<4x512xf32>
    %626 = vector.extract_strided_slice %548 {offsets = [0, 1], sizes = [4, 511], strides = [1, 1]} : vector<4x512xf32> to vector<4x511xf32>
    %627 = vector.extract_strided_slice %548 {offsets = [0, 0], sizes = [4, 1], strides = [1, 1]} : vector<4x512xf32> to vector<4x1xf32>
    %628 = tpu.concatenate %626, %627 in 1 : vector<4x511xf32>, vector<4x1xf32> -> vector<4x512xf32>
    %629 = vector.extract_strided_slice %3 {offsets = [5, 0], sizes = [1, 512], strides = [1, 1]} : vector<9x512xf32> to vector<1x512xf32>
    %630 = vector.broadcast %629 : vector<1x512xf32> to vector<4x512xf32>
    %631 = arith.mulf %628, %630 : vector<4x512xf32>
    %632 = vector.extract_strided_slice %548 {offsets = [0, 15], sizes = [4, 497], strides = [1, 1]} : vector<4x512xf32> to vector<4x497xf32>
    %633 = vector.extract_strided_slice %548 {offsets = [0, 0], sizes = [4, 15], strides = [1, 1]} : vector<4x512xf32> to vector<4x15xf32>
    %634 = tpu.concatenate %632, %633 in 1 : vector<4x497xf32>, vector<4x15xf32> -> vector<4x512xf32>
    %635 = vector.extract_strided_slice %3 {offsets = [6, 0], sizes = [1, 512], strides = [1, 1]} : vector<9x512xf32> to vector<1x512xf32>
    %636 = vector.broadcast %635 : vector<1x512xf32> to vector<4x512xf32>
    %637 = arith.mulf %634, %636 : vector<4x512xf32>
    %638 = vector.extract_strided_slice %548 {offsets = [0, 16], sizes = [4, 496], strides = [1, 1]} : vector<4x512xf32> to vector<4x496xf32>
    %639 = vector.extract_strided_slice %548 {offsets = [0, 0], sizes = [4, 16], strides = [1, 1]} : vector<4x512xf32> to vector<4x16xf32>
    %640 = tpu.concatenate %638, %639 in 1 : vector<4x496xf32>, vector<4x16xf32> -> vector<4x512xf32>
    %641 = vector.extract_strided_slice %3 {offsets = [7, 0], sizes = [1, 512], strides = [1, 1]} : vector<9x512xf32> to vector<1x512xf32>
    %642 = vector.broadcast %641 : vector<1x512xf32> to vector<4x512xf32>
    %643 = arith.mulf %640, %642 : vector<4x512xf32>
    %644 = vector.extract_strided_slice %548 {offsets = [0, 17], sizes = [4, 495], strides = [1, 1]} : vector<4x512xf32> to vector<4x495xf32>
    %645 = vector.extract_strided_slice %548 {offsets = [0, 0], sizes = [4, 17], strides = [1, 1]} : vector<4x512xf32> to vector<4x17xf32>
    %646 = tpu.concatenate %644, %645 in 1 : vector<4x495xf32>, vector<4x17xf32> -> vector<4x512xf32>
    %647 = vector.extract_strided_slice %3 {offsets = [8, 0], sizes = [1, 512], strides = [1, 1]} : vector<9x512xf32> to vector<1x512xf32>
    %648 = vector.broadcast %647 : vector<1x512xf32> to vector<4x512xf32>
    %649 = arith.mulf %646, %648 : vector<4x512xf32>
    %650 = tpu.concatenate %607, %613, %619, %625, %548, %631, %637, %643, %649 in 0 : vector<4x512xf32>, vector<4x512xf32>, vector<4x512xf32>, vector<4x512xf32>, vector<4x512xf32>, vector<4x512xf32>, vector<4x512xf32>, vector<4x512xf32>, vector<4x512xf32> -> vector<36x512xf32>
    %cst_54 = arith.constant dense<0.000000e+00> : vector<8x512xf32>
    %651 = tpu.matmul %5, %650, %cst_54 {dimension_numbers = #tpu.dot_dimension_numbers<[1], [0], [0], [1], [0, 0, 1, 1], [], []>} : vector<8x36xf32>, vector<36x512xf32>, vector<8x512xf32> -> vector<8x512xf32>
    %652 = arith.addf %601, %651 : vector<8x512xf32>
    %653 = arith.negf %652 : vector<8x512xf32>
    %654 = math.exp %653 : vector<8x512xf32>
    %cst_55 = arith.constant 1.000000e+00 : f32
    %655 = vector.broadcast %cst_55 : f32 to vector<8x512xf32>
    %656 = arith.addf %655, %654 : vector<8x512xf32>
    %657 = arith.divf %655, %656 : vector<8x512xf32>
    %658 = vector.extract_strided_slice %657 {offsets = [0, 0], sizes = [4, 512], strides = [1, 1]} : vector<8x512xf32> to vector<4x512xf32>
    %659 = vector.extract_strided_slice %657 {offsets = [4, 0], sizes = [4, 512], strides = [1, 1]} : vector<8x512xf32> to vector<4x512xf32>
    %660 = vector.extract_strided_slice %600 {offsets = [8, 0], sizes = [4, 512], strides = [1, 1]} : vector<12x512xf32> to vector<4x512xf32>
    %661 = arith.mulf %658, %548 : vector<4x512xf32>
    %662 = vector.extract_strided_slice %661 {offsets = [0, 495], sizes = [4, 17], strides = [1, 1]} : vector<4x512xf32> to vector<4x17xf32>
    %663 = vector.extract_strided_slice %661 {offsets = [0, 0], sizes = [4, 495], strides = [1, 1]} : vector<4x512xf32> to vector<4x495xf32>
    %664 = tpu.concatenate %662, %663 in 1 : vector<4x17xf32>, vector<4x495xf32> -> vector<4x512xf32>
    %665 = vector.extract_strided_slice %3 {offsets = [0, 0], sizes = [1, 512], strides = [1, 1]} : vector<9x512xf32> to vector<1x512xf32>
    %666 = vector.broadcast %665 : vector<1x512xf32> to vector<4x512xf32>
    %667 = arith.mulf %664, %666 : vector<4x512xf32>
    %668 = vector.extract_strided_slice %661 {offsets = [0, 496], sizes = [4, 16], strides = [1, 1]} : vector<4x512xf32> to vector<4x16xf32>
    %669 = vector.extract_strided_slice %661 {offsets = [0, 0], sizes = [4, 496], strides = [1, 1]} : vector<4x512xf32> to vector<4x496xf32>
    %670 = tpu.concatenate %668, %669 in 1 : vector<4x16xf32>, vector<4x496xf32> -> vector<4x512xf32>
    %671 = vector.extract_strided_slice %3 {offsets = [1, 0], sizes = [1, 512], strides = [1, 1]} : vector<9x512xf32> to vector<1x512xf32>
    %672 = vector.broadcast %671 : vector<1x512xf32> to vector<4x512xf32>
    %673 = arith.mulf %670, %672 : vector<4x512xf32>
    %674 = vector.extract_strided_slice %661 {offsets = [0, 497], sizes = [4, 15], strides = [1, 1]} : vector<4x512xf32> to vector<4x15xf32>
    %675 = vector.extract_strided_slice %661 {offsets = [0, 0], sizes = [4, 497], strides = [1, 1]} : vector<4x512xf32> to vector<4x497xf32>
    %676 = tpu.concatenate %674, %675 in 1 : vector<4x15xf32>, vector<4x497xf32> -> vector<4x512xf32>
    %677 = vector.extract_strided_slice %3 {offsets = [2, 0], sizes = [1, 512], strides = [1, 1]} : vector<9x512xf32> to vector<1x512xf32>
    %678 = vector.broadcast %677 : vector<1x512xf32> to vector<4x512xf32>
    %679 = arith.mulf %676, %678 : vector<4x512xf32>
    %680 = vector.extract_strided_slice %661 {offsets = [0, 511], sizes = [4, 1], strides = [1, 1]} : vector<4x512xf32> to vector<4x1xf32>
    %681 = vector.extract_strided_slice %661 {offsets = [0, 0], sizes = [4, 511], strides = [1, 1]} : vector<4x512xf32> to vector<4x511xf32>
    %682 = tpu.concatenate %680, %681 in 1 : vector<4x1xf32>, vector<4x511xf32> -> vector<4x512xf32>
    %683 = vector.extract_strided_slice %3 {offsets = [3, 0], sizes = [1, 512], strides = [1, 1]} : vector<9x512xf32> to vector<1x512xf32>
    %684 = vector.broadcast %683 : vector<1x512xf32> to vector<4x512xf32>
    %685 = arith.mulf %682, %684 : vector<4x512xf32>
    %686 = vector.extract_strided_slice %661 {offsets = [0, 1], sizes = [4, 511], strides = [1, 1]} : vector<4x512xf32> to vector<4x511xf32>
    %687 = vector.extract_strided_slice %661 {offsets = [0, 0], sizes = [4, 1], strides = [1, 1]} : vector<4x512xf32> to vector<4x1xf32>
    %688 = tpu.concatenate %686, %687 in 1 : vector<4x511xf32>, vector<4x1xf32> -> vector<4x512xf32>
    %689 = vector.extract_strided_slice %3 {offsets = [5, 0], sizes = [1, 512], strides = [1, 1]} : vector<9x512xf32> to vector<1x512xf32>
    %690 = vector.broadcast %689 : vector<1x512xf32> to vector<4x512xf32>
    %691 = arith.mulf %688, %690 : vector<4x512xf32>
    %692 = vector.extract_strided_slice %661 {offsets = [0, 15], sizes = [4, 497], strides = [1, 1]} : vector<4x512xf32> to vector<4x497xf32>
    %693 = vector.extract_strided_slice %661 {offsets = [0, 0], sizes = [4, 15], strides = [1, 1]} : vector<4x512xf32> to vector<4x15xf32>
    %694 = tpu.concatenate %692, %693 in 1 : vector<4x497xf32>, vector<4x15xf32> -> vector<4x512xf32>
    %695 = vector.extract_strided_slice %3 {offsets = [6, 0], sizes = [1, 512], strides = [1, 1]} : vector<9x512xf32> to vector<1x512xf32>
    %696 = vector.broadcast %695 : vector<1x512xf32> to vector<4x512xf32>
    %697 = arith.mulf %694, %696 : vector<4x512xf32>
    %698 = vector.extract_strided_slice %661 {offsets = [0, 16], sizes = [4, 496], strides = [1, 1]} : vector<4x512xf32> to vector<4x496xf32>
    %699 = vector.extract_strided_slice %661 {offsets = [0, 0], sizes = [4, 16], strides = [1, 1]} : vector<4x512xf32> to vector<4x16xf32>
    %700 = tpu.concatenate %698, %699 in 1 : vector<4x496xf32>, vector<4x16xf32> -> vector<4x512xf32>
    %701 = vector.extract_strided_slice %3 {offsets = [7, 0], sizes = [1, 512], strides = [1, 1]} : vector<9x512xf32> to vector<1x512xf32>
    %702 = vector.broadcast %701 : vector<1x512xf32> to vector<4x512xf32>
    %703 = arith.mulf %700, %702 : vector<4x512xf32>
    %704 = vector.extract_strided_slice %661 {offsets = [0, 17], sizes = [4, 495], strides = [1, 1]} : vector<4x512xf32> to vector<4x495xf32>
    %705 = vector.extract_strided_slice %661 {offsets = [0, 0], sizes = [4, 17], strides = [1, 1]} : vector<4x512xf32> to vector<4x17xf32>
    %706 = tpu.concatenate %704, %705 in 1 : vector<4x495xf32>, vector<4x17xf32> -> vector<4x512xf32>
    %707 = vector.extract_strided_slice %3 {offsets = [8, 0], sizes = [1, 512], strides = [1, 1]} : vector<9x512xf32> to vector<1x512xf32>
    %708 = vector.broadcast %707 : vector<1x512xf32> to vector<4x512xf32>
    %709 = arith.mulf %706, %708 : vector<4x512xf32>
    %710 = tpu.concatenate %667, %673, %679, %685, %661, %691, %697, %703, %709 in 0 : vector<4x512xf32>, vector<4x512xf32>, vector<4x512xf32>, vector<4x512xf32>, vector<4x512xf32>, vector<4x512xf32>, vector<4x512xf32>, vector<4x512xf32>, vector<4x512xf32> -> vector<36x512xf32>
    %cst_56 = arith.constant dense<0.000000e+00> : vector<4x512xf32>
    %711 = tpu.matmul %6, %710, %cst_56 {dimension_numbers = #tpu.dot_dimension_numbers<[1], [0], [0], [1], [0, 0, 1, 1], [], []>} : vector<4x36xf32>, vector<36x512xf32>, vector<4x512xf32> -> vector<4x512xf32>
    %712 = arith.addf %660, %711 : vector<4x512xf32>
    %713 = math.tanh %712 : vector<4x512xf32>
    %cst_57 = arith.constant 1.000000e+00 : f32
    %714 = vector.broadcast %cst_57 : f32 to vector<4x512xf32>
    %715 = arith.subf %714, %659 : vector<4x512xf32>
    %716 = arith.mulf %715, %548 : vector<4x512xf32>
    %717 = arith.mulf %659, %713 : vector<4x512xf32>
    %718 = arith.addf %716, %717 : vector<4x512xf32>
    %c0_58 = arith.constant 0 : index
    %c0_59 = arith.constant 0 : index
    %719 = vector.load %arg10[%c0_58, %c0_59] : memref<4x512xf32, #tpu.memory_space<vmem>>, vector<4x512xf32>
    tpu.vector_store %arg10[%c0_58, %c0_59], %718 {strides = array<i32>} : memref<4x512xf32, #tpu.memory_space<vmem>>, vector<4x512xf32>,
    %720 = arith.index_cast %c3_i32 : i32 to index
    %c0_60 = arith.constant 0 : index
    %c0_61 = arith.constant 0 : index
    %721 = vector.load %arg8[%720, %c0_60, %c0_61] : memref<4x4x512xf32, #tpu.memory_space<vmem>>, vector<1x4x512xf32>
    %722 = vector.shape_cast %721 : vector<1x4x512xf32> to vector<4x512xf32>
    %723 = vector.shape_cast %718 : vector<4x512xf32> to vector<1x4x512xf32>
    tpu.vector_store %arg8[%720, %c0_60, %c0_61], %723 {strides = array<i32>} : memref<4x4x512xf32, #tpu.memory_space<vmem>>, vector<1x4x512xf32>,
    %c4_i32 = arith.constant 4 : i32
    %c1_i32_62 = arith.constant 1 : i32
    %724 = arith.cmpi eq, %arg0, %c1_i32_62 : i32
    %725 = arith.extui %724 : i1 to i32
    %c0_i32_63 = arith.constant 0 : i32
    %726 = arith.cmpi ne, %725, %c0_i32_63 : i32
    scf.if %726 {
      %c0_64 = arith.constant 0 : index
      %c0_65 = arith.constant 0 : index
      %727 = vector.load %arg10[%c0_64, %c0_65] : memref<4x512xf32, #tpu.memory_space<vmem>>, vector<4x512xf32>
      %c0_66 = arith.constant 0 : index
      %c0_67 = arith.constant 0 : index
      %728 = vector.load %arg9[%c0_66, %c0_67] : memref<4x512xf32, #tpu.memory_space<vmem>>, vector<4x512xf32>
      tpu.vector_store %arg9[%c0_66, %c0_67], %727 {strides = array<i32>} : memref<4x512xf32, #tpu.memory_space<vmem>>, vector<4x512xf32>,
    } else {
    }
    return
  }
  func.func @transform_0(%arg0: i32) -> (i32, i32, i32) {
    %c0_i32 = arith.constant 0 : i32
    %c0_i32_0 = arith.constant 0 : i32
    %c0_i32_1 = arith.constant 0 : i32
    return %arg0, %c0_i32, %c0_i32_0 : i32, i32, i32
  }
  func.func @transform_1(%arg0: i32) -> (i32, i32) {
    %c0_i32 = arith.constant 0 : i32
    %c0_i32_0 = arith.constant 0 : i32
    %c0_i32_1 = arith.constant 0 : i32
    return %c0_i32, %c0_i32_0 : i32, i32
  }
  func.func @transform_2(%arg0: i32) -> (i32, i32) {
    %c0_i32 = arith.constant 0 : i32
    %c0_i32_0 = arith.constant 0 : i32
    %c0_i32_1 = arith.constant 0 : i32
    return %c0_i32, %c0_i32_0 : i32, i32
  }
  func.func @transform_3(%arg0: i32) -> (i32, i32) {
    %c0_i32 = arith.constant 0 : i32
    %c0_i32_0 = arith.constant 0 : i32
    %c0_i32_1 = arith.constant 0 : i32
    return %c0_i32, %c0_i32_0 : i32, i32
  }
  func.func @transform_4(%arg0: i32) -> (i32, i32) {
    %c0_i32 = arith.constant 0 : i32
    %c0_i32_0 = arith.constant 0 : i32
    %c0_i32_1 = arith.constant 0 : i32
    return %c0_i32, %c0_i32_0 : i32, i32
  }
  func.func @transform_5(%arg0: i32) -> (i32, i32) {
    %c0_i32 = arith.constant 0 : i32
    %c0_i32_0 = arith.constant 0 : i32
    %c0_i32_1 = arith.constant 0 : i32
    return %c0_i32, %c0_i32_0 : i32, i32
  }
  func.func @transform_6(%arg0: i32) -> (i32, i32) {
    %c0_i32 = arith.constant 0 : i32
    %c0_i32_0 = arith.constant 0 : i32
    %c0_i32_1 = arith.constant 0 : i32
    return %c0_i32, %c0_i32_0 : i32, i32
  }
  func.func @transform_7(%arg0: i32) -> (i32, i32, i32) {
    %c0_i32 = arith.constant 0 : i32
    %c0_i32_0 = arith.constant 0 : i32
    %c0_i32_1 = arith.constant 0 : i32
    return %arg0, %c0_i32, %c0_i32_0 : i32, i32, i32
  }
  func.func @transform_8(%arg0: i32) -> (i32, i32) {
    %c0_i32 = arith.constant 0 : i32
    %c0_i32_0 = arith.constant 0 : i32
    %c0_i32_1 = arith.constant 0 : i32
    return %c0_i32, %c0_i32_0 : i32, i32
  }
}

</mosaic_0001>

<bundles_post_ra>
// kernel: gru_bottleneck_forward.1
= control target key start
LH: loop header
LB: loop body
LE: loop exit
PB: predicated region body
PF: predicated region fallthrough
CT: control target
= control target key end

     0   :  { %s6301_s27 = smov 0   ;;  %s10014_s0 = inlined_call_operand.vmem [shape: f32[8,4,512], index: 0, kind: input, shape index: {}]   ;;  %s10015_s1 = inlined_call_operand.vmem [shape: f32[4,512], index: 1, kind: input, shape index: {}]   ;;  %s10016_s2 = inlined_call_operand.vmem [shape: f32[12,36], index: 2, kind: input, shape index: {}]   ;;  %s10017_s3 = inlined_call_operand.vmem [shape: f32[12,1], index: 3, kind: input, shape index: {}]   ;;  %s10018_s4 = inlined_call_operand.vmem [shape: f32[8,36], index: 4, kind: input, shape index: {}]   ;;  %s10019_s5 = inlined_call_operand.vmem [shape: f32[4,36], index: 5, kind: input, shape index: {}]   ;;  %s10020_s6 = inlined_call_operand.vmem [shape: f32[9,512], index: 6, kind: input, shape index: {}]   ;;  %s10021_s7 = inlined_call_operand.vmem [shape: f32[8,4,512], index: 7, kind: output, shape index: {0}]   ;;  %s10022_s8 = inlined_call_operand.vmem [shape: f32[4,512], index: 8, kind: output, shape index: {1}]  }
   0x1 LB: > { %s6307_s28 = sadd.s32 4294967295, %s6245_s27   ;;  %p5940_p0 = scmp.ge.s32.totalorder %s6245_s27, 1  ;;  %s6245_s27 = sphi %s6301_s27, %s19_s27  }
   0x2   : > { %p262_p1 = scmp.lt.s32.totalorder %s6245_s27, 3 }
   0x4   : > { %p263_p2 = pnand %p5940_p0, %p262_p1 }
   0x6   : > { %266 = sbr.rel (%p263_p2) target bundleno = 3605 (0xe15), region = 48 }
   0xb   : > { %s5941_s29 = sshll.u32 %s6307_s28, 2  ;;  %p5947_p4 = scmp.ne.s32.totalorder %s6307_s28, 0 }
   0xc   : > { %p299_p3 = scmp.lt.s32.totalorder %s5941_s29, 7 }
   0xd   : > { %315 = sbr.rel (%p5947_p4) target bundleno = 21 (0x15), region = 52 }
   0xe   : > { %s10383_s29 = smov (!%p299_p3, %s5941_s29), 7 }
   0xf   : > { %s6091_s30 = sshll.u32 %s10383_s29, 4 }
  0x10   : > { %s6315_s11 = scalar_lea.vmem %s10014_s0, %s6091_s30  ;;  %s6320_s14 = scalar_lea.vmem %s10021_s7, %s6091_s30 }
  0x12   : > { %v316_v0 = vld [vmem:[%s10015_s1] sm:$0xff]  ;;  %v317_v1 = vld [vmem:[%s10015_s1 + $0x8] sm:$0xff] }
  0x13   : > { %318 = vst [vmem:[#allocation2] sm:$0xff] %v316_v0 }
  0x14   : > { %319 = vst [vmem:[#allocation2 + $0x8] sm:$0xff] %v317_v1 }
  0x15 PF: > { %v6330_v2 = vld [vmem:[%s6315_s11 + $0x8] sm:$0xff]  ;;  %v6335_v3 = vld [vmem:[%s6315_s11] sm:$0xff]  ;;  %s6247_s19 = smov 17   ;;  %s6248_s20 = smov 16   ;;  %vm503_vm0 = vcmask 1039360   ;;  %vm577_vm1 = vcmask 916480  }
  0x16   : > { %347 = vst [vmem:[#allocation1 + $0x10] ss:$2 sm:$0xff] %v6330_v2  ;;  %s6249_s21 = smov 15   ;;  %s6250_s22 = smov 1   ;;  %vm10133_vm2 = vcmask 924672   ;;  %vm471_vm3 = vcmask 7168  }
  0x17   : > { %339 = vst [vmem:[#allocation1] ss:$2 sm:$0xff] %v6330_v2  ;;  %s6251_s23 = smov 127   ;;  %s6252_s24 = smov 113   ;;  %vm397_vm4 = vcmask 130048   ;;  %vm614_vm5 = vcmask 908288  }
  0x18   : > { %s6253_s25 = smov 112   ;;  %s6254_s26 = smov 111   ;;  %vm434_vm6 = vcmask 121856   ;;  %vm10132_vm7 = vcmask 138240   ;;  %vm695_vm8 = vcmask 1043456   ;;  %vm10131_vm9 = vcmask 293888  }
  0x19   : > { %p6088_p5 = scmp.ne.s32.totalorder %s6307_s28, 1 }
  0x1b   : > { %v6378_v32 = vld [vmem:[#allocation2 + $0x8] sm:$0xff] }
  0x1c   : > { %10140 = vst [vmem:[#allocation3_spill] sm:$0xff] %v6378_v32 }
  0x1d   : > { %v350_v4 = vld.sshfl [vmem:[#allocation1 + $0x10] sm:$0xff pattern:$0x75316420]  ;;  %v6337_v5 = vld.sshfl [vmem:[#allocation1 + $0x18] sm:$0xff pattern:$0x75316420] }
  0x1e   : > { %356 = vrot.lane.b32.xlu2 %v350_v4, %s6247_s19  ;;  %v6340_v6 = vld.sshfl [vmem:[#allocation1 + $0x8] sm:$0xff pattern:$0x75316420]  ;;  %384 = vst [vmem:[#allocation1 + $0x10] ss:$2 sm:$0xff] %v6330_v2 }
  0x1f   : > { %345 = vst [vmem:[#allocation1] ss:$2 sm:$0xff] %v6335_v3 }
  0x25   : > { %v387_v7 = vld.sshfl [vmem:[#allocation1 + $0x10] sm:$0xff pattern:$0x75316420]  ;;  %v388_v8 = vld.sshfl [vmem:[#allocation1 + $0x18] sm:$0xff pattern:$0x75316420] }
  0x26   : > { %v6344_v9 = vld.sshfl [vmem:[#allocation1] sm:$0xff pattern:$0x75316420]  ;;  %v349_v10 = vld.sshfl [vmem:[#allocation1 + $0x8] sm:$0xff pattern:$0x75316420]  ;;  %395 = vrot.lane.b32.xlu2 %v388_v8, %s6248_s20  ;;  %393 = vrot.lane.b32.xlu1 %v387_v7, %s6248_s20 }
  0x27   : > { %377 = vst [vmem:[#allocation1] ss:$2 sm:$0xff] %v6330_v2 }
  0x28   : > { %421 = vst [vmem:[#allocation1 + $0x10] ss:$2 sm:$0xff] %v6330_v2 }
  0x2e   : > { %v378_v11 = vld.sshfl [vmem:[#allocation1 + $0x8] sm:$0xff pattern:$0x75316420]  ;;  %354 = vrot.lane.b32.xlu1 %v349_v10, %s6247_s19 }
  0x2f   : > { %382 = vst [vmem:[#allocation1] ss:$2 sm:$0xff] %v6335_v3  ;;  %v424_v12 = vld.sshfl [vmem:[#allocation1 + $0x10] sm:$0xff pattern:$0x75316420] }
  0x30   : > { %v425_v13 = vld.sshfl [vmem:[#allocation1 + $0x18] sm:$0xff pattern:$0x75316420]  ;;  %430 = vrot.lane.b32.xlu0 %v424_v12, %s6249_s21 }
  0x31   : > { %458 = vst [vmem:[#allocation1 + $0x10] ss:$2 sm:$0xff] %v6330_v2 }
  0x36   : > { %v385_v14 = vld.sshfl [vmem:[#allocation1] sm:$0xff pattern:$0x75316420]  ;;  %v386_v15 = vld.sshfl [vmem:[#allocation1 + $0x8] sm:$0xff pattern:$0x75316420] }
  0x37   : > { %414 = vst [vmem:[#allocation1] ss:$2 sm:$0xff] %v6330_v2 }
  0x38   : > { %v461_v16 = vld.sshfl [vmem:[#allocation1 + $0x10] sm:$0xff pattern:$0x75316420]  ;;  %v462_v17 = vld.sshfl [vmem:[#allocation1 + $0x18] sm:$0xff pattern:$0x75316420] }
  0x39   : > { %467 = vrot.lane.b32.xlu0 %v461_v16, %s6250_s22  ;;  %490 = vst [vmem:[#allocation1 + $0x10] ss:$2 sm:$0xff] %v6330_v2 }
  0x3e   : > { %v6357_v18 = vld.sshfl [vmem:[#allocation1 + $0x8] sm:$0xff pattern:$0x75316420] }
  0x3f   : > { %419 = vst [vmem:[#allocation1] ss:$2 sm:$0xff] %v6335_v3 }
  0x40   : > { %v493_v19 = vld.sshfl [vmem:[#allocation1 + $0x10] sm:$0xff pattern:$0x75316420]  ;;  %v494_v20 = vld.sshfl [vmem:[#allocation1 + $0x18] sm:$0xff pattern:$0x75316420] }
  0x41   : > { %499 = vrot.lane.b32.xlu2 %v493_v19, %s6251_s23  ;;  %391 = vrot.lane.b32.xlu0 %v386_v15, %s6248_s20  ;;  %527 = vst [vmem:[#allocation1 + $0x10] ss:$2 sm:$0xff] %v6330_v2 }
  0x46   : > { %v422_v21 = vld.sshfl [vmem:[#allocation1] sm:$0xff pattern:$0x75316420]  ;;  %v423_v22 = vld.sshfl [vmem:[#allocation1 + $0x8] sm:$0xff pattern:$0x75316420] }
  0x47   : > { %451 = vst [vmem:[#allocation1] ss:$2 sm:$0xff] %v6330_v2 }
  0x48   : > { %v531_v23 = vld.sshfl [vmem:[#allocation1 + $0x18] sm:$0xff pattern:$0x75316420]  ;;  %v530_v24 = vld.sshfl [vmem:[#allocation1 + $0x10] sm:$0xff pattern:$0x75316420] }
  0x49   : > { %501 = vrot.lane.b32.xlu2 %v494_v20, %s6251_s23  ;;  %538 = vrot.lane.b32.xlu1 %v531_v23, %s6252_s24  ;;  %564 = vst [vmem:[#allocation1 + $0x10] ss:$2 sm:$0xff] %v6330_v2 }
  0x4a   : > { %469 = vrot.lane.b32.xlu0 %v462_v17, %s6250_s22 }
  0x4e   : > { %v452_v25 = vld.sshfl [vmem:[#allocation1 + $0x8] sm:$0xff pattern:$0x75316420] }
  0x4f   : > { %456 = vst [vmem:[#allocation1] ss:$2 sm:$0xff] %v6335_v3 }
  0x50   : > { %v567_v26 = vld.sshfl [vmem:[#allocation1 + $0x10] sm:$0xff pattern:$0x75316420]  ;;  %v568_v27 = vld.sshfl [vmem:[#allocation1 + $0x18] sm:$0xff pattern:$0x75316420] }
  0x51   : > { %379 = vrot.lane.b32.xlu1 %v378_v11, %s6248_s20  ;;  %428 = vrot.lane.b32.xlu2 %v423_v22, %s6249_s21  ;;  %601 = vst [vmem:[#allocation1 + $0x10] ss:$2 sm:$0xff] %v6330_v2 }
  0x52   : > { %432 = vrot.lane.b32.xlu0 %v425_v13, %s6249_s21 }
  0x56   : > { %v460_v28 = vld.sshfl [vmem:[#allocation1 + $0x8] sm:$0xff pattern:$0x75316420]  ;;  %v459_v29 = vld.sshfl [vmem:[#allocation1] sm:$0xff pattern:$0x75316420] }
  0x57   : > { %488 = vst [vmem:[#allocation1] ss:$2 sm:$0xff] %v6335_v3 }
  0x58   : > { %v604_v30 = vld.sshfl [vmem:[#allocation1 + $0x10] sm:$0xff pattern:$0x75316420]  ;;  %v605_v31 = vld.sshfl [vmem:[#allocation1 + $0x18] sm:$0xff pattern:$0x75316420] }
  0x59   : > { %389 = vrot.lane.b32.xlu2 %v385_v14, %s6248_s20  ;;  %426 = vrot.lane.b32.xlu1 %v422_v21, %s6249_s21  ;;  %662 = vst [vmem:[#allocation1 + $0x10] ss:$2 sm:$0xff] %v6330_v2 }
  0x5a   : > { %536 = vrot.lane.b32.xlu0 %v530_v24, %s6252_s24 }
  0x5e   : > { %v492_v33 = vld.sshfl [vmem:[#allocation1 + $0x8] sm:$0xff pattern:$0x75316420]  ;;  %v491_v34 = vld.sshfl [vmem:[#allocation1] sm:$0xff pattern:$0x75316420] }
  0x5f   : > { %511 = vst [vmem:[#allocation1] ss:$2 sm:$0xff] %v6335_v3 }
  0x60   : > { %v6381_v35 = vld.sshfl [vmem:[#allocation1 + $0x10] sm:$0xff pattern:$0x75316420]  ;;  %v6383_v36 = vld.sshfl [vmem:[#allocation1 + $0x18] sm:$0xff pattern:$0x75316420] }
  0x61   : > { %341 = vrot.lane.b32.xlu2 %v6340_v6, %s6247_s19  ;;  %453 = vrot.lane.b32.xlu1 %v452_v25, %s6250_s22  ;;  %842 = vst [vmem:[#allocation1 + $0x10] ss:$2 sm:$0xff] %v6378_v32  ;;  %v6455_v6 = vld [vmem:[#allocation2] sm:$0xff] }
  0x62   : > { %573 = vrot.lane.b32.xlu0 %v567_v26, %s6253_s25  ;;  %10141 = vst [vmem:[#allocation4_spill] sm:$0xff] %v6455_v6 }
  0x66   : > { %v512_v37 = vld.sshfl [vmem:[#allocation1] sm:$0xff pattern:$0x75316420] }
  0x67   : > { %525 = vst [vmem:[#allocation1] ss:$2 sm:$0xff] %v6335_v3 }
  0x68   : > { %v845_v38 = vld.sshfl [vmem:[#allocation1 + $0x10] sm:$0xff pattern:$0x75316420]  ;;  %v6391_v39 = vld.sshfl [vmem:[#allocation1 + $0x18] sm:$0xff pattern:$0x75316420] }
  0x69   : > { %610 = vrot.lane.b32.xlu1 %v604_v30, %s6254_s26  ;;  %465 = vrot.lane.b32.xlu2 %v460_v28, %s6250_s22  ;;  %874 = vst [vmem:[#allocation1 + $0x10] ss:$2 sm:$0xff] %v6378_v32 }
  0x6a   : > { %575 = vrot.lane.b32.xlu0 %v568_v27, %s6253_s25 }
  0x6e   : > { %v529_v40 = vld.sshfl [vmem:[#allocation1 + $0x8] sm:$0xff pattern:$0x75316420]  ;;  %v528_v41 = vld.sshfl [vmem:[#allocation1] sm:$0xff pattern:$0x75316420] }
  0x6f   : > { %548 = vst [vmem:[#allocation1] ss:$2 sm:$0xff] %v6335_v3 }
  0x70   : > { %v877_v42 = vld.sshfl [vmem:[#allocation1 + $0x10] sm:$0xff pattern:$0x75316420]  ;;  %v6398_v43 = vld.sshfl [vmem:[#allocation1 + $0x18] sm:$0xff pattern:$0x75316420] }
  0x71   : > { %612 = vrot.lane.b32.xlu1 %v605_v31, %s6254_s26  ;;  %463 = vrot.lane.b32.xlu2 %v459_v29, %s6250_s22  ;;  %906 = vst [vmem:[#allocation1 + $0x10] ss:$2 sm:$0xff] %v6378_v32 }
  0x72   : > { %358 = vrot.lane.b32.xlu0 %v6337_v5, %s6247_s19 }
  0x76   : > { %v549_v44 = vld.sshfl [vmem:[#allocation1] sm:$0xff pattern:$0x75316420] }
  0x77   : > { %562 = vst [vmem:[#allocation1] ss:$2 sm:$0xff] %v6335_v3 }
  0x78   : > { %v909_v45 = vld.sshfl [vmem:[#allocation1 + $0x10] sm:$0xff pattern:$0x75316420]  ;;  %v6406_v46 = vld.sshfl [vmem:[#allocation1 + $0x18] sm:$0xff pattern:$0x75316420]  ;;  %v6421_v52 = vpop.permute.xlu2 %356 }
  0x79   : > { %497 = vrot.lane.b32.xlu2 %v492_v33, %s6251_s23  ;;  %495 = vrot.lane.b32.xlu1 %v491_v34, %s6251_s23  ;;  %938 = vst [vmem:[#allocation1 + $0x10] ss:$2 sm:$0xff] %v6378_v32 }
  0x7a   : > { %416 = vrot.lane.b32.xlu0 %v6357_v18, %s6249_s21 }
  0x7e   : > { %v566_v47 = vld.sshfl [vmem:[#allocation1 + $0x8] sm:$0xff pattern:$0x75316420]  ;;  %v565_v48 = vld.sshfl [vmem:[#allocation1] sm:$0xff pattern:$0x75316420] }
  0x7f   : > { %585 = vst [vmem:[#allocation1] ss:$2 sm:$0xff] %v6335_v3 }
  0x80   : > { %v941_v49 = vld.sshfl [vmem:[#allocation1 + $0x10] sm:$0xff pattern:$0x75316420]  ;;  %v6414_v50 = vld.sshfl [vmem:[#allocation1 + $0x18] sm:$0xff pattern:$0x75316420]  ;;  %v6430_v59 = vpop.permute.xlu2 %395 }
  0x81   : > { %883 = vrot.lane.b32.xlu2 %v877_v42, %s6248_s20  ;;  %513 = vrot.lane.b32.xlu1 %v512_v37, %s6251_s23  ;;  %965 = vst [vmem:[#allocation1 + $0x10] ss:$2 sm:$0xff] %v6378_v32 }
  0x82   : > { %352 = vrot.lane.b32.xlu0 %v6344_v9, %s6247_s19 }
  0x86   : > { %v586_v51 = vld.sshfl [vmem:[#allocation1] sm:$0xff pattern:$0x75316420] }
  0x87   : > { %599 = vst [vmem:[#allocation1] ss:$2 sm:$0xff] %v6335_v3 }
  0x88   : > { %v968_v53 = vld.sshfl [vmem:[#allocation1 + $0x10] sm:$0xff pattern:$0x75316420]  ;;  %v969_v54 = vld.sshfl [vmem:[#allocation1 + $0x18] sm:$0xff pattern:$0x75316420] }
  0x89   : > { %534 = vrot.lane.b32.xlu1 %v529_v40, %s6252_s24  ;;  %550 = vrot.lane.b32.xlu2 %v549_v44, %s6252_s24  ;;  %997 = vst [vmem:[#allocation1 + $0x10] ss:$2 sm:$0xff] %v6378_v32 }
  0x8a   : > { %532 = vrot.lane.b32.xlu0 %v528_v41, %s6252_s24 }
  0x8e   : > { %v602_v55 = vld.sshfl [vmem:[#allocation1] sm:$0xff pattern:$0x75316420]  ;;  %v603_v56 = vld.sshfl [vmem:[#allocation1 + $0x8] sm:$0xff pattern:$0x75316420] }
  0x8f   : > { %622 = vst [vmem:[#allocation1] ss:$2 sm:$0xff] %v6335_v3 }
  0x90   : > { %v1001_v57 = vld.sshfl [vmem:[#allocation1 + $0x18] sm:$0xff pattern:$0x75316420]  ;;  %v1000_v58 = vld.sshfl [vmem:[#allocation1 + $0x10] sm:$0xff pattern:$0x75316420] }
  0x91   : > { %915 = vrot.lane.b32.xlu1 %v909_v45, %s6249_s21  ;;  %974 = vrot.lane.b32.xlu2 %v968_v53, %s6251_s23  ;;  %1029 = vst [vmem:[#allocation1 + $0x10] ss:$2 sm:$0xff] %v6378_v32 }
  0x92   : > { %851 = vrot.lane.b32.xlu0 %v845_v38, %s6247_s19  ;;  %v322_v38 = vld [vmem:[%s10020_s6 + $0x10] sm:$0xff] }
  0x93   : > { %v6533_v40 = vperm.slane %v322_v38, 7  ;;  %v6556_v53 = vperm.slane %v322_v38, 3 }
  0x95   : > { %10143 = vst [vmem:[#allocation6_spill] sm:$0xff] %v6533_v40 }
  0x96   : > { %v623_v60 = vld.sshfl [vmem:[#allocation1] sm:$0xff pattern:$0x75316420]  ;;  %10147 = vst [vmem:[#allocation10_spill] sm:$0xff] %v6556_v53 }
  0x97   : > { %660 = vst [vmem:[#allocation1] ss:$2 sm:$0xff] %v6335_v3 }
  0x98   : > { %v1032_v61 = vld.sshfl [vmem:[#allocation1 + $0x10] sm:$0xff pattern:$0x75316420]  ;;  %v1033_v62 = vld.sshfl [vmem:[#allocation1 + $0x18] sm:$0xff pattern:$0x75316420]  ;;  %v6459_v8 = vpop.permute.xlu1 %393 }
  0x99   : > { %571 = vrot.lane.b32.xlu1 %v566_v47, %s6253_s25  ;;  %606 = vrot.lane.b32.xlu2 %v602_v55, %s6254_s26  ;;  %1061 = vst [vmem:[#allocation1 + $0x10] ss:$2 sm:$0xff] %v6378_v32  ;;  %v6567_v55 = vld [vmem:[%s10020_s6 + $0x30] ss:$0 sm:$0xff] }
  0x9a   : > { %569 = vrot.lane.b32.xlu0 %v565_v48, %s6253_s25  ;;  %10148 = vst [vmem:[#allocation11_spill] sm:$0xff] %v6567_v55 }
  0x9b   : > { %v6440_v63 = vpop.permute.xlu2 %499 }
  0x9e   : > { %v6442_v0 = vld.sshfl [vmem:[#allocation1] sm:$0xff pattern:$0x75316420]  ;;  %v6444_v1 = vld.sshfl [vmem:[#allocation1 + $0x8] sm:$0xff pattern:$0x75316420] }
  0x9f   : > { %834 = vst [vmem:[#allocation1] ss:$2 sm:$0xff] %v6378_v32 }
  0xa0   : > { %v1064_v2 = vld.sshfl [vmem:[#allocation1 + $0x10] sm:$0xff pattern:$0x75316420]  ;;  %v1065_v3 = vld.sshfl [vmem:[#allocation1 + $0x18] sm:$0xff pattern:$0x75316420]  ;;  %v6473_v13 = vpop.permute.xlu1 %354 }
  0xa1   : > { %947 = vrot.lane.b32.xlu1 %v941_v49, %s6250_s22  ;;  %1008 = vrot.lane.b32.xlu2 %v1001_v57, %s6252_s24  ;;  %1117 = vst [vmem:[#allocation1 + $0x10] ss:$2 sm:$0xff] %v6378_v32 }
  0xa2   : > { %976 = vrot.lane.b32.xlu0 %v969_v54, %s6251_s23  ;;  %v6451_v4 = vpop.permute.xlu0 %430 }
  0xa3   : > { %v6453_v5 = vpop.permute.xlu2 %501 }
  0xa4   : > { %v506_v45 = vsel %vm503_vm0, %v6440_v63, %v6453_v5 }
  0xa6   : > { %v6457_v7 = vld.sshfl [vmem:[#allocation1 + $0x8] sm:$0xff pattern:$0x75316420] }
  0xa7   : > { %10142 = vst [vmem:[#allocation5_spill] sm:$0xff] %v6457_v7 }
  0xa8   : > { %840 = vst [vmem:[#allocation1] ss:$2 sm:$0xff] %v6455_v6 }
  0xa9   : > { %587 = vrot.lane.b32.xlu1 %v586_v51, %s6253_s25  ;;  %624 = vrot.lane.b32.xlu2 %v623_v60, %s6254_s26  ;;  %v6572_v60 = vperm.slane %v322_v38, 2 }
  0xaa   : > { %608 = vrot.lane.b32.xlu0 %v603_v56, %s6254_s26  ;;  %v6569_v56 = vperm.slane %v322_v38, 1 }
  0xab   : > { %v6465_v9 = vpop.permute.xlu0 %467  ;;  %v6467_v10 = vpop.permute.xlu2 %428  ;;  %10150 = vst [vmem:[#allocation13_spill] sm:$0xff] %v6572_v60 }
  0xac   : > { %10149 = vst [vmem:[#allocation12_spill] sm:$0xff] %v6569_v56 }
  0xaf   : > { %v844_v11 = vld.sshfl [vmem:[#allocation1 + $0x8] sm:$0xff pattern:$0x75316420]  ;;  %v6469_v12 = vld.sshfl [vmem:[#allocation1] sm:$0xff pattern:$0x75316420] }
  0xb0   : > { %867 = vst [vmem:[#allocation1] ss:$2 sm:$0xff] %v6378_v32 }
  0xb1   : > { %1006 = vrot.lane.b32.xlu1 %v1000_v58, %s6252_s24  ;;  %1040 = vrot.lane.b32.xlu2 %v1033_v62, %s6253_s25 }
  0xb2   : > { %1070 = vrot.lane.b32.xlu0 %v1064_v2, %s6254_s26 }
  0xb3   : > { %v6477_v14 = vpop.permute.xlu0 %391  ;;  %v6479_v15 = vpop.permute.xlu2 %389 }
  0xb7   : > { %v868_v16 = vld.sshfl [vmem:[#allocation1 + $0x8] sm:$0xff pattern:$0x75316420] }
  0xb8   : > { %872 = vst [vmem:[#allocation1] ss:$2 sm:$0xff] %v6455_v6 }
  0xb9   : > { %1038 = vrot.lane.b32.xlu1 %v1032_v61, %s6253_s25  ;;  %849 = vrot.lane.b32.xlu2 %v844_v11, %s6247_s19  ;;  %v399_v61 = vsel %vm397_vm4, %v6477_v14, %v6459_v8 }
  0xba   : > { %885 = vrot.lane.b32.xlu0 %v6398_v43, %s6248_s20  ;;  %v6539_v43 = vperm.slane %v322_v38, 5 }
  0xbb   : > { %v6486_v17 = vpop.permute.xlu1 %538  ;;  %v6488_v18 = vpop.permute.xlu2 %341 }
  0xbc   : > { %v6490_v19 = vpop.permute.xlu0 %469  ;;  %10145 = vst [vmem:[#allocation8_spill] sm:$0xff] %v6539_v43  ;;  %v523_v51 = vmul.f32 %v6539_v43, %v506_v45  ;;  %v6588_v45 = vperm.slane %v322_v38, 0 }
  0xbe   : > { %10151 = vst [vmem:[#allocation14_spill] sm:$0xff] %v6588_v45 }
  0xbf   : > { %v6492_v20 = vld.sshfl [vmem:[#allocation1] sm:$0xff pattern:$0x75316420]  ;;  %v876_v21 = vld.sshfl [vmem:[#allocation1 + $0x8] sm:$0xff pattern:$0x75316420] }
  0xc0   : > { %899 = vst [vmem:[#allocation1] ss:$2 sm:$0xff] %v6378_v32 }
  0xc1   : > { %1072 = vrot.lane.b32.xlu1 %v1065_v3, %s6254_s26  ;;  %869 = vrot.lane.b32.xlu2 %v868_v16, %s6248_s20 }
  0xc3   : > { %v6497_v22 = vpop.permute.xlu1 %379  ;;  %v6499_v23 = vpop.permute.xlu2 %465 }
  0xc4   : > { %v6501_v24 = vpop.permute.xlu0 %432  ;;  %v473_v54 = vsel %vm471_vm3, %v6499_v23, %v6465_v9 }
  0xc5   : > { %v486_v3 = vmul.f32 %v6556_v53, %v473_v54 }
  0xc7   : > { %v6503_v25 = vld.sshfl [vmem:[#allocation1 + $0x8] sm:$0xff pattern:$0x75316420] }
  0xc8   : > { %904 = vst [vmem:[#allocation1] ss:$2 sm:$0xff] %v6455_v6 }
  0xc9   : > { %949 = vrot.lane.b32.xlu1 %v6414_v50, %s6250_s22 }
  0xcb   : > { %v6508_v26 = vpop.permute.xlu1 %426  ;;  %v6510_v27 = vpop.permute.xlu2 %463 }
  0xcc   : > { %v6512_v28 = vpop.permute.xlu0 %536 }
  0xcd   : > { %v543_v48 = vsel %vm10133_vm2, %v6512_v28, %v6486_v17 }
  0xcf   : > { %v908_v29 = vld.sshfl [vmem:[#allocation1 + $0x8] sm:$0xff pattern:$0x75316420]  ;;  %v6514_v30 = vld.sshfl [vmem:[#allocation1] sm:$0xff pattern:$0x75316420] }
  0xd0   : > { %913 = vrot.lane.b32.xlu0 %v908_v29, %s6249_s21  ;;  %931 = vst [vmem:[#allocation1] ss:$2 sm:$0xff] %v6378_v32  ;;  %v436_v29 = vsel %vm434_vm6, %v6467_v10, %v6451_v4 }
  0xd1   : > { %917 = vrot.lane.b32.xlu1 %v6406_v46, %s6249_s21  ;;  %v6549_v46 = vperm.slane %v322_v38, 6  ;;  %v449_v54 = vmul.f32 %v6572_v60, %v436_v29 }
  0xd3   : > { %v6520_v31 = vpop.permute.xlu1 %453  ;;  %v6522_v33 = vpop.permute.xlu2 %497  ;;  %10146 = vst [vmem:[#allocation9_spill] sm:$0xff] %v6549_v46  ;;  %v560_v57 = vmul.f32 %v6549_v46, %v543_v48  ;;  %v362_v48 = vsel %vm10132_vm7, %v6473_v13, %v6421_v52 }
  0xd4   : > { %v6524_v34 = vpop.permute.xlu0 %573 }
  0xd7   : > { %v932_v37 = vld.sshfl [vmem:[#allocation1 + $0x8] sm:$0xff pattern:$0x75316420] }
  0xd8   : > { %933 = vrot.lane.b32.xlu2 %v932_v37, %s6250_s22  ;;  %936 = vst [vmem:[#allocation1] ss:$2 sm:$0xff] %v6455_v6 }
  0xd9   : > { %853 = vrot.lane.b32.xlu1 %v6391_v39, %s6247_s19 }
  0xdb   : > { %v6535_v41 = vpop.permute.xlu1 %610  ;;  %v6537_v42 = vpop.permute.xlu2 %883 }
  0xdc   : > { %10144 = vst [vmem:[#allocation7_spill] sm:$0xff] %v6537_v42  ;;  %v6541_v44 = vpop.permute.xlu0 %575 }
  0xdd   : > { %v580_v39 = vsel %vm577_vm1, %v6524_v34, %v6541_v44 }
  0xde   : > { %v597_v47 = vmul.f32 %v6533_v40, %v580_v39  ;;  %v412_v39 = vmul.f32 %v6569_v56, %v399_v61  ;;  %v654_v61 = vrot.slane %v486_v3, 4 }
  0xdf   : > { %v940_v49 = vld.sshfl [vmem:[#allocation1 + $0x8] sm:$0xff pattern:$0x75316420]  ;;  %v939_v50 = vld.sshfl [vmem:[#allocation1] sm:$0xff pattern:$0x75316420] }
  0xe0   : > { %945 = vrot.lane.b32.xlu0 %v940_v49, %s6250_s22  ;;  %963 = vst [vmem:[#allocation1] ss:$2 sm:$0xff] %v6455_v6  ;;  %v689_v58 = vrot.slane %v597_v47, 4 }
  0xe1   : > { %881 = vrot.lane.b32.xlu1 %v876_v21, %s6248_s20  ;;  %v677_v21 = vrot.slane %v523_v51, 4 }
  0xe2   : > { %v710_v47 = vsel %vm695_vm8, %v560_v57, %v689_v58  ;;  %v375_v57 = vmul.f32 %v6588_v45, %v362_v48  ;;  %v642_v58 = vrot.slane %v412_v39, 4  ;;  %v323_v45 = vld [vmem:[%s10020_s6 + $0x18] sm:$0xff] }
  0xe3   : > { %v613_v62 = vpop.permute.xlu1 %612  ;;  %v6577_v2 = vpop.permute.xlu2 %550  ;;  %v706_v38 = vsel %vm695_vm8, %v6381_v35, %v677_v21  ;;  %v6647_v56 = vperm.slane %v323_v45, 3  ;;  %v6717_v46 = vperm.slane %v323_v45, 0 }
  0xe4   : > { %v6580_v11 = vpop.permute.xlu0 %358  ;;  %v617_v16 = vsel %vm614_vm5, %v6535_v41, %v613_v62 }
  0xe5   : > { %v634_v37 = vmul.f32 %v6567_v55, %v617_v16  ;;  %10156 = vst [vmem:[#allocation19_spill] sm:$0xff] %v6647_v56 }
  0xe6   : > { %10166 = vst [vmem:[#allocation29_spill] sm:$0xff] %v6717_v46 }
  0xe7   : > { %5954 = vmatpush.msk.msra.mxu2 %vm695_vm8, %v634_v37  ;;  %v966_v49 = vld.sshfl [vmem:[#allocation1] sm:$0xff pattern:$0x75316420]  ;;  %v967_v51 = vld.sshfl [vmem:[#allocation1 + $0x8] sm:$0xff pattern:$0x75316420] }
  0xe8   : > { %943 = vrot.lane.b32.xlu0 %v939_v50, %s6250_s22  ;;  %970 = vrot.lane.b32.xlu2 %v966_v49, %s6251_s23  ;;  %985 = vst [vmem:[#allocation1] ss:$2 sm:$0xff] %v6455_v6  ;;  %v702_v50 = vsel %vm695_vm8, %v449_v54, %v654_v61  ;;  %v698_v49 = vsel %vm695_vm8, %v375_v57, %v642_v58  ;;  %v6632_v57 = vld [vmem:[%s10020_s6 + $0x38] ss:$0 sm:$0xff] }
  0xe9   : > { %799 = vmatpush.msra.mxu2 %v710_v47  ;;  %10153 = vst [vmem:[#allocation16_spill] sm:$0xff] %v6632_v57 }
  0xeb   : > { %v6603_v16 = vpop.permute.xlu1 %495  ;;  %800 = vmatpush.msra.mxu2 %v706_v38  ;;  %v6605_v37 = vpop.permute.xlu2 %974 }
  0xec   : > { %v6607_v29 = vpop.permute.xlu0 %416 }
  0xed   : > { %801 = vmatpush.msra.mxu2 %v702_v50 }
  0xef   : > { %802 = vmatpush.msra.mxu2 %v698_v49  ;;  %v986_v35 = vld.sshfl [vmem:[#allocation1] sm:$0xff pattern:$0x75316420] }
  0xf0   : > { %972 = vrot.lane.b32.xlu0 %v967_v51, %s6251_s23  ;;  %987 = vrot.lane.b32.xlu2 %v986_v35, %s6251_s23  ;;  %995 = vst [vmem:[#allocation1] ss:$2 sm:$0xff] %v6455_v6 }
  0xf3   : > { %v6614_v3 = vpop.permute.xlu1 %513  ;;  %v6616_v21 = vpop.permute.xlu2 %606 }
  0xf4   : > { %v6618_v39 = vpop.permute.xlu0 %352 }
  0xf7   : > { %v999_v47 = vld.sshfl [vmem:[#allocation1 + $0x8] sm:$0xff pattern:$0x75316420]  ;;  %v998_v48 = vld.sshfl [vmem:[#allocation1] sm:$0xff pattern:$0x75316420] }
  0xf8   : > { %1004 = vrot.lane.b32.xlu2 %v999_v47, %s6252_s24  ;;  %1017 = vst [vmem:[#allocation1] ss:$2 sm:$0xff] %v6455_v6  ;;  %1002 = vrot.lane.b32.xlu1 %v998_v48, %s6252_s24 }
  0xfb   : > { %v6623_v54 = vpop.permute.xlu1 %534  ;;  %v6625_v51 = vpop.permute.xlu2 %1008 }
  0xfc   : > { %10152 = vst [vmem:[#allocation15_spill] sm:$0xff] %v6625_v51  ;;  %v533_v38 = vpop.permute.xlu0 %532 }
  0xff   : > { %v1018_v61 = vld.sshfl [vmem:[#allocation1] sm:$0xff pattern:$0x75316420] }
 0x100   : > { %1019 = vrot.lane.b32.xlu0 %v1018_v61, %s6252_s24  ;;  %1027 = vst [vmem:[#allocation1] ss:$2 sm:$0xff] %v6455_v6 }
 0x103   : > { %v6634_v58 = vpop.permute.xlu1 %915  ;;  %v625_v50 = vpop.permute.xlu2 %624 }
 0x104   : > { %10154 = vst [vmem:[#allocation17_spill] sm:$0xff] %v6634_v58  ;;  %v6636_v49 = vpop.permute.xlu0 %851  ;;  %v627_v35 = vsel %vm614_vm5, %v613_v62, %v625_v50  ;;  %v6652_v50 = vld [vmem:[%s10020_s6 + $0x8] sm:$0xff] }
 0x105   : > { %10155 = vst [vmem:[#allocation18_spill] sm:$0xff] %v6636_v49  ;;  %v635_v47 = vmul.f32 %v6632_v57, %v627_v35  ;;  %v474_v35 = vsel %vm471_vm3, %v6465_v9, %v6490_v19  ;;  %v6666_v57 = vperm.slane %v6652_v50, 1  ;;  %v398_v9 = vsel %vm397_vm4, %v6479_v15, %v6477_v14 }
 0x106   : > { %v6669_v49 = vmul.f32 %v6647_v56, %v474_v35  ;;  %v6687_v35 = vperm.slane %v6652_v50, 5  ;;  %v6690_v14 = vperm.slane %v6652_v50, 2  ;;  %v6693_v56 = vperm.slane %v6652_v50, 3 }
 0x107   : > { %5957 = vmatpush.msk.msra.mxu3 %vm695_vm8, %v635_v47  ;;  %v1031_v48 = vld.sshfl [vmem:[#allocation1 + $0x8] sm:$0xff pattern:$0x75316420]  ;;  %v1030_v61 = vld.sshfl [vmem:[#allocation1] sm:$0xff pattern:$0x75316420] }
 0x108   : > { %1036 = vrot.lane.b32.xlu2 %v1031_v48, %s6253_s25  ;;  %1034 = vrot.lane.b32.xlu1 %v1030_v61, %s6253_s25  ;;  %1049 = vst [vmem:[#allocation1] ss:$2 sm:$0xff] %v6455_v6  ;;  %v6657_v47 = vperm.slane %v323_v45, 1  ;;  %v320_v48 = vld [vmem:[%s10020_s6] sm:$0xff]  ;;  %v400_v61 = vsel %vm397_vm4, %v6459_v8, %v6430_v59  ;;  %v405_v59 = vsel %vm397_vm4, %v6497_v22, %v6479_v15  ;;  %v6684_v8 = vperm.slane %v323_v45, 2 }
 0x109   : > { %10158 = vst [vmem:[#allocation21_spill] sm:$0xff] %v6666_v57  ;;  %v6674_v19 = vperm.slane %v320_v48, 1  ;;  %v6703_v15 = vmul.f32 %v6666_v57, %v398_v9  ;;  %v6706_v58 = vperm.slane %v320_v48, 3  ;;  %v479_v9 = vsel %vm471_vm3, %v6520_v31, %v6510_v27 }
 0x10a   : > { %10157 = vst [vmem:[#allocation20_spill] sm:$0xff] %v6657_v47  ;;  %v6679_v42 = vmul.f32 %v6657_v47, %v400_v61  ;;  %v6698_v61 = vperm.slane %v320_v48, 7  ;;  %v6734_v57 = vperm.slane %v320_v48, 6  ;;  %v435_v31 = vsel %vm434_vm6, %v6508_v26, %v6467_v10 }
 0x10b   : > { %v572_v60 = vpop.permute.xlu1 %571  ;;  %10159 = vst [vmem:[#allocation22_spill] sm:$0xff] %v6674_v19  ;;  %v6712_v7 = vmul.f32 %v6674_v19, %v405_v59  ;;  %v6730_v59 = vperm.slane %v6652_v50, 7  ;;  %v6732_v19 = vperm.slane %v323_v45, 5  ;;  %v6762_v10 = vperm.slane %v323_v45, 7 }
 0x10c   : > { %v570_v62 = vpop.permute.xlu0 %569  ;;  %10160 = vst [vmem:[#allocation23_spill] sm:$0xff] %v6684_v8 }
 0x10d   : > { %10161 = vst [vmem:[#allocation24_spill] sm:$0xff] %v6687_v35  ;;  %v578_v55 = vsel %vm577_vm1, %v570_v62, %v572_v60  ;;  %v6727_v62 = vperm.slane %v320_v48, 5 }
 0x10e   : > { %10162 = vst [vmem:[#allocation25_spill] sm:$0xff] %v6690_v14  ;;  %v595_v43 = vmul.f32 %v6698_v61, %v578_v55  ;;  %v6753_v55 = vperm.slane %v320_v48, 2 }
 0x10f   : > { %v1050_v53 = vld.sshfl [vmem:[#allocation1] sm:$0xff pattern:$0x75316420]  ;;  %10163 = vst [vmem:[#allocation26_spill] sm:$0xff] %v6693_v56 }
 0x110   : > { %1051 = vrot.lane.b32.xlu2 %v1050_v53, %s6253_s25  ;;  %1059 = vst [vmem:[#allocation1] ss:$2 sm:$0xff] %v6455_v6  ;;  %v505_v53 = vsel %vm503_vm0, %v6522_v33, %v6440_v63  ;;  %v472_v63 = vsel %vm471_vm3, %v6510_v27, %v6499_v23  ;;  %v579_v23 = vsel %vm577_vm1, %v572_v60, %v6524_v34  ;;  %v6770_v60 = vperm.slane %v6652_v50, 0 }
 0x111   : > { %10165 = vst [vmem:[#allocation28_spill] sm:$0xff] %v6706_v58  ;;  %v6725_v22 = vmul.f32 %v6687_v35, %v505_v53  ;;  %v437_v27 = vsel %vm434_vm6, %v6451_v4, %v6501_v24  ;;  %v504_v53 = vsel %vm503_vm0, %v6603_v16, %v6522_v33  ;;  %v541_v35 = vsel %vm10133_vm2, %v533_v38, %v6623_v54 }
 0x112   : > { %10168 = vst [vmem:[#allocation31_spill] sm:$0xff] %v6732_v19  ;;  %v6751_v34 = vmul.f32 %v6693_v56, %v472_v63  ;;  %v516_v4 = vsel %vm503_vm0, %v6453_v5, %v6614_v3  ;;  %v6765_v24 = vmul.f32 %v6706_v58, %v479_v9  ;;  %v6767_v33 = vperm.slane %v320_v48, 0  ;;  %v6777_v5 = vld [vmem:[%s10020_s6 + $0x20] ss:$0 sm:$0xff] }
 0x113   : > { %v6700_v47 = vpop.permute.xlu1 %947  ;;  %10169 = vst [vmem:[#allocation32_spill] sm:$0xff] %v6734_v57  ;;  %v596_v16 = vmul.f32 %v6730_v59, %v579_v23  ;;  %v558_v3 = vmul.f32 %v6734_v57, %v541_v35  ;;  %v676_v48 = vrot.slane %v6725_v22, 4  ;;  %v524_v63 = vmul.f32 %v6732_v19, %v516_v4 }
 0x114   : > { %10164 = vst [vmem:[#allocation27_spill] sm:$0xff] %v6700_v47  ;;  %v6709_v32 = vpop.permute.xlu0 %976  ;;  %v6719_v47 = vperm.slane %v323_v45, 6  ;;  %v521_v45 = vmul.f32 %v6727_v62, %v504_v53  ;;  %v6792_v9 = vperm.slane %v6652_v50, 6 }
 0x115   : > { %10170 = vst [vmem:[#allocation33_spill] sm:$0xff] %v6753_v55  ;;  %v688_v53 = vrot.slane %v596_v16, 4  ;;  %v652_v16 = vrot.slane %v6765_v24, 4 }
 0x116   : > { %10167 = vst [vmem:[#allocation30_spill] sm:$0xff] %v6719_v47 }
 0x117   : > { %v1063_v51 = vld.sshfl [vmem:[#allocation1 + $0x8] sm:$0xff pattern:$0x75316420]  ;;  %v1062_v40 = vld.sshfl [vmem:[#allocation1] sm:$0xff pattern:$0x75316420] }
 0x118   : > { %911 = vrot.lane.b32.xlu2 %v6514_v30, %s6249_s21  ;;  %1068 = vrot.lane.b32.xlu1 %v1063_v51, %s6254_s26  ;;  %1081 = vst [vmem:[#allocation1] ss:$2 sm:$0xff] %v6455_v6  ;;  %v6782_v30 = vld [vmem:[%s10020_s6 + $0x28] ss:$0 sm:$0xff]  ;;  %v687_v51 = vrot.slane %v595_v43, 4  ;;  %v542_v43 = vsel %vm10133_vm2, %v6623_v54, %v6512_v28  ;;  %v675_v28 = vrot.slane %v521_v45, 4 }
 0x119   : > { %10171 = vst [vmem:[#allocation34_spill] sm:$0xff] %v6762_v10  ;;  %1066 = vrot.lane.b32.xlu0 %v1062_v40, %s6254_s26  ;;  %v553_v40 = vsel %vm10133_vm2, %v6486_v17, %v6577_v2  ;;  %v442_v2 = vsel %vm434_vm6, %v6607_v29, %v6508_v26  ;;  %v678_v26 = vrot.slane %v524_v63, 4  ;;  %v559_v29 = vmul.f32 %v6792_v9, %v542_v43 }
 0x11a   : > { %10172 = vst [vmem:[#allocation35_spill] sm:$0xff] %v6767_v33  ;;  %v561_v4 = vmul.f32 %v6719_v47, %v553_v40  ;;  %v447_v45 = vmul.f32 %v6753_v55, %v442_v2  ;;  %v705_v40 = vsel %vm695_vm8, %v6444_v1, %v676_v48  ;;  %v640_v63 = vrot.slane %v6712_v7, 4  ;;  %v10176_v2 = vld [vmem:[#allocation6_spill] sm:$0xff] }
 0x11b   : > { %10173 = vst [vmem:[#allocation36_spill] sm:$0xff] %v6770_v60  ;;  %v588_v38 = vpop.permute.xlu1 %587  ;;  %v709_v24 = vsel %vm695_vm8, %v559_v29, %v688_v53  ;;  %v10175_v43 = vrot.slane %v6669_v49, 4  ;;  %v643_v1 = vrot.slane %v6679_v42, 4  ;;  %v6860_v49 = vpop.permute.xlu2 %1040  ;;  %v10178_v53 = vld [vmem:[#allocation8_spill] sm:$0xff] }
 0x11c   : > { %10174 = vst [vmem:[#allocation37_spill] sm:$0xff] %v6792_v9  ;;  %v590_v23 = vsel %vm577_vm1, %v6541_v44, %v588_v38  ;;  %v609_v58 = vpop.permute.xlu0 %608  ;;  %v708_v38 = vsel %vm695_vm8, %v558_v3, %v687_v51  ;;  %v448_v3 = vmul.f32 %v6690_v14, %v435_v31  ;;  %v653_v51 = vrot.slane %v6751_v34, 4 }
 0x11d   : > { %v598_v35 = vmul.f32 %v6762_v10, %v590_v23  ;;  %v615_v22 = vsel %vm614_vm5, %v6616_v21, %v609_v58  ;;  %v616_v17 = vsel %vm614_vm5, %v609_v58, %v6535_v41  ;;  %v363_v21 = vsel %vm10132_vm7, %v6421_v52, %v6580_v11 }
 0x11e   : > { %v632_v50 = vmul.f32 %v6777_v5, %v615_v22  ;;  %v633_v44 = vmul.f32 %v6782_v30, %v616_v17  ;;  %v368_v41 = vsel %vm10132_vm7, %v6488_v18, %v6618_v39  ;;  %v361_v52 = vsel %vm10132_vm7, %v6618_v39, %v6473_v13 }
 0x11f   : > { %v690_v54 = vrot.slane %v598_v35, 4  ;;  %v1082_v58 = vld.sshfl [vmem:[#allocation1] sm:$0xff pattern:$0x75316420]  ;;  %v450_v11 = vmul.f32 %v6684_v8, %v437_v27  ;;  %v373_v13 = vmul.f32 %v6767_v33, %v368_v41  ;;  %v704_v39 = vsel %vm695_vm8, %v6442_v0, %v675_v28  ;;  %v10179_v28 = vld [vmem:[#allocation9_spill] sm:$0xff] }
 0x120   : > { %5948 = vmatpush.msk.msra.mxu0 %vm695_vm8, %v632_v50  ;;  %5951 = vmatpush.msk.msra.mxu1 %vm695_vm8, %v633_v44  ;;  %1115 = vst [vmem:[#allocation1] ss:$2 sm:$0xff] %v6455_v6  ;;  %v376_v27 = vmul.f32 %v6717_v46, %v363_v21  ;;  %v374_v31 = vmul.f32 %v6770_v60, %v361_v52  ;;  %v641_v22 = vrot.slane %v6703_v15, 4  ;;  %v10177_v44 = vld [vmem:[#allocation15_spill] sm:$0xff] }
 0x121   : > { %901 = vrot.lane.b32.xlu1 %v6503_v25, %s6249_s21  ;;  %v711_v18 = vsel %vm695_vm8, %v561_v4, %v690_v54  ;;  %1083 = vrot.lane.b32.xlu0 %v1082_v58, %s6254_s26  ;;  %v707_v34 = vsel %vm695_vm8, %v6383_v36, %v678_v26  ;;  %v700_v23 = vsel %vm695_vm8, %v447_v45, %v652_v16  ;;  %v1120_v4 = vld.sshfl [vmem:[#allocation1 + $0x10] sm:$0xff pattern:$0x75316420]  ;;  %v6878_v41 = vld.sshfl [vmem:[#allocation1 + $0x18] sm:$0xff pattern:$0x75316420] }
 0x122   : > { %753 = vmatpush.msra.mxu0 %v708_v38  ;;  %776 = vmatpush.msra.mxu1 %v709_v24  ;;  %v701_v0 = vsel %vm695_vm8, %v448_v3, %v653_v51  ;;  %v703_v35 = vsel %vm695_vm8, %v450_v11, %v10175_v43  ;;  %v696_v36 = vsel %vm695_vm8, %v373_v13, %v640_v63  ;;  %v10180_v38 = vld [vmem:[#allocation5_spill] sm:$0xff]  ;;  %v10181_v58 = vld [vmem:[#allocation3_spill] sm:$0xff] }
 0x123   : > { %822 = vmatpush.msra.mxu3 %v711_v18  ;;  %v6835_v25 = vpop.permute.xlu1 %1006  ;;  %v697_v7 = vsel %vm695_vm8, %v374_v31, %v641_v22  ;;  %v699_v48 = vsel %vm695_vm8, %v376_v27, %v643_v1  ;;  %v980_v17 = vsel %vm503_vm0, %v6605_v37, %v6709_v32  ;;  %1343 = vst [vmem:[#allocation1 + $0x10] ss:$2 sm:$0xff] %v10181_v58  ;;  %v10182_v52 = vld [vmem:[#allocation11_spill] sm:$0xff]  ;;  %v6894_v51 = vpop.permute.xlu2 %849 }
 0x124   : > { %754 = vmatpush.msra.mxu0 %v704_v39  ;;  %777 = vmatpush.msra.mxu1 %v705_v40  ;;  %v6880_v26 = vpop.permute.xlu0 %1070  ;;  %v10184_v22 = vld [vmem:[#allocation27_spill] sm:$0xff] }
 0x125   : > { %823 = vmatpush.msra.mxu3 %v707_v34  ;;  %v328_v34 = vld [vmem:[%s10016_s2] sm:$0xff] }
 0x126   : > { %755 = vmatpush.msra.mxu0 %v700_v23  ;;  %778 = vmatpush.msra.mxu1 %v701_v0  ;;  %v10183_v0 = vld [vmem:[#allocation17_spill] sm:$0xff] }
 0x127   : > { %824 = vmatpush.msra.mxu3 %v703_v35  ;;  %5955 = vmatmul.msk.f32.vlgmr.msra.gmra.mxu2 %vm10131_vm9, %v328_v34 }
 0x128   : > { %756 = vmatpush.msra.mxu0 %v696_v36  ;;  %779 = vmatpush.msra.mxu1 %v697_v7  ;;  %v10185_v36 = vld [vmem:[#allocation7_spill] sm:$0xff] }
 0x129   : > { %825 = vmatpush.msra.mxu3 %v699_v48  ;;  %847 = vrot.lane.b32.xlu1 %v6469_v12, %s6247_s19  ;;  %v1012_v12 = vsel %vm10133_vm2, %v6835_v25, %v10177_v44  ;;  %v10186_v48 = vld [vmem:[#allocation10_spill] sm:$0xff] }
 0x12a   : > { %879 = vrot.lane.b32.xlu0 %v6492_v20, %s6248_s20  ;;  %v993_v20 = vmul.f32 %v980_v17, %v10178_v53  ;;  %v1025_v54 = vmul.f32 %v1012_v12, %v10179_v28  ;;  %5958 = vmatmul.msk.f32.vlgmr.msra.gmra.mxu3 %vm10131_vm9, %v328_v34  ;;  %v10187_v17 = vld [vmem:[#allocation18_spill] sm:$0xff]  ;;  %v10188_v12 = vld [vmem:[#allocation12_spill] sm:$0xff] }
 0x12b   : > { %v6862_v42 = vpop.permute.xlu1 %1038  ;;  %v6900_v27 = vpop.permute.xlu2 %869  ;;  %5952 = vmatmul.msk.f32.vlgmr.msra.gmra.mxu1 %vm10131_vm9, %v328_v34  ;;  %5949 = vmatmul.msk.f32.vlgmr.msra.gmra.mxu0 %vm10131_vm9, %v328_v34  ;;  %v6944_v34 = vld [vmem:[%s10018_s4] sm:$0xff] }
 0x12c   : > { %v1044_v15 = vsel %vm577_vm1, %v6862_v42, %v6860_v49  ;;  %v1132_v45 = vrot.slane %v993_v20, 4  ;;  %v6896_v13 = vpop.permute.xlu0 %885  ;;  %v10191_v53 = vld [vmem:[#allocation24_spill] sm:$0xff] }
 0x12d   : > { %v1057_v50 = vmul.f32 %v1044_v15, %v10176_v2 }
 0x12e   : > { %v1160_v3 = vsel %vm695_vm8, %v1120_v4, %v1132_v45  ;;  %v329_v4 = vld [vmem:[%s10016_s2 + $0x8] sm:$0xf]  ;;  %v10190_v45 = vld [vmem:[#allocation14_spill] sm:$0xff] }
 0x12f   : > { %v1144_v21 = vrot.slane %v1057_v50, 4  ;;  %v856_v50 = vsel %vm10132_vm7, %v6894_v51, %v10187_v17  ;;  %5956 = vmatmul.msk.f32.gmra.mxu2 %vm10131_vm9, %v329_v4 }
 0x131   : > { %v1164_v11 = vsel %vm695_vm8, %v1025_v54, %v1144_v21  ;;  %v10189_v54 = vld [vmem:[#allocation13_spill] sm:$0xff] }
 0x132   : > { %836 = vrot.lane.b32.xlu0 %v10180_v38, %s6247_s19  ;;  %5959 = vmatmul.msk.f32.gmra.mxu3 %vm10131_vm9, %v329_v4 }
 0x133   : > { %v6882_v29 = vpop.permute.xlu1 %1072  ;;  %v6911_v63 = vpop.permute.xlu2 %933  ;;  %5953 = vmatmul.msk.f32.gmra.mxu1 %vm10131_vm9, %v329_v4  ;;  %5950 = vmatmul.msk.f32.gmra.mxu0 %vm10131_vm9, %v329_v4 }
 0x134   : > { %v1076_v16 = vsel %vm614_vm5, %v6880_v26, %v6882_v29 }
 0x135   : > { %v1089_v18 = vmul.f32 %v10182_v52, %v1076_v16  ;;  %v865_v52 = vmul.f32 %v856_v50, %v10190_v45 }
 0x137   : > { %5964 = vmatpush.msk.msrb.mxu2 %vm695_vm8, %v1089_v18 }
 0x139   : > { %1233 = vmatpush.msrb.mxu2 %v1164_v11 }
 0x13b   : > { %v6892_v24 = vpop.permute.xlu1 %949  ;;  %1234 = vmatpush.msrb.mxu2 %v1160_v3 }
 0x142   : > { %v6902_v31 = vpop.permute.xlu0 %913  ;;  %v971_v11 = vpop.permute.xlu2 %970 }
 0x143   : > { %v6898_v39 = vpop.permute.xlu1 %917  ;;  %v920_v43 = vsel %vm434_vm6, %v6902_v31, %v10183_v0 }
 0x144   : > { %v929_v38 = vmul.f32 %v920_v43, %v10189_v54  ;;  %v1118_v43 = vld.sshfl [vmem:[#allocation1] sm:$0xff pattern:$0x75316420] }
 0x145   : > { %v332_v54 = vld [vmem:[%s10017_s3] sm:$0xff] }
 0x14b   : > { %v6904_v40 = vpop.permute.xlu1 %853 }
 0x152   : > { %v946_v23 = vpop.permute.xlu0 %945 }
 0x153   : > { %v6918_v35 = vpop.permute.xlu1 %881  ;;  %v952_v1 = vsel %vm471_vm3, %v946_v23, %v10184_v22 }
 0x154   : > { %v888_v7 = vsel %vm397_vm4, %v6918_v35, %v10185_v36  ;;  %v961_v15 = vmul.f32 %v952_v1, %v10186_v48  ;;  %v1119_v1 = vld.sshfl [vmem:[#allocation1 + $0x8] sm:$0xff pattern:$0x75316420] }
 0x155   : > { %v897_v20 = vmul.f32 %v888_v7, %v10188_v12  ;;  %1341 = vst [vmem:[#allocation1] ss:$2 sm:$0xff] %v6455_v6  ;;  %v988_v7 = vpop.permute.xlu2 %987 }
 0x156   : > { %v1109_v21 = vrot.slane %v961_v15, 4 }
 0x157   : > { %v1097_v16 = vrot.slane %v897_v20, 4 }
 0x158   : > { %v1156_v18 = vsel %vm695_vm8, %v929_v38, %v1109_v21 }
 0x159   : > { %1235 = vmatpush.msrb.mxu2 %v1156_v18  ;;  %v1152_v3 = vsel %vm695_vm8, %v865_v52, %v1097_v16  ;;  %v6255_v18 = vmov 0  }
 0x15a   : > { %v944_v50 = vpop.permute.xlu0 %943  ;;  %6110 = vset.pattern.permute.xlu2 %v6255_v18  ;;  %6111 = vset.pattern.permute.xlu0 %v6255_v18 }
 0x15b   : > { %1236 = vmatpush.msrb.mxu2 %v1152_v3  ;;  %714 = vperm.xlu2 %6110, %v332_v54  }
 0x15c   : > { %5965 = vmatmul.msk.f32.vlgmr.msrb.gmra.mxu2 %vm10131_vm9, %v6944_v34 }
 0x15d   : > { %v1005_v15 = vpop.permute.xlu2 %1004 }
 0x15e   : > { %v1011_v18 = vsel %vm10133_vm2, %v1005_v15, %v6835_v25 }
 0x162   : > { %v973_v38 = vpop.permute.xlu0 %972 }
 0x163   : > { %v979_v12 = vsel %vm503_vm0, %v973_v38, %v6605_v37  ;;  %v978_v48 = vsel %vm503_vm0, %v971_v11, %v973_v38  ;;  %v1024_v37 = vmul.f32 %v1011_v18, %v6792_v9 }
 0x164   : > { %v992_v6 = vmul.f32 %v979_v12, %v10191_v53  ;;  %v991_v54 = vmul.f32 %v978_v48, %v6727_v62  ;;  %v958_v48 = vsel %vm471_vm3, %v6911_v63, %v944_v50 }
 0x165   : > { %v1037_v20 = vpop.permute.xlu2 %1036 }
 0x166   : > { %v1043_v3 = vsel %vm577_vm1, %v1037_v20, %v6862_v42  ;;  %v1131_v18 = vrot.slane %v992_v6, 4 }
 0x167   : > { %v1056_v28 = vmul.f32 %v1043_v3, %v6730_v59 }
 0x169   : > { %v1143_v3 = vrot.slane %v1056_v28, 4  ;;  %v990_v28 = vsel %vm503_vm0, %v6709_v32, %v988_v7  ;;  %v1159_v32 = vsel %vm695_vm8, %v1119_v1, %v1131_v18 }
 0x16a   : > { %v1003_v4 = vpop.permute.xlu1 %1002 }
 0x16b   : > { %v1010_v2 = vsel %vm10133_vm2, %v1003_v4, %v1005_v15  ;;  %v1163_v63 = vsel %vm695_vm8, %v1024_v37, %v1143_v3  ;;  %v953_v37 = vsel %vm471_vm3, %v10184_v22, %v6892_v24  ;;  %v10193_v24 = vld [vmem:[#allocation16_spill] sm:$0xff] }
 0x16c   : > { %v1023_v11 = vmul.f32 %v1010_v2, %v6734_v57 }
 0x16d   : > { %v1052_v21 = vpop.permute.xlu2 %1051 }
 0x172   : > { %v1020_v52 = vpop.permute.xlu0 %1019 }
 0x173   : > { %v1022_v6 = vsel %vm10133_vm2, %v10177_v44, %v1020_v52 }
 0x174   : > { %v1026_v1 = vmul.f32 %v1022_v6, %v6719_v47 }
 0x175   : > { %v912_v58 = vpop.permute.xlu2 %911 }
 0x17a   : > { %v1035_v16 = vpop.permute.xlu1 %1034 }
 0x17b   : > { %v1042_v45 = vsel %vm577_vm1, %v1035_v16, %v1037_v20  ;;  %v951_v20 = vsel %vm471_vm3, %v944_v50, %v946_v23  ;;  %v10192_v50 = vld [vmem:[#allocation28_spill] sm:$0xff] }
 0x17c   : > { %v1055_v42 = vmul.f32 %v1042_v45, %v6698_v61  ;;  %v919_v45 = vsel %vm434_vm6, %v912_v58, %v6902_v31  ;;  %v960_v4 = vmul.f32 %v951_v20, %v6693_v56  ;;  %v1054_v31 = vsel %vm577_vm1, %v6860_v49, %v1052_v21 }
 0x17d   : > { %v959_v20 = vmul.f32 %v958_v48, %v10192_v50  ;;  %v994_v49 = vmul.f32 %v990_v28, %v6732_v19  ;;  %v1058_v21 = vmul.f32 %v1054_v31, %v6762_v10 }
 0x17e   : > { %v1142_v15 = vrot.slane %v1055_v42, 4  ;;  %v928_v42 = vmul.f32 %v919_v45, %v6690_v14  ;;  %v1108_v7 = vrot.slane %v960_v4, 4  ;;  %v889_v45 = vsel %vm397_vm4, %v10185_v36, %v6896_v13  ;;  %v10195_v13 = vld [vmem:[#allocation20_spill] sm:$0xff] }
 0x17f   : > { %v1145_v48 = vrot.slane %v1058_v21, 4  ;;  %v898_v36 = vmul.f32 %v889_v45, %v10195_v13 }
 0x180   : > { %v1155_v44 = vsel %vm695_vm8, %v928_v42, %v1108_v7 }
 0x18a   : > { %v1069_v16 = vpop.permute.xlu1 %1068 }
 0x18b   : > { %v1075_v38 = vsel %vm614_vm5, %v1069_v16, %v6880_v26  ;;  %v1067_v25 = vpop.permute.xlu0 %1066  ;;  %v1130_v26 = vrot.slane %v991_v54, 4 }
 0x18c   : > { %v1074_v12 = vsel %vm614_vm5, %v1067_v25, %v1069_v16  ;;  %v1088_v23 = vmul.f32 %v6782_v30, %v1075_v38  ;;  %v1162_v16 = vsel %vm695_vm8, %v1023_v11, %v1142_v15  ;;  %v10194_v15 = vld [vmem:[#allocation19_spill] sm:$0xff] }
 0x18d   : > { %v1087_v2 = vmul.f32 %v6777_v5, %v1074_v12  ;;  %v1158_v38 = vsel %vm695_vm8, %v1118_v43, %v1130_v26  ;;  %v1107_v43 = vrot.slane %v959_v20, 4  ;;  %v962_v12 = vmul.f32 %v953_v37, %v10194_v15  ;;  %v10196_v20 = vld [vmem:[#allocation21_spill] sm:$0xff] }
 0x18e   : > { %5962 = vmatpush.msk.msrb.mxu1 %vm695_vm8, %v1088_v23  ;;  %v1133_v23 = vrot.slane %v994_v49, 4 }
 0x18f   : > { %5960 = vmatpush.msk.msrb.mxu0 %vm695_vm8, %v1087_v2 }
 0x190   : > { %1213 = vmatpush.msrb.mxu1 %v1163_v63  ;;  %v1161_v26 = vsel %vm695_vm8, %v6878_v41, %v1133_v23 }
 0x191   : > { %1193 = vmatpush.msrb.mxu0 %v1162_v16 }
 0x192   : > { %1214 = vmatpush.msrb.mxu1 %v1159_v32 }
 0x193   : > { %v902_v54 = vpop.permute.xlu1 %901  ;;  %v1084_v25 = vpop.permute.xlu0 %1083  ;;  %1194 = vmatpush.msrb.mxu0 %v1158_v38 }
 0x194   : > { %v926_v11 = vsel %vm434_vm6, %v902_v54, %v912_v58  ;;  %v1086_v3 = vsel %vm614_vm5, %v6882_v29, %v1084_v25  ;;  %1215 = vmatpush.msrb.mxu1 %v1155_v44  ;;  %v921_v58 = vsel %vm434_vm6, %v10183_v0, %v6898_v39  ;;  %v857_v29 = vsel %vm10132_vm7, %v10187_v17, %v6904_v40 }
 0x195   : > { %v927_v52 = vmul.f32 %v926_v11, %v6753_v55  ;;  %v1090_v22 = vmul.f32 %v10193_v24, %v1086_v3  ;;  %v930_v2 = vmul.f32 %v921_v58, %v6684_v8  ;;  %v1165_v39 = vsel %vm695_vm8, %v1026_v1, %v1145_v48 }
 0x196   : > { %v1110_v0 = vrot.slane %v962_v12, 4  ;;  %v866_v18 = vmul.f32 %v857_v29, %v6717_v46  ;;  %v1098_v40 = vrot.slane %v898_v36, 4  ;;  %v1346_v36 = vld.sshfl [vmem:[#allocation1 + $0x10] sm:$0xff pattern:$0x75316420] }
 0x197   : > { %v1154_v4 = vsel %vm695_vm8, %v927_v52, %v1107_v43  ;;  %5966 = vmatpush.msk.msrb.mxu3 %vm695_vm8, %v1090_v22 }
 0x198   : > { %1195 = vmatpush.msrb.mxu0 %v1154_v4  ;;  %v1157_v63 = vsel %vm695_vm8, %v930_v2, %v1110_v0  ;;  %v1153_v41 = vsel %vm695_vm8, %v866_v18, %v1098_v40 }
 0x199   : > { %1253 = vmatpush.msrb.mxu3 %v1165_v39 }
 0x19b   : > { %v848_v28 = vpop.permute.xlu1 %847  ;;  %1254 = vmatpush.msrb.mxu3 %v1161_v26 }
 0x19c   : > { %v880_v31 = vpop.permute.xlu0 %879  ;;  %v855_v17 = vsel %vm10132_vm7, %v848_v28, %v6894_v51  ;;  %v10197_v51 = vld [vmem:[#allocation22_spill] sm:$0xff] }
 0x19d   : > { %v887_v42 = vsel %vm397_vm4, %v880_v31, %v6918_v35  ;;  %1255 = vmatpush.msrb.mxu3 %v1157_v63  ;;  %v894_v6 = vsel %vm397_vm4, %v6900_v27, %v880_v31  ;;  %v864_v32 = vmul.f32 %v855_v17, %v6770_v60  ;;  %v10199_v31 = vld [vmem:[#allocation3_spill] sm:$0xff]  ;;  %v1344_v63 = vld.sshfl [vmem:[#allocation1] sm:$0xff pattern:$0x75316420] }
 0x19e   : > { %v896_v16 = vmul.f32 %v887_v42, %v10196_v20  ;;  %v895_v49 = vmul.f32 %v894_v6, %v10197_v51  ;;  %v1345_v42 = vld.sshfl [vmem:[#allocation1 + $0x8] sm:$0xff pattern:$0x75316420] }
 0x19f   : > { %1256 = vmatpush.msrb.mxu3 %v1153_v41 }
 0x1a0   : > { %v1096_v7 = vrot.slane %v896_v16, 4  ;;  %5967 = vmatmul.msk.f32.vlgmr.msrb.gmra.mxu3 %vm10131_vm9, %v6944_v34  ;;  %v1095_v38 = vrot.slane %v895_v49, 4  ;;  %v10200_v16 = vld [vmem:[#allocation4_spill] sm:$0xff] }
 0x1a1   : > { %1700 = vst [vmem:[#allocation1 + $0x1] ss:$2 sm:$0xff] %v10200_v16 }
 0x1a2   : > { %v1151_v35 = vsel %vm695_vm8, %v864_v32, %v1096_v7 }
 0x1a3   : > { %1216 = vmatpush.msrb.mxu1 %v1151_v35 }
 0x1a4   : > { %v837_v21 = vpop.permute.xlu0 %836  ;;  %5963 = vmatmul.msk.f32.vlgmr.msrb.gmra.mxu1 %vm10131_vm9, %v6944_v34 }
 0x1a5   : > { %v862_v27 = vsel %vm10132_vm7, %v837_v21, %v848_v28  ;;  %v7057_v28 = vld.sshfl [vmem:[#allocation1 + $0x18] sm:$0xff pattern:$0x75316420] }
 0x1a6   : > { %v863_v54 = vmul.f32 %v862_v27, %v6767_v33  ;;  %1702 = vst [vmem:[#allocation1 + $0x11] ss:$2 sm:$0xff] %v10199_v31 }
 0x1a8   : > { %v1150_v37 = vsel %vm695_vm8, %v863_v54, %v1095_v38  ;;  %v781_v18 = vpop.f32.mrf.mxu1  ;;  %v758_v26 = vpop.f32.mrf.mxu0 }
 0x1a9   : > { %1196 = vmatpush.msrb.mxu0 %v1150_v37 }
 0x1aa   : > { %5961 = vmatmul.msk.f32.vlgmr.msrb.gmra.mxu0 %vm10131_vm9, %v6944_v34  ;;  %v804_v11 = vpop.f32.mrf.mxu2 }
 0x1ad   : > { %v827_v40 = vpop.f32.mrf.mxu3 }
 0x1b0   : > { %v7062_v17 = vpop.f32.mrf.mxu1  ;;  %v7067_v6 = vpop.f32.mrf.mxu0 }
 0x1b2   : > { %v7043_v25 = vpop.f32.mrf.mxu2 }
 0x1b5   : > { %v7045_v44 = vpop.permute.xlu2 %714  ;;  %v7069_v41 = vpop.f32.mrf.mxu3 }
 0x1b6   : > { %10198 = vst [vmem:[#allocation15_spill] sm:$0xff] %v7045_v44  ;;  %v805_v1 = vadd.f32 %v804_v11, %v7045_v44  ;;  %v782_v32 = vadd.f32 %v781_v18, %v7045_v44  ;;  %v759_v21 = vadd.f32 %v758_v26, %v7045_v44  ;;  %v828_v54 = vadd.f32 %v827_v40, %v7045_v44 }
 0x1df   : > { %v1238_v52 = vpop.f32.mrf.mxu2 }
 0x1e0   : > { %v1263_v3 = vadd.f32 %v1238_v52, %v805_v1 }
 0x1e2   : > { %v5970_v43 = vmul.f32 -1.442695, %v1263_v3 }
 0x1e4   : > { %6116 = vpow2.f32 %v5970_v43 }
 0x1ea   : > { %v6117_v45 = vpop.eup %6116 }
 0x1eb   : > { %v1279_v58 = vadd.f32 1.0, %v6117_v45 }
 0x1ed   : > { %6118 = vrcp.f32 %v1279_v58  ;;  %v1322_v12 = vand.u32 2147483648, %v1279_v58  ;;  %vm1316_vm10 = vweird.f32 %v1279_v58  ;;  %v1320_v34 = vand.u32 2147483647, %v1279_v58 }
 0x1ef   : > { %v1323_v4 = vor.u32 1.1754944e-38, %v1322_v12  ;;  %vm1321_vm13 = vcmp.eq.f32.partialorder %v1320_v34, 8.507059e+37 }
 0x1f3   : > { %v6119_v24 = vpop.eup %6118 }
 0x1f4   : > { %v1312_v22 = vmul.f32 %v6119_v24, %v1279_v58  ;;  %vm1317_vm11 = vweird.f32 %v6119_v24 }
 0x1f5   : > { %vm1318_vm12 = vmor %vm1316_vm10, %vm1317_vm11 }
 0x1f6   : > { %v1313_v23 = vsub.f32 1.0, %v1312_v22 }
 0x1f8   : > { %v1314_v48 = vmul.f32 %v6119_v24, %v1313_v23 }
 0x1fa   : > { %v1315_v29 = vadd.f32 %v6119_v24, %v1314_v48 }
 0x1fc   : > { %v1319_v2 = vsel %vm1318_vm12, %v6119_v24, %v1315_v29 }
 0x1fd   : > { %v7048_v39 = vsel %vm1321_vm13, %v1323_v4, %v1319_v2 }
 0x1fe   : > { %v7051_v0 = vmul.f32 %v1346_v36, %v7048_v39 }
 0x200   : > { %1490 = vrot.lane.b32.xlu2 %v7051_v0, %s6253_s25 }
 0x208   : > { %1511 = vrot.lane.b32.xlu2 %v7051_v0, %s6254_s26 }
 0x210   : > { %1448 = vrot.lane.b32.xlu2 %v7051_v0, %s6251_s23 }
 0x218   : > { %1469 = vrot.lane.b32.xlu2 %v7051_v0, %s6252_s24 }
 0x221   : > { %v1218_v7 = vpop.f32.mrf.mxu1 }
 0x222   : > { %v1262_v49 = vadd.f32 %v1218_v7, %v782_v32 }
 0x223   : > { %v1258_v37 = vpop.f32.mrf.mxu3 }
 0x224   : > { %v5969_v35 = vmul.f32 -1.442695, %v1262_v49  ;;  %v1264_v52 = vadd.f32 %v1258_v37, %v828_v54 }
 0x226   : > { %6120 = vpow2.f32 %v5969_v35  ;;  %v5971_v43 = vmul.f32 -1.442695, %v1264_v52 }
 0x227   : > { %v1198_v27 = vpop.f32.mrf.mxu0 }
 0x228   : > { %v1261_v38 = vadd.f32 %v1198_v27, %v759_v21 }
 0x22a   : > { %v5968_v11 = vmul.f32 -1.442695, %v1261_v38 }
 0x22c   : > { %v6121_v1 = vpop.eup %6120  ;;  %6122 = vpow2.f32 %v5968_v11 }
 0x22d   : > { %v1278_v3 = vadd.f32 1.0, %v6121_v1 }
 0x22f   : > { %6124 = vrcp.f32 %v1278_v3  ;;  %v1307_v23 = vand.u32 2147483648, %v1278_v3  ;;  %v1305_v4 = vand.u32 2147483647, %v1278_v3  ;;  %vm1301_vm15 = vweird.f32 %v1278_v3 }
 0x230   : > { %6126 = vpow2.f32 %v5971_v43 }
 0x231   : > { %v1308_v18 = vor.u32 1.1754944e-38, %v1307_v23  ;;  %vm1306_vm11 = vcmp.eq.f32.partialorder %v1305_v4, 8.507059e+37 }
 0x232   : > { %v6123_v45 = vpop.eup %6122 }
 0x233   : > { %v1277_v58 = vadd.f32 1.0, %v6123_v45 }
 0x235   : > { %v6125_v24 = vpop.eup %6124  ;;  %6128 = vrcp.f32 %v1277_v58  ;;  %v1292_v32 = vand.u32 2147483648, %v1277_v58  ;;  %v1290_v35 = vand.u32 2147483647, %v1277_v58  ;;  %vm1286_vm13 = vweird.f32 %v1277_v58 }
 0x236   : > { %v1297_v22 = vmul.f32 %v6125_v24, %v1278_v3  ;;  %v6127_v34 = vpop.eup %6126  ;;  %vm1302_vm14 = vweird.f32 %v6125_v24 }
 0x237   : > { %vm1303_vm10 = vmor %vm1301_vm15, %vm1302_vm14  ;;  %v1280_v26 = vadd.f32 1.0, %v6127_v34  ;;  %v1293_v27 = vor.u32 1.1754944e-38, %v1292_v32  ;;  %vm1291_vm15 = vcmp.eq.f32.partialorder %v1290_v35, 8.507059e+37 }
 0x238   : > { %v1298_v12 = vsub.f32 1.0, %v1297_v22 }
 0x239   : > { %6130 = vrcp.f32 %v1280_v26  ;;  %v1337_v3 = vand.u32 2147483648, %v1280_v26  ;;  %v1335_v43 = vand.u32 2147483647, %v1280_v26 }
 0x23a   : > { %v1299_v48 = vmul.f32 %v6125_v24, %v1298_v12 }
 0x23b   : > { %v6129_v29 = vpop.eup %6128 }
 0x23c   : > { %v1300_v36 = vadd.f32 %v6125_v24, %v1299_v48  ;;  %v1282_v2 = vmul.f32 %v6129_v29, %v1277_v58  ;;  %vm1287_vm12 = vweird.f32 %v6129_v29  ;;  %v1338_v58 = vor.u32 1.1754944e-38, %v1337_v3 }
 0x23d   : > { %vm1288_vm14 = vmor %vm1286_vm13, %vm1287_vm12  ;;  %vm1336_vm13 = vcmp.eq.f32.partialorder %v1335_v43, 8.507059e+37 }
 0x23e   : > { %v1304_v31 = vsel %vm1303_vm10, %v6125_v24, %v1300_v36  ;;  %v1283_v40 = vsub.f32 1.0, %v1282_v2 }
 0x23f   : > { %v7074_v16 = vsel %vm1306_vm11, %v1308_v18, %v1304_v31  ;;  %v6131_v37 = vpop.eup %6130  ;;  %vm1331_vm11 = vweird.f32 %v1280_v26 }
 0x240   : > { %v7077_v7 = vmul.f32 %v1345_v42, %v7074_v16  ;;  %v1284_v49 = vmul.f32 %v6129_v29, %v1283_v40  ;;  %v1327_v11 = vmul.f32 %v6131_v37, %v1280_v26  ;;  %vm1332_vm10 = vweird.f32 %v6131_v37 }
 0x241   : > { %vm1333_vm12 = vmor %vm1331_vm11, %vm1332_vm10 }
 0x242   : > { %v1285_v21 = vadd.f32 %v6129_v29, %v1284_v49  ;;  %1428 = vrot.lane.b32.xlu2 %v7077_v7, %s6250_s22  ;;  %1488 = vrot.lane.b32.xlu1 %v7077_v7, %s6253_s25  ;;  %v1328_v1 = vsub.f32 1.0, %v1327_v11 }
 0x244   : > { %v1289_v54 = vsel %vm1288_vm14, %v6129_v29, %v1285_v21  ;;  %v1329_v52 = vmul.f32 %v6131_v37, %v1328_v1 }
 0x245   : > { %v7083_v38 = vsel %vm1291_vm15, %v1293_v27, %v1289_v54 }
 0x246   : > { %v7086_v42 = vmul.f32 %v1344_v63, %v7083_v38  ;;  %v1330_v63 = vadd.f32 %v6131_v37, %v1329_v52 }
 0x248   : > { %1486 = vrot.lane.b32.xlu0 %v7086_v42, %s6253_s25  ;;  %v1334_v45 = vsel %vm1333_vm12, %v6131_v37, %v1330_v63 }
 0x249   : > { %v7106_v24 = vsel %vm1336_vm13, %v1338_v58, %v1334_v45 }
 0x24a   : > { %1386 = vrot.lane.b32.xlu2 %v7077_v7, %s6248_s20  ;;  %1509 = vrot.lane.b32.xlu1 %v7077_v7, %s6254_s26  ;;  %v7110_v22 = vmul.f32 %v7057_v28, %v7106_v24  ;;  %v333_v28 = vld [vmem:[%s10017_s3 + $0x8] sm:$0xf] }
 0x250   : > { %1507 = vrot.lane.b32.xlu0 %v7086_v42, %s6254_s26 }
 0x252   : > { %1407 = vrot.lane.b32.xlu2 %v7077_v7, %s6249_s21  ;;  %1446 = vrot.lane.b32.xlu1 %v7077_v7, %s6251_s23 }
 0x258   : > { %1444 = vrot.lane.b32.xlu0 %v7086_v42, %s6251_s23 }
 0x25a   : > { %1365 = vrot.lane.b32.xlu2 %v7077_v7, %s6247_s19  ;;  %1467 = vrot.lane.b32.xlu1 %v7077_v7, %s6252_s24  ;;  %v7149_v12 = vpop.permute.xlu2 %1490 }
 0x260   : > { %1465 = vrot.lane.b32.xlu0 %v7086_v42, %s6252_s24 }
 0x262   : > { %1450 = vrot.lane.b32.xlu2 %v7110_v22, %s6251_s23  ;;  %1426 = vrot.lane.b32.xlu1 %v7086_v42, %s6250_s22  ;;  %v7151_v23 = vpop.permute.xlu2 %1511 }
 0x268   : > { %1423 = vrot.lane.b32.xlu0 %v7110_v22, %s6250_s22 }
 0x26a   : > { %1388 = vrot.lane.b32.xlu2 %v7051_v0, %s6248_s20  ;;  %1384 = vrot.lane.b32.xlu1 %v7086_v42, %s6248_s20  ;;  %v7153_v48 = vpop.permute.xlu2 %1448 }
 0x270   : > { %1381 = vrot.lane.b32.xlu0 %v7110_v22, %s6248_s20 }
 0x272   : > { %719 = vperm.xlu2 %6110, %v333_v28   ;;  %1405 = vrot.lane.b32.xlu1 %v7086_v42, %s6249_s21  ;;  %v7165_v31 = vpop.permute.xlu2 %1469 }
 0x278   : > { %1402 = vrot.lane.b32.xlu0 %v7110_v22, %s6249_s21 }
 0x27a   : > { %1363 = vrot.lane.b32.xlu1 %v7086_v42, %s6247_s19 }
 0x280   : > { %1357 = vrot.lane.b32.xlu0 %v7110_v22, %s6247_s19 }
 0x282   : > { %1430 = vrot.lane.b32.xlu1 %v7051_v0, %s6250_s22 }
 0x288   : > { %1492 = vrot.lane.b32.xlu0 %v7110_v22, %s6253_s25 }
 0x28a   : > { %1513 = vrot.lane.b32.xlu1 %v7110_v22, %s6254_s26 }
 0x290   : > { %1471 = vrot.lane.b32.xlu0 %v7110_v22, %s6252_s24 }
 0x292   : > { %1367 = vrot.lane.b32.xlu1 %v7051_v0, %s6247_s19 }
 0x298   : > { %1409 = vrot.lane.b32.xlu0 %v7051_v0, %s6249_s21 }
 0x29c   : > { %v7183_v1 = vpop.permute.xlu2 %1428 }
 0x2b4   : > { %v1489_v34 = vpop.permute.xlu1 %1488 }
 0x2b5   : > { %v1495_v49 = vsel %vm577_vm1, %v1489_v34, %v7149_v12 }
 0x2b6   : > { %v1504_v35 = vmul.f32 %v1495_v49, %v6730_v59  ;;  %v7197_v49 = vpop.permute.xlu2 %1386 }
 0x2b8   : > { %v1569_v52 = vrot.slane %v1504_v35, 4 }
 0x2ba   : > { %v7155_v4 = vpop.permute.xlu0 %1486 }
 0x2bb   : > { %v1494_v37 = vsel %vm577_vm1, %v7155_v4, %v1489_v34 }
 0x2bc   : > { %v1510_v29 = vpop.permute.xlu1 %1509  ;;  %v1503_v43 = vmul.f32 %v1494_v37, %v6698_v61 }
 0x2bd   : > { %v1516_v36 = vsel %vm614_vm5, %v1510_v29, %v7151_v23 }
 0x2be   : > { %v1525_v2 = vmul.f32 %v6782_v30, %v1516_v36  ;;  %v1568_v36 = vrot.slane %v1503_v43, 4 }
 0x2c0   : > { %5974 = vmatpush.msk.msra.mxu1 %vm695_vm8, %v1525_v2 }
 0x2c2   : > { %v7161_v18 = vpop.permute.xlu0 %1507 }
 0x2c3   : > { %v1515_v26 = vsel %vm614_vm5, %v7161_v18, %v1510_v29 }
 0x2c4   : > { %v1524_v40 = vmul.f32 %v6777_v5, %v1515_v26  ;;  %v1447_v32 = vpop.permute.xlu1 %1446 }
 0x2c5   : > { %v1453_v30 = vsel %vm503_vm0, %v1447_v32, %v7153_v48 }
 0x2c6   : > { %5972 = vmatpush.msk.msra.mxu0 %vm695_vm8, %v1524_v40  ;;  %v1462_v21 = vmul.f32 %v1453_v30, %v10191_v53 }
 0x2c8   : > { %v1557_v63 = vrot.slane %v1462_v21, 4 }
 0x2ca   : > { %v7175_v27 = vpop.permute.xlu0 %1444  ;;  %v1585_v34 = vsel %vm695_vm8, %v7077_v7, %v1557_v63 }
 0x2cb   : > { %v1452_v5 = vsel %vm503_vm0, %v7175_v27, %v1447_v32 }
 0x2cc   : > { %v1468_v54 = vpop.permute.xlu1 %1467  ;;  %v1461_v45 = vmul.f32 %v1452_v5, %v6727_v62 }
 0x2cd   : > { %v1474_v11 = vsel %vm10133_vm2, %v1468_v54, %v7165_v31 }
 0x2ce   : > { %v1483_v3 = vmul.f32 %v1474_v11, %v6792_v9  ;;  %v1556_v2 = vrot.slane %v1461_v45, 4 }
 0x2d0   : > { %v1589_v58 = vsel %vm695_vm8, %v1483_v3, %v1569_v52  ;;  %v1584_v30 = vsel %vm695_vm8, %v7086_v42, %v1556_v2 }
 0x2d1   : > { %1639 = vmatpush.msra.mxu1 %v1589_v58 }
 0x2d2   : > { %v7189_v28 = vpop.permute.xlu0 %1465 }
 0x2d3   : > { %v1473_v29 = vsel %vm10133_vm2, %v7189_v28, %v1468_v54  ;;  %1640 = vmatpush.msra.mxu1 %v1585_v34  ;;  %v7205_v54 = vpop.permute.xlu2 %1407 }
 0x2d4   : > { %v1482_v26 = vmul.f32 %v1473_v29, %v6734_v57  ;;  %v1427_v40 = vpop.permute.xlu1 %1426 }
 0x2d5   : > { %v1432_v21 = vsel %vm471_vm3, %v1427_v40, %v7183_v1 }
 0x2d6   : > { %v1588_v32 = vsel %vm695_vm8, %v1482_v26, %v1568_v36  ;;  %v1441_v37 = vmul.f32 %v1432_v21, %v6693_v56 }
 0x2d7   : > { %1619 = vmatpush.msra.mxu0 %v1588_v32 }
 0x2d8   : > { %v1545_v63 = vrot.slane %v1441_v37, 4 }
 0x2d9   : > { %1620 = vmatpush.msra.mxu0 %v1584_v30 }
 0x2da   : > { %v7201_v35 = vpop.permute.xlu0 %1423 }
 0x2db   : > { %v1439_v52 = vsel %vm471_vm3, %v7201_v35, %v1427_v40  ;;  %v7224_v2 = vpop.permute.xlu2 %1365 }
 0x2dc   : > { %v1385_v7 = vpop.permute.xlu1 %1384  ;;  %v1440_v45 = vmul.f32 %v1439_v52, %v10192_v50 }
 0x2dd   : > { %v1390_v43 = vsel %vm397_vm4, %v1385_v7, %v7197_v49 }
 0x2de   : > { %v1399_v34 = vmul.f32 %v1390_v43, %v10196_v20  ;;  %v1544_v26 = vrot.slane %v1440_v45, 4 }
 0x2e0   : > { %v1533_v37 = vrot.slane %v1399_v34, 4 }
 0x2e2   : > { %v7208_v5 = vpop.permute.xlu0 %1381 }
 0x2e3   : > { %v1397_v30 = vsel %vm397_vm4, %v7208_v5, %v1385_v7 }
 0x2e4   : > { %v1406_v11 = vpop.permute.xlu1 %1405 }
 0x2e5   : > { %v1411_v42 = vsel %vm434_vm6, %v1406_v11, %v7205_v54 }
 0x2e6   : > { %v1420_v3 = vmul.f32 %v1411_v42, %v6690_v14 }
 0x2e8   : > { %v1581_v58 = vsel %vm695_vm8, %v1420_v3, %v1545_v63  ;;  %v1398_v63 = vmul.f32 %v1397_v30, %v10197_v51 }
 0x2e9   : > { %1641 = vmatpush.msra.mxu1 %v1581_v58 }
 0x2ea   : > { %v7220_v29 = vpop.permute.xlu0 %1402  ;;  %v1532_v45 = vrot.slane %v1398_v63, 4 }
 0x2eb   : > { %v1418_v36 = vsel %vm434_vm6, %v7220_v29, %v1406_v11  ;;  %v7236_v11 = vld [vmem:[%s10019_s5] sm:$0xf] }
 0x2ec   : > { %v1419_v40 = vmul.f32 %v1418_v36, %v6753_v55  ;;  %v1364_v32 = vpop.permute.xlu1 %1363 }
 0x2ed   : > { %v1369_v21 = vsel %vm10132_vm7, %v1364_v32, %v7224_v2 }
 0x2ee   : > { %v1378_v52 = vmul.f32 %v1369_v21, %v6770_v60  ;;  %v1580_v42 = vsel %vm695_vm8, %v1419_v40, %v1544_v26  ;;  %v1451_v26 = vpop.permute.xlu2 %1450 }
 0x2ef   : > { %1621 = vmatpush.msra.mxu0 %v1580_v42  ;;  %v1454_v30 = vsel %vm503_vm0, %v7153_v48, %v1451_v26  ;;  %v1460_v21 = vsel %vm503_vm0, %v1451_v26, %v7175_v27  ;;  %v7264_v27 = vld [vmem:[%s10020_s6 + $0x30] ss:$0 sm:$0xff] }
 0x2f0   : > { %v1577_v3 = vsel %vm695_vm8, %v1378_v52, %v1533_v37  ;;  %v1464_v48 = vmul.f32 %v1460_v21, %v6732_v19 }
 0x2f1   : > { %1642 = vmatpush.msra.mxu1 %v1577_v3  ;;  %v10201_v3 = vld [vmem:[#allocation8_spill] sm:$0xff] }
 0x2f2   : > { %5975 = vmatmul.msk.f32.vlgmr.msra.gmra.mxu1 %vm10131_vm9, %v7236_v11  ;;  %v1358_v7 = vpop.permute.xlu0 %1357  ;;  %v1559_v26 = vrot.slane %v1464_v48, 4 }
 0x2f3   : > { %v1376_v43 = vsel %vm10132_vm7, %v1358_v7, %v1364_v32 }
 0x2f4   : > { %v1377_v58 = vmul.f32 %v1376_v43, %v6767_v33  ;;  %v1431_v34 = vpop.permute.xlu1 %1430  ;;  %v1463_v43 = vmul.f32 %v1454_v30, %v10201_v3 }
 0x2f5   : > { %v1433_v21 = vsel %vm471_vm3, %v7183_v1, %v1431_v34 }
 0x2f6   : > { %v1576_v36 = vsel %vm695_vm8, %v1377_v58, %v1532_v45  ;;  %v10202_v45 = vld [vmem:[#allocation6_spill] sm:$0xff]  ;;  %v1389_v30 = vpop.permute.xlu2 %1388 }
 0x2f7   : > { %1622 = vmatpush.msra.mxu0 %v1576_v36  ;;  %v1558_v36 = vrot.slane %v1463_v43, 4  ;;  %v1391_v48 = vsel %vm397_vm4, %v7197_v49, %v1389_v30  ;;  %v1587_v49 = vsel %vm695_vm8, %v7110_v22, %v1559_v26 }
 0x2f8   : > { %5973 = vmatmul.msk.f32.vlgmr.msra.gmra.mxu0 %vm10131_vm9, %v7236_v11 }
 0x2fa   : > { %v1493_v40 = vpop.permute.xlu0 %1492 }
 0x2fb   : > { %v1496_v32 = vsel %vm577_vm1, %v7149_v12, %v1493_v40  ;;  %v1502_v52 = vsel %vm577_vm1, %v1493_v40, %v7155_v4  ;;  %v7270_v4 = vld [vmem:[%s10020_s6 + $0x38] ss:$0 sm:$0xff] }
 0x2fc   : > { %v1514_v37 = vpop.permute.xlu1 %1513  ;;  %v1506_v58 = vmul.f32 %v1502_v52, %v6762_v10 }
 0x2fd   : > { %v1517_v42 = vsel %vm614_vm5, %v7151_v23, %v1514_v37  ;;  %v1523_v63 = vsel %vm614_vm5, %v1514_v37, %v7161_v18  ;;  %v1505_v18 = vmul.f32 %v1496_v32, %v10202_v45  ;;  %v1434_v37 = vsel %vm471_vm3, %v1431_v34, %v7201_v35  ;;  %v10204_v34 = vld [vmem:[#allocation10_spill] sm:$0xff] }
 0x2fe   : > { %v1526_v12 = vmul.f32 %v7264_v27, %v1517_v42  ;;  %v1527_v23 = vmul.f32 %v7270_v4, %v1523_v63  ;;  %v1571_v63 = vrot.slane %v1506_v58, 4  ;;  %v1442_v10 = vmul.f32 %v1433_v21, %v10204_v34 }
 0x2ff   : > { %v1570_v52 = vrot.slane %v1505_v18, 4  ;;  %v1586_v18 = vsel %vm695_vm8, %v7051_v0, %v1558_v36  ;;  %v10206_v36 = vld [vmem:[#allocation14_spill] sm:$0xff] }
 0x300   : > { %5976 = vmatpush.msk.msra.mxu2 %vm695_vm8, %v1526_v12  ;;  %5978 = vmatpush.msk.msra.mxu3 %vm695_vm8, %v1527_v23  ;;  %v10203_v12 = vld [vmem:[#allocation9_spill] sm:$0xff] }
 0x302   : > { %v1472_v40 = vpop.permute.xlu0 %1471 }
 0x303   : > { %v1475_v42 = vsel %vm10133_vm2, %v7165_v31, %v1472_v40  ;;  %v1481_v32 = vsel %vm10133_vm2, %v1472_v40, %v7189_v28  ;;  %v1392_v31 = vsel %vm397_vm4, %v1389_v30, %v7208_v5  ;;  %v1443_v28 = vmul.f32 %v1434_v37, %v10194_v15  ;;  %v10205_v5 = vld [vmem:[#allocation12_spill] sm:$0xff] }
 0x304   : > { %v1484_v23 = vmul.f32 %v1475_v42, %v10203_v12  ;;  %v1485_v43 = vmul.f32 %v1481_v32, %v6719_v47  ;;  %v1368_v44 = vpop.permute.xlu1 %1367  ;;  %v1400_v30 = vmul.f32 %v1391_v48, %v10205_v5  ;;  %v1401_v21 = vmul.f32 %v1392_v31, %v10195_v13  ;;  %v7320_v48 = vpop.permute.xlu2 %719 }
 0x305   : > { %v1370_v58 = vsel %vm10132_vm7, %v7224_v2, %v1368_v44  ;;  %v1371_v40 = vsel %vm10132_vm7, %v1368_v44, %v1358_v7  ;;  %v1546_v42 = vrot.slane %v1442_v10, 4  ;;  %v1547_v32 = vrot.slane %v1443_v28, 4  ;;  %v10207_v44 = vld [vmem:[#allocation13_spill] sm:$0xff]  ;;  %10208 = vst [vmem:[#allocation5_spill] sm:$0xff] %v7320_v48 }
 0x306   : > { %v1590_v1 = vsel %vm695_vm8, %v1484_v23, %v1570_v52  ;;  %v1591_v35 = vsel %vm695_vm8, %v1485_v43, %v1571_v63  ;;  %v1379_v26 = vmul.f32 %v1370_v58, %v10206_v36  ;;  %v1380_v2 = vmul.f32 %v1371_v40, %v6717_v46 }
 0x307   : > { %1659 = vmatpush.msra.mxu2 %v1590_v1  ;;  %1679 = vmatpush.msra.mxu3 %v1591_v35  ;;  %v1534_v63 = vrot.slane %v1400_v30, 4  ;;  %v1535_v23 = vrot.slane %v1401_v21, 4  ;;  %v785_v1 = vadd.f32 %v7062_v17, %v7320_v48  ;;  %v762_v28 = vadd.f32 %v7067_v6, %v7320_v48  ;;  %v1704_v30 = vld.sshfl [vmem:[#allocation1 + $0x8] sm:$0xff pattern:$0x75316420] }
 0x308   : > { %v1696_v58 = vsub.f32 1.0, %v7074_v16 }
 0x309   : > { %1660 = vmatpush.msra.mxu2 %v1586_v18  ;;  %1680 = vmatpush.msra.mxu3 %v1587_v49 }
 0x30a   : > { %v1410_v37 = vpop.permute.xlu0 %1409  ;;  %v1712_v21 = vmul.f32 %v1704_v30, %v1696_v58 }
 0x30b   : > { %v1412_v0 = vsel %vm434_vm6, %v7205_v54, %v1410_v37  ;;  %v1413_v22 = vsel %vm434_vm6, %v1410_v37, %v7220_v29  ;;  %v1578_v54 = vsel %vm695_vm8, %v1379_v26, %v1534_v63  ;;  %v1579_v29 = vsel %vm695_vm8, %v1380_v2, %v1535_v23 }
 0x30c   : > { %v1421_v7 = vmul.f32 %v1412_v0, %v10207_v44  ;;  %v1422_v52 = vmul.f32 %v1413_v22, %v6684_v8  ;;  %v1703_v0 = vld.sshfl [vmem:[#allocation1] sm:$0xff pattern:$0x75316420]  ;;  %v808_v63 = vadd.f32 %v7043_v25, %v7320_v48  ;;  %v831_v23 = vadd.f32 %v7069_v41, %v7320_v48 }
 0x30d   : > { %v1698_v25 = vsub.f32 1.0, %v7106_v24 }
 0x30e   : > { %v1582_v43 = vsel %vm695_vm8, %v1421_v7, %v1546_v42  ;;  %v1583_v10 = vsel %vm695_vm8, %v1422_v52, %v1547_v32  ;;  %v1695_v42 = vsub.f32 1.0, %v7083_v38  ;;  %v7333_v52 = vld [vmem:[%s6315_s11 + $0x18] sm:$0xff] }
 0x30f   : > { %1661 = vmatpush.msra.mxu2 %v1582_v43  ;;  %1681 = vmatpush.msra.mxu3 %v1583_v10 }
 0x310   : > { %v1711_v22 = vmul.f32 %v1703_v0, %v1695_v42 }
 0x311   : > { %1662 = vmatpush.msra.mxu2 %v1578_v54  ;;  %1682 = vmatpush.msra.mxu3 %v1579_v29 }
 0x312   : > { %5977 = vmatmul.msk.f32.vlgmr.msra.gmra.mxu2 %vm10131_vm9, %v7236_v11  ;;  %5979 = vmatmul.msk.f32.vlgmr.msra.gmra.mxu3 %vm10131_vm9, %v7236_v11 }
 0x36f   : > { %v1644_v35 = vpop.f32.mrf.mxu1 }
 0x370   : > { %v1688_v31 = vadd.f32 %v1644_v35, %v785_v1  ;;  %v1697_v35 = vsub.f32 1.0, %v7048_v39 }
 0x372   : > { %6132 = vtanh.f32 %v1688_v31  ;;  %v1705_v31 = vld.sshfl [vmem:[#allocation1 + $0x10] sm:$0xff pattern:$0x75316420] }
 0x375   : > { %v1624_v18 = vpop.f32.mrf.mxu0 }
 0x376   : > { %v1687_v49 = vadd.f32 %v1624_v18, %v762_v28 }
 0x378   : > { %v6133_v40 = vpop.eup %6132  ;;  %6134 = vtanh.f32 %v1687_v49 }
 0x379   : > { %v1720_v11 = vrot.slane %v6133_v40, 4  ;;  %v1706_v40 = vld.sshfl [vmem:[#allocation1 + $0x18] sm:$0xff pattern:$0x75316420] }
 0x37b   : > { %v1728_v37 = vmul.f32 %v1720_v11, %v7074_v16  ;;  %v7337_v16 = vld [vmem:[%s6315_s11 + $0x10] sm:$0xff]  ;;  %v1713_v11 = vmul.f32 %v1705_v31, %v1697_v35 }
 0x37d   : > { %v1732_v17 = vadd.f32 %v1728_v37, %v1712_v21  ;;  %v1714_v37 = vmul.f32 %v1706_v40, %v1698_v25 }
 0x37e   : > { %v6135_v32 = vpop.eup %6134 }
 0x37f   : > { %1740 = vst.sshfl [vmem:[#allocation1 + $0x8] sm:$0xff pattern:$0x75316420] %v1732_v17  ;;  %v1719_v6 = vrot.slane %v6135_v32, 4 }
 0x381   : > { %v1727_v26 = vmul.f32 %v1719_v6, %v7083_v38 }
 0x383   : > { %v1731_v2 = vadd.f32 %v1727_v26, %v1711_v22 }
 0x385   : > { %1739 = vst.sshfl [vmem:[#allocation1] sm:$0xff pattern:$0x75316420] %v1731_v2 }
 0x38c   : > { %v7330_v7 = vld [vmem:[#allocation1 + $0x1] ss:$2 sm:$0xff] }
 0x38d   : > { %1751 = vst.sshfl [vmem:[#allocation1] sm:$0xff pattern:$0x75316420] %v1731_v2 }
 0x38e   : > { %1752 = vst.sshfl [vmem:[#allocation1 + $0x8] sm:$0xff pattern:$0x75316420] %v1732_v17 }
 0x38f   : > { %1769 = vst [vmem:[#allocation1] ss:$2 sm:$0xff] %v7333_v52 }
 0x395   : > { %v1756_v43 = vld [vmem:[#allocation1 + $0x1] ss:$2 sm:$0xff]  ;;  %v1664_v38 = vpop.f32.mrf.mxu2  ;;  %v1684_v10 = vpop.f32.mrf.mxu3 }
 0x396   : > { %v1770_v54 = vld.sshfl [vmem:[#allocation1 + $0x8] sm:$0xff pattern:$0x75316420]  ;;  %1761 = vst [vmem:[%s6320_s14] sm:$0xff] %v1756_v43  ;;  %v1689_v29 = vadd.f32 %v1664_v38, %v808_v63  ;;  %v1690_v1 = vadd.f32 %v1684_v10, %v831_v23 }
 0x397   : > { %1775 = vst [vmem:[#allocation1] ss:$2 sm:$0xff] %v7337_v16  ;;  %1771 = vrot.lane.b32.xlu2 %v1770_v54, %s6247_s19 }
 0x398   : > { %6136 = vtanh.f32 %v1689_v29 }
 0x399   : > { %6138 = vtanh.f32 %v1690_v1 }
 0x39e   : > { %v6137_v28 = vpop.eup %6136  ;;  %v1778_v41 = vld.sshfl [vmem:[#allocation1] sm:$0xff pattern:$0x75316420]  ;;  %v1779_v18 = vld.sshfl [vmem:[#allocation1 + $0x8] sm:$0xff pattern:$0x75316420] }
 0x39f   : > { %v6139_v49 = vpop.eup %6138  ;;  %1802 = vst [vmem:[#allocation1] ss:$2 sm:$0xff] %v7333_v52  ;;  %v1721_v58 = vrot.slane %v6137_v28, 4  ;;  %1784 = vrot.lane.b32.xlu1 %v1779_v18, %s6247_s19  ;;  %1782 = vrot.lane.b32.xlu0 %v1778_v41, %s6247_s19 }
 0x3a0   : > { %v1722_v30 = vrot.slane %v6139_v49, 4 }
 0x3a1   : > { %v1729_v21 = vmul.f32 %v1721_v58, %v7048_v39 }
 0x3a2   : > { %v1730_v17 = vmul.f32 %v1722_v30, %v7106_v24 }
 0x3a3   : > { %v1733_v42 = vadd.f32 %v1729_v21, %v1713_v11 }
 0x3a4   : > { %v1734_v32 = vadd.f32 %v1730_v17, %v1714_v37 }
 0x3a5   : > { %1741 = vst.sshfl [vmem:[#allocation1 + $0x10] sm:$0xff pattern:$0x75316420] %v1733_v42 }
 0x3a6   : > { %v1803_v0 = vld.sshfl [vmem:[#allocation1 + $0x8] sm:$0xff pattern:$0x75316420]  ;;  %1742 = vst.sshfl [vmem:[#allocation1 + $0x18] sm:$0xff pattern:$0x75316420] %v1734_v32 }
 0x3a7   : > { %1807 = vst [vmem:[#allocation1] ss:$2 sm:$0xff] %v7337_v16  ;;  %1804 = vrot.lane.b32.xlu1 %v1803_v0, %s6248_s20 }
 0x3ad   : > { %v7355_v6 = vld [vmem:[#allocation1 + $0x11] ss:$2 sm:$0xff] }
 0x3ae   : > { %v1810_v22 = vld.sshfl [vmem:[#allocation1] sm:$0xff pattern:$0x75316420]  ;;  %v1811_v26 = vld.sshfl [vmem:[#allocation1 + $0x8] sm:$0xff pattern:$0x75316420] }
 0x3af   : > { %1834 = vst [vmem:[#allocation1] ss:$2 sm:$0xff] %v7333_v52 }
 0x3b0   : > { %1753 = vst.sshfl [vmem:[#allocation1 + $0x10] sm:$0xff pattern:$0x75316420] %v1733_v42 }
 0x3b1   : > { %1754 = vst.sshfl [vmem:[#allocation1 + $0x18] sm:$0xff pattern:$0x75316420] %v1734_v32 }
 0x3b2   : > { %1777 = vst [vmem:[#allocation1 + $0x10] ss:$2 sm:$0xff] %v7333_v52 }
 0x3b6   : > { %v1835_v39 = vld.sshfl [vmem:[#allocation1 + $0x8] sm:$0xff pattern:$0x75316420] }
 0x3b7   : > { %1839 = vst [vmem:[#allocation1] ss:$2 sm:$0xff] %v7337_v16 }
 0x3b8   : > { %v1758_v24 = vld [vmem:[#allocation1 + $0x11] ss:$2 sm:$0xff] }
 0x3b9   : > { %v1780_v2 = vld.sshfl [vmem:[#allocation1 + $0x10] sm:$0xff pattern:$0x75316420]  ;;  %v1781_v63 = vld.sshfl [vmem:[#allocation1 + $0x18] sm:$0xff pattern:$0x75316420] }
 0x3ba   : > { %1809 = vst [vmem:[#allocation1 + $0x10] ss:$2 sm:$0xff] %v7333_v52  ;;  %1788 = vrot.lane.b32.xlu0 %v1781_v63, %s6247_s19  ;;  %1786 = vrot.lane.b32.xlu2 %v1780_v2, %s6247_s19 }
 0x3bb   : > { %1762 = vst [vmem:[%s6320_s14 + $0x8] sm:$0xff] %v1758_v24 }
 0x3be   : > { %v1842_v23 = vld.sshfl [vmem:[#allocation1] sm:$0xff pattern:$0x75316420]  ;;  %v1843_v43 = vld.sshfl [vmem:[#allocation1 + $0x8] sm:$0xff pattern:$0x75316420] }
 0x3bf   : > { %1866 = vst [vmem:[#allocation1] ss:$2 sm:$0xff] %v7333_v52 }
 0x3c1   : > { %v1812_v38 = vld.sshfl [vmem:[#allocation1 + $0x10] sm:$0xff pattern:$0x75316420]  ;;  %v1813_v10 = vld.sshfl [vmem:[#allocation1 + $0x18] sm:$0xff pattern:$0x75316420] }
 0x3c2   : > { %1841 = vst [vmem:[#allocation1 + $0x10] ss:$2 sm:$0xff] %v7333_v52  ;;  %1816 = vrot.lane.b32.xlu0 %v1811_v26, %s6248_s20  ;;  %1820 = vrot.lane.b32.xlu2 %v1813_v10, %s6248_s20 }
 0x3c3   : > { %1818 = vrot.lane.b32.xlu1 %v1812_v38, %s6248_s20 }
 0x3c6   : > { %v1867_v54 = vld.sshfl [vmem:[#allocation1 + $0x8] sm:$0xff pattern:$0x75316420] }
 0x3c7   : > { %1871 = vst [vmem:[#allocation1] ss:$2 sm:$0xff] %v7337_v16 }
 0x3c9   : > { %v1844_v29 = vld.sshfl [vmem:[#allocation1 + $0x10] sm:$0xff pattern:$0x75316420]  ;;  %v1845_v1 = vld.sshfl [vmem:[#allocation1 + $0x18] sm:$0xff pattern:$0x75316420] }
 0x3ca   : > { %1873 = vst [vmem:[#allocation1 + $0x10] ss:$2 sm:$0xff] %v7333_v52  ;;  %1814 = vrot.lane.b32.xlu2 %v1810_v22, %s6248_s20  ;;  %1850 = vrot.lane.b32.xlu0 %v1844_v29, %s6249_s21 }
 0x3cb   : > { %1846 = vrot.lane.b32.xlu1 %v1842_v23, %s6249_s21 }
 0x3ce   : > { %v1874_v35 = vld.sshfl [vmem:[#allocation1] sm:$0xff pattern:$0x75316420]  ;;  %v1875_v31 = vld.sshfl [vmem:[#allocation1 + $0x8] sm:$0xff pattern:$0x75316420] }
 0x3cf   : > { %1898 = vst [vmem:[#allocation1] ss:$2 sm:$0xff] %v7337_v16 }
 0x3d1   : > { %v1876_v25 = vld.sshfl [vmem:[#allocation1 + $0x10] sm:$0xff pattern:$0x75316420]  ;;  %v1877_v28 = vld.sshfl [vmem:[#allocation1 + $0x18] sm:$0xff pattern:$0x75316420] }
 0x3d2   : > { %1900 = vst [vmem:[#allocation1 + $0x10] ss:$2 sm:$0xff] %v7333_v52  ;;  %1848 = vrot.lane.b32.xlu2 %v1843_v43, %s6249_s21  ;;  %1852 = vrot.lane.b32.xlu0 %v1845_v1, %s6249_s21 }
 0x3d6   : > { %v1901_v41 = vld.sshfl [vmem:[#allocation1] sm:$0xff pattern:$0x75316420]  ;;  %v1902_v18 = vld.sshfl [vmem:[#allocation1 + $0x8] sm:$0xff pattern:$0x75316420] }
 0x3d7   : > { %1920 = vst [vmem:[#allocation1] ss:$2 sm:$0xff] %v7337_v16 }
 0x3d9   : > { %v1903_v49 = vld.sshfl [vmem:[#allocation1 + $0x10] sm:$0xff pattern:$0x75316420]  ;;  %v1904_v58 = vld.sshfl [vmem:[#allocation1 + $0x18] sm:$0xff pattern:$0x75316420] }
 0x3da   : > { %1932 = vst [vmem:[#allocation1 + $0x10] ss:$2 sm:$0xff] %v7333_v52  ;;  %1836 = vrot.lane.b32.xlu0 %v1835_v39, %s6249_s21  ;;  %1911 = vrot.lane.b32.xlu2 %v1904_v58, %s6251_s23 }
 0x3db   : > { %1909 = vrot.lane.b32.xlu1 %v1903_v49, %s6251_s23 }
 0x3de   : > { %v1921_v40 = vld.sshfl [vmem:[#allocation1] sm:$0xff pattern:$0x75316420] }
 0x3df   : > { %1930 = vst [vmem:[#allocation1] ss:$2 sm:$0xff] %v7337_v16 }
 0x3e1   : > { %v1935_v30 = vld.sshfl [vmem:[#allocation1 + $0x10] sm:$0xff pattern:$0x75316420]  ;;  %v1936_v11 = vld.sshfl [vmem:[#allocation1 + $0x18] sm:$0xff pattern:$0x75316420] }
 0x3e2   : > { %1964 = vst [vmem:[#allocation1 + $0x10] ss:$2 sm:$0xff] %v7333_v52  ;;  %1882 = vrot.lane.b32.xlu0 %v1876_v25, %s6250_s22  ;;  %1880 = vrot.lane.b32.xlu2 %v1875_v31, %s6250_s22 }
 0x3e3   : > { %1868 = vrot.lane.b32.xlu1 %v1867_v54, %s6250_s22 }
 0x3e6   : > { %v1933_v21 = vld.sshfl [vmem:[#allocation1] sm:$0xff pattern:$0x75316420]  ;;  %v1934_v37 = vld.sshfl [vmem:[#allocation1 + $0x8] sm:$0xff pattern:$0x75316420] }
 0x3e7   : > { %1952 = vst [vmem:[#allocation1] ss:$2 sm:$0xff] %v7337_v16 }
 0x3e9   : > { %v1967_v17 = vld.sshfl [vmem:[#allocation1 + $0x10] sm:$0xff pattern:$0x75316420]  ;;  %v1968_v42 = vld.sshfl [vmem:[#allocation1 + $0x18] sm:$0xff pattern:$0x75316420] }
 0x3ea   : > { %1996 = vst [vmem:[#allocation1 + $0x10] ss:$2 sm:$0xff] %v7333_v52  ;;  %1884 = vrot.lane.b32.xlu0 %v1877_v28, %s6250_s22  ;;  %1878 = vrot.lane.b32.xlu2 %v1874_v35, %s6250_s22 }
 0x3eb   : > { %1943 = vrot.lane.b32.xlu1 %v1936_v11, %s6252_s24 }
 0x3ee   : > { %v1953_v32 = vld.sshfl [vmem:[#allocation1] sm:$0xff pattern:$0x75316420] }
 0x3ef   : > { %1962 = vst [vmem:[#allocation1] ss:$2 sm:$0xff] %v7337_v16 }
 0x3f1   : > { %v1999_v0 = vld.sshfl [vmem:[#allocation1 + $0x10] sm:$0xff pattern:$0x75316420]  ;;  %v2000_v22 = vld.sshfl [vmem:[#allocation1 + $0x18] sm:$0xff pattern:$0x75316420]  ;;  %v7419_v29 = vpop.permute.xlu2 %1771 }
 0x3f2   : > { %2052 = vst [vmem:[#allocation1 + $0x10] ss:$2 sm:$0xff] %v7333_v52  ;;  %1907 = vrot.lane.b32.xlu2 %v1902_v18, %s6251_s23  ;;  %1941 = vrot.lane.b32.xlu0 %v1935_v30, %s6252_s24 }
 0x3f3   : > { %1975 = vrot.lane.b32.xlu1 %v1968_v42, %s6253_s25 }
 0x3f6   : > { %v1965_v26 = vld.sshfl [vmem:[#allocation1] sm:$0xff pattern:$0x75316420]  ;;  %v1966_v39 = vld.sshfl [vmem:[#allocation1 + $0x8] sm:$0xff pattern:$0x75316420] }
 0x3f7   : > { %1984 = vst [vmem:[#allocation1] ss:$2 sm:$0xff] %v7337_v16 }
 0x3f9   : > { %v7399_v24 = vld.sshfl [vmem:[#allocation1 + $0x10] sm:$0xff pattern:$0x75316420]  ;;  %v7401_v2 = vld.sshfl [vmem:[#allocation1 + $0x18] sm:$0xff pattern:$0x75316420] }
 0x3fa   : > { %10209 = vst [vmem:[#allocation11_spill] sm:$0xff] %v7401_v2  ;;  %1973 = vrot.lane.b32.xlu0 %v1967_v17, %s6253_s25  ;;  %2005 = vrot.lane.b32.xlu2 %v1999_v0, %s6254_s26 }
 0x3fb   : > { %2214 = vst [vmem:[#allocation1 + $0x10] ss:$2 sm:$0xff] %v7355_v6  ;;  %1905 = vrot.lane.b32.xlu1 %v1901_v41, %s6251_s23 }
 0x3fe   : > { %v7407_v52 = vld.sshfl [vmem:[#allocation1] sm:$0xff pattern:$0x75316420] }
 0x3ff   : > { %1994 = vst [vmem:[#allocation1] ss:$2 sm:$0xff] %v7337_v16 }
 0x402   : > { %v2217_v63 = vld.sshfl [vmem:[#allocation1 + $0x10] sm:$0xff pattern:$0x75316420]  ;;  %v2218_v23 = vld.sshfl [vmem:[#allocation1 + $0x18] sm:$0xff pattern:$0x75316420]  ;;  %2007 = vrot.lane.b32.xlu0 %v2000_v22, %s6254_s26  ;;  %1954 = vrot.lane.b32.xlu2 %v1953_v32, %s6252_s24 }
 0x403   : > { %2246 = vst [vmem:[#allocation1 + $0x10] ss:$2 sm:$0xff] %v7355_v6  ;;  %1922 = vrot.lane.b32.xlu1 %v1921_v40, %s6251_s23 }
 0x406   : > { %v1997_v43 = vld.sshfl [vmem:[#allocation1] sm:$0xff pattern:$0x75316420]  ;;  %v1998_v38 = vld.sshfl [vmem:[#allocation1 + $0x8] sm:$0xff pattern:$0x75316420] }
 0x407   : > { %2016 = vst [vmem:[#allocation1] ss:$2 sm:$0xff] %v7337_v16 }
 0x40a   : > { %v2249_v10 = vld.sshfl [vmem:[#allocation1 + $0x10] sm:$0xff pattern:$0x75316420]  ;;  %v2250_v54 = vld.sshfl [vmem:[#allocation1 + $0x18] sm:$0xff pattern:$0x75316420]  ;;  %1937 = vrot.lane.b32.xlu0 %v1933_v21, %s6252_s24 }
 0x40b   : > { %2278 = vst [vmem:[#allocation1 + $0x10] ss:$2 sm:$0xff] %v7355_v6  ;;  %2255 = vrot.lane.b32.xlu2 %v2249_v10, %s6248_s20  ;;  %1939 = vrot.lane.b32.xlu1 %v1934_v37, %s6252_s24 }
 0x40e   : > { %v2017_v1 = vld.sshfl [vmem:[#allocation1] sm:$0xff pattern:$0x75316420] }
 0x40f   : > { %2050 = vst [vmem:[#allocation1] ss:$2 sm:$0xff] %v7337_v16 }
 0x411   : > { %v7445_v11 = vpop.permute.xlu0 %1782  ;;  %v7452_v0 = vpop.permute.xlu1 %1784 }
 0x412   : > { %v2281_v35 = vld.sshfl [vmem:[#allocation1 + $0x10] sm:$0xff pattern:$0x75316420]  ;;  %v2282_v31 = vld.sshfl [vmem:[#allocation1 + $0x18] sm:$0xff pattern:$0x75316420]  ;;  %2223 = vrot.lane.b32.xlu0 %v2217_v63, %s6247_s19 }
 0x413   : > { %2310 = vst [vmem:[#allocation1 + $0x10] ss:$2 sm:$0xff] %v7355_v6  ;;  %2001 = vrot.lane.b32.xlu2 %v1997_v43, %s6254_s26  ;;  %2225 = vrot.lane.b32.xlu1 %v2218_v23, %s6247_s19 }
 0x414   : > { %v7426_v25 = vpop.permute.xlu2 %1786 }
 0x416   : > { %v7428_v28 = vld.sshfl [vmem:[#allocation1] sm:$0xff pattern:$0x75316420]  ;;  %v7430_v41 = vld.sshfl [vmem:[#allocation1 + $0x8] sm:$0xff pattern:$0x75316420] }
 0x417   : > { %10210 = vst [vmem:[#allocation17_spill] sm:$0xff] %v7430_v41 }
 0x418   : > { %2206 = vst [vmem:[#allocation1] ss:$2 sm:$0xff] %v7355_v6 }
 0x419   : > { %v7466_v43 = vpop.permute.xlu1 %1804 }
 0x41a   : > { %v2313_v18 = vld.sshfl [vmem:[#allocation1 + $0x10] sm:$0xff pattern:$0x75316420]  ;;  %v2314_v16 = vld.sshfl [vmem:[#allocation1 + $0x18] sm:$0xff pattern:$0x75316420]  ;;  %2257 = vrot.lane.b32.xlu0 %v2250_v54, %s6248_s20 }
 0x41b   : > { %2337 = vst [vmem:[#allocation1 + $0x10] ss:$2 sm:$0xff] %v7355_v6  ;;  %1971 = vrot.lane.b32.xlu1 %v1966_v39, %s6253_s25 }
 0x41c   : > { %v7436_v49 = vpop.permute.xlu2 %1820 }
 0x41d   : > { %10211 = vst [vmem:[#allocation27_spill] sm:$0xff] %v7436_v49 }
 0x41f   : > { %v7438_v58 = vld.sshfl [vmem:[#allocation1 + $0x8] sm:$0xff pattern:$0x75316420] }
 0x420   : > { %10212 = vst [vmem:[#allocation7_spill] sm:$0xff] %v7438_v58 }
 0x421   : > { %2212 = vst [vmem:[#allocation1] ss:$2 sm:$0xff] %v7330_v7 }
 0x422   : > { %v2340_v40 = vld.sshfl [vmem:[#allocation1 + $0x10] sm:$0xff pattern:$0x75316420]  ;;  %v2341_v30 = vld.sshfl [vmem:[#allocation1 + $0x18] sm:$0xff pattern:$0x75316420]  ;;  %1969 = vrot.lane.b32.xlu0 %v1965_v26, %s6253_s25 }
 0x423   : > { %2369 = vst [vmem:[#allocation1 + $0x10] ss:$2 sm:$0xff] %v7355_v6  ;;  %2346 = vrot.lane.b32.xlu2 %v2340_v40, %s6251_s23  ;;  %2287 = vrot.lane.b32.xlu1 %v2281_v35, %s6249_s21 }
 0x424   : > { %v7447_v21 = vpop.permute.xlu2 %1814 }
 0x428   : > { %v2216_v37 = vld.sshfl [vmem:[#allocation1 + $0x8] sm:$0xff pattern:$0x75316420]  ;;  %v7449_v17 = vld.sshfl [vmem:[#allocation1] sm:$0xff pattern:$0x75316420] }
 0x429   : > { %2239 = vst [vmem:[#allocation1] ss:$2 sm:$0xff] %v7355_v6 }
 0x42a   : > { %v2372_v42 = vld.sshfl [vmem:[#allocation1 + $0x10] sm:$0xff pattern:$0x75316420]  ;;  %v2373_v32 = vld.sshfl [vmem:[#allocation1 + $0x18] sm:$0xff pattern:$0x75316420]  ;;  %2003 = vrot.lane.b32.xlu0 %v1998_v38, %s6254_s26 }
 0x42b   : > { %2401 = vst [vmem:[#allocation1 + $0x10] ss:$2 sm:$0xff] %v7355_v6  ;;  %2018 = vrot.lane.b32.xlu2 %v2017_v1, %s6254_s26  ;;  %2289 = vrot.lane.b32.xlu1 %v2282_v31, %s6249_s21 }
 0x42c   : > { %v7458_v22 = vpop.permute.xlu2 %1848  ;;  %v7460_v26 = vpop.permute.xlu0 %1788 }
 0x42d   : > { %10213 = vst [vmem:[#allocation18_spill] sm:$0xff] %v7460_v26 }
 0x430   : > { %v2240_v39 = vld.sshfl [vmem:[#allocation1 + $0x8] sm:$0xff pattern:$0x75316420] }
 0x431   : > { %2244 = vst [vmem:[#allocation1] ss:$2 sm:$0xff] %v7330_v7 }
 0x432   : > { %v2404_v63 = vld.sshfl [vmem:[#allocation1 + $0x10] sm:$0xff pattern:$0x75316420]  ;;  %v2405_v23 = vld.sshfl [vmem:[#allocation1 + $0x18] sm:$0xff pattern:$0x75316420]  ;;  %2348 = vrot.lane.b32.xlu0 %v2341_v30, %s6251_s23 }
 0x433   : > { %2380 = vrot.lane.b32.xlu2 %v2373_v32, %s6252_s24  ;;  %2433 = vst [vmem:[#allocation1 + $0x10] ss:$2 sm:$0xff] %v7355_v6  ;;  %1986 = vrot.lane.b32.xlu1 %v7407_v52, %s6253_s25 }
 0x434   : > { %v7470_v38 = vpop.permute.xlu2 %1911  ;;  %v7472_v10 = vpop.permute.xlu0 %1816 }
 0x435   : > { %v7479_v40 = vpop.permute.xlu1 %1818 }
 0x436   : > { %10214 = vst [vmem:[#allocation16_spill] sm:$0xff] %v7479_v40 }
 0x438   : > { %v7474_v54 = vld.sshfl [vmem:[#allocation1] sm:$0xff pattern:$0x75316420]  ;;  %v2248_v1 = vld.sshfl [vmem:[#allocation1 + $0x8] sm:$0xff pattern:$0x75316420] }
 0x439   : > { %2271 = vst [vmem:[#allocation1] ss:$2 sm:$0xff] %v7355_v6 }
 0x43a   : > { %v2436_v35 = vld.sshfl [vmem:[#allocation1 + $0x10] sm:$0xff pattern:$0x75316420]  ;;  %v2437_v31 = vld.sshfl [vmem:[#allocation1 + $0x18] sm:$0xff pattern:$0x75316420] }
 0x43b   : > { %2412 = vrot.lane.b32.xlu2 %v2405_v23, %s6253_s25  ;;  %2442 = vrot.lane.b32.xlu0 %v2436_v35, %s6254_s26  ;;  %2489 = vst [vmem:[#allocation1 + $0x10] ss:$2 sm:$0xff] %v7355_v6 }
 0x43c   : > { %2319 = vrot.lane.b32.xlu1 %v2313_v18, %s6250_s22  ;;  %v7483_v52 = vpop.permute.xlu2 %1880  ;;  %v7485_v30 = vpop.permute.xlu0 %1850 }
 0x43d   : > { %v7501_v46 = vpop.permute.xlu1 %1846 }
 0x440   : > { %v7487_v32 = vld.sshfl [vmem:[#allocation1 + $0x8] sm:$0xff pattern:$0x75316420] }
 0x441   : > { %2276 = vst [vmem:[#allocation1] ss:$2 sm:$0xff] %v7330_v7 }
 0x442   : > { %v7491_v23 = vld.sshfl [vmem:[#allocation1 + $0x10] sm:$0xff pattern:$0x75316420]  ;;  %v7493_v35 = vld.sshfl [vmem:[#allocation1 + $0x18] sm:$0xff pattern:$0x75316420] }
 0x443   : > { %2221 = vrot.lane.b32.xlu2 %v2216_v37, %s6247_s19  ;;  %10215 = vst [vmem:[#allocation3_spill] sm:$0xff] %v7491_v23 }
 0x444   : > { %10216 = vst [vmem:[#allocation4_spill] sm:$0xff] %v7493_v35  ;;  %2321 = vrot.lane.b32.xlu1 %v2314_v16, %s6250_s22  ;;  %v7497_v18 = vpop.permute.xlu2 %1878  ;;  %v7499_v48 = vpop.permute.xlu0 %1852 }
 0x445   : > { %2712 = vst [vmem:[#allocation1 + $0x10] ss:$2 sm:$0xff] %v7355_v6 }
 0x446   : > { %10217 = vst [vmem:[#allocation38_spill] sm:$0xff] %v7499_v48 }
 0x448   : > { %v2280_v2 = vld.sshfl [vmem:[#allocation1 + $0x8] sm:$0xff pattern:$0x75316420]  ;;  %v7503_v8 = vld.sshfl [vmem:[#allocation1] sm:$0xff pattern:$0x75316420] }
 0x449   : > { %2285 = vrot.lane.b32.xlu0 %v2280_v2, %s6249_s21  ;;  %2303 = vst [vmem:[#allocation1] ss:$2 sm:$0xff] %v7355_v6 }
 0x44b   : > { %2241 = vrot.lane.b32.xlu2 %v2240_v39, %s6248_s20 }
 0x44c   : > { %v7508_v37 = vld.sshfl [vmem:[#allocation1 + $0x10] sm:$0xff pattern:$0x75316420]  ;;  %v7510_v16 = vld.sshfl [vmem:[#allocation1 + $0x18] sm:$0xff pattern:$0x75316420]  ;;  %2378 = vrot.lane.b32.xlu1 %v2372_v42, %s6252_s24  ;;  %v7514_v35 = vpop.permute.xlu2 %1907  ;;  %v7516_v23 = vpop.permute.xlu0 %1836 }
 0x44d   : > { %10218 = vst [vmem:[#allocation39_spill] sm:$0xff] %v7508_v37  ;;  %v7518_v26 = vpop.permute.xlu1 %1909 }
 0x44e   : > { %10219 = vst [vmem:[#allocation40_spill] sm:$0xff] %v7510_v16 }
 0x44f   : > { %3068 = vst [vmem:[#allocation1 + $0x11] ss:$2 sm:$0xff] %v7355_v6 }
 0x450   : > { %v2304_v58 = vld.sshfl [vmem:[#allocation1 + $0x8] sm:$0xff pattern:$0x75316420] }
 0x451   : > { %2308 = vst [vmem:[#allocation1] ss:$2 sm:$0xff] %v7330_v7 }
 0x453   : > { %2305 = vrot.lane.b32.xlu2 %v2304_v58, %s6250_s22 }
 0x454   : > { %2410 = vrot.lane.b32.xlu1 %v2404_v63, %s6253_s25  ;;  %v7523_v2 = vpop.permute.xlu0 %1882  ;;  %v7527_v42 = vpop.permute.xlu2 %2005 }
 0x455   : > { %10220 = vst [vmem:[#allocation41_spill] sm:$0xff] %v7523_v2  ;;  %v7525_v39 = vpop.permute.xlu1 %1868 }
 0x458   : > { %v2312_v6 = vld.sshfl [vmem:[#allocation1 + $0x8] sm:$0xff pattern:$0x75316420]  ;;  %v2311_v16 = vld.sshfl [vmem:[#allocation1] sm:$0xff pattern:$0x75316420] }
 0x459   : > { %2317 = vrot.lane.b32.xlu0 %v2312_v6, %s6250_s22  ;;  %2335 = vst [vmem:[#allocation1] ss:$2 sm:$0xff] %v7330_v7 }
 0x45c   : > { %2444 = vrot.lane.b32.xlu1 %v2437_v31, %s6254_s26  ;;  %v7532_v37 = vpop.permute.xlu0 %1884  ;;  %v7539_v47 = vpop.permute.xlu2 %1954 }
 0x45d   : > { %10221 = vst [vmem:[#allocation42_spill] sm:$0xff] %v7532_v37  ;;  %v7534_v48 = vpop.permute.xlu1 %1943 }
 0x45e   : > { %10222 = vst [vmem:[#allocation43_spill] sm:$0xff] %v7539_v47 }
 0x460   : > { %v2338_v58 = vld.sshfl [vmem:[#allocation1] sm:$0xff pattern:$0x75316420]  ;;  %v2339_v63 = vld.sshfl [vmem:[#allocation1 + $0x8] sm:$0xff pattern:$0x75316420] }
 0x461   : > { %2315 = vrot.lane.b32.xlu0 %v2311_v16, %s6250_s22  ;;  %2342 = vrot.lane.b32.xlu2 %v2338_v58, %s6251_s23  ;;  %2357 = vst [vmem:[#allocation1] ss:$2 sm:$0xff] %v7330_v7 }
 0x464   : > { %2253 = vrot.lane.b32.xlu1 %v2248_v1, %s6248_s20  ;;  %v7542_v6 = vpop.permute.xlu0 %1941 }
 0x465   : > { %v7544_v13 = vpop.permute.xlu1 %1975  ;;  %v7549_v16 = vpop.permute.xlu2 %2255 }
 0x466   : > { %10223 = vst [vmem:[#allocation44_spill] sm:$0xff] %v7544_v13 }
 0x467   : > { %10224 = vst [vmem:[#allocation45_spill] sm:$0xff] %v7549_v16  ;;  %v1887_v16 = vsel %vm471_vm3, %v7483_v52, %v7523_v2 }
 0x468   : > { %v2358_v31 = vld.sshfl [vmem:[#allocation1] sm:$0xff pattern:$0x75316420]  ;;  %v1896_v37 = vmul.f32 %v1887_v16, %v10204_v34  ;;  %v1855_v16 = vsel %vm434_vm6, %v7458_v22, %v7485_v30 }
 0x469   : > { %2344 = vrot.lane.b32.xlu0 %v2339_v63, %s6251_s23  ;;  %2359 = vrot.lane.b32.xlu2 %v2358_v31, %s6251_s23  ;;  %2367 = vst [vmem:[#allocation1] ss:$2 sm:$0xff] %v7330_v7  ;;  %v1915_v63 = vsel %vm503_vm0, %v7518_v26, %v7470_v38 }
 0x46c   : > { %v7551_v58 = vpop.permute.xlu0 %1973 }
 0x46d   : > { %v7553_v15 = vpop.permute.xlu1 %1905  ;;  %v1979_v1 = vsel %vm577_vm1, %v7551_v58, %v7544_v13  ;;  %v1928_v13 = vmul.f32 %v1915_v63, %v10201_v3  ;;  %v7575_v19 = vpop.permute.xlu2 %2001 }
 0x46e   : > { %v1992_v31 = vmul.f32 %v1979_v1, %v10202_v45 }
 0x46f   : > { %v2067_v33 = vrot.slane %v1928_v13, 4 }
 0x470   : > { %v2371_v47 = vld.sshfl [vmem:[#allocation1 + $0x8] sm:$0xff pattern:$0x75316420]  ;;  %v2370_v49 = vld.sshfl [vmem:[#allocation1] sm:$0xff pattern:$0x75316420] }
 0x471   : > { %2376 = vrot.lane.b32.xlu2 %v2371_v47, %s6252_s24  ;;  %2374 = vrot.lane.b32.xlu1 %v2370_v49, %s6252_s24  ;;  %2389 = vst [vmem:[#allocation1] ss:$2 sm:$0xff] %v7330_v7  ;;  %v1823_v47 = vsel %vm397_vm4, %v7472_v10, %v7479_v40  ;;  %v1947_v49 = vsel %vm10133_vm2, %v7542_v6, %v7534_v48  ;;  %v2079_v1 = vrot.slane %v1992_v31, 4  ;;  %v2044_v31 = vrot.slane %v1896_v37, 4 }
 0x472   : > { %v1832_v40 = vmul.f32 %v1823_v47, %v10205_v5  ;;  %v1960_v41 = vmul.f32 %v1947_v49, %v10203_v12 }
 0x474   : > { %v2008_v60 = vpop.permute.xlu0 %2007  ;;  %v2099_v34 = vsel %vm695_vm8, %v1960_v41, %v2079_v1  ;;  %v2032_v13 = vrot.slane %v1832_v40, 4 }
 0x475   : > { %v7578_v45 = vpop.permute.xlu1 %1922  ;;  %v2011_v2 = vsel %vm614_vm5, %v7527_v42, %v2008_v60 }
 0x476   : > { %v2024_v63 = vmul.f32 %v7264_v27, %v2011_v2  ;;  %v1791_v27 = vsel %vm10132_vm7, %v7452_v0, %v7426_v25  ;;  %v1864_v2 = vmul.f32 %v1855_v16, %v10207_v44 }
 0x478   : > { %v2390_v3 = vld.sshfl [vmem:[#allocation1] sm:$0xff pattern:$0x75316420]  ;;  %5988 = vmatpush.msk.msrb.mxu2 %vm695_vm8, %v2024_v63  ;;  %v1800_v63 = vmul.f32 %v1791_v27, %v10206_v36  ;;  %v2091_v41 = vsel %vm695_vm8, %v1864_v2, %v2044_v31 }
 0x479   : > { %2391 = vrot.lane.b32.xlu0 %v2390_v3, %s6252_s24  ;;  %2399 = vst [vmem:[#allocation1] ss:$2 sm:$0xff] %v7330_v7  ;;  %v2095_v3 = vsel %vm695_vm8, %v7399_v24, %v2067_v33  ;;  %v7609_v33 = vld [vmem:[%s10016_s2] sm:$0xff] }
 0x47a   : > { %2171 = vmatpush.msrb.mxu2 %v2099_v34  ;;  %v2087_v34 = vsel %vm695_vm8, %v1800_v63, %v2032_v13  ;;  %v7625_v13 = vld [vmem:[%s10016_s2 + $0x8] sm:$0xf] }
 0x47c   : > { %2172 = vmatpush.msrb.mxu2 %v2095_v3  ;;  %v1938_v49 = vpop.permute.xlu0 %1937 }
 0x47d   : > { %v7598_v47 = vpop.permute.xlu2 %2346  ;;  %v1940_v37 = vpop.permute.xlu1 %1939 }
 0x47e   : > { %2173 = vmatpush.msrb.mxu2 %v2091_v41 }
 0x480   : > { %v2403_v1 = vld.sshfl [vmem:[#allocation1 + $0x8] sm:$0xff pattern:$0x75316420]  ;;  %v2402_v5 = vld.sshfl [vmem:[#allocation1] sm:$0xff pattern:$0x75316420]  ;;  %2174 = vmatpush.msrb.mxu2 %v2087_v34 }
 0x481   : > { %2408 = vrot.lane.b32.xlu2 %v2403_v1, %s6253_s25  ;;  %2406 = vrot.lane.b32.xlu1 %v2402_v5, %s6253_s25  ;;  %2421 = vst [vmem:[#allocation1] ss:$2 sm:$0xff] %v7330_v7 }
 0x482   : > { %5989 = vmatmul.msk.f32.vlgmr.msrb.gmra.mxu2 %vm10131_vm9, %v7609_v33 }
 0x484   : > { %v7613_v40 = vpop.permute.xlu0 %2223 }
 0x485   : > { %v2019_v24 = vpop.permute.xlu2 %2018  ;;  %v7615_v16 = vpop.permute.xlu1 %2225 }
 0x486   : > { %v2021_v31 = vsel %vm614_vm5, %v2008_v60, %v2019_v24 }
 0x487   : > { %v2025_v5 = vmul.f32 %v7270_v4, %v2021_v31  ;;  %v1913_v31 = vsel %vm503_vm0, %v7553_v15, %v7514_v35  ;;  %v1822_v15 = vsel %vm397_vm4, %v7447_v21, %v7472_v10 }
 0x488   : > { %v2422_v27 = vld.sshfl [vmem:[#allocation1] sm:$0xff pattern:$0x75316420] }
 0x489   : > { %2423 = vrot.lane.b32.xlu2 %v2422_v27, %s6253_s25  ;;  %2431 = vst [vmem:[#allocation1] ss:$2 sm:$0xff] %v7330_v7  ;;  %5991 = vmatpush.msk.msrb.mxu3 %vm695_vm8, %v2025_v5 }
 0x48a   : > { %5990 = vmatmul.msk.f32.gmra.mxu2 %vm10131_vm9, %v7625_v13 }
 0x48c   : > { %v7629_v2 = vpop.permute.xlu0 %2257 }
 0x48d   : > { %v1972_v60 = vpop.permute.xlu1 %1971 }
 0x48e   : > { %v1978_v1 = vsel %vm577_vm1, %v1972_v60, %v7551_v58  ;;  %v1886_v58 = vsel %vm471_vm3, %v7497_v18, %v7483_v52  ;;  %v1926_v52 = vmul.f32 %v1913_v31, %v6727_v62 }
 0x48f   : > { %v1991_v5 = vmul.f32 %v1978_v1, %v6730_v59 }
 0x490   : > { %v2435_v3 = vld.sshfl [vmem:[#allocation1 + $0x8] sm:$0xff pattern:$0x75316420]  ;;  %v2434_v4 = vld.sshfl [vmem:[#allocation1] sm:$0xff pattern:$0x75316420] }
 0x491   : > { %2283 = vrot.lane.b32.xlu2 %v7503_v8, %s6249_s21  ;;  %2440 = vrot.lane.b32.xlu1 %v2435_v3, %s6254_s26  ;;  %2453 = vst [vmem:[#allocation1] ss:$2 sm:$0xff] %v7330_v7  ;;  %v1914_v8 = vsel %vm503_vm0, %v7514_v35, %v7518_v26  ;;  %v1829_v26 = vsel %vm397_vm4, %v7466_v43, %v7447_v21 }
 0x492   : > { %2438 = vrot.lane.b32.xlu0 %v2434_v4, %s6254_s26  ;;  %v1927_v35 = vmul.f32 %v1914_v8, %v10191_v53  ;;  %v1945_v3 = vsel %vm10133_vm2, %v1938_v49, %v1940_v37 }
 0x494   : > { %v1970_v63 = vpop.permute.xlu0 %1969  ;;  %v2066_v31 = vrot.slane %v1927_v35, 4  ;;  %v7710_v35 = vpop.permute.xlu2 %2380 }
 0x495   : > { %v7636_v41 = vpop.permute.xlu1 %2287  ;;  %v1977_v34 = vsel %vm577_vm1, %v1970_v63, %v1972_v60  ;;  %v1895_v60 = vmul.f32 %v1886_v58, %v6693_v56  ;;  %v2078_v63 = vrot.slane %v1991_v5, 4  ;;  %v2065_v58 = vrot.slane %v1926_v52, 4 }
 0x496   : > { %v1990_v27 = vmul.f32 %v1977_v34, %v6698_v61  ;;  %v1830_v34 = vmul.f32 %v1829_v26, %v10197_v51  ;;  %v1958_v5 = vmul.f32 %v1945_v3, %v6734_v57  ;;  %v1854_v26 = vsel %vm434_vm6, %v7501_v46, %v7458_v22 }
 0x497   : > { %v1790_v22 = vsel %vm10132_vm7, %v7445_v11, %v7452_v0  ;;  %v1925_v3 = vsel %vm503_vm0, %v7470_v38, %v7578_v45  ;;  %v10227_v0 = vld [vmem:[#allocation42_spill] sm:$0xff]  ;;  %v10229_v45 = vld [vmem:[#allocation36_spill] sm:$0xff] }
 0x498   : > { %v2454_v24 = vld.sshfl [vmem:[#allocation1] sm:$0xff pattern:$0x75316420]  ;;  %v2077_v43 = vrot.slane %v1990_v27, 4  ;;  %v1797_v27 = vsel %vm10132_vm7, %v7419_v29, %v7445_v11  ;;  %v1799_v38 = vmul.f32 %v1790_v22, %v10229_v45 }
 0x499   : > { %2273 = vrot.lane.b32.xlu1 %v7487_v32, %s6249_s21  ;;  %2487 = vst [vmem:[#allocation1] ss:$2 sm:$0xff] %v7330_v7  ;;  %v1893_v32 = vsel %vm471_vm3, %v7525_v39, %v7497_v18  ;;  %v1946_v39 = vsel %vm10133_vm2, %v1940_v37, %v7542_v6  ;;  %v7683_v6 = vld [vmem:[%s10020_s6 + $0x20] ss:$0 sm:$0xff]  ;;  %v7689_v37 = vld [vmem:[%s10020_s6 + $0x28] ss:$0 sm:$0xff] }
 0x49a   : > { %2455 = vrot.lane.b32.xlu0 %v2454_v24, %s6254_s26  ;;  %v1894_v18 = vmul.f32 %v1893_v32, %v10192_v50  ;;  %v1831_v24 = vmul.f32 %v1822_v15, %v10196_v20  ;;  %v1959_v32 = vmul.f32 %v1946_v39, %v6792_v9  ;;  %v1861_v15 = vsel %vm434_vm6, %v7516_v23, %v7501_v46 }
 0x49b   : > { %v2097_v29 = vsel %vm695_vm8, %v1958_v5, %v2077_v43  ;;  %v2030_v46 = vrot.slane %v1830_v34, 4  ;;  %v10226_v43 = vld [vmem:[#allocation35_spill] sm:$0xff] }
 0x49c   : > { %v2004_v4 = vpop.permute.xlu0 %2003  ;;  %v2042_v52 = vrot.slane %v1894_v18, 4  ;;  %v2098_v39 = vsel %vm695_vm8, %v1959_v32, %v2078_v63  ;;  %v2031_v23 = vrot.slane %v1831_v24, 4  ;;  %v2093_v18 = vsel %vm695_vm8, %v7428_v28, %v2065_v58  ;;  %v10230_v34 = vld [vmem:[#allocation31_spill] sm:$0xff]  ;;  %v10232_v32 = vld [vmem:[#allocation16_spill] sm:$0xff] }
 0x49d   : > { %v7672_v1 = vpop.permute.xlu1 %2289  ;;  %v2009_v21 = vsel %vm614_vm5, %v7575_v19, %v2004_v4  ;;  %v2010_v10 = vsel %vm614_vm5, %v2004_v4, %v7527_v42  ;;  %v10225_v4 = vld [vmem:[#allocation17_spill] sm:$0xff]  ;;  %v1798_v11 = vmul.f32 %v1797_v27, %v10226_v43  ;;  %v1929_v24 = vmul.f32 %v1925_v3, %v10230_v34  ;;  %v10231_v58 = vld [vmem:[#allocation27_spill] sm:$0xff] }
 0x49e   : > { %v2022_v49 = vmul.f32 %v7683_v6, %v2009_v21  ;;  %v2023_v19 = vmul.f32 %v7689_v37, %v2010_v10  ;;  %v2094_v63 = vsel %vm695_vm8, %v10225_v4, %v2066_v31  ;;  %v10228_v21 = vld [vmem:[#allocation41_spill] sm:$0xff]  ;;  %v1824_v31 = vsel %vm397_vm4, %v10232_v32, %v10231_v58  ;;  %v10233_v5 = vld [vmem:[#allocation43_spill] sm:$0xff]  ;;  %v10240_v4 = vld [vmem:[#allocation30_spill] sm:$0xff] }
 0x49f   : > { %v1888_v10 = vsel %vm471_vm3, %v10228_v21, %v10227_v0  ;;  %v1957_v27 = vsel %vm10133_vm2, %v7534_v48, %v10233_v5  ;;  %v10239_v48 = vld [vmem:[#allocation20_spill] sm:$0xff]  ;;  %v2068_v0 = vrot.slane %v1929_v24, 4  ;;  %v10243_v24 = vld [vmem:[#allocation18_spill] sm:$0xff]  ;;  %v10246_v5 = vld [vmem:[#allocation29_spill] sm:$0xff] }
 0x4a0   : > { %v7692_v8 = vld.sshfl [vmem:[#allocation1] sm:$0xff pattern:$0x75316420]  ;;  %v7694_v42 = vld.sshfl [vmem:[#allocation1 + $0x8] sm:$0xff pattern:$0x75316420]  ;;  %5982 = vmatpush.msk.msrb.mxu0 %vm695_vm8, %v2022_v49  ;;  %5985 = vmatpush.msk.msrb.mxu1 %vm695_vm8, %v2023_v19 }
 0x4a1   : > { %2219 = vrot.lane.b32.xlu1 %v7449_v17, %s6247_s19  ;;  %2710 = vst [vmem:[#allocation1] ss:$2 sm:$0xff] %v7330_v7  ;;  %v2043_v17 = vrot.slane %v1895_v60, 4  ;;  %v1863_v60 = vmul.f32 %v1854_v26, %v6690_v14  ;;  %v10234_v26 = vld [vmem:[#allocation44_spill] sm:$0xff] }
 0x4a2   : > { %2251 = vrot.lane.b32.xlu0 %v7474_v54, %s6248_s20  ;;  %2125 = vmatpush.msrb.mxu0 %v2097_v29  ;;  %v1862_v54 = vmul.f32 %v1861_v15, %v6753_v55 }
 0x4a3   : > { %2148 = vmatpush.msrb.mxu1 %v2098_v39  ;;  %v2090_v28 = vsel %vm695_vm8, %v1863_v60, %v2043_v17  ;;  %v10238_v17 = vld [vmem:[#allocation34_spill] sm:$0xff]  ;;  %v2085_v60 = vsel %vm695_vm8, %v1798_v11, %v2030_v46 }
 0x4a4   : > { %2126 = vmatpush.msrb.mxu0 %v2093_v18  ;;  %v2089_v19 = vsel %vm695_vm8, %v1862_v54, %v2042_v52  ;;  %v10237_v52 = vld [vmem:[#allocation19_spill] sm:$0xff]  ;;  %v2086_v54 = vsel %vm695_vm8, %v1799_v38, %v2031_v23  ;;  %v1833_v18 = vmul.f32 %v1824_v31, %v10239_v48  ;;  %v7764_v23 = vpop.permute.xlu2 %2412 }
 0x4a5   : > { %2149 = vmatpush.msrb.mxu1 %v2094_v63  ;;  %v1987_v49 = vpop.permute.xlu1 %1986  ;;  %v1897_v22 = vmul.f32 %v1888_v10, %v10237_v52  ;;  %v1961_v63 = vmul.f32 %v1957_v27, %v10240_v4  ;;  %v10241_v10 = vld [vmem:[#allocation38_spill] sm:$0xff]  ;;  %v10245_v31 = vld [vmem:[#allocation11_spill] sm:$0xff] }
 0x4a6   : > { %v1989_v15 = vsel %vm577_vm1, %v10234_v26, %v1987_v49  ;;  %2127 = vmatpush.msrb.mxu0 %v2089_v19  ;;  %v1856_v46 = vsel %vm434_vm6, %v7485_v30, %v10241_v10  ;;  %v1792_v49 = vsel %vm10132_vm7, %v7426_v25, %v10243_v24  ;;  %v2033_v19 = vrot.slane %v1833_v18, 4  ;;  %v7778_v26 = vpop.permute.xlu0 %2348 }
 0x4a7   : > { %2150 = vmatpush.msrb.mxu1 %v2090_v28  ;;  %v1993_v3 = vmul.f32 %v1989_v15, %v10238_v17  ;;  %v2045_v11 = vrot.slane %v1897_v22, 4  ;;  %v10244_v28 = vld [vmem:[#allocation23_spill] sm:$0xff]  ;;  %v2096_v30 = vsel %vm695_vm8, %v10245_v31, %v2068_v0  ;;  %v1801_v27 = vmul.f32 %v1792_v49, %v10246_v5 }
 0x4a8   : > { %v7746_v29 = vld.sshfl [vmem:[#allocation1 + $0x8] sm:$0xff pattern:$0x75316420]  ;;  %v7748_v39 = vld.sshfl [vmem:[#allocation1] sm:$0xff pattern:$0x75316420]  ;;  %2128 = vmatpush.msrb.mxu0 %v2085_v60  ;;  %v1865_v58 = vmul.f32 %v1856_v46, %v10244_v28 }
 0x4a9   : > { %10235 = vst [vmem:[#allocation17_spill] sm:$0xff] %v7746_v29  ;;  %2151 = vmatpush.msrb.mxu1 %v2086_v54  ;;  %v2080_v21 = vrot.slane %v1993_v3, 4  ;;  %5983 = vmatmul.msk.f32.vlgmr.msrb.gmra.mxu0 %vm10131_vm9, %v7609_v33  ;;  %v2088_v25 = vsel %vm695_vm8, %v1801_v27, %v2033_v19 }
 0x4aa   : > { %10236 = vst [vmem:[#allocation42_spill] sm:$0xff] %v7748_v39  ;;  %5986 = vmatmul.msk.f32.vlgmr.msrb.gmra.mxu1 %vm10131_vm9, %v7609_v33  ;;  %v2092_v15 = vsel %vm695_vm8, %v1865_v58, %v2045_v11  ;;  %v10252_v39 = vld [vmem:[#allocation3_spill] sm:$0xff] }
 0x4ab   : > { %3066 = vst [vmem:[#allocation1 + $0x1] ss:$2 sm:$0xff] %v7330_v7  ;;  %v10242_v7 = vld [vmem:[#allocation7_spill] sm:$0xff]  ;;  %v2100_v38 = vsel %vm695_vm8, %v1961_v63, %v2080_v21 }
 0x4ac   : > { %2208 = vrot.lane.b32.xlu0 %v10242_v7, %s6247_s19  ;;  %2194 = vmatpush.msrb.mxu3 %v2100_v38  ;;  %v7788_v22 = vpop.permute.xlu2 %2221  ;;  %v10248_v7 = vld [vmem:[#allocation6_spill] sm:$0xff]  ;;  %v10249_v38 = vld [vmem:[#allocation8_spill] sm:$0xff] }
 0x4ae   : > { %v7773_v32 = vpop.permute.xlu1 %2319  ;;  %2195 = vmatpush.msrb.mxu3 %v2096_v30  ;;  %v7792_v60 = vpop.permute.xlu0 %2442  ;;  %v10250_v30 = vld [vmem:[#allocation10_spill] sm:$0xff] }
 0x4b0   : > { %2196 = vmatpush.msrb.mxu3 %v2092_v15  ;;  %v7822_v15 = vld [vmem:[%s10020_s6 + $0x30] ss:$0 sm:$0xff] }
 0x4b1   : > { %5984 = vmatmul.msk.f32.gmra.mxu0 %vm10131_vm9, %v7625_v13  ;;  %10251 = vst [vmem:[#allocation31_spill] sm:$0xff] %v7822_v15 }
 0x4b2   : > { %5987 = vmatmul.msk.f32.gmra.mxu1 %vm10131_vm9, %v7625_v13  ;;  %2197 = vmatpush.msrb.mxu3 %v2088_v25 }
 0x4b3   : > { %5992 = vmatmul.msk.f32.vlgmr.msrb.gmra.mxu3 %vm10131_vm9, %v7609_v33  ;;  %v2352_v33 = vsel %vm503_vm0, %v7598_v47, %v7778_v26 }
 0x4b4   : > { %v7796_v18 = vpop.permute.xlu2 %2241  ;;  %v2365_v24 = vmul.f32 %v2352_v33, %v10249_v38 }
 0x4b5   : > { %10247 = vst [vmem:[#allocation41_spill] sm:$0xff] %v7796_v18 }
 0x4b6   : > { %v7790_v3 = vpop.permute.xlu1 %2321 }
 0x4bb   : > { %5993 = vmatmul.msk.f32.gmra.mxu3 %vm10131_vm9, %v7625_v13  ;;  %v7798_v63 = vpop.permute.xlu0 %2285 }
 0x4bc   : > { %v7802_v10 = vpop.permute.xlu2 %2305 }
 0x4be   : > { %v2379_v54 = vpop.permute.xlu1 %2378 }
 0x4bf   : > { %v2384_v49 = vsel %vm10133_vm2, %v2379_v54, %v7710_v35 }
 0x4c0   : > { %v2397_v33 = vmul.f32 %v2384_v49, %v10203_v12  ;;  %v10253_v49 = vld [vmem:[#allocation45_spill] sm:$0xff] }
 0x4c6   : > { %v2411_v0 = vpop.permute.xlu1 %2410 }
 0x4c7   : > { %v2416_v21 = vsel %vm577_vm1, %v2411_v0, %v7764_v23 }
 0x4c8   : > { %v2429_v11 = vmul.f32 %v2416_v21, %v10248_v7  ;;  %v2504_v21 = vrot.slane %v2365_v24, 4  ;;  %v2343_v7 = vpop.permute.xlu2 %2342  ;;  %v2228_v24 = vsel %vm10132_vm7, %v7788_v22, %v7613_v40 }
 0x4ca   : > { %v2516_v58 = vrot.slane %v2429_v11, 4  ;;  %v2292_v11 = vsel %vm434_vm6, %v7798_v63, %v7636_v41  ;;  %v2532_v29 = vsel %vm695_vm8, %v10252_v39, %v2504_v21 }
 0x4cb   : > { %v2318_v46 = vpop.permute.xlu0 %2317 }
 0x4cc   : > { %v2324_v13 = vsel %vm471_vm3, %v2318_v46, %v7773_v32 }
 0x4cd   : > { %v2333_v27 = vmul.f32 %v2324_v13, %v10250_v30  ;;  %v2536_v13 = vsel %vm695_vm8, %v2397_v33, %v2516_v58  ;;  %v2301_v30 = vmul.f32 %v2292_v11, %v10207_v44  ;;  %v10254_v58 = vld [vmem:[#allocation12_spill] sm:$0xff]  ;;  %v2237_v11 = vmul.f32 %v2228_v24, %v10206_v36 }
 0x4ce   : > { %v7813_v19 = vpop.permute.xlu1 %2444 }
 0x4cf   : > { %v2448_v31 = vsel %vm614_vm5, %v7792_v60, %v7813_v19  ;;  %v2481_v38 = vrot.slane %v2333_v27, 4 }
 0x4d0   : > { %v2461_v25 = vmul.f32 %v7822_v15, %v2448_v31  ;;  %v2360_v39 = vpop.permute.xlu2 %2359 }
 0x4d1   : > { %v2528_v27 = vsel %vm695_vm8, %v2301_v30, %v2481_v38 }
 0x4d2   : > { %5998 = vmatpush.msk.msra.mxu2 %vm695_vm8, %v2461_v25 }
 0x4d3   : > { %v2316_v38 = vpop.permute.xlu0 %2315 }
 0x4d4   : > { %2602 = vmatpush.msra.mxu2 %v2536_v13  ;;  %v2323_v18 = vsel %vm471_vm3, %v2316_v38, %v2318_v46 }
 0x4d6   : > { %v7834_v31 = vpop.permute.xlu1 %2253  ;;  %2603 = vmatpush.msra.mxu2 %v2532_v29  ;;  %v7849_v29 = vld [vmem:[%s10018_s4] sm:$0xff] }
 0x4d7   : > { %v2260_v25 = vsel %vm397_vm4, %v7834_v31, %v10253_v49  ;;  %10255 = vst [vmem:[#allocation27_spill] sm:$0xff] %v7849_v29 }
 0x4d8   : > { %v2269_v33 = vmul.f32 %v2260_v25, %v10254_v58  ;;  %2604 = vmatpush.msra.mxu2 %v2528_v27  ;;  %v2377_v44 = vpop.permute.xlu2 %2376 }
 0x4d9   : > { %v2383_v12 = vsel %vm10133_vm2, %v2377_v44, %v2379_v54 }
 0x4da   : > { %v2469_v13 = vrot.slane %v2269_v33, 4 }
 0x4db   : > { %v2345_v27 = vpop.permute.xlu0 %2344 }
 0x4dc   : > { %v2524_v21 = vsel %vm695_vm8, %v2237_v11, %v2469_v13  ;;  %v2351_v13 = vsel %vm503_vm0, %v2345_v27, %v7598_v47  ;;  %v2350_v15 = vsel %vm503_vm0, %v2343_v7, %v2345_v27 }
 0x4dd   : > { %2605 = vmatpush.msra.mxu2 %v2524_v21  ;;  %v2364_v51 = vmul.f32 %v2351_v13, %v10191_v53 }
 0x4de   : > { %5999 = vmatmul.msk.f32.vlgmr.msra.gmra.mxu2 %vm10131_vm9, %v7849_v29 }
 0x4df   : > { %v2503_v13 = vrot.slane %v2364_v51, 4  ;;  %v2325_v51 = vsel %vm471_vm3, %v7773_v32, %v7790_v3  ;;  %v2261_v3 = vsel %vm397_vm4, %v10253_v49, %v7629_v2  ;;  %v7911_v2 = vld [vmem:[%s10020_s6 + $0x38] ss:$0 sm:$0xff] }
 0x4e0   : > { %v2409_v30 = vpop.permute.xlu2 %2408 }
 0x4e1   : > { %v2415_v36 = vsel %vm577_vm1, %v2409_v30, %v2411_v0  ;;  %v2363_v0 = vmul.f32 %v2350_v15, %v6727_v62  ;;  %v2330_v15 = vsel %vm471_vm3, %v7802_v10, %v2316_v38 }
 0x4e2   : > { %v2428_v21 = vmul.f32 %v2415_v36, %v6730_v59  ;;  %v2331_v10 = vmul.f32 %v2330_v15, %v10192_v50  ;;  %v2229_v15 = vsel %vm10132_vm7, %v7613_v40, %v7615_v16 }
 0x4e3   : > { %v2375_v25 = vpop.permute.xlu1 %2374 }
 0x4e4   : > { %v2382_v47 = vsel %vm10133_vm2, %v2375_v25, %v2377_v44  ;;  %v2502_v25 = vrot.slane %v2363_v0, 4 }
 0x4e6   : > { %v2530_v32 = vsel %vm695_vm8, %v7692_v8, %v2502_v25  ;;  %v10256_v25 = vld [vmem:[#allocation4_spill] sm:$0xff] }
 0x4e8   : > { %v2424_v58 = vpop.permute.xlu2 %2423 }
 0x4eb   : > { %v2392_v33 = vpop.permute.xlu0 %2391 }
 0x4f0   : > { %v2284_v29 = vpop.permute.xlu2 %2283 }
 0x4f1   : > { %v2291_v54 = vsel %vm434_vm6, %v2284_v29, %v7798_v63  ;;  %v2426_v63 = vsel %vm577_vm1, %v7764_v23, %v2424_v58  ;;  %v2531_v23 = vsel %vm695_vm8, %v7694_v42, %v2503_v13 }
 0x4f3   : > { %v2407_v24 = vpop.permute.xlu1 %2406 }
 0x4f4   : > { %v2414_v11 = vsel %vm577_vm1, %v2407_v24, %v2409_v30  ;;  %v2396_v30 = vmul.f32 %v2383_v12, %v6792_v9  ;;  %v2515_v24 = vrot.slane %v2428_v21, 4  ;;  %v2332_v12 = vmul.f32 %v2323_v18, %v6693_v56 }
 0x4f5   : > { %v2427_v43 = vmul.f32 %v2414_v11, %v6698_v61 }
 0x4f6   : > { %v2535_v18 = vsel %vm695_vm8, %v2396_v30, %v2515_v24  ;;  %v2480_v21 = vrot.slane %v2332_v12, 4  ;;  %v2334_v30 = vmul.f32 %v2325_v51, %v10237_v52  ;;  %v2479_v24 = vrot.slane %v2331_v10, 4  ;;  %v10258_v10 = vld [vmem:[#allocation41_spill] sm:$0xff] }
 0x4f7   : > { %v2514_v27 = vrot.slane %v2427_v43, 4  ;;  %v2362_v43 = vsel %vm503_vm0, %v7778_v26, %v2360_v39  ;;  %v2394_v26 = vsel %vm10133_vm2, %v7710_v35, %v2392_v33  ;;  %v2430_v39 = vmul.f32 %v2426_v63, %v10238_v17 }
 0x4f8   : > { %v2366_v58 = vmul.f32 %v2362_v43, %v10230_v34 }
 0x503   : > { %v2441_v45 = vpop.permute.xlu1 %2440 }
 0x504   : > { %v2447_v36 = vsel %vm614_vm5, %v2441_v45, %v7792_v60  ;;  %v2439_v7 = vpop.permute.xlu0 %2438  ;;  %v2395_v60 = vmul.f32 %v2382_v47, %v6734_v57  ;;  %v2398_v47 = vmul.f32 %v2394_v26, %v10240_v4  ;;  %v10259_v26 = vld [vmem:[#allocation27_spill] sm:$0xff] }
 0x505   : > { %v2460_v11 = vmul.f32 %v7689_v37, %v2447_v36  ;;  %v2446_v46 = vsel %vm614_vm5, %v2439_v7, %v2441_v45  ;;  %v2300_v45 = vmul.f32 %v2291_v54, %v6690_v14  ;;  %v2505_v7 = vrot.slane %v2366_v58, 4 }
 0x506   : > { %v2459_v44 = vmul.f32 %v7683_v6, %v2446_v46  ;;  %v2534_v38 = vsel %vm695_vm8, %v2395_v60, %v2514_v27  ;;  %v2517_v54 = vrot.slane %v2430_v39, 4 }
 0x507   : > { %5996 = vmatpush.msk.msra.mxu1 %vm695_vm8, %v2460_v11  ;;  %v2527_v42 = vsel %vm695_vm8, %v2300_v45, %v2480_v21  ;;  %v2293_v11 = vsel %vm434_vm6, %v7636_v41, %v7672_v1  ;;  %v2533_v60 = vsel %vm695_vm8, %v10256_v25, %v2505_v7  ;;  %v2238_v41 = vmul.f32 %v2229_v15, %v10246_v5  ;;  %v10263_v25 = vld [vmem:[#allocation39_spill] sm:$0xff] }
 0x508   : > { %5994 = vmatpush.msk.msra.mxu0 %vm695_vm8, %v2459_v44  ;;  %v2537_v46 = vsel %vm695_vm8, %v2398_v47, %v2517_v54  ;;  %v2302_v13 = vmul.f32 %v2293_v11, %v10244_v28 }
 0x509   : > { %2582 = vmatpush.msra.mxu1 %v2535_v18  ;;  %v10257_v18 = vld [vmem:[#allocation36_spill] sm:$0xff] }
 0x50a   : > { %2562 = vmatpush.msra.mxu0 %v2534_v38 }
 0x50b   : > { %v2274_v0 = vpop.permute.xlu1 %2273  ;;  %2583 = vmatpush.msra.mxu1 %v2531_v23  ;;  %v10260_v23 = vld [vmem:[#allocation22_spill] sm:$0xff] }
 0x50c   : > { %v2298_v35 = vsel %vm434_vm6, %v2274_v0, %v2284_v29  ;;  %2563 = vmatpush.msra.mxu0 %v2530_v32  ;;  %v2456_v33 = vpop.permute.xlu0 %2455  ;;  %v2270_v29 = vmul.f32 %v2261_v3, %v10239_v48  ;;  %v10261_v32 = vld [vmem:[#allocation35_spill] sm:$0xff] }
 0x50d   : > { %v2299_v36 = vmul.f32 %v2298_v35, %v6753_v55  ;;  %v2458_v8 = vsel %vm614_vm5, %v7813_v19, %v2456_v33  ;;  %2584 = vmatpush.msra.mxu1 %v2527_v42  ;;  %v2482_v19 = vrot.slane %v2334_v30, 4  ;;  %v2176_v35 = vpop.f32.mrf.mxu2  ;;  %v10262_v42 = vld [vmem:[#allocation15_spill] sm:$0xff] }
 0x50e   : > { %v2462_v49 = vmul.f32 %v7911_v2, %v2458_v8  ;;  %v2470_v12 = vrot.slane %v2270_v29, 4 }
 0x50f   : > { %v2526_v27 = vsel %vm695_vm8, %v2299_v36, %v2479_v24  ;;  %v2529_v43 = vsel %vm695_vm8, %v2302_v13, %v2482_v19  ;;  %v2177_v24 = vadd.f32 %v2176_v35, %v10262_v42 }
 0x510   : > { %6000 = vmatpush.msk.msra.mxu3 %vm695_vm8, %v2462_v49  ;;  %2564 = vmatpush.msra.mxu0 %v2526_v27  ;;  %v2525_v45 = vsel %vm695_vm8, %v2238_v41, %v2470_v12 }
 0x512   : > { %2622 = vmatpush.msra.mxu3 %v2537_v46 }
 0x513   : > { %v2220_v44 = vpop.permute.xlu1 %2219 }
 0x514   : > { %2623 = vmatpush.msra.mxu3 %v2533_v60  ;;  %v2252_v1 = vpop.permute.xlu0 %2251  ;;  %v2227_v63 = vsel %vm10132_vm7, %v2220_v44, %v7788_v22 }
 0x515   : > { %v2259_v40 = vsel %vm397_vm4, %v2252_v1, %v7834_v31  ;;  %v2236_v51 = vmul.f32 %v2227_v63, %v10257_v18  ;;  %v2266_v38 = vsel %vm397_vm4, %v10258_v10, %v2252_v1  ;;  %v7949_v33 = vpop.f32.mrf.mxu2 }
 0x516   : > { %2624 = vmatpush.msra.mxu3 %v2529_v43  ;;  %v2268_v16 = vmul.f32 %v2259_v40, %v10196_v20  ;;  %v2267_v58 = vmul.f32 %v2266_v38, %v10260_v23 }
 0x518   : > { %2625 = vmatpush.msra.mxu3 %v2525_v45  ;;  %v2468_v21 = vrot.slane %v2268_v16, 4  ;;  %v2467_v0 = vrot.slane %v2267_v58, 4 }
 0x519   : > { %6001 = vmatmul.msk.f32.vlgmr.msra.gmra.mxu3 %vm10131_vm9, %v10259_v26 }
 0x51a   : > { %v2523_v22 = vsel %vm695_vm8, %v2236_v51, %v2468_v21 }
 0x51b   : > { %2585 = vmatpush.msra.mxu1 %v2523_v22 }
 0x51c   : > { %5997 = vmatmul.msk.f32.vlgmr.msra.gmra.mxu1 %vm10131_vm9, %v10259_v26 }
 0x51e   : > { %v2209_v31 = vpop.permute.xlu0 %2208 }
 0x51f   : > { %v2234_v39 = vsel %vm10132_vm7, %v2209_v31, %v2220_v44 }
 0x520   : > { %v2235_v3 = vmul.f32 %v2234_v39, %v10261_v32 }
 0x522   : > { %v2522_v30 = vsel %vm695_vm8, %v2235_v3, %v2467_v0 }
 0x523   : > { %2565 = vmatpush.msra.mxu0 %v2522_v30 }
 0x524   : > { %5995 = vmatmul.msk.f32.vlgmr.msra.gmra.mxu0 %vm10131_vm9, %v10259_v26 }
 0x526   : > { %v2130_v1 = vpop.f32.mrf.mxu0 }
 0x527   : > { %v2153_v41 = vpop.f32.mrf.mxu1  ;;  %v2131_v21 = vadd.f32 %v2130_v1, %v10262_v42  ;;  %v10264_v1 = vld [vmem:[#allocation17_spill] sm:$0xff] }
 0x528   : > { %v2154_v40 = vadd.f32 %v2153_v41, %v10262_v42 }
 0x52e   : > { %v7967_v16 = vpop.f32.mrf.mxu0 }
 0x52f   : > { %v7962_v63 = vpop.f32.mrf.mxu1 }
 0x536   : > { %v2199_v43 = vpop.f32.mrf.mxu3 }
 0x537   : > { %v2200_v31 = vadd.f32 %v2199_v43, %v10262_v42 }
 0x53e   : > { %v7969_v45 = vpop.f32.mrf.mxu3 }
 0x561   : > { %v2607_v47 = vpop.f32.mrf.mxu2 }
 0x562   : > { %v2632_v36 = vadd.f32 %v2607_v47, %v2177_v24 }
 0x564   : > { %v6004_v8 = vmul.f32 -1.442695, %v2632_v36 }
 0x566   : > { %6140 = vpow2.f32 %v6004_v8 }
 0x56c   : > { %v6141_v49 = vpop.eup %6140 }
 0x56d   : > { %v2648_v29 = vadd.f32 1.0, %v6141_v49 }
 0x56f   : > { %6142 = vrcp.f32 %v2648_v29  ;;  %v2691_v11 = vand.u32 2147483648, %v2648_v29  ;;  %v2689_v46 = vand.u32 2147483647, %v2648_v29  ;;  %vm2685_vm15 = vweird.f32 %v2648_v29 }
 0x571   : > { %v2692_v12 = vor.u32 1.1754944e-38, %v2691_v11  ;;  %vm2690_vm11 = vcmp.eq.f32.partialorder %v2689_v46, 8.507059e+37 }
 0x575   : > { %v6143_v7 = vpop.eup %6142 }
 0x576   : > { %v2681_v54 = vmul.f32 %v6143_v7, %v2648_v29  ;;  %vm2686_vm14 = vweird.f32 %v6143_v7 }
 0x577   : > { %vm2687_vm10 = vmor %vm2685_vm15, %vm2686_vm14 }
 0x578   : > { %v2682_v27 = vsub.f32 1.0, %v2681_v54 }
 0x57a   : > { %v2683_v19 = vmul.f32 %v6143_v7, %v2682_v27 }
 0x57c   : > { %v2684_v15 = vadd.f32 %v6143_v7, %v2683_v19 }
 0x57e   : > { %v2688_v13 = vsel %vm2687_vm10, %v6143_v7, %v2684_v15 }
 0x57f   : > { %v7952_v44 = vsel %vm2690_vm11, %v2692_v12, %v2688_v13 }
 0x580   : > { %v7956_v60 = vmul.f32 %v10263_v25, %v7952_v44 }
 0x582   : > { %2859 = vrot.lane.b32.xlu1 %v7956_v60, %s6253_s25 }
 0x58a   : > { %2880 = vrot.lane.b32.xlu1 %v7956_v60, %s6254_s26 }
 0x592   : > { %2817 = vrot.lane.b32.xlu1 %v7956_v60, %s6251_s23 }
 0x599   : > { %v2587_v51 = vpop.f32.mrf.mxu1 }
 0x59a   : > { %2838 = vrot.lane.b32.xlu1 %v7956_v60, %s6252_s24  ;;  %v2631_v10 = vadd.f32 %v2587_v51, %v2154_v40 }
 0x59c   : > { %v6003_v38 = vmul.f32 -1.442695, %v2631_v10  ;;  %v2627_v22 = vpop.f32.mrf.mxu3 }
 0x59d   : > { %v2633_v3 = vadd.f32 %v2627_v22, %v2200_v31  ;;  %v10265_v31 = vld [vmem:[#allocation42_spill] sm:$0xff] }
 0x59e   : > { %6144 = vpow2.f32 %v6003_v38 }
 0x59f   : > { %v6005_v35 = vmul.f32 -1.442695, %v2633_v3 }
 0x5a1   : > { %v2567_v26 = vpop.f32.mrf.mxu0 }
 0x5a2   : > { %v2630_v58 = vadd.f32 %v2567_v26, %v2131_v21 }
 0x5a4   : > { %v6002_v39 = vmul.f32 -1.442695, %v2630_v58  ;;  %v6145_v0 = vpop.eup %6144 }
 0x5a5   : > { %v2647_v30 = vadd.f32 1.0, %v6145_v0 }
 0x5a6   : > { %6146 = vpow2.f32 %v6002_v39 }
 0x5a7   : > { %6148 = vrcp.f32 %v2647_v30  ;;  %v2676_v29 = vand.u32 2147483648, %v2647_v30  ;;  %v2674_v27 = vand.u32 2147483647, %v2647_v30  ;;  %vm2670_vm13 = vweird.f32 %v2647_v30 }
 0x5a8   : > { %6150 = vpow2.f32 %v6005_v35 }
 0x5a9   : > { %v2677_v46 = vor.u32 1.1754944e-38, %v2676_v29  ;;  %vm2675_vm15 = vcmp.eq.f32.partialorder %v2674_v27, 8.507059e+37  ;;  %v10266_v29 = vld [vmem:[#allocation40_spill] sm:$0xff] }
 0x5ac   : > { %v6147_v24 = vpop.eup %6146 }
 0x5ad   : > { %v2646_v47 = vadd.f32 1.0, %v6147_v24  ;;  %v6149_v36 = vpop.eup %6148 }
 0x5ae   : > { %v2666_v8 = vmul.f32 %v6149_v36, %v2647_v30  ;;  %v6151_v7 = vpop.eup %6150  ;;  %vm2671_vm12 = vweird.f32 %v6149_v36 }
 0x5af   : > { %6152 = vrcp.f32 %v2646_v47  ;;  %vm2672_vm14 = vmor %vm2670_vm13, %vm2671_vm12  ;;  %v2649_v15 = vadd.f32 1.0, %v6151_v7  ;;  %v2661_v40 = vand.u32 2147483648, %v2646_v47  ;;  %v2659_v10 = vand.u32 2147483647, %v2646_v47 }
 0x5b0   : > { %v2667_v49 = vsub.f32 1.0, %v2666_v8  ;;  %vm2655_vm11 = vweird.f32 %v2646_v47 }
 0x5b1   : > { %6154 = vrcp.f32 %v2649_v15  ;;  %v2662_v21 = vor.u32 1.1754944e-38, %v2661_v40  ;;  %vm2660_vm13 = vcmp.eq.f32.partialorder %v2659_v10, 8.507059e+37  ;;  %v2706_v24 = vand.u32 2147483648, %v2649_v15 }
 0x5b2   : > { %v2668_v54 = vmul.f32 %v6149_v36, %v2667_v49 }
 0x5b3   : > { %v2707_v8 = vor.u32 1.1754944e-38, %v2706_v24 }
 0x5b4   : > { %v2669_v19 = vadd.f32 %v6149_v36, %v2668_v54 }
 0x5b5   : > { %v6153_v11 = vpop.eup %6152 }
 0x5b6   : > { %v2651_v12 = vmul.f32 %v6153_v11, %v2646_v47  ;;  %v2673_v13 = vsel %vm2672_vm14, %v6149_v36, %v2669_v19  ;;  %vm2656_vm10 = vweird.f32 %v6153_v11  ;;  %v2704_v47 = vand.u32 2147483647, %v2649_v15 }
 0x5b7   : > { %v7975_v25 = vsel %vm2675_vm15, %v2677_v46, %v2673_v13  ;;  %vm2657_vm12 = vmor %vm2655_vm11, %vm2656_vm10  ;;  %v6155_v58 = vpop.eup %6154  ;;  %vm2700_vm15 = vweird.f32 %v2649_v15 }
 0x5b8   : > { %v2652_v41 = vsub.f32 1.0, %v2651_v12  ;;  %v7979_v43 = vmul.f32 %v10264_v1, %v7975_v25  ;;  %v2696_v0 = vmul.f32 %v6155_v58, %v2649_v15  ;;  %vm2701_vm14 = vweird.f32 %v6155_v58 }
 0x5b9   : > { %vm2702_vm10 = vmor %vm2700_vm15, %vm2701_vm14  ;;  %vm2705_vm11 = vcmp.eq.f32.partialorder %v2704_v47, 8.507059e+37 }
 0x5ba   : > { %v2653_v51 = vmul.f32 %v6153_v11, %v2652_v41  ;;  %2797 = vrot.lane.b32.xlu1 %v7979_v43, %s6250_s22  ;;  %2857 = vrot.lane.b32.xlu0 %v7979_v43, %s6253_s25  ;;  %v2697_v3 = vsub.f32 1.0, %v2696_v0 }
 0x5bc   : > { %v2654_v38 = vadd.f32 %v6153_v11, %v2653_v51  ;;  %v2698_v30 = vmul.f32 %v6155_v58, %v2697_v3 }
 0x5be   : > { %v2658_v26 = vsel %vm2657_vm12, %v6153_v11, %v2654_v38  ;;  %v2699_v35 = vadd.f32 %v6155_v58, %v2698_v30 }
 0x5bf   : > { %v7985_v22 = vsel %vm2660_vm13, %v2662_v21, %v2658_v26 }
 0x5c0   : > { %v7989_v39 = vmul.f32 %v10265_v31, %v7985_v22  ;;  %v2703_v36 = vsel %vm2702_vm10, %v6155_v58, %v2699_v35 }
 0x5c1   : > { %v8009_v49 = vsel %vm2705_vm11, %v2707_v8, %v2703_v36 }
 0x5c2   : > { %2855 = vrot.lane.b32.xlu2 %v7989_v39, %s6253_s25  ;;  %2755 = vrot.lane.b32.xlu1 %v7979_v43, %s6248_s20  ;;  %v8013_v7 = vmul.f32 %v10266_v29, %v8009_v49 }
 0x5c3   : > { %2878 = vrot.lane.b32.xlu0 %v7979_v43, %s6254_s26 }
 0x5ca   : > { %2876 = vrot.lane.b32.xlu2 %v7989_v39, %s6254_s26  ;;  %2776 = vrot.lane.b32.xlu1 %v7979_v43, %s6249_s21 }
 0x5cb   : > { %2815 = vrot.lane.b32.xlu0 %v7979_v43, %s6251_s23 }
 0x5d2   : > { %2813 = vrot.lane.b32.xlu2 %v7989_v39, %s6251_s23  ;;  %2734 = vrot.lane.b32.xlu1 %v7979_v43, %s6247_s19 }
 0x5d3   : > { %2836 = vrot.lane.b32.xlu0 %v7979_v43, %s6252_s24 }
 0x5da   : > { %2834 = vrot.lane.b32.xlu2 %v7989_v39, %s6252_s24  ;;  %2819 = vrot.lane.b32.xlu1 %v8013_v7, %s6251_s23 }
 0x5db   : > { %2795 = vrot.lane.b32.xlu0 %v7989_v39, %s6250_s22 }
 0x5e2   : > { %2792 = vrot.lane.b32.xlu2 %v8013_v7, %s6250_s22  ;;  %2757 = vrot.lane.b32.xlu1 %v7956_v60, %s6248_s20 }
 0x5e3   : > { %2753 = vrot.lane.b32.xlu0 %v7989_v39, %s6248_s20 }
 0x5ea   : > { %2750 = vrot.lane.b32.xlu2 %v8013_v7, %s6248_s20 }
 0x5eb   : > { %2774 = vrot.lane.b32.xlu0 %v7989_v39, %s6249_s21 }
 0x5f2   : > { %2771 = vrot.lane.b32.xlu2 %v8013_v7, %s6249_s21 }
 0x5f3   : > { %2732 = vrot.lane.b32.xlu0 %v7989_v39, %s6247_s19 }
 0x5f4   : > { %v8051_v27 = vpop.permute.xlu1 %2859 }
 0x5fa   : > { %2726 = vrot.lane.b32.xlu2 %v8013_v7, %s6247_s19 }
 0x5fb   : > { %2799 = vrot.lane.b32.xlu0 %v7956_v60, %s6250_s22 }
 0x5fc   : > { %v8055_v19 = vpop.permute.xlu1 %2880 }
 0x602   : > { %2861 = vrot.lane.b32.xlu2 %v8013_v7, %s6253_s25 }
 0x603   : > { %2882 = vrot.lane.b32.xlu0 %v8013_v7, %s6254_s26 }
 0x604   : > { %v8059_v12 = vpop.permute.xlu1 %2817 }
 0x60a   : > { %2840 = vrot.lane.b32.xlu2 %v8013_v7, %s6252_s24 }
 0x60b   : > { %2736 = vrot.lane.b32.xlu0 %v7956_v60, %s6247_s19 }
 0x60c   : > { %v8071_v38 = vpop.permute.xlu1 %2838 }
 0x612   : > { %2778 = vrot.lane.b32.xlu2 %v7956_v60, %s6249_s21 }
 0x61c   : > { %v8049_v54 = vpop.permute.xlu2 %2855 }
 0x624   : > { %v8053_v11 = vpop.permute.xlu2 %2876 }
 0x62c   : > { %v8057_v46 = vpop.permute.xlu2 %2813  ;;  %v2858_v15 = vpop.permute.xlu0 %2857 }
 0x62d   : > { %v2863_v58 = vsel %vm577_vm1, %v8049_v54, %v2858_v15  ;;  %v2864_v31 = vsel %vm577_vm1, %v2858_v15, %v8051_v27  ;;  %v8085_v30 = vpop.permute.xlu1 %2797 }
 0x62e   : > { %v2872_v0 = vmul.f32 %v2863_v58, %v6698_v61  ;;  %v2873_v3 = vmul.f32 %v2864_v31, %v6730_v59 }
 0x630   : > { %v2937_v8 = vrot.slane %v2872_v0, 4  ;;  %v2938_v29 = vrot.slane %v2873_v3, 4 }
 0x634   : > { %v8061_v13 = vpop.permute.xlu2 %2834 }
 0x635   : > { %v2879_v41 = vpop.permute.xlu0 %2878 }
 0x636   : > { %v2884_v1 = vsel %vm614_vm5, %v8053_v11, %v2879_v41  ;;  %v2885_v40 = vsel %vm614_vm5, %v2879_v41, %v8055_v19 }
 0x637   : > { %v2893_v51 = vmul.f32 %v7683_v6, %v2884_v1  ;;  %v2894_v10 = vmul.f32 %v7689_v37, %v2885_v40 }
 0x639   : > { %6006 = vmatpush.msk.msrb.mxu0 %vm695_vm8, %v2893_v51  ;;  %6008 = vmatpush.msk.msrb.mxu1 %vm695_vm8, %v2894_v10 }
 0x63c   : > { %v8073_v21 = vpop.permute.xlu2 %2792 }
 0x63d   : > { %v2816_v26 = vpop.permute.xlu0 %2815 }
 0x63e   : > { %v2821_v6 = vsel %vm503_vm0, %v8057_v46, %v2816_v26  ;;  %v2822_v37 = vsel %vm503_vm0, %v2816_v26, %v8059_v12 }
 0x63f   : > { %v2830_v35 = vmul.f32 %v2821_v6, %v6727_v62  ;;  %v2831_v24 = vmul.f32 %v2822_v37, %v10191_v53  ;;  %v8103_v37 = vpop.permute.xlu1 %2755 }
 0x641   : > { %v2925_v1 = vrot.slane %v2830_v35, 4  ;;  %v2926_v40 = vrot.slane %v2831_v24, 4 }
 0x643   : > { %v2953_v31 = vsel %vm695_vm8, %v7989_v39, %v2925_v1  ;;  %v2954_v6 = vsel %vm695_vm8, %v7979_v43, %v2926_v40 }
 0x644   : > { %v8089_v47 = vpop.permute.xlu2 %2750 }
 0x645   : > { %v2837_v36 = vpop.permute.xlu0 %2836 }
 0x646   : > { %v2842_v15 = vsel %vm10133_vm2, %v8061_v13, %v2837_v36  ;;  %v2843_v41 = vsel %vm10133_vm2, %v2837_v36, %v8071_v38 }
 0x647   : > { %v2851_v51 = vmul.f32 %v2842_v15, %v6734_v57  ;;  %v2852_v10 = vmul.f32 %v2843_v41, %v6792_v9  ;;  %v8107_v24 = vpop.permute.xlu1 %2776 }
 0x649   : > { %v2957_v26 = vsel %vm695_vm8, %v2851_v51, %v2937_v8  ;;  %v2958_v58 = vsel %vm695_vm8, %v2852_v10, %v2938_v29 }
 0x64a   : > { %2985 = vmatpush.msrb.mxu0 %v2957_v26  ;;  %3005 = vmatpush.msrb.mxu1 %v2958_v58 }
 0x64c   : > { %2986 = vmatpush.msrb.mxu0 %v2953_v31  ;;  %3006 = vmatpush.msrb.mxu1 %v2954_v6  ;;  %v8105_v3 = vpop.permute.xlu2 %2771 }
 0x64d   : > { %v2796_v0 = vpop.permute.xlu0 %2795 }
 0x64e   : > { %v2801_v36 = vsel %vm471_vm3, %v2796_v0, %v8085_v30  ;;  %v2808_v8 = vsel %vm471_vm3, %v8073_v21, %v2796_v0 }
 0x64f   : > { %v2809_v43 = vmul.f32 %v2808_v8, %v10192_v50  ;;  %v2810_v29 = vmul.f32 %v2801_v36, %v6693_v56  ;;  %v8127_v6 = vpop.permute.xlu1 %2734 }
 0x651   : > { %v2913_v40 = vrot.slane %v2809_v43, 4  ;;  %v2914_v51 = vrot.slane %v2810_v29, 4 }
 0x654   : > { %v8113_v39 = vpop.permute.xlu2 %2726 }
 0x655   : > { %v2754_v35 = vpop.permute.xlu0 %2753 }
 0x656   : > { %v2759_v58 = vsel %vm397_vm4, %v2754_v35, %v8103_v37  ;;  %v2766_v31 = vsel %vm397_vm4, %v8089_v47, %v2754_v35 }
 0x657   : > { %v2767_v43 = vmul.f32 %v2766_v31, %v10260_v23  ;;  %v2768_v29 = vmul.f32 %v2759_v58, %v10196_v20  ;;  %v2820_v58 = vpop.permute.xlu1 %2819  ;;  %v8144_v31 = vld [vmem:[%s10019_s5] sm:$0xf] }
 0x659   : > { %v2902_v42 = vrot.slane %v2768_v29, 4 }
 0x65c   : > { %v2862_v8 = vpop.permute.xlu2 %2861 }
 0x65d   : > { %v2775_v15 = vpop.permute.xlu0 %2774  ;;  %v2865_v29 = vsel %vm577_vm1, %v8051_v27, %v2862_v8  ;;  %v10268_v27 = vld [vmem:[#allocation6_spill] sm:$0xff] }
 0x65e   : > { %v2780_v41 = vsel %vm434_vm6, %v2775_v15, %v8107_v24  ;;  %v2787_v1 = vsel %vm434_vm6, %v8105_v3, %v2775_v15 }
 0x65f   : > { %v2788_v10 = vmul.f32 %v2787_v1, %v6753_v55  ;;  %v2789_v26 = vmul.f32 %v2780_v41, %v6690_v14  ;;  %v2901_v1 = vrot.slane %v2767_v43, 4  ;;  %v2823_v43 = vsel %vm503_vm0, %v8059_v12, %v2820_v58 }
 0x661   : > { %v2949_v0 = vsel %vm695_vm8, %v2788_v10, %v2913_v40  ;;  %v2950_v36 = vsel %vm695_vm8, %v2789_v26, %v2914_v51 }
 0x662   : > { %2987 = vmatpush.msrb.mxu0 %v2949_v0  ;;  %3007 = vmatpush.msrb.mxu1 %v2950_v36 }
 0x664   : > { %v2841_v0 = vpop.permute.xlu2 %2840 }
 0x665   : > { %v2733_v15 = vpop.permute.xlu0 %2732 }
 0x666   : > { %v2738_v41 = vsel %vm10132_vm7, %v2733_v15, %v8127_v6  ;;  %v2745_v35 = vsel %vm10132_vm7, %v8113_v39, %v2733_v15  ;;  %v2871_v15 = vsel %vm577_vm1, %v2862_v8, %v8049_v54  ;;  %v2758_v8 = vpop.permute.xlu1 %2757 }
 0x667   : > { %v2746_v40 = vmul.f32 %v2745_v35, %v10261_v32  ;;  %v2747_v51 = vmul.f32 %v2738_v41, %v10257_v18  ;;  %v2844_v41 = vsel %vm10133_vm2, %v8071_v38, %v2841_v0  ;;  %v2850_v35 = vsel %vm10133_vm2, %v2841_v0, %v8061_v13 }
 0x668   : > { %v2875_v54 = vmul.f32 %v2871_v15, %v10238_v17  ;;  %v10271_v15 = vld [vmem:[#allocation31_spill] sm:$0xff] }
 0x669   : > { %v2945_v10 = vsel %vm695_vm8, %v2746_v40, %v2901_v1  ;;  %v2946_v26 = vsel %vm695_vm8, %v2747_v51, %v2902_v42  ;;  %v2829_v42 = vsel %vm503_vm0, %v2820_v58, %v8057_v46  ;;  %v10267_v1 = vld [vmem:[#allocation8_spill] sm:$0xff]  ;;  %v2854_v58 = vmul.f32 %v2850_v35, %v10240_v4 }
 0x66a   : > { %2988 = vmatpush.msrb.mxu0 %v2945_v10  ;;  %3008 = vmatpush.msrb.mxu1 %v2946_v26  ;;  %v2832_v40 = vmul.f32 %v2823_v43, %v10267_v1  ;;  %v2833_v51 = vmul.f32 %v2829_v42, %v10230_v34  ;;  %v2874_v10 = vmul.f32 %v2865_v29, %v10268_v27  ;;  %v10269_v26 = vld [vmem:[#allocation9_spill] sm:$0xff]  ;;  %v10270_v43 = vld [vmem:[#allocation10_spill] sm:$0xff] }
 0x66b   : > { %6007 = vmatmul.msk.f32.vlgmr.msrb.gmra.mxu0 %vm10131_vm9, %v8144_v31  ;;  %6009 = vmatmul.msk.f32.vlgmr.msrb.gmra.mxu1 %vm10131_vm9, %v8144_v31  ;;  %v2853_v38 = vmul.f32 %v2844_v41, %v10269_v26  ;;  %v2760_v35 = vsel %vm397_vm4, %v8103_v37, %v2758_v8 }
 0x66c   : > { %v2779_v0 = vpop.permute.xlu2 %2778  ;;  %v2928_v29 = vrot.slane %v2833_v51, 4  ;;  %v2939_v55 = vrot.slane %v2874_v10, 4 }
 0x66d   : > { %v2800_v36 = vpop.permute.xlu0 %2799 }
 0x66e   : > { %v2802_v12 = vsel %vm471_vm3, %v8085_v30, %v2800_v36  ;;  %v2803_v46 = vsel %vm471_vm3, %v2800_v36, %v8073_v21  ;;  %v2927_v36 = vrot.slane %v2832_v40, 4  ;;  %v2959_v51 = vsel %vm695_vm8, %v2853_v38, %v2939_v55 }
 0x66f   : > { %v2811_v18 = vmul.f32 %v2802_v12, %v10270_v43  ;;  %v2812_v42 = vmul.f32 %v2803_v46, %v10237_v52  ;;  %v2761_v12 = vsel %vm397_vm4, %v2758_v8, %v8089_v47  ;;  %v2940_v46 = vrot.slane %v2875_v54, 4 }
 0x670   : > { %v2770_v10 = vmul.f32 %v2761_v12, %v10239_v48 }
 0x671   : > { %v2915_v40 = vrot.slane %v2811_v18, 4  ;;  %v2960_v37 = vsel %vm695_vm8, %v2854_v58, %v2940_v46  ;;  %v2956_v18 = vsel %vm695_vm8, %v8013_v7, %v2928_v29 }
 0x675   : > { %v2883_v13 = vpop.permute.xlu0 %2882 }
 0x676   : > { %v2886_v30 = vsel %vm614_vm5, %v8055_v19, %v2883_v13  ;;  %v2892_v21 = vsel %vm614_vm5, %v2883_v13, %v8053_v11  ;;  %v2781_v19 = vsel %vm434_vm6, %v8107_v24, %v2779_v0  ;;  %v2782_v11 = vsel %vm434_vm6, %v2779_v0, %v8105_v3  ;;  %v10272_v13 = vld [vmem:[#allocation12_spill] sm:$0xff]  ;;  %v10273_v24 = vld [vmem:[#allocation13_spill] sm:$0xff] }
 0x677   : > { %v2895_v14 = vmul.f32 %v10271_v15, %v2886_v30  ;;  %v2896_v41 = vmul.f32 %v7911_v2, %v2892_v21  ;;  %v2916_v2 = vrot.slane %v2812_v42, 4  ;;  %v2769_v47 = vmul.f32 %v2760_v35, %v10272_v13  ;;  %v10274_v21 = vld [vmem:[#allocation14_spill] sm:$0xff] }
 0x678   : > { %v2790_v54 = vmul.f32 %v2781_v19, %v10273_v24  ;;  %v2791_v3 = vmul.f32 %v2782_v11, %v10244_v28  ;;  %v2904_v30 = vrot.slane %v2770_v10, 4  ;;  %v3061_v19 = vsub.f32 1.0, %v7985_v22 }
 0x679   : > { %6010 = vmatpush.msk.msrb.mxu2 %vm695_vm8, %v2895_v14  ;;  %6012 = vmatpush.msk.msrb.mxu3 %vm695_vm8, %v2896_v41  ;;  %v2955_v14 = vsel %vm695_vm8, %v7956_v60, %v2927_v36  ;;  %v2903_v42 = vrot.slane %v2769_v47, 4 }
 0x67a   : > { %v2951_v58 = vsel %vm695_vm8, %v2790_v54, %v2915_v40  ;;  %v2952_v0 = vsel %vm695_vm8, %v2791_v3, %v2916_v2  ;;  %v3062_v40 = vsub.f32 1.0, %v7975_v25 }
 0x67b   : > { %3025 = vmatpush.msrb.mxu2 %v2959_v51  ;;  %3045 = vmatpush.msrb.mxu3 %v2960_v37  ;;  %v3069_v51 = vld.sshfl [vmem:[#allocation1] sm:$0xff pattern:$0x75316420] }
 0x67d   : > { %3026 = vmatpush.msrb.mxu2 %v2955_v14  ;;  %3046 = vmatpush.msrb.mxu3 %v2956_v18  ;;  %v2737_v55 = vpop.permute.xlu0 %2736 }
 0x67e   : > { %v2739_v8 = vsel %vm10132_vm7, %v8127_v6, %v2737_v55  ;;  %v2740_v38 = vsel %vm10132_vm7, %v2737_v55, %v8113_v39  ;;  %v10275_v39 = vld [vmem:[#allocation5_spill] sm:$0xff] }
 0x67f   : > { %v2748_v60 = vmul.f32 %v2739_v8, %v10274_v21  ;;  %v2749_v36 = vmul.f32 %v2740_v38, %v10246_v5  ;;  %3027 = vmatpush.msrb.mxu2 %v2951_v58  ;;  %3047 = vmatpush.msrb.mxu3 %v2952_v0  ;;  %v2134_v6 = vadd.f32 %v7967_v16, %v10275_v39  ;;  %v8225_v55 = vld [vmem:[%s6315_s11 + $0x28] sm:$0xff] }
 0x680   : > { %v2157_v15 = vadd.f32 %v7962_v63, %v10275_v39  ;;  %v3077_v16 = vmul.f32 %v3069_v51, %v3061_v19  ;;  %v3070_v63 = vld.sshfl [vmem:[#allocation1 + $0x8] sm:$0xff pattern:$0x75316420] }
 0x681   : > { %v2947_v7 = vsel %vm695_vm8, %v2748_v60, %v2903_v42  ;;  %v2948_v29 = vsel %vm695_vm8, %v2749_v36, %v2904_v30  ;;  %v3078_v10 = vmul.f32 %v3070_v63, %v3062_v40  ;;  %v8233_v42 = vld [vmem:[%s6315_s11 + $0x20] sm:$0xff] }
 0x682   : > { %3028 = vmatpush.msrb.mxu2 %v2947_v7  ;;  %3048 = vmatpush.msrb.mxu3 %v2948_v29  ;;  %v3071_v29 = vld.sshfl [vmem:[#allocation1 + $0x10] sm:$0xff pattern:$0x75316420] }
 0x683   : > { %6011 = vmatmul.msk.f32.vlgmr.msrb.gmra.mxu2 %vm10131_vm9, %v8144_v31  ;;  %6013 = vmatmul.msk.f32.vlgmr.msrb.gmra.mxu3 %vm10131_vm9, %v8144_v31 }
 0x6e8   : > { %v2990_v41 = vpop.f32.mrf.mxu0  ;;  %v3010_v35 = vpop.f32.mrf.mxu1 }
 0x6e9   : > { %v3053_v12 = vadd.f32 %v2990_v41, %v2134_v6  ;;  %v3054_v46 = vadd.f32 %v3010_v35, %v2157_v15  ;;  %v3072_v15 = vld.sshfl [vmem:[#allocation1 + $0x18] sm:$0xff pattern:$0x75316420] }
 0x6eb   : > { %6156 = vtanh.f32 %v3053_v12 }
 0x6ec   : > { %6158 = vtanh.f32 %v3054_v46 }
 0x6f1   : > { %v6157_v11 = vpop.eup %6156 }
 0x6f2   : > { %v6159_v2 = vpop.eup %6158  ;;  %v3085_v31 = vrot.slane %v6157_v11, 4 }
 0x6f3   : > { %v3086_v37 = vrot.slane %v6159_v2, 4 }
 0x6f4   : > { %v3093_v47 = vmul.f32 %v3085_v31, %v7985_v22  ;;  %v2180_v22 = vadd.f32 %v7949_v33, %v10275_v39  ;;  %v3063_v33 = vsub.f32 1.0, %v7952_v44 }
 0x6f5   : > { %v3094_v54 = vmul.f32 %v3086_v37, %v7975_v25  ;;  %v2203_v25 = vadd.f32 %v7969_v45, %v10275_v39  ;;  %v3064_v45 = vsub.f32 1.0, %v8009_v49 }
 0x6f6   : > { %v3097_v3 = vadd.f32 %v3093_v47, %v3077_v16  ;;  %v3079_v46 = vmul.f32 %v3071_v29, %v3063_v33 }
 0x6f7   : > { %v3098_v14 = vadd.f32 %v3094_v54, %v3078_v10  ;;  %v3080_v11 = vmul.f32 %v3072_v15, %v3064_v45 }
 0x6f8   : > { %3105 = vst.sshfl [vmem:[#allocation1] sm:$0xff pattern:$0x75316420] %v3097_v3 }
 0x6f9   : > { %3106 = vst.sshfl [vmem:[#allocation1 + $0x8] sm:$0xff pattern:$0x75316420] %v3098_v14 }
 0x700   : > { %v8222_v18 = vld [vmem:[#allocation1 + $0x1] ss:$2 sm:$0xff] }
 0x701   : > { %3117 = vst.sshfl [vmem:[#allocation1] sm:$0xff pattern:$0x75316420] %v3097_v3 }
 0x702   : > { %3118 = vst.sshfl [vmem:[#allocation1 + $0x8] sm:$0xff pattern:$0x75316420] %v3098_v14 }
 0x703   : > { %3136 = vst [vmem:[#allocation1] ss:$2 sm:$0xff] %v8225_v55 }
 0x706   : > { %v3030_v8 = vpop.f32.mrf.mxu2  ;;  %v3050_v38 = vpop.f32.mrf.mxu3 }
 0x707   : > { %v3055_v58 = vadd.f32 %v3030_v8, %v2180_v22  ;;  %v3056_v0 = vadd.f32 %v3050_v38, %v2203_v25 }
 0x709   : > { %v3122_v30 = vld [vmem:[#allocation1 + $0x1] ss:$2 sm:$0xff]  ;;  %6160 = vtanh.f32 %v3055_v58 }
 0x70a   : > { %v3137_v60 = vld.sshfl [vmem:[#allocation1 + $0x8] sm:$0xff pattern:$0x75316420]  ;;  %6014 = vst [vmem:[%s6320_s14 + $0x10] sm:$0xff] %v3122_v30  ;;  %6162 = vtanh.f32 %v3056_v0 }
 0x70b   : > { %3142 = vst [vmem:[#allocation1] ss:$2 sm:$0xff] %v8233_v42  ;;  %3138 = vrot.lane.b32.xlu0 %v3137_v60, %s6247_s19 }
 0x70f   : > { %v6161_v36 = vpop.eup %6160 }
 0x710   : > { %v6163_v7 = vpop.eup %6162  ;;  %v3087_v6 = vrot.slane %v6161_v36, 4 }
 0x711   : > { %v3088_v41 = vrot.slane %v6163_v7, 4 }
 0x712   : > { %v3145_v35 = vld.sshfl [vmem:[#allocation1] sm:$0xff pattern:$0x75316420]  ;;  %v3146_v12 = vld.sshfl [vmem:[#allocation1 + $0x8] sm:$0xff pattern:$0x75316420]  ;;  %v3095_v19 = vmul.f32 %v3087_v6, %v7952_v44 }
 0x713   : > { %3169 = vst [vmem:[#allocation1] ss:$2 sm:$0xff] %v8225_v55  ;;  %v3096_v40 = vmul.f32 %v3088_v41, %v8009_v49  ;;  %3151 = vrot.lane.b32.xlu2 %v3146_v12, %s6247_s19  ;;  %3149 = vrot.lane.b32.xlu1 %v3145_v35, %s6247_s19 }
 0x714   : > { %v3099_v2 = vadd.f32 %v3095_v19, %v3079_v46 }
 0x715   : > { %v3100_v31 = vadd.f32 %v3096_v40, %v3080_v11 }
 0x716   : > { %3107 = vst.sshfl [vmem:[#allocation1 + $0x10] sm:$0xff pattern:$0x75316420] %v3099_v2 }
 0x717   : > { %3108 = vst.sshfl [vmem:[#allocation1 + $0x18] sm:$0xff pattern:$0x75316420] %v3100_v31 }
 0x71a   : > { %v3170_v51 = vld.sshfl [vmem:[#allocation1 + $0x8] sm:$0xff pattern:$0x75316420] }
 0x71b   : > { %3174 = vst [vmem:[#allocation1] ss:$2 sm:$0xff] %v8233_v42  ;;  %3171 = vrot.lane.b32.xlu2 %v3170_v51, %s6248_s20 }
 0x71e   : > { %v8247_v44 = vld [vmem:[#allocation1 + $0x11] ss:$2 sm:$0xff] }
 0x71f   : > { %3119 = vst.sshfl [vmem:[#allocation1 + $0x10] sm:$0xff pattern:$0x75316420] %v3099_v2 }
 0x720   : > { %3120 = vst.sshfl [vmem:[#allocation1 + $0x18] sm:$0xff pattern:$0x75316420] %v3100_v31 }
 0x721   : > { %3144 = vst [vmem:[#allocation1 + $0x10] ss:$2 sm:$0xff] %v8225_v55 }
 0x722   : > { %v3177_v49 = vld.sshfl [vmem:[#allocation1] sm:$0xff pattern:$0x75316420]  ;;  %v3178_v37 = vld.sshfl [vmem:[#allocation1 + $0x8] sm:$0xff pattern:$0x75316420] }
 0x723   : > { %3201 = vst [vmem:[#allocation1] ss:$2 sm:$0xff] %v8225_v55 }
 0x727   : > { %v3124_v16 = vld [vmem:[#allocation1 + $0x11] ss:$2 sm:$0xff] }
 0x728   : > { %v3147_v47 = vld.sshfl [vmem:[#allocation1 + $0x10] sm:$0xff pattern:$0x75316420]  ;;  %v3148_v63 = vld.sshfl [vmem:[#allocation1 + $0x18] sm:$0xff pattern:$0x75316420] }
 0x729   : > { %3176 = vst [vmem:[#allocation1 + $0x10] ss:$2 sm:$0xff] %v8225_v55  ;;  %3155 = vrot.lane.b32.xlu1 %v3148_v63, %s6247_s19  ;;  %3153 = vrot.lane.b32.xlu0 %v3147_v47, %s6247_s19 }
 0x72a   : > { %v3202_v10 = vld.sshfl [vmem:[#allocation1 + $0x8] sm:$0xff pattern:$0x75316420]  ;;  %6015 = vst [vmem:[%s6320_s14 + $0x18] sm:$0xff] %v3124_v16 }
 0x72b   : > { %3206 = vst [vmem:[#allocation1] ss:$2 sm:$0xff] %v8233_v42 }
 0x730   : > { %v3179_v54 = vld.sshfl [vmem:[#allocation1 + $0x10] sm:$0xff pattern:$0x75316420]  ;;  %v3180_v3 = vld.sshfl [vmem:[#allocation1 + $0x18] sm:$0xff pattern:$0x75316420] }
 0x731   : > { %3208 = vst [vmem:[#allocation1 + $0x10] ss:$2 sm:$0xff] %v8225_v55  ;;  %3183 = vrot.lane.b32.xlu1 %v3178_v37, %s6248_s20  ;;  %3187 = vrot.lane.b32.xlu0 %v3180_v3, %s6248_s20 }
 0x732   : > { %v3209_v14 = vld.sshfl [vmem:[#allocation1] sm:$0xff pattern:$0x75316420]  ;;  %v3210_v22 = vld.sshfl [vmem:[#allocation1 + $0x8] sm:$0xff pattern:$0x75316420]  ;;  %3185 = vrot.lane.b32.xlu2 %v3179_v54, %s6248_s20 }
 0x733   : > { %3233 = vst [vmem:[#allocation1] ss:$2 sm:$0xff] %v8225_v55 }
 0x738   : > { %v3211_v25 = vld.sshfl [vmem:[#allocation1 + $0x10] sm:$0xff pattern:$0x75316420]  ;;  %v3212_v8 = vld.sshfl [vmem:[#allocation1 + $0x18] sm:$0xff pattern:$0x75316420] }
 0x739   : > { %3240 = vst [vmem:[#allocation1 + $0x10] ss:$2 sm:$0xff] %v8225_v55  ;;  %3181 = vrot.lane.b32.xlu0 %v3177_v49, %s6248_s20  ;;  %3217 = vrot.lane.b32.xlu1 %v3211_v25, %s6249_s21 }
 0x73a   : > { %v3234_v38 = vld.sshfl [vmem:[#allocation1 + $0x8] sm:$0xff pattern:$0x75316420]  ;;  %3213 = vrot.lane.b32.xlu2 %v3209_v14, %s6249_s21 }
 0x73b   : > { %3238 = vst [vmem:[#allocation1] ss:$2 sm:$0xff] %v8233_v42 }
 0x740   : > { %v3243_v58 = vld.sshfl [vmem:[#allocation1 + $0x10] sm:$0xff pattern:$0x75316420]  ;;  %v3244_v0 = vld.sshfl [vmem:[#allocation1 + $0x18] sm:$0xff pattern:$0x75316420] }
 0x741   : > { %3267 = vst [vmem:[#allocation1 + $0x10] ss:$2 sm:$0xff] %v8225_v55  ;;  %3215 = vrot.lane.b32.xlu0 %v3210_v22, %s6249_s21  ;;  %3219 = vrot.lane.b32.xlu1 %v3212_v8, %s6249_s21 }
 0x742   : > { %v3241_v30 = vld.sshfl [vmem:[#allocation1] sm:$0xff pattern:$0x75316420]  ;;  %v3242_v60 = vld.sshfl [vmem:[#allocation1 + $0x8] sm:$0xff pattern:$0x75316420] }
 0x743   : > { %3265 = vst [vmem:[#allocation1] ss:$2 sm:$0xff] %v8233_v42 }
 0x748   : > { %v3270_v33 = vld.sshfl [vmem:[#allocation1 + $0x10] sm:$0xff pattern:$0x75316420]  ;;  %v3271_v36 = vld.sshfl [vmem:[#allocation1 + $0x18] sm:$0xff pattern:$0x75316420] }
 0x749   : > { %3299 = vst [vmem:[#allocation1 + $0x10] ss:$2 sm:$0xff] %v8225_v55  ;;  %3203 = vrot.lane.b32.xlu1 %v3202_v10, %s6249_s21  ;;  %3278 = vrot.lane.b32.xlu0 %v3271_v36, %s6251_s23 }
 0x74a   : > { %v3268_v45 = vld.sshfl [vmem:[#allocation1] sm:$0xff pattern:$0x75316420]  ;;  %v3269_v7 = vld.sshfl [vmem:[#allocation1 + $0x8] sm:$0xff pattern:$0x75316420]  ;;  %3276 = vrot.lane.b32.xlu2 %v3270_v33, %s6251_s23 }
 0x74b   : > { %3287 = vst [vmem:[#allocation1] ss:$2 sm:$0xff] %v8233_v42 }
 0x750   : > { %v3302_v29 = vld.sshfl [vmem:[#allocation1 + $0x10] sm:$0xff pattern:$0x75316420]  ;;  %v3303_v6 = vld.sshfl [vmem:[#allocation1 + $0x18] sm:$0xff pattern:$0x75316420] }
 0x751   : > { %3331 = vst [vmem:[#allocation1 + $0x10] ss:$2 sm:$0xff] %v8225_v55  ;;  %3249 = vrot.lane.b32.xlu1 %v3243_v58, %s6250_s22  ;;  %3247 = vrot.lane.b32.xlu0 %v3242_v60, %s6250_s22 }
 0x752   : > { %v3288_v15 = vld.sshfl [vmem:[#allocation1] sm:$0xff pattern:$0x75316420]  ;;  %3235 = vrot.lane.b32.xlu2 %v3234_v38, %s6250_s22 }
 0x753   : > { %3297 = vst [vmem:[#allocation1] ss:$2 sm:$0xff] %v8233_v42 }
 0x758   : > { %v3334_v41 = vld.sshfl [vmem:[#allocation1 + $0x10] sm:$0xff pattern:$0x75316420]  ;;  %v3335_v35 = vld.sshfl [vmem:[#allocation1 + $0x18] sm:$0xff pattern:$0x75316420] }
 0x759   : > { %3363 = vst [vmem:[#allocation1 + $0x10] ss:$2 sm:$0xff] %v8225_v55  ;;  %3251 = vrot.lane.b32.xlu1 %v3244_v0, %s6250_s22  ;;  %3245 = vrot.lane.b32.xlu0 %v3241_v30, %s6250_s22 }
 0x75a   : > { %v3300_v12 = vld.sshfl [vmem:[#allocation1] sm:$0xff pattern:$0x75316420]  ;;  %v3301_v46 = vld.sshfl [vmem:[#allocation1 + $0x8] sm:$0xff pattern:$0x75316420]  ;;  %3310 = vrot.lane.b32.xlu2 %v3303_v6, %s6252_s24 }
 0x75b   : > { %3319 = vst [vmem:[#allocation1] ss:$2 sm:$0xff] %v8233_v42 }
 0x760   : > { %v3366_v19 = vld.sshfl [vmem:[#allocation1 + $0x10] sm:$0xff pattern:$0x75316420]  ;;  %v3367_v11 = vld.sshfl [vmem:[#allocation1 + $0x18] sm:$0xff pattern:$0x75316420] }
 0x761   : > { %3419 = vst [vmem:[#allocation1 + $0x10] ss:$2 sm:$0xff] %v8225_v55  ;;  %3274 = vrot.lane.b32.xlu0 %v3269_v7, %s6251_s23  ;;  %3308 = vrot.lane.b32.xlu1 %v3302_v29, %s6252_s24 }
 0x762   : > { %v3320_v40 = vld.sshfl [vmem:[#allocation1] sm:$0xff pattern:$0x75316420]  ;;  %3342 = vrot.lane.b32.xlu2 %v3335_v35, %s6253_s25 }
 0x763   : > { %3329 = vst [vmem:[#allocation1] ss:$2 sm:$0xff] %v8233_v42 }
 0x768   : > { %v8290_v2 = vld.sshfl [vmem:[#allocation1 + $0x10] sm:$0xff pattern:$0x75316420]  ;;  %v8292_v31 = vld.sshfl [vmem:[#allocation1 + $0x18] sm:$0xff pattern:$0x75316420] }
 0x769   : > { %10276 = vst [vmem:[#allocation16_spill] sm:$0xff] %v8292_v31  ;;  %3340 = vrot.lane.b32.xlu1 %v3334_v41, %s6253_s25  ;;  %3372 = vrot.lane.b32.xlu0 %v3366_v19, %s6254_s26 }
 0x76a   : > { %3581 = vst [vmem:[#allocation1 + $0x10] ss:$2 sm:$0xff] %v8247_v44  ;;  %v3332_v55 = vld.sshfl [vmem:[#allocation1] sm:$0xff pattern:$0x75316420]  ;;  %3272 = vrot.lane.b32.xlu2 %v3268_v45, %s6251_s23 }
 0x76b   : > { %v3333_v51 = vld.sshfl [vmem:[#allocation1 + $0x8] sm:$0xff pattern:$0x75316420] }
 0x76c   : > { %3351 = vst [vmem:[#allocation1] ss:$2 sm:$0xff] %v8233_v42 }
 0x76d   : > { %v8309_v22 = vpop.permute.xlu2 %3151 }
 0x771   : > { %v3584_v49 = vld.sshfl [vmem:[#allocation1 + $0x10] sm:$0xff pattern:$0x75316420]  ;;  %v3585_v37 = vld.sshfl [vmem:[#allocation1 + $0x18] sm:$0xff pattern:$0x75316420]  ;;  %3374 = vrot.lane.b32.xlu1 %v3367_v11, %s6254_s26  ;;  %3321 = vrot.lane.b32.xlu0 %v3320_v40, %s6252_s24 }
 0x772   : > { %3613 = vst [vmem:[#allocation1 + $0x10] ss:$2 sm:$0xff] %v8247_v44  ;;  %3289 = vrot.lane.b32.xlu2 %v3288_v15, %s6251_s23 }
 0x773   : > { %v3352_v16 = vld.sshfl [vmem:[#allocation1] sm:$0xff pattern:$0x75316420] }
 0x774   : > { %3361 = vst [vmem:[#allocation1] ss:$2 sm:$0xff] %v8233_v42 }
 0x775   : > { %v8322_v30 = vpop.permute.xlu2 %3171 }
 0x779   : > { %v3616_v47 = vld.sshfl [vmem:[#allocation1 + $0x10] sm:$0xff pattern:$0x75316420]  ;;  %v3617_v63 = vld.sshfl [vmem:[#allocation1 + $0x18] sm:$0xff pattern:$0x75316420]  ;;  %3304 = vrot.lane.b32.xlu1 %v3300_v12, %s6252_s24 }
 0x77a   : > { %3645 = vst [vmem:[#allocation1 + $0x10] ss:$2 sm:$0xff] %v8247_v44  ;;  %3622 = vrot.lane.b32.xlu0 %v3616_v47, %s6248_s20  ;;  %3306 = vrot.lane.b32.xlu2 %v3301_v46, %s6252_s24 }
 0x77b   : > { %v3364_v10 = vld.sshfl [vmem:[#allocation1] sm:$0xff pattern:$0x75316420]  ;;  %v3365_v54 = vld.sshfl [vmem:[#allocation1 + $0x8] sm:$0xff pattern:$0x75316420] }
 0x77c   : > { %3383 = vst [vmem:[#allocation1] ss:$2 sm:$0xff] %v8233_v42 }
 0x77d   : > { %v8334_v45 = vpop.permute.xlu0 %3138 }
 0x781   : > { %v3648_v3 = vld.sshfl [vmem:[#allocation1 + $0x10] sm:$0xff pattern:$0x75316420]  ;;  %v3649_v14 = vld.sshfl [vmem:[#allocation1 + $0x18] sm:$0xff pattern:$0x75316420]  ;;  %3590 = vrot.lane.b32.xlu1 %v3584_v49, %s6247_s19 }
 0x782   : > { %3677 = vst [vmem:[#allocation1 + $0x10] ss:$2 sm:$0xff] %v8247_v44  ;;  %3368 = vrot.lane.b32.xlu0 %v3364_v10, %s6254_s26  ;;  %3592 = vrot.lane.b32.xlu2 %v3585_v37, %s6247_s19 }
 0x783   : > { %v3384_v25 = vld.sshfl [vmem:[#allocation1] sm:$0xff pattern:$0x75316420] }
 0x784   : > { %3417 = vst [vmem:[#allocation1] ss:$2 sm:$0xff] %v8233_v42 }
 0x785   : > { %v8336_v7 = vpop.permute.xlu1 %3149 }
 0x789   : > { %v3680_v8 = vld.sshfl [vmem:[#allocation1 + $0x10] sm:$0xff pattern:$0x75316420]  ;;  %v3681_v38 = vld.sshfl [vmem:[#allocation1 + $0x18] sm:$0xff pattern:$0x75316420]  ;;  %3624 = vrot.lane.b32.xlu1 %v3617_v63, %s6248_s20 }
 0x78a   : > { %3704 = vst [vmem:[#allocation1 + $0x10] ss:$2 sm:$0xff] %v8247_v44  ;;  %3338 = vrot.lane.b32.xlu2 %v3333_v51, %s6253_s25 }
 0x78b   : > { %v8318_v58 = vld.sshfl [vmem:[#allocation1] sm:$0xff pattern:$0x75316420]  ;;  %v8320_v0 = vld.sshfl [vmem:[#allocation1 + $0x8] sm:$0xff pattern:$0x75316420] }
 0x78c   : > { %10277 = vst [vmem:[#allocation43_spill] sm:$0xff] %v8318_v58  ;;  %v8329_v42 = vpop.permute.xlu2 %3185 }
 0x78d   : > { %10278 = vst [vmem:[#allocation44_spill] sm:$0xff] %v8320_v0 }
 0x78e   : > { %3573 = vst [vmem:[#allocation1] ss:$2 sm:$0xff] %v8247_v44 }
 0x791   : > { %v3707_v60 = vld.sshfl [vmem:[#allocation1 + $0x10] sm:$0xff pattern:$0x75316420]  ;;  %v3708_v33 = vld.sshfl [vmem:[#allocation1 + $0x18] sm:$0xff pattern:$0x75316420]  ;;  %3336 = vrot.lane.b32.xlu1 %v3332_v55, %s6253_s25 }
 0x792   : > { %3736 = vst [vmem:[#allocation1 + $0x10] ss:$2 sm:$0xff] %v8247_v44  ;;  %3713 = vrot.lane.b32.xlu0 %v3707_v60, %s6251_s23  ;;  %3654 = vrot.lane.b32.xlu2 %v3648_v3, %s6249_s21 }
 0x794   : > { %v8350_v46 = vpop.permute.xlu2 %3213 }
 0x795   : > { %v8332_v36 = vld.sshfl [vmem:[#allocation1 + $0x8] sm:$0xff pattern:$0x75316420]  ;;  %10282 = vst [vmem:[#allocation38_spill] sm:$0xff] %v8350_v46 }
 0x796   : > { %10279 = vst [vmem:[#allocation19_spill] sm:$0xff] %v8332_v36 }
 0x797   : > { %3579 = vst [vmem:[#allocation1] ss:$2 sm:$0xff] %v8222_v18 }
 0x799   : > { %v3739_v29 = vld.sshfl [vmem:[#allocation1 + $0x10] sm:$0xff pattern:$0x75316420]  ;;  %v3740_v6 = vld.sshfl [vmem:[#allocation1 + $0x18] sm:$0xff pattern:$0x75316420]  ;;  %3370 = vrot.lane.b32.xlu1 %v3365_v54, %s6254_s26 }
 0x79a   : > { %3768 = vst [vmem:[#allocation1 + $0x10] ss:$2 sm:$0xff] %v8247_v44  ;;  %3385 = vrot.lane.b32.xlu0 %v3384_v25, %s6254_s26  ;;  %3656 = vrot.lane.b32.xlu2 %v3649_v14, %s6249_s21 }
 0x79b   : > { %v8345_v35 = vpop.permute.xlu1 %3155  ;;  %v8347_v12 = vpop.permute.xlu0 %3153 }
 0x79c   : > { %10281 = vst [vmem:[#allocation20_spill] sm:$0xff] %v8345_v35 }
 0x79e   : > { %v3583_v15 = vld.sshfl [vmem:[#allocation1 + $0x8] sm:$0xff pattern:$0x75316420]  ;;  %v8343_v41 = vld.sshfl [vmem:[#allocation1] sm:$0xff pattern:$0x75316420] }
 0x79f   : > { %10280 = vst [vmem:[#allocation34_spill] sm:$0xff] %v8343_v41 }
 0x7a0   : > { %3606 = vst [vmem:[#allocation1] ss:$2 sm:$0xff] %v8247_v44 }
 0x7a1   : > { %v3771_v19 = vld.sshfl [vmem:[#allocation1 + $0x10] sm:$0xff pattern:$0x75316420]  ;;  %v3772_v11 = vld.sshfl [vmem:[#allocation1 + $0x18] sm:$0xff pattern:$0x75316420]  ;;  %3715 = vrot.lane.b32.xlu1 %v3708_v33, %s6251_s23 }
 0x7a2   : > { %3747 = vrot.lane.b32.xlu0 %v3740_v6, %s6252_s24  ;;  %3800 = vst [vmem:[#allocation1 + $0x10] ss:$2 sm:$0xff] %v8247_v44  ;;  %3353 = vrot.lane.b32.xlu2 %v3352_v16, %s6253_s25 }
 0x7a3   : > { %v8356_v55 = vpop.permute.xlu1 %3183  ;;  %v8358_v51 = vpop.permute.xlu0 %3187 }
 0x7a4   : > { %v8361_v49 = vpop.permute.xlu2 %3276  ;;  %v3190_v32 = vsel %vm397_vm4, %v8356_v55, %v8329_v42 }
 0x7a7   : > { %v3607_v40 = vld.sshfl [vmem:[#allocation1 + $0x8] sm:$0xff pattern:$0x75316420] }
 0x7a8   : > { %3611 = vst [vmem:[#allocation1] ss:$2 sm:$0xff] %v8222_v18 }
 0x7a9   : > { %v3803_v37 = vld.sshfl [vmem:[#allocation1 + $0x10] sm:$0xff pattern:$0x75316420]  ;;  %v3804_v47 = vld.sshfl [vmem:[#allocation1 + $0x18] sm:$0xff pattern:$0x75316420] }
 0x7aa   : > { %3779 = vrot.lane.b32.xlu0 %v3772_v11, %s6253_s25  ;;  %3809 = vrot.lane.b32.xlu1 %v3803_v37, %s6254_s26  ;;  %3856 = vst [vmem:[#allocation1 + $0x10] ss:$2 sm:$0xff] %v8247_v44 }
 0x7ab   : > { %3686 = vrot.lane.b32.xlu2 %v3680_v8, %s6250_s22  ;;  %v8369_v10 = vpop.permute.xlu1 %3217  ;;  %v8371_v54 = vpop.permute.xlu0 %3181 }
 0x7ac   : > { %v8374_v3 = vpop.permute.xlu2 %3235 }
 0x7af   : > { %v8367_v16 = vld.sshfl [vmem:[#allocation1] sm:$0xff pattern:$0x75316420]  ;;  %v3615_v63 = vld.sshfl [vmem:[#allocation1 + $0x8] sm:$0xff pattern:$0x75316420] }
 0x7b0   : > { %10283 = vst [vmem:[#allocation7_spill] sm:$0xff] %v8367_v16 }
 0x7b1   : > { %3638 = vst [vmem:[#allocation1] ss:$2 sm:$0xff] %v8247_v44  ;;  %v8376_v14 = vld.sshfl [vmem:[#allocation1 + $0x10] sm:$0xff pattern:$0x75316420] }
 0x7b2   : > { %10284 = vst [vmem:[#allocation18_spill] sm:$0xff] %v8376_v14  ;;  %v8378_v25 = vld.sshfl [vmem:[#allocation1 + $0x18] sm:$0xff pattern:$0x75316420]  ;;  %3588 = vrot.lane.b32.xlu0 %v3583_v15, %s6247_s19 }
 0x7b3   : > { %10285 = vst [vmem:[#allocation11_spill] sm:$0xff] %v8378_v25  ;;  %3688 = vrot.lane.b32.xlu2 %v3681_v38, %s6250_s22  ;;  %v8385_v60 = vpop.permute.xlu1 %3219  ;;  %v8387_v33 = vpop.permute.xlu0 %3215 }
 0x7b4   : > { %4079 = vst [vmem:[#allocation1 + $0x10] ss:$2 sm:$0xff] %v8247_v44  ;;  %v8390_v6 = vpop.permute.xlu2 %3310 }
 0x7b5   : > { %10286 = vst [vmem:[#allocation3_spill] sm:$0xff] %v8385_v60 }
 0x7b8   : > { %v8383_v8 = vld.sshfl [vmem:[#allocation1 + $0x8] sm:$0xff pattern:$0x75316420] }
 0x7b9   : > { %3643 = vst [vmem:[#allocation1] ss:$2 sm:$0xff] %v8222_v18 }
 0x7ba   : > { %3608 = vrot.lane.b32.xlu0 %v3607_v40, %s6248_s20 }
 0x7bb   : > { %v8392_v11 = vld.sshfl [vmem:[#allocation1 + $0x10] sm:$0xff pattern:$0x75316420]  ;;  %v8394_v37 = vld.sshfl [vmem:[#allocation1 + $0x18] sm:$0xff pattern:$0x75316420]  ;;  %3745 = vrot.lane.b32.xlu2 %v3739_v29, %s6252_s24  ;;  %v8401_v39 = vpop.permute.xlu1 %3203  ;;  %v8404_v25 = vpop.permute.xlu0 %3278 }
 0x7bc   : > { %10287 = vst [vmem:[#allocation45_spill] sm:$0xff] %v8392_v11  ;;  %v8407_v11 = vpop.permute.xlu2 %3342  ;;  %v3282_v41 = vsel %vm503_vm0, %v8361_v49, %v8404_v25 }
 0x7bd   : > { %10288 = vst [vmem:[#allocation4_spill] sm:$0xff] %v8394_v37 }
 0x7be   : > { %4435 = vst [vmem:[#allocation1 + $0x11] ss:$2 sm:$0xff] %v8247_v44 }
 0x7bf   : > { %10289 = vst [vmem:[#allocation41_spill] sm:$0xff] %v8401_v39  ;;  %v8475_v39 = vld [vmem:[%s10020_s6 + $0x30] ss:$0 sm:$0xff] }
 0x7c0   : > { %v3647_v38 = vld.sshfl [vmem:[#allocation1 + $0x8] sm:$0xff pattern:$0x75316420]  ;;  %v8399_v15 = vld.sshfl [vmem:[#allocation1] sm:$0xff pattern:$0x75316420] }
 0x7c1   : > { %3652 = vrot.lane.b32.xlu1 %v3647_v38, %s6249_s21  ;;  %3670 = vst [vmem:[#allocation1] ss:$2 sm:$0xff] %v8247_v44 }
 0x7c3   : > { %3777 = vrot.lane.b32.xlu2 %v3771_v19, %s6253_s25  ;;  %v8410_v37 = vpop.permute.xlu1 %3249  ;;  %v8414_v29 = vpop.permute.xlu0 %3247 }
 0x7c4   : > { %v8416_v14 = vpop.permute.xlu2 %3272 }
 0x7c8   : > { %v3671_v40 = vld.sshfl [vmem:[#allocation1 + $0x8] sm:$0xff pattern:$0x75316420] }
 0x7c9   : > { %3672 = vrot.lane.b32.xlu0 %v3671_v40, %s6250_s22  ;;  %3675 = vst [vmem:[#allocation1] ss:$2 sm:$0xff] %v8222_v18 }
 0x7cb   : > { %3811 = vrot.lane.b32.xlu2 %v3804_v47, %s6254_s26  ;;  %v8419_v44 = vpop.permute.xlu1 %3251  ;;  %v8422_v19 = vpop.permute.xlu0 %3245 }
 0x7cc   : > { %v8425_v5 = vpop.permute.xlu2 %3289 }
 0x7d0   : > { %v3679_v38 = vld.sshfl [vmem:[#allocation1 + $0x8] sm:$0xff pattern:$0x75316420]  ;;  %v3678_v36 = vld.sshfl [vmem:[#allocation1] sm:$0xff pattern:$0x75316420] }
 0x7d1   : > { %3684 = vrot.lane.b32.xlu1 %v3679_v38, %s6250_s22  ;;  %3702 = vst [vmem:[#allocation1] ss:$2 sm:$0xff] %v8222_v18 }
 0x7d3   : > { %3620 = vrot.lane.b32.xlu2 %v3615_v63, %s6248_s20  ;;  %v8428_v16 = vpop.permute.xlu1 %3308  ;;  %v8432_v47 = vpop.permute.xlu0 %3274 }
 0x7d4   : > { %v8435_v38 = vpop.permute.xlu2 %3306  ;;  %v3314_v60 = vsel %vm10133_vm2, %v8428_v16, %v8390_v6 }
 0x7d5   : > { %v3327_v57 = vmul.f32 %v3314_v60, %v10269_v26 }
 0x7d8   : > { %v3705_v40 = vld.sshfl [vmem:[#allocation1] sm:$0xff pattern:$0x75316420]  ;;  %v3706_v31 = vld.sshfl [vmem:[#allocation1 + $0x8] sm:$0xff pattern:$0x75316420] }
 0x7d9   : > { %3682 = vrot.lane.b32.xlu1 %v3678_v36, %s6250_s22  ;;  %3709 = vrot.lane.b32.xlu0 %v3705_v40, %s6251_s23  ;;  %3724 = vst [vmem:[#allocation1] ss:$2 sm:$0xff] %v8222_v18 }
 0x7db   : > { %v8437_v0 = vpop.permute.xlu1 %3340  ;;  %v8447_v40 = vpop.permute.xlu0 %3372 }
 0x7dc   : > { %v8442_v63 = vpop.permute.xlu2 %3592  ;;  %v3346_v36 = vsel %vm577_vm1, %v8437_v0, %v8407_v11 }
 0x7dd   : > { %10290 = vst [vmem:[#allocation27_spill] sm:$0xff] %v8442_v63  ;;  %v3359_v58 = vmul.f32 %v3346_v36, %v10268_v27 }
 0x7df   : > { %v3446_v36 = vrot.slane %v3359_v58, 4  ;;  %v3222_v58 = vsel %vm434_vm6, %v8387_v33, %v8369_v10 }
 0x7e0   : > { %v3725_v28 = vld.sshfl [vmem:[#allocation1] sm:$0xff pattern:$0x75316420] }
 0x7e1   : > { %3711 = vrot.lane.b32.xlu1 %v3706_v31, %s6251_s23  ;;  %3726 = vrot.lane.b32.xlu0 %v3725_v28, %s6251_s23  ;;  %3734 = vst [vmem:[#allocation1] ss:$2 sm:$0xff] %v8222_v18  ;;  %v3254_v28 = vsel %vm471_vm3, %v8414_v29, %v8410_v37  ;;  %v3295_v31 = vmul.f32 %v3282_v41, %v10267_v1 }
 0x7e2   : > { %v3263_v41 = vmul.f32 %v3254_v28, %v10270_v43  ;;  %v3466_v9 = vsel %vm695_vm8, %v3327_v57, %v3446_v36 }
 0x7e3   : > { %v8463_v4 = vpop.permute.xlu1 %3374  ;;  %v8483_v28 = vpop.permute.xlu0 %3321 }
 0x7e4   : > { %v3378_v1 = vsel %vm614_vm5, %v8447_v40, %v8463_v4  ;;  %v3339_v27 = vpop.permute.xlu2 %3338  ;;  %v3411_v43 = vrot.slane %v3263_v41, 4 }
 0x7e5   : > { %v3391_v46 = vmul.f32 %v8475_v39, %v3378_v1  ;;  %v3158_v1 = vsel %vm10132_vm7, %v8309_v22, %v8347_v12 }
 0x7e6   : > { %v3167_v57 = vmul.f32 %v3158_v1, %v10274_v21 }
 0x7e7   : > { %6024 = vmatpush.msk.msra.mxu2 %vm695_vm8, %v3391_v46 }
 0x7e8   : > { %v3738_v35 = vld.sshfl [vmem:[#allocation1 + $0x8] sm:$0xff pattern:$0x75316420]  ;;  %v3737_v63 = vld.sshfl [vmem:[#allocation1] sm:$0xff pattern:$0x75316420] }
 0x7e9   : > { %3743 = vrot.lane.b32.xlu0 %v3738_v35, %s6252_s24  ;;  %3741 = vrot.lane.b32.xlu2 %v3737_v63, %s6252_s24  ;;  %3756 = vst [vmem:[#allocation1] ss:$2 sm:$0xff] %v8222_v18  ;;  %v3199_v35 = vmul.f32 %v3190_v32, %v10272_v13  ;;  %v3434_v63 = vrot.slane %v3295_v31, 4  ;;  %v3231_v31 = vmul.f32 %v3222_v58, %v10273_v24  ;;  %v8521_v58 = vld [vmem:[%s10016_s2 + $0x8] sm:$0xf] }
 0x7ea   : > { %3538 = vmatpush.msra.mxu2 %v3466_v9 }
 0x7eb   : > { %v3399_v32 = vrot.slane %v3199_v35, 4  ;;  %v3462_v13 = vsel %vm695_vm8, %v8290_v2, %v3434_v63  ;;  %v8493_v26 = vpop.permute.xlu1 %3304  ;;  %v3458_v9 = vsel %vm695_vm8, %v3231_v31, %v3411_v43  ;;  %v8505_v2 = vld [vmem:[%s10016_s2] sm:$0xff] }
 0x7ec   : > { %3539 = vmatpush.msra.mxu2 %v3462_v13  ;;  %v8498_v46 = vpop.permute.xlu2 %3654  ;;  %v8509_v36 = vpop.permute.xlu0 %3622 }
 0x7ed   : > { %v3454_v41 = vsel %vm695_vm8, %v3167_v57, %v3399_v32 }
 0x7ee   : > { %3540 = vmatpush.msra.mxu2 %v3458_v9 }
 0x7f0   : > { %v3757_v60 = vld.sshfl [vmem:[#allocation1] sm:$0xff pattern:$0x75316420]  ;;  %3541 = vmatpush.msra.mxu2 %v3454_v41 }
 0x7f1   : > { %3758 = vrot.lane.b32.xlu1 %v3757_v60, %s6252_s24  ;;  %3766 = vst [vmem:[#allocation1] ss:$2 sm:$0xff] %v8222_v18  ;;  %6025 = vmatmul.msk.f32.vlgmr.msra.gmra.mxu2 %vm10131_vm9, %v8505_v2 }
 0x7f3   : > { %v8511_v63 = vpop.permute.xlu1 %3590 }
 0x7f4   : > { %v8516_v43 = vpop.permute.xlu2 %3656  ;;  %v3369_v32 = vpop.permute.xlu0 %3368 }
 0x7f5   : > { %10291 = vst [vmem:[#allocation39_spill] sm:$0xff] %v8516_v43 }
 0x7f8   : > { %v3770_v13 = vld.sshfl [vmem:[#allocation1 + $0x8] sm:$0xff pattern:$0x75316420]  ;;  %v3769_v35 = vld.sshfl [vmem:[#allocation1] sm:$0xff pattern:$0x75316420] }
 0x7f9   : > { %3775 = vrot.lane.b32.xlu0 %v3770_v13, %s6253_s25  ;;  %3773 = vrot.lane.b32.xlu2 %v3769_v35, %s6253_s25  ;;  %3788 = vst [vmem:[#allocation1] ss:$2 sm:$0xff] %v8222_v18  ;;  %v8538_v35 = vsel %vm10132_vm7, %v8336_v7, %v8309_v22  ;;  %v3196_v22 = vsel %vm397_vm4, %v8322_v30, %v8371_v54 }
 0x7fa   : > { %6026 = vmatmul.msk.f32.gmra.mxu2 %vm10131_vm9, %v8521_v58  ;;  %v3292_v30 = vsel %vm503_vm0, %v8404_v25, %v8425_v5  ;;  %v3281_v5 = vsel %vm503_vm0, %v8432_v47, %v8361_v49  ;;  %v3313_v49 = vsel %vm10133_vm2, %v8435_v38, %v8428_v16 }
 0x7fb   : > { %v8525_v31 = vpop.permute.xlu1 %3624 }
 0x7fc   : > { %10292 = vst [vmem:[#allocation17_spill] sm:$0xff] %v8525_v31  ;;  %v3354_v60 = vpop.permute.xlu2 %3353 }
 0x800   : > { %v3789_v1 = vld.sshfl [vmem:[#allocation1] sm:$0xff pattern:$0x75316420] }
 0x801   : > { %3790 = vrot.lane.b32.xlu0 %v3789_v1, %s6253_s25  ;;  %3798 = vst [vmem:[#allocation1] ss:$2 sm:$0xff] %v8222_v18  ;;  %v3345_v1 = vsel %vm577_vm1, %v3339_v27, %v8437_v0  ;;  %v3189_v0 = vsel %vm397_vm4, %v8371_v54, %v8356_v55  ;;  %v8582_v54 = vmul.f32 %v3196_v22, %v10260_v23 }
 0x802   : > { %v3358_v55 = vmul.f32 %v3345_v1, %v6730_v59  ;;  %v8589_v25 = vmul.f32 %v3189_v0, %v10196_v20  ;;  %v3312_v1 = vsel %vm10133_vm2, %v8493_v26, %v8435_v38 }
 0x803   : > { %v3337_v41 = vpop.permute.xlu1 %3336 }
 0x804   : > { %v8533_v13 = vpop.permute.xlu0 %3713  ;;  %v3344_v31 = vsel %vm577_vm1, %v3337_v41, %v3339_v27  ;;  %v3253_v27 = vsel %vm471_vm3, %v8422_v19, %v8414_v29  ;;  %v8599_v29 = vmul.f32 %v3292_v30, %v10230_v34  ;;  %v3324_v41 = vsel %vm10133_vm2, %v8390_v6, %v8483_v28  ;;  %v8635_v28 = vld [vmem:[%s10020_s6 + $0x28] ss:$0 sm:$0xff] }
 0x805   : > { %v8542_v43 = vpop.permute.xlu2 %3686  ;;  %v10293_v30 = vld [vmem:[#allocation37_spill] sm:$0xff] }
 0x808   : > { %v3802_v57 = vld.sshfl [vmem:[#allocation1 + $0x8] sm:$0xff pattern:$0x75316420]  ;;  %v3801_v9 = vld.sshfl [vmem:[#allocation1] sm:$0xff pattern:$0x75316420] }
 0x809   : > { %3650 = vrot.lane.b32.xlu0 %v8399_v15, %s6249_s21  ;;  %3807 = vrot.lane.b32.xlu2 %v3802_v57, %s6254_s26  ;;  %3820 = vst [vmem:[#allocation1] ss:$2 sm:$0xff] %v8222_v18  ;;  %v8548_v15 = vsel %vm10132_vm7, %v8334_v45, %v8336_v7  ;;  %v3191_v57 = vsel %vm397_vm4, %v8329_v42, %v8358_v51 }
 0x80a   : > { %3805 = vrot.lane.b32.xlu1 %v3801_v9, %s6254_s26  ;;  %v3255_v9 = vsel %vm471_vm3, %v8410_v37, %v8419_v44  ;;  %v3260_v45 = vsel %vm471_vm3, %v8374_v3, %v8422_v19  ;;  %v3356_v42 = vsel %vm577_vm1, %v8407_v11, %v3354_v60  ;;  %v3280_v7 = vsel %vm503_vm0, %v8416_v14, %v8432_v47 }
 0x80b   : > { %v8579_v51 = vmul.f32 %v3191_v57, %v10239_v48  ;;  %v3357_v3 = vmul.f32 %v3344_v31, %v6698_v61  ;;  %v8592_v11 = vmul.f32 %v3255_v9, %v10237_v52  ;;  %v8595_v14 = vmul.f32 %v3260_v45, %v10192_v50  ;;  %v3371_v57 = vpop.permute.xlu1 %3370 }
 0x80c   : > { %v3360_v37 = vmul.f32 %v3356_v42, %v10238_v17  ;;  %v8602_v44 = vmul.f32 %v3253_v27, %v6693_v56  ;;  %v3293_v19 = vmul.f32 %v3280_v7, %v6727_v62  ;;  %v3294_v31 = vmul.f32 %v3281_v5, %v10191_v53  ;;  %v3386_v16 = vpop.permute.xlu0 %3385 }
 0x80d   : > { %v3445_v60 = vrot.slane %v3358_v55, 4  ;;  %v3444_v22 = vrot.slane %v3357_v3, 4  ;;  %v3376_v0 = vsel %vm614_vm5, %v3369_v32, %v3371_v57  ;;  %v3377_v9 = vsel %vm614_vm5, %v3371_v57, %v8447_v40  ;;  %v8621_v45 = vpop.permute.xlu2 %3688  ;;  %v8641_v32 = vld [vmem:[%s10020_s6 + $0x38] ss:$0 sm:$0xff]  ;;  %v10294_v55 = vld [vmem:[#allocation32_spill] sm:$0xff]  ;;  %v10295_v3 = vld [vmem:[#allocation38_spill] sm:$0xff] }
 0x80e   : > { %v3388_v26 = vsel %vm614_vm5, %v8463_v4, %v3386_v16  ;;  %v3447_v6 = vrot.slane %v3360_v37, 4  ;;  %v3390_v40 = vmul.f32 %v8635_v28, %v3377_v9  ;;  %v3397_v42 = vrot.slane %v8582_v54, 4 }
 0x80f   : > { %v3392_v4 = vmul.f32 %v8641_v32, %v3388_v26  ;;  %v3326_v27 = vmul.f32 %v3313_v49, %v10293_v30  ;;  %v3432_v7 = vrot.slane %v3293_v19, 4  ;;  %v3325_v5 = vmul.f32 %v3312_v1, %v10294_v55  ;;  %v10298_v1 = vld [vmem:[#allocation3_spill] sm:$0xff] }
 0x810   : > { %v3821_v47 = vld.sshfl [vmem:[#allocation1] sm:$0xff pattern:$0x75316420]  ;;  %v3221_v37 = vsel %vm434_vm6, %v10295_v3, %v8387_v33  ;;  %v3433_v16 = vrot.slane %v3294_v31, 4  ;;  %6021 = vmatpush.msk.msra.mxu1 %vm695_vm8, %v3390_v40  ;;  %v3435_v54 = vrot.slane %v8599_v29, 4  ;;  %v3409_v49 = vrot.slane %v8595_v14, 4 }
 0x811   : > { %3640 = vrot.lane.b32.xlu2 %v8383_v8, %s6249_s21  ;;  %3854 = vst [vmem:[#allocation1] ss:$2 sm:$0xff] %v8222_v18  ;;  %v8629_v8 = vld [vmem:[%s10020_s6 + $0x20] ss:$0 sm:$0xff]  ;;  %6027 = vmatpush.msk.msra.mxu3 %vm695_vm8, %v3392_v4  ;;  %v3464_v19 = vsel %vm695_vm8, %v3325_v5, %v3444_v22  ;;  %v3465_v33 = vsel %vm695_vm8, %v3326_v27, %v3445_v60  ;;  %v3410_v26 = vrot.slane %v8602_v44, 4  ;;  %v10301_v60 = vld [vmem:[#allocation33_spill] sm:$0xff] }
 0x812   : > { %3822 = vrot.lane.b32.xlu1 %v3821_v47, %s6254_s26  ;;  %v3389_v38 = vmul.f32 %v8629_v8, %v3376_v0  ;;  %v10296_v47 = vld [vmem:[#allocation41_spill] sm:$0xff]  ;;  %v10297_v0 = vld [vmem:[#allocation30_spill] sm:$0xff]  ;;  %v3223_v31 = vsel %vm434_vm6, %v8369_v10, %v10298_v1  ;;  %3515 = vmatpush.msra.mxu1 %v3465_v33  ;;  %v10300_v40 = vld [vmem:[#allocation20_spill] sm:$0xff]  ;;  %v3398_v5 = vrot.slane %v8589_v25, 4 }
 0x813   : > { %v3228_v57 = vsel %vm434_vm6, %v10296_v47, %v10295_v3  ;;  %v3328_v9 = vmul.f32 %v3324_v41, %v10297_v0  ;;  %v3412_v41 = vrot.slane %v8592_v11, 4  ;;  %v3159_v22 = vsel %vm10132_vm7, %v8347_v12, %v10300_v40  ;;  %v10302_v27 = vld [vmem:[#allocation43_spill] sm:$0xff]  ;;  %v10305_v47 = vld [vmem:[#allocation44_spill] sm:$0xff] }
 0x814   : > { %6018 = vmatpush.msk.msra.mxu0 %vm695_vm8, %v3389_v38  ;;  %v10299_v38 = vld [vmem:[#allocation35_spill] sm:$0xff]  ;;  %v3229_v4 = vmul.f32 %v3228_v57, %v10301_v60  ;;  %v3460_v10 = vsel %vm695_vm8, %v10302_v27, %v3432_v7  ;;  %v3461_v12 = vsel %vm695_vm8, %v10305_v47, %v3433_v16  ;;  %v8685_v57 = vpop.permute.xlu0 %3747  ;;  %v3400_v7 = vrot.slane %v8579_v51, 4  ;;  %v10309_v16 = vld [vmem:[#allocation36_spill] sm:$0xff]  ;;  %v10310_v27 = vld [vmem:[#allocation29_spill] sm:$0xff] }
 0x815   : > { %v3467_v29 = vsel %vm695_vm8, %v3328_v9, %v3447_v6  ;;  %v3165_v14 = vmul.f32 %v8548_v15, %v10299_v38  ;;  %v10303_v6 = vld [vmem:[#allocation25_spill] sm:$0xff]  ;;  %v10304_v15 = vld [vmem:[#allocation34_spill] sm:$0xff]  ;;  %v10306_v9 = vld [vmem:[#allocation23_spill] sm:$0xff]  ;;  %v8690_v33 = vpop.permute.xlu2 %3745  ;;  %3516 = vmatpush.msra.mxu1 %v3461_v12  ;;  %v3166_v40 = vmul.f32 %v8538_v35, %v10309_v16  ;;  %v8709_v35 = vpop.permute.xlu1 %3715 }
 0x816   : > { %3492 = vmatpush.msra.mxu0 %v3464_v19  ;;  %3561 = vmatpush.msra.mxu3 %v3467_v29  ;;  %v3230_v3 = vmul.f32 %v3221_v37, %v10303_v6  ;;  %v3232_v19 = vmul.f32 %v3223_v31, %v10306_v9  ;;  %v10307_v25 = vld [vmem:[#allocation7_spill] sm:$0xff]  ;;  %v10308_v37 = vld [vmem:[#allocation16_spill] sm:$0xff]  ;;  %v3456_v29 = vsel %vm695_vm8, %v3229_v4, %v3409_v49 }
 0x817   : > { %v3463_v1 = vsel %vm695_vm8, %v10308_v37, %v3435_v54  ;;  %v3168_v31 = vmul.f32 %v3159_v22, %v10310_v27  ;;  %v3453_v54 = vsel %vm695_vm8, %v3166_v40, %v3398_v5  ;;  %v10313_v22 = vld [vmem:[#allocation19_spill] sm:$0xff]  ;;  %v3719_v5 = vsel %vm503_vm0, %v8533_v13, %v8709_v35  ;;  %v10316_v40 = vld [vmem:[#allocation9_spill] sm:$0xff] }
 0x818   : > { %v8675_v11 = vld.sshfl [vmem:[#allocation1 + $0x8] sm:$0xff pattern:$0x75316420]  ;;  %v8677_v44 = vld.sshfl [vmem:[#allocation1] sm:$0xff pattern:$0x75316420]  ;;  %3493 = vmatpush.msra.mxu0 %v3460_v10  ;;  %3562 = vmatpush.msra.mxu3 %v3463_v1  ;;  %v3457_v51 = vsel %vm695_vm8, %v3230_v3, %v3410_v26  ;;  %v3459_v10 = vsel %vm695_vm8, %v3232_v19, %v3412_v41  ;;  %v3751_v12 = vsel %vm10133_vm2, %v8690_v33, %v8685_v57 }
 0x819   : > { %3586 = vrot.lane.b32.xlu2 %v10304_v15, %s6247_s19  ;;  %4077 = vst [vmem:[#allocation1] ss:$2 sm:$0xff] %v8222_v18  ;;  %3517 = vmatpush.msra.mxu1 %v3457_v51  ;;  %v3452_v15 = vsel %vm695_vm8, %v3165_v14, %v3397_v42  ;;  %v3455_v49 = vsel %vm695_vm8, %v3168_v31, %v3400_v7  ;;  %v10317_v31 = vld [vmem:[#allocation18_spill] sm:$0xff] }
 0x81a   : > { %3618 = vrot.lane.b32.xlu1 %v10307_v25, %s6248_s20  ;;  %3494 = vmatpush.msra.mxu0 %v3456_v29  ;;  %v3764_v51 = vmul.f32 %v3751_v12, %v10316_v40 }
 0x81b   : > { %3563 = vmatpush.msra.mxu3 %v3459_v10  ;;  %3518 = vmatpush.msra.mxu1 %v3453_v54 }
 0x81c   : > { %3495 = vmatpush.msra.mxu0 %v3452_v15  ;;  %6022 = vmatmul.msk.f32.vlgmr.msra.gmra.mxu1 %vm10131_vm9, %v8505_v2  ;;  %v8717_v26 = vpop.permute.xlu0 %3779 }
 0x81d   : > { %6019 = vmatmul.msk.f32.vlgmr.msra.gmra.mxu0 %vm10131_vm9, %v8505_v2  ;;  %3564 = vmatpush.msra.mxu3 %v3455_v49  ;;  %v3778_v14 = vpop.permute.xlu2 %3777  ;;  %v3810_v7 = vpop.permute.xlu1 %3809 }
 0x81e   : > { %6028 = vmatmul.msk.f32.vlgmr.msra.gmra.mxu3 %vm10131_vm9, %v8505_v2  ;;  %v3783_v4 = vsel %vm577_vm1, %v3778_v14, %v8717_v26  ;;  %v10314_v2 = vld [vmem:[#allocation6_spill] sm:$0xff] }
 0x81f   : > { %v3796_v3 = vmul.f32 %v3783_v4, %v10314_v2  ;;  %v10318_v4 = vld [vmem:[#allocation12_spill] sm:$0xff] }
 0x820   : > { %v8713_v42 = vld.sshfl [vmem:[#allocation1 + $0x8] sm:$0xff pattern:$0x75316420]  ;;  %v8715_v41 = vld.sshfl [vmem:[#allocation1] sm:$0xff pattern:$0x75316420] }
 0x821   : > { %10311 = vst [vmem:[#allocation42_spill] sm:$0xff] %v8713_v42  ;;  %v3883_v25 = vrot.slane %v3796_v3, 4 }
 0x822   : > { %10312 = vst [vmem:[#allocation40_spill] sm:$0xff] %v8715_v41  ;;  %3575 = vrot.lane.b32.xlu1 %v10313_v22, %s6247_s19 }
 0x823   : > { %4433 = vst [vmem:[#allocation1 + $0x1] ss:$2 sm:$0xff] %v8222_v18  ;;  %v10315_v18 = vld [vmem:[#allocation8_spill] sm:$0xff] }
 0x824   : > { %6023 = vmatmul.msk.f32.gmra.mxu1 %vm10131_vm9, %v8521_v58  ;;  %v3732_v47 = vmul.f32 %v3719_v5, %v10315_v18  ;;  %v8748_v15 = vpop.permute.xlu0 %3588 }
 0x825   : > { %6020 = vmatmul.msk.f32.gmra.mxu0 %vm10131_vm9, %v8521_v58  ;;  %v8738_v19 = vpop.permute.xlu2 %3811 }
 0x826   : > { %6029 = vmatmul.msk.f32.gmra.mxu3 %vm10131_vm9, %v8521_v58  ;;  %v3815_v37 = vsel %vm614_vm5, %v3810_v7, %v8738_v19  ;;  %v3871_v29 = vrot.slane %v3732_v47, 4  ;;  %v3903_v58 = vsel %vm695_vm8, %v3764_v51, %v3883_v25  ;;  %v10319_v25 = vld [vmem:[#allocation10_spill] sm:$0xff] }
 0x827   : > { %v3828_v1 = vmul.f32 %v8475_v39, %v3815_v37 }
 0x828   : > { %v3899_v10 = vsel %vm695_vm8, %v10317_v31, %v3871_v29 }
 0x829   : > { %6034 = vmatpush.msk.msrb.mxu2 %vm695_vm8, %v3828_v1  ;;  %v3595_v1 = vsel %vm10132_vm7, %v8748_v15, %v8511_v63 }
 0x82b   : > { %3969 = vmatpush.msrb.mxu2 %v3903_v58 }
 0x82c   : > { %v8752_v22 = vpop.permute.xlu0 %3608 }
 0x82d   : > { %3970 = vmatpush.msrb.mxu2 %v3899_v10  ;;  %v8750_v49 = vpop.permute.xlu2 %3620  ;;  %v3604_v10 = vmul.f32 %v3595_v1, %v10274_v21 }
 0x82e   : > { %v3627_v39 = vsel %vm397_vm4, %v8750_v49, %v8509_v36 }
 0x82f   : > { %v3636_v5 = vmul.f32 %v3627_v39, %v10318_v4 }
 0x831   : > { %v3836_v29 = vrot.slane %v3636_v5, 4 }
 0x833   : > { %v3653_v54 = vpop.permute.xlu1 %3652  ;;  %v3891_v4 = vsel %vm695_vm8, %v3604_v10, %v3836_v29 }
 0x834   : > { %v3659_v47 = vsel %vm434_vm6, %v3653_v54, %v8498_v46 }
 0x835   : > { %v3668_v51 = vmul.f32 %v3659_v47, %v10273_v24 }
 0x83b   : > { %v3673_v58 = vpop.permute.xlu0 %3672 }
 0x843   : > { %v3685_v3 = vpop.permute.xlu1 %3684  ;;  %v3742_v47 = vpop.permute.xlu2 %3741 }
 0x844   : > { %v3691_v12 = vsel %vm471_vm3, %v3685_v3, %v8542_v43 }
 0x845   : > { %v3700_v37 = vmul.f32 %v3691_v12, %v10319_v25  ;;  %v8773_v12 = vld [vmem:[%s10018_s4] sm:$0xff] }
 0x847   : > { %v3848_v31 = vrot.slane %v3700_v37, 4 }
 0x849   : > { %v3895_v39 = vsel %vm695_vm8, %v3668_v51, %v3848_v31 }
 0x84a   : > { %3971 = vmatpush.msrb.mxu2 %v3895_v39 }
 0x84b   : > { %v3710_v5 = vpop.permute.xlu0 %3709  ;;  %v3683_v37 = vpop.permute.xlu1 %3682 }
 0x84c   : > { %3972 = vmatpush.msrb.mxu2 %v3891_v4 }
 0x84d   : > { %6035 = vmatmul.msk.f32.vlgmr.msrb.gmra.mxu2 %vm10131_vm9, %v8773_v12 }
 0x853   : > { %v3727_v24 = vpop.permute.xlu0 %3726  ;;  %v3774_v25 = vpop.permute.xlu2 %3773 }
 0x854   : > { %v3712_v31 = vpop.permute.xlu1 %3711 }
 0x855   : > { %v3718_v29 = vsel %vm503_vm0, %v3712_v31, %v8533_v13 }
 0x856   : > { %v3731_v10 = vmul.f32 %v3718_v29, %v10191_v53  ;;  %v3690_v53 = vsel %vm471_vm3, %v3683_v37, %v3685_v3 }
 0x858   : > { %v3870_v41 = vrot.slane %v3731_v10, 4  ;;  %v3697_v10 = vsel %vm471_vm3, %v3673_v58, %v3683_v37 }
 0x859   : > { %v3698_v58 = vmul.f32 %v3697_v10, %v10192_v50 }
 0x85a   : > { %v3898_v13 = vsel %vm695_vm8, %v8675_v11, %v3870_v41 }
 0x85b   : > { %v3744_v1 = vpop.permute.xlu0 %3743 }
 0x85c   : > { %v3750_v40 = vsel %vm10133_vm2, %v3744_v1, %v8690_v33 }
 0x863   : > { %v3808_v21 = vpop.permute.xlu2 %3807  ;;  %v3759_v29 = vpop.permute.xlu1 %3758 }
 0x864   : > { %v3814_v51 = vsel %vm614_vm5, %v3808_v21, %v3810_v7  ;;  %v3763_v7 = vmul.f32 %v3750_v40, %v10293_v30 }
 0x865   : > { %v3827_v4 = vmul.f32 %v8635_v28, %v3814_v51 }
 0x867   : > { %6032 = vmatpush.msk.msrb.mxu1 %vm695_vm8, %v3827_v4 }
 0x86b   : > { %v3776_v39 = vpop.permute.xlu0 %3775  ;;  %v3641_v3 = vpop.permute.xlu2 %3640 }
 0x86c   : > { %v3782_v2 = vsel %vm577_vm1, %v3776_v39, %v3778_v14  ;;  %v3781_v33 = vsel %vm577_vm1, %v3774_v25, %v3776_v39  ;;  %v3717_v14 = vsel %vm503_vm0, %v3710_v5, %v3712_v31 }
 0x86d   : > { %v3795_v18 = vmul.f32 %v3782_v2, %v6730_v59  ;;  %v3699_v2 = vmul.f32 %v3690_v53, %v6693_v56  ;;  %v3794_v40 = vmul.f32 %v3781_v33, %v6698_v61  ;;  %v3692_v33 = vsel %vm471_vm3, %v8542_v43, %v8621_v45 }
 0x86e   : > { %v3701_v10 = vmul.f32 %v3692_v33, %v10237_v52 }
 0x86f   : > { %v3882_v42 = vrot.slane %v3795_v18, 4  ;;  %v3730_v18 = vmul.f32 %v3717_v14, %v6727_v62  ;;  %v3846_v14 = vrot.slane %v3698_v58, 4 }
 0x871   : > { %v3902_v51 = vsel %vm695_vm8, %v3763_v7, %v3882_v42  ;;  %v3749_v7 = vsel %vm10133_vm2, %v3742_v47, %v3744_v1  ;;  %v3869_v47 = vrot.slane %v3730_v18, 4  ;;  %v3729_v1 = vsel %vm503_vm0, %v8709_v35, %v3727_v24  ;;  %v10320_v35 = vld [vmem:[#allocation17_spill] sm:$0xff] }
 0x872   : > { %3949 = vmatpush.msrb.mxu1 %v3902_v51  ;;  %v3847_v51 = vrot.slane %v3699_v2, 4  ;;  %v3762_v37 = vmul.f32 %v3749_v7, %v10294_v55  ;;  %v3733_v2 = vmul.f32 %v3729_v1, %v10230_v34  ;;  %v3761_v18 = vsel %vm10133_vm2, %v8685_v57, %v3759_v29 }
 0x873   : > { %v3791_v4 = vpop.permute.xlu0 %3790  ;;  %v3897_v24 = vsel %vm695_vm8, %v8677_v44, %v3869_v47  ;;  %v3849_v29 = vrot.slane %v3701_v10, 4 }
 0x874   : > { %3950 = vmatpush.msrb.mxu1 %v3898_v13  ;;  %v3881_v13 = vrot.slane %v3794_v40, 4  ;;  %v3793_v53 = vsel %vm577_vm1, %v8717_v26, %v3791_v4  ;;  %v3628_v40 = vsel %vm397_vm4, %v8509_v36, %v10320_v35  ;;  %v3765_v36 = vmul.f32 %v3761_v18, %v10297_v0  ;;  %v3543_v35 = vpop.f32.mrf.mxu2  ;;  %v10324_v18 = vld [vmem:[#allocation15_spill] sm:$0xff] }
 0x875   : > { %v3637_v44 = vmul.f32 %v3628_v40, %v10239_v48 }
 0x876   : > { %v3901_v4 = vsel %vm695_vm8, %v3762_v37, %v3881_v13 }
 0x87b   : > { %v3651_v42 = vpop.permute.xlu0 %3650 }
 0x87c   : > { %v3806_v11 = vpop.permute.xlu1 %3805  ;;  %v3658_v41 = vsel %vm434_vm6, %v3651_v42, %v3653_v54  ;;  %v3665_v39 = vsel %vm434_vm6, %v3641_v3, %v3651_v42 }
 0x87d   : > { %v3813_v25 = vsel %vm614_vm5, %v3806_v11, %v3808_v21  ;;  %v3667_v5 = vmul.f32 %v3658_v41, %v10303_v6  ;;  %v3797_v21 = vmul.f32 %v3793_v53, %v10238_v17  ;;  %v3666_v26 = vmul.f32 %v3665_v39, %v10301_v60  ;;  %v8866_v40 = vpop.f32.mrf.mxu2 }
 0x87e   : > { %v3826_v31 = vmul.f32 %v8629_v8, %v3813_v25  ;;  %v3872_v41 = vrot.slane %v3733_v2, 4  ;;  %v3587_v25 = vpop.permute.xlu2 %3586  ;;  %v3837_v53 = vrot.slane %v3637_v44, 4 }
 0x87f   : > { %v3894_v54 = vsel %vm695_vm8, %v3667_v5, %v3847_v51  ;;  %v3884_v7 = vrot.slane %v3797_v21, 4  ;;  %v3893_v45 = vsel %vm695_vm8, %v3666_v26, %v3846_v14  ;;  %v10321_v51 = vld [vmem:[#allocation39_spill] sm:$0xff]  ;;  %v3594_v47 = vsel %vm10132_vm7, %v3587_v25, %v8748_v15 }
 0x880   : > { %6030 = vmatpush.msk.msrb.mxu0 %vm695_vm8, %v3826_v31  ;;  %3951 = vmatpush.msrb.mxu1 %v3894_v54  ;;  %v3660_v57 = vsel %vm434_vm6, %v8498_v46, %v10321_v51  ;;  %v10323_v31 = vld [vmem:[#allocation11_spill] sm:$0xff]  ;;  %v3603_v26 = vmul.f32 %v3594_v47, %v10309_v16 }
 0x881   : > { %v3904_v3 = vsel %vm695_vm8, %v3765_v36, %v3884_v7  ;;  %v3669_v5 = vmul.f32 %v3660_v57, %v10306_v9  ;;  %v3900_v39 = vsel %vm695_vm8, %v10323_v31, %v3872_v41 }
 0x882   : > { %3929 = vmatpush.msrb.mxu0 %v3901_v4 }
 0x884   : > { %v3823_v42 = vpop.permute.xlu1 %3822  ;;  %3930 = vmatpush.msrb.mxu0 %v3897_v24 }
 0x885   : > { %v3825_v43 = vsel %vm614_vm5, %v8738_v19, %v3823_v42  ;;  %v10322_v19 = vld [vmem:[#allocation27_spill] sm:$0xff]  ;;  %v3544_v42 = vadd.f32 %v3543_v35, %v10324_v18 }
 0x886   : > { %v3829_v11 = vmul.f32 %v8641_v32, %v3825_v43  ;;  %3931 = vmatpush.msrb.mxu0 %v3893_v45  ;;  %v3596_v13 = vsel %vm10132_vm7, %v8511_v63, %v10322_v19  ;;  %v3896_v63 = vsel %vm695_vm8, %v3669_v5, %v3849_v29 }
 0x887   : > { %v3605_v46 = vmul.f32 %v3596_v13, %v10310_v27 }
 0x888   : > { %6036 = vmatpush.msk.msrb.mxu3 %vm695_vm8, %v3829_v11 }
 0x889   : > { %v3892_v21 = vsel %vm695_vm8, %v3605_v46, %v3837_v53 }
 0x88a   : > { %3989 = vmatpush.msrb.mxu3 %v3904_v3 }
 0x88c   : > { %v3619_v58 = vpop.permute.xlu1 %3618  ;;  %3990 = vmatpush.msrb.mxu3 %v3900_v39 }
 0x88d   : > { %v3626_v37 = vsel %vm397_vm4, %v3619_v58, %v8750_v49  ;;  %v3633_v1 = vsel %vm397_vm4, %v8752_v22, %v3619_v58 }
 0x88e   : > { %v3635_v54 = vmul.f32 %v3626_v37, %v10196_v20  ;;  %3991 = vmatpush.msrb.mxu3 %v3896_v63  ;;  %v3634_v15 = vmul.f32 %v3633_v1, %v10260_v23 }
 0x890   : > { %v3835_v4 = vrot.slane %v3635_v54, 4  ;;  %3992 = vmatpush.msrb.mxu3 %v3892_v21  ;;  %v3834_v14 = vrot.slane %v3634_v15, 4 }
 0x891   : > { %6037 = vmatmul.msk.f32.vlgmr.msrb.gmra.mxu3 %vm10131_vm9, %v8773_v12 }
 0x892   : > { %v3890_v49 = vsel %vm695_vm8, %v3603_v26, %v3835_v4 }
 0x893   : > { %3952 = vmatpush.msrb.mxu1 %v3890_v49 }
 0x894   : > { %v3576_v33 = vpop.permute.xlu1 %3575  ;;  %6033 = vmatmul.msk.f32.vlgmr.msrb.gmra.mxu1 %vm10131_vm9, %v8773_v12 }
 0x895   : > { %v3601_v22 = vsel %vm10132_vm7, %v3576_v33, %v3587_v25  ;;  %v10325_v25 = vld [vmem:[#allocation45_spill] sm:$0xff] }
 0x896   : > { %v3602_v2 = vmul.f32 %v3601_v22, %v10299_v38 }
 0x898   : > { %v3889_v24 = vsel %vm695_vm8, %v3602_v2, %v3834_v14 }
 0x899   : > { %3932 = vmatpush.msrb.mxu0 %v3889_v24  ;;  %v3520_v53 = vpop.f32.mrf.mxu1 }
 0x89a   : > { %6031 = vmatmul.msk.f32.vlgmr.msrb.gmra.mxu0 %vm10131_vm9, %v8773_v12  ;;  %v3497_v31 = vpop.f32.mrf.mxu0  ;;  %v3521_v47 = vadd.f32 %v3520_v53, %v10324_v18 }
 0x89b   : > { %v3498_v21 = vadd.f32 %v3497_v31, %v10324_v18  ;;  %v10326_v31 = vld [vmem:[#allocation42_spill] sm:$0xff] }
 0x8a1   : > { %v3566_v39 = vpop.f32.mrf.mxu3  ;;  %v8881_v58 = vpop.f32.mrf.mxu1 }
 0x8a2   : > { %v8885_v46 = vpop.f32.mrf.mxu0  ;;  %v3567_v49 = vadd.f32 %v3566_v39, %v10324_v18 }
 0x8a9   : > { %v8888_v37 = vpop.f32.mrf.mxu3 }
 0x8d0   : > { %v3974_v10 = vpop.f32.mrf.mxu2 }
 0x8d1   : > { %v3999_v7 = vadd.f32 %v3974_v10, %v3544_v42 }
 0x8d3   : > { %v6040_v43 = vmul.f32 -1.442695, %v3999_v7 }
 0x8d5   : > { %6164 = vpow2.f32 %v6040_v43 }
 0x8db   : > { %v6165_v45 = vpop.eup %6164 }
 0x8dc   : > { %v4015_v11 = vadd.f32 1.0, %v6165_v45 }
 0x8de   : > { %6166 = vrcp.f32 %v4015_v11  ;;  %v4058_v51 = vand.u32 2147483648, %v4015_v11  ;;  %v4056_v29 = vand.u32 2147483647, %v4015_v11  ;;  %vm4052_vm13 = vweird.f32 %v4015_v11 }
 0x8e0   : > { %v4059_v3 = vor.u32 1.1754944e-38, %v4058_v51  ;;  %vm4057_vm15 = vcmp.eq.f32.partialorder %v4056_v29, 8.507059e+37 }
 0x8e4   : > { %v6167_v44 = vpop.eup %6166 }
 0x8e5   : > { %v4048_v41 = vmul.f32 %v6167_v44, %v4015_v11  ;;  %vm4053_vm12 = vweird.f32 %v6167_v44 }
 0x8e6   : > { %vm4054_vm14 = vmor %vm4052_vm13, %vm4053_vm12 }
 0x8e7   : > { %v4049_v36 = vsub.f32 1.0, %v4048_v41 }
 0x8e9   : > { %v4050_v57 = vmul.f32 %v6167_v44, %v4049_v36 }
 0x8eb   : > { %v4051_v12 = vadd.f32 %v6167_v44, %v4050_v57 }
 0x8ed   : > { %v4055_v19 = vsel %vm4054_vm14, %v6167_v44, %v4051_v12 }
 0x8ee   : > { %v8869_v13 = vsel %vm4057_vm15, %v4059_v3, %v4055_v19 }
 0x8ef   : > { %v8873_v5 = vmul.f32 %v10325_v25, %v8869_v13 }
 0x8f1   : > { %4226 = vrot.lane.b32.xlu2 %v8873_v5, %s6253_s25 }
 0x8f9   : > { %4247 = vrot.lane.b32.xlu2 %v8873_v5, %s6254_s26 }
 0x901   : > { %4184 = vrot.lane.b32.xlu2 %v8873_v5, %s6251_s23 }
 0x909   : > { %4205 = vrot.lane.b32.xlu2 %v8873_v5, %s6252_s24 }
 0x911   : > { %v3954_v63 = vpop.f32.mrf.mxu1 }
 0x912   : > { %v3998_v54 = vadd.f32 %v3954_v63, %v3521_v47 }
 0x914   : > { %v6039_v1 = vmul.f32 -1.442695, %v3998_v54  ;;  %v3994_v15 = vpop.f32.mrf.mxu3 }
 0x915   : > { %v4000_v14 = vadd.f32 %v3994_v15, %v3567_v49 }
 0x916   : > { %6168 = vpow2.f32 %v6039_v1 }
 0x917   : > { %v3934_v26 = vpop.f32.mrf.mxu0  ;;  %v6041_v24 = vmul.f32 -1.442695, %v4000_v14 }
 0x918   : > { %v3997_v4 = vadd.f32 %v3934_v26, %v3498_v21 }
 0x91a   : > { %v6038_v33 = vmul.f32 -1.442695, %v3997_v4  ;;  %v10327_v4 = vld [vmem:[#allocation40_spill] sm:$0xff] }
 0x91c   : > { %v6169_v22 = vpop.eup %6168  ;;  %6170 = vpow2.f32 %v6038_v33 }
 0x91d   : > { %v4014_v2 = vadd.f32 1.0, %v6169_v22 }
 0x91f   : > { %6172 = vrcp.f32 %v4014_v2  ;;  %v4043_v45 = vand.u32 2147483648, %v4014_v2  ;;  %v4041_v41 = vand.u32 2147483647, %v4014_v2  ;;  %vm4037_vm11 = vweird.f32 %v4014_v2 }
 0x920   : > { %6174 = vpow2.f32 %v6041_v24 }
 0x921   : > { %v4044_v29 = vor.u32 1.1754944e-38, %v4043_v45  ;;  %vm4042_vm13 = vcmp.eq.f32.partialorder %v4041_v41, 8.507059e+37 }
 0x922   : > { %v6171_v35 = vpop.eup %6170 }
 0x923   : > { %v4013_v42 = vadd.f32 1.0, %v6171_v35 }
 0x925   : > { %v6173_v10 = vpop.eup %6172  ;;  %6176 = vrcp.f32 %v4013_v42  ;;  %v4028_v53 = vand.u32 2147483648, %v4013_v42  ;;  %v4026_v63 = vand.u32 2147483647, %v4013_v42  ;;  %vm4022_vm15 = vweird.f32 %v4013_v42 }
 0x926   : > { %v4033_v7 = vmul.f32 %v6173_v10, %v4014_v2  ;;  %v6175_v11 = vpop.eup %6174  ;;  %vm4038_vm10 = vweird.f32 %v6173_v10 }
 0x927   : > { %vm4039_vm12 = vmor %vm4037_vm11, %vm4038_vm10  ;;  %v4016_v12 = vadd.f32 1.0, %v6175_v11  ;;  %v4029_v1 = vor.u32 1.1754944e-38, %v4028_v53  ;;  %vm4027_vm11 = vcmp.eq.f32.partialorder %v4026_v63, 8.507059e+37 }
 0x928   : > { %v4034_v43 = vsub.f32 1.0, %v4033_v7 }
 0x929   : > { %6178 = vrcp.f32 %v4016_v12  ;;  %v4073_v24 = vand.u32 2147483648, %v4016_v12  ;;  %v4071_v35 = vand.u32 2147483647, %v4016_v12 }
 0x92a   : > { %v4035_v44 = vmul.f32 %v6173_v10, %v4034_v43  ;;  %v10328_v43 = vld [vmem:[#allocation4_spill] sm:$0xff] }
 0x92b   : > { %v6177_v36 = vpop.eup %6176 }
 0x92c   : > { %v4036_v51 = vadd.f32 %v6173_v10, %v4035_v44  ;;  %v4018_v57 = vmul.f32 %v6177_v36, %v4013_v42  ;;  %vm4023_vm14 = vweird.f32 %v6177_v36 }
 0x92d   : > { %vm4024_vm10 = vmor %vm4022_vm15, %vm4023_vm14  ;;  %vm4072_vm15 = vcmp.eq.f32.partialorder %v4071_v35, 8.507059e+37 }
 0x92e   : > { %v4040_v3 = vsel %vm4039_vm12, %v6173_v10, %v4036_v51  ;;  %v4019_v19 = vsub.f32 1.0, %v4018_v57  ;;  %v4074_v10 = vor.u32 1.1754944e-38, %v4073_v24 }
 0x92f   : > { %v8892_v25 = vsel %vm4042_vm13, %v4044_v29, %v4040_v3  ;;  %v6179_v49 = vpop.eup %6178  ;;  %vm4067_vm13 = vweird.f32 %v4016_v12 }
 0x930   : > { %v8896_v39 = vmul.f32 %v10326_v31, %v8892_v25  ;;  %v4020_v47 = vmul.f32 %v6177_v36, %v4019_v19  ;;  %v4063_v33 = vmul.f32 %v6179_v49, %v4016_v12  ;;  %vm4068_vm12 = vweird.f32 %v6179_v49 }
 0x931   : > { %vm4069_vm14 = vmor %vm4067_vm13, %vm4068_vm12 }
 0x932   : > { %v4021_v54 = vadd.f32 %v6177_v36, %v4020_v47  ;;  %4164 = vrot.lane.b32.xlu2 %v8896_v39, %s6250_s22  ;;  %4224 = vrot.lane.b32.xlu1 %v8896_v39, %s6253_s25  ;;  %v4064_v22 = vsub.f32 1.0, %v4063_v33 }
 0x934   : > { %v4025_v21 = vsel %vm4024_vm10, %v6177_v36, %v4021_v54  ;;  %v4065_v14 = vmul.f32 %v6179_v49, %v4064_v22 }
 0x935   : > { %v8902_v26 = vsel %vm4027_vm11, %v4029_v1, %v4025_v21  ;;  %v10329_v1 = vld [vmem:[#allocation24_spill] sm:$0xff] }
 0x936   : > { %v8906_v15 = vmul.f32 %v10327_v4, %v8902_v26  ;;  %v4066_v2 = vadd.f32 %v6179_v49, %v4065_v14 }
 0x938   : > { %4222 = vrot.lane.b32.xlu0 %v8906_v15, %s6253_s25  ;;  %v4070_v42 = vsel %vm4069_vm14, %v6179_v49, %v4066_v2 }
 0x939   : > { %v8926_v7 = vsel %vm4072_vm15, %v4074_v10, %v4070_v42 }
 0x93a   : > { %4122 = vrot.lane.b32.xlu2 %v8896_v39, %s6248_s20  ;;  %4245 = vrot.lane.b32.xlu1 %v8896_v39, %s6254_s26  ;;  %v8930_v45 = vmul.f32 %v10328_v43, %v8926_v7 }
 0x940   : > { %4243 = vrot.lane.b32.xlu0 %v8906_v15, %s6254_s26 }
 0x942   : > { %4143 = vrot.lane.b32.xlu2 %v8896_v39, %s6249_s21  ;;  %4182 = vrot.lane.b32.xlu1 %v8896_v39, %s6251_s23 }
 0x948   : > { %4180 = vrot.lane.b32.xlu0 %v8906_v15, %s6251_s23 }
 0x94a   : > { %4101 = vrot.lane.b32.xlu2 %v8896_v39, %s6247_s19  ;;  %4203 = vrot.lane.b32.xlu1 %v8896_v39, %s6252_s24 }
 0x94b   : > { %v8966_v11 = vpop.permute.xlu2 %4226 }
 0x950   : > { %4201 = vrot.lane.b32.xlu0 %v8906_v15, %s6252_s24 }
 0x952   : > { %4186 = vrot.lane.b32.xlu2 %v8930_v45, %s6251_s23  ;;  %4162 = vrot.lane.b32.xlu1 %v8906_v15, %s6250_s22 }
 0x953   : > { %v8968_v44 = vpop.permute.xlu2 %4247 }
 0x958   : > { %4159 = vrot.lane.b32.xlu0 %v8930_v45, %s6250_s22 }
 0x95a   : > { %4124 = vrot.lane.b32.xlu2 %v8873_v5, %s6248_s20  ;;  %4120 = vrot.lane.b32.xlu1 %v8906_v15, %s6248_s20 }
 0x95b   : > { %v8972_v51 = vpop.permute.xlu2 %4184 }
 0x960   : > { %4117 = vrot.lane.b32.xlu0 %v8930_v45, %s6248_s20 }
 0x962   : > { %4141 = vrot.lane.b32.xlu1 %v8906_v15, %s6249_s21 }
 0x963   : > { %v8983_v47 = vpop.permute.xlu2 %4205 }
 0x968   : > { %4138 = vrot.lane.b32.xlu0 %v8930_v45, %s6249_s21 }
 0x96a   : > { %4099 = vrot.lane.b32.xlu1 %v8906_v15, %s6247_s19 }
 0x970   : > { %4093 = vrot.lane.b32.xlu0 %v8930_v45, %s6247_s19 }
 0x972   : > { %4166 = vrot.lane.b32.xlu1 %v8873_v5, %s6250_s22 }
 0x978   : > { %4228 = vrot.lane.b32.xlu0 %v8930_v45, %s6253_s25 }
 0x97a   : > { %4249 = vrot.lane.b32.xlu1 %v8930_v45, %s6254_s26 }
 0x980   : > { %4207 = vrot.lane.b32.xlu0 %v8930_v45, %s6252_s24 }
 0x982   : > { %4103 = vrot.lane.b32.xlu1 %v8873_v5, %s6247_s19 }
 0x988   : > { %4145 = vrot.lane.b32.xlu0 %v8873_v5, %s6249_s21 }
 0x98c   : > { %v9000_v14 = vpop.permute.xlu2 %4164 }
 0x9a4   : > { %v4225_v41 = vpop.permute.xlu1 %4224 }
 0x9a5   : > { %v4231_v63 = vsel %vm577_vm1, %v4225_v41, %v8966_v11 }
 0x9a6   : > { %v4240_v54 = vmul.f32 %v4231_v63, %v6730_v59 }
 0x9a8   : > { %v4305_v2 = vrot.slane %v4240_v54, 4 }
 0x9aa   : > { %v8970_v36 = vpop.permute.xlu0 %4222 }
 0x9ac   : > { %v4246_v57 = vpop.permute.xlu1 %4245 }
 0x9ad   : > { %v4252_v29 = vsel %vm614_vm5, %v4246_v57, %v8968_v44 }
 0x9ae   : > { %v4261_v12 = vmul.f32 %v8635_v28, %v4252_v29 }
 0x9b0   : > { %6044 = vmatpush.msk.msra.mxu1 %vm695_vm8, %v4261_v12 }
 0x9b2   : > { %v8978_v3 = vpop.permute.xlu0 %4243 }
 0x9b3   : > { %v4251_v19 = vsel %vm614_vm5, %v8978_v3, %v4246_v57 }
 0x9b4   : > { %v4260_v53 = vmul.f32 %v8629_v8, %v4251_v19  ;;  %v4183_v31 = vpop.permute.xlu1 %4182  ;;  %v4230_v8 = vsel %vm577_vm1, %v8970_v36, %v4225_v41 }
 0x9b5   : > { %v4189_v28 = vsel %vm503_vm0, %v4183_v31, %v8972_v51  ;;  %v4239_v42 = vmul.f32 %v4230_v8, %v6698_v61 }
 0x9b6   : > { %6042 = vmatpush.msk.msra.mxu0 %vm695_vm8, %v4260_v53  ;;  %v4198_v21 = vmul.f32 %v4189_v28, %v10329_v1  ;;  %v9014_v28 = vpop.permute.xlu2 %4122 }
 0x9b7   : > { %v4304_v12 = vrot.slane %v4239_v42, 4 }
 0x9b8   : > { %v4293_v24 = vrot.slane %v4198_v21, 4 }
 0x9ba   : > { %v8992_v4 = vpop.permute.xlu0 %4180  ;;  %v4321_v57 = vsel %vm695_vm8, %v8896_v39, %v4293_v24 }
 0x9bb   : > { %v4188_v33 = vsel %vm503_vm0, %v8992_v4, %v4183_v31 }
 0x9bc   : > { %v4204_v49 = vpop.permute.xlu1 %4203  ;;  %v4197_v10 = vmul.f32 %v4188_v33, %v6727_v62 }
 0x9bd   : > { %v4210_v22 = vsel %vm10133_vm2, %v4204_v49, %v8983_v47 }
 0x9be   : > { %v4219_v35 = vmul.f32 %v4210_v22, %v10293_v30  ;;  %v4292_v19 = vrot.slane %v4197_v10, 4  ;;  %v9022_v8 = vpop.permute.xlu2 %4143 }
 0x9c0   : > { %v4325_v43 = vsel %vm695_vm8, %v4219_v35, %v4305_v2  ;;  %v4320_v54 = vsel %vm695_vm8, %v8906_v15, %v4292_v19 }
 0x9c1   : > { %4372 = vmatpush.msra.mxu1 %v4325_v43 }
 0x9c2   : > { %v9006_v41 = vpop.permute.xlu0 %4201 }
 0x9c3   : > { %v4209_v29 = vsel %vm10133_vm2, %v9006_v41, %v4204_v49  ;;  %4373 = vmatpush.msra.mxu1 %v4321_v57 }
 0x9c4   : > { %v4218_v53 = vmul.f32 %v4209_v29, %v10294_v55  ;;  %v4163_v31 = vpop.permute.xlu1 %4162 }
 0x9c5   : > { %v4168_v49 = vsel %vm471_vm3, %v4163_v31, %v9000_v14 }
 0x9c6   : > { %v4324_v63 = vsel %vm695_vm8, %v4218_v53, %v4304_v12  ;;  %v4177_v33 = vmul.f32 %v4168_v49, %v6693_v56  ;;  %v9041_v53 = vpop.permute.xlu2 %4101 }
 0x9c7   : > { %4352 = vmatpush.msra.mxu0 %v4324_v63 }
 0x9c8   : > { %v4281_v35 = vrot.slane %v4177_v33, 4 }
 0x9c9   : > { %4353 = vmatpush.msra.mxu0 %v4320_v54 }
 0x9ca   : > { %v9018_v21 = vpop.permute.xlu0 %4159 }
 0x9cb   : > { %v4175_v24 = vsel %vm471_vm3, %v9018_v21, %v4163_v31 }
 0x9cc   : > { %v4121_v39 = vpop.permute.xlu1 %4120  ;;  %v4176_v43 = vmul.f32 %v4175_v24, %v10192_v50 }
 0x9cd   : > { %v4126_v10 = vsel %vm397_vm4, %v4121_v39, %v9014_v28 }
 0x9ce   : > { %v4135_v29 = vmul.f32 %v4126_v10, %v10196_v20  ;;  %v4280_v31 = vrot.slane %v4176_v43, 4  ;;  %v9055_v43 = vld [vmem:[%s10019_s5] sm:$0xf] }
 0x9d0   : > { %v4269_v24 = vrot.slane %v4135_v29, 4 }
 0x9d2   : > { %v9025_v22 = vpop.permute.xlu0 %4117 }
 0x9d3   : > { %v4133_v49 = vsel %vm397_vm4, %v9025_v22, %v4121_v39 }
 0x9d4   : > { %v4142_v2 = vpop.permute.xlu1 %4141 }
 0x9d5   : > { %v4147_v15 = vsel %vm434_vm6, %v4142_v2, %v9022_v8 }
 0x9d6   : > { %v4156_v42 = vmul.f32 %v4147_v15, %v10303_v6 }
 0x9d8   : > { %v4317_v57 = vsel %vm695_vm8, %v4156_v42, %v4281_v35 }
 0x9d9   : > { %4374 = vmatpush.msra.mxu1 %v4317_v57 }
 0x9da   : > { %v9037_v12 = vpop.permute.xlu0 %4138 }
 0x9db   : > { %v4154_v19 = vsel %vm434_vm6, %v9037_v12, %v4142_v2  ;;  %v4134_v2 = vmul.f32 %v4133_v49, %v10260_v23 }
 0x9dc   : > { %v4155_v63 = vmul.f32 %v4154_v19, %v10301_v60  ;;  %v4100_v54 = vpop.permute.xlu1 %4099 }
 0x9dd   : > { %v4105_v33 = vsel %vm10132_vm7, %v4100_v54, %v9041_v53  ;;  %v4268_v57 = vrot.slane %v4134_v2, 4 }
 0x9de   : > { %v4114_v15 = vmul.f32 %v4105_v33, %v10309_v16  ;;  %v4316_v35 = vsel %vm695_vm8, %v4155_v63, %v4280_v31  ;;  %v4187_v63 = vpop.permute.xlu2 %4186 }
 0x9df   : > { %4354 = vmatpush.msra.mxu0 %v4316_v35  ;;  %v4190_v33 = vsel %vm503_vm0, %v8972_v51, %v4187_v63 }
 0x9e0   : > { %v4313_v42 = vsel %vm695_vm8, %v4114_v15, %v4269_v24  ;;  %v4196_v24 = vsel %vm503_vm0, %v4187_v63, %v8992_v4  ;;  %v9081_v4 = vld [vmem:[%s10020_s6 + $0x30] ss:$0 sm:$0xff] }
 0x9e1   : > { %4375 = vmatpush.msra.mxu1 %v4313_v42  ;;  %v4200_v51 = vmul.f32 %v4196_v24, %v10230_v34 }
 0x9e2   : > { %v4094_v10 = vpop.permute.xlu0 %4093  ;;  %6045 = vmatmul.msk.f32.vlgmr.msra.gmra.mxu1 %vm10131_vm9, %v9055_v43 }
 0x9e3   : > { %v4112_v39 = vsel %vm10132_vm7, %v4094_v10, %v4100_v54  ;;  %v4295_v63 = vrot.slane %v4200_v51, 4 }
 0x9e4   : > { %v4113_v29 = vmul.f32 %v4112_v39, %v10299_v38  ;;  %v4167_v19 = vpop.permute.xlu1 %4166  ;;  %v10330_v39 = vld [vmem:[#allocation8_spill] sm:$0xff] }
 0x9e5   : > { %v4169_v24 = vsel %vm471_vm3, %v9000_v14, %v4167_v19 }
 0x9e6   : > { %v4312_v31 = vsel %vm695_vm8, %v4113_v29, %v4268_v57  ;;  %v4199_v57 = vmul.f32 %v4190_v33, %v10330_v39  ;;  %v4125_v33 = vpop.permute.xlu2 %4124 }
 0x9e7   : > { %4355 = vmatpush.msra.mxu0 %v4312_v31  ;;  %v4127_v51 = vsel %vm397_vm4, %v9014_v28, %v4125_v33  ;;  %v4323_v28 = vsel %vm695_vm8, %v8930_v45, %v4295_v63 }
 0x9e8   : > { %6043 = vmatmul.msk.f32.vlgmr.msra.gmra.mxu0 %vm10131_vm9, %v9055_v43 }
 0x9ea   : > { %v4229_v49 = vpop.permute.xlu0 %4228 }
 0x9eb   : > { %v4232_v54 = vsel %vm577_vm1, %v8966_v11, %v4229_v49  ;;  %v4238_v35 = vsel %vm577_vm1, %v4229_v49, %v8970_v36  ;;  %v10331_v36 = vld [vmem:[#allocation6_spill] sm:$0xff] }
 0x9ec   : > { %v4250_v15 = vpop.permute.xlu1 %4249  ;;  %v4241_v31 = vmul.f32 %v4232_v54, %v10331_v36 }
 0x9ed   : > { %v4253_v2 = vsel %vm614_vm5, %v8968_v44, %v4250_v15  ;;  %v4259_v42 = vsel %vm614_vm5, %v4250_v15, %v8978_v3  ;;  %v4242_v44 = vmul.f32 %v4238_v35, %v10238_v17  ;;  %v4294_v3 = vrot.slane %v4199_v57, 4 }
 0x9ee   : > { %v4262_v11 = vmul.f32 %v9081_v4, %v4253_v2  ;;  %v4263_v29 = vmul.f32 %v8641_v32, %v4259_v42  ;;  %v4170_v15 = vsel %vm471_vm3, %v4167_v19, %v9018_v21  ;;  %v4306_v35 = vrot.slane %v4241_v31, 4  ;;  %v10332_v42 = vld [vmem:[#allocation9_spill] sm:$0xff]  ;;  %v10333_v19 = vld [vmem:[#allocation10_spill] sm:$0xff] }
 0x9ef   : > { %v4307_v2 = vrot.slane %v4242_v44, 4  ;;  %v4178_v18 = vmul.f32 %v4169_v24, %v10333_v19  ;;  %v4322_v31 = vsel %vm695_vm8, %v8873_v5, %v4294_v3  ;;  %v10335_v3 = vld [vmem:[#allocation14_spill] sm:$0xff] }
 0x9f0   : > { %6046 = vmatpush.msk.msra.mxu2 %vm695_vm8, %v4262_v11  ;;  %6048 = vmatpush.msk.msra.mxu3 %vm695_vm8, %v4263_v29 }
 0x9f2   : > { %v4208_v49 = vpop.permute.xlu0 %4207 }
 0x9f3   : > { %v4211_v32 = vsel %vm10133_vm2, %v8983_v47, %v4208_v49  ;;  %v4217_v54 = vsel %vm10133_vm2, %v4208_v49, %v9006_v41  ;;  %v4128_v47 = vsel %vm397_vm4, %v4125_v33, %v9025_v22  ;;  %v4179_v41 = vmul.f32 %v4170_v15, %v10237_v52  ;;  %v10334_v22 = vld [vmem:[#allocation12_spill] sm:$0xff] }
 0x9f4   : > { %v4220_v11 = vmul.f32 %v4211_v32, %v10332_v42  ;;  %v4221_v57 = vmul.f32 %v4217_v54, %v10297_v0  ;;  %v4104_v29 = vpop.permute.xlu1 %4103  ;;  %v4136_v33 = vmul.f32 %v4127_v51, %v10334_v22  ;;  %v4137_v24 = vmul.f32 %v4128_v47, %v10239_v48 }
 0x9f5   : > { %v4106_v44 = vsel %vm10132_vm7, %v9041_v53, %v4104_v29  ;;  %v4107_v49 = vsel %vm10132_vm7, %v4104_v29, %v4094_v10  ;;  %v4282_v32 = vrot.slane %v4178_v18, 4  ;;  %v4283_v54 = vrot.slane %v4179_v41, 4  ;;  %v10336_v10 = vld [vmem:[#allocation13_spill] sm:$0xff] }
 0x9f6   : > { %v4326_v14 = vsel %vm695_vm8, %v4220_v11, %v4306_v35  ;;  %v4327_v21 = vsel %vm695_vm8, %v4221_v57, %v4307_v2  ;;  %v4115_v63 = vmul.f32 %v4106_v44, %v10335_v3  ;;  %v4116_v53 = vmul.f32 %v4107_v49, %v10310_v27  ;;  %v10337_v29 = vld [vmem:[#allocation5_spill] sm:$0xff] }
 0x9f7   : > { %4392 = vmatpush.msra.mxu2 %v4326_v14  ;;  %4412 = vmatpush.msra.mxu3 %v4327_v21  ;;  %v4270_v11 = vrot.slane %v4136_v33, 4  ;;  %v4271_v57 = vrot.slane %v4137_v24, 4  ;;  %v3524_v14 = vadd.f32 %v8881_v58, %v10337_v29  ;;  %v3501_v41 = vadd.f32 %v8885_v46, %v10337_v29  ;;  %v4437_v24 = vld.sshfl [vmem:[#allocation1 + $0x8] sm:$0xff pattern:$0x75316420] }
 0x9f8   : > { %v4429_v44 = vsub.f32 1.0, %v8892_v25  ;;  %v4428_v58 = vsub.f32 1.0, %v8902_v26  ;;  %v4436_v46 = vld.sshfl [vmem:[#allocation1] sm:$0xff pattern:$0x75316420] }
 0x9f9   : > { %4393 = vmatpush.msra.mxu2 %v4322_v31  ;;  %4413 = vmatpush.msra.mxu3 %v4323_v28 }
 0x9fa   : > { %v4146_v15 = vpop.permute.xlu0 %4145 }
 0x9fb   : > { %v4148_v5 = vsel %vm434_vm6, %v9022_v8, %v4146_v15  ;;  %v4149_v45 = vsel %vm434_vm6, %v4146_v15, %v9037_v12  ;;  %v4314_v8 = vsel %vm695_vm8, %v4115_v63, %v4270_v11  ;;  %v4315_v12 = vsel %vm695_vm8, %v4116_v53, %v4271_v57  ;;  %v9151_v57 = vld [vmem:[%s6315_s11 + $0x30] sm:$0xff] }
 0x9fc   : > { %v4157_v35 = vmul.f32 %v4148_v5, %v10336_v10  ;;  %v4158_v2 = vmul.f32 %v4149_v45, %v10306_v9  ;;  %v4445_v15 = vmul.f32 %v4437_v24, %v4429_v44  ;;  %v4444_v45 = vmul.f32 %v4436_v46, %v4428_v58  ;;  %v4438_v44 = vld.sshfl [vmem:[#allocation1 + $0x10] sm:$0xff pattern:$0x75316420] }
 0x9fd   : > { %v3570_v11 = vadd.f32 %v8888_v37, %v10337_v29 }
 0x9fe   : > { %v4318_v51 = vsel %vm695_vm8, %v4157_v35, %v4282_v32  ;;  %v4319_v18 = vsel %vm695_vm8, %v4158_v2, %v4283_v54  ;;  %v9143_v2 = vld [vmem:[%s6315_s11 + $0x38] sm:$0xff] }
 0x9ff   : > { %4394 = vmatpush.msra.mxu2 %v4318_v51  ;;  %4414 = vmatpush.msra.mxu3 %v4319_v18 }
 0xa01   : > { %4395 = vmatpush.msra.mxu2 %v4314_v8  ;;  %4415 = vmatpush.msra.mxu3 %v4315_v12 }
 0xa02   : > { %6047 = vmatmul.msk.f32.vlgmr.msra.gmra.mxu2 %vm10131_vm9, %v9055_v43  ;;  %6049 = vmatmul.msk.f32.vlgmr.msra.gmra.mxu3 %vm10131_vm9, %v9055_v43 }
 0xa5f   : > { %v4377_v21 = vpop.f32.mrf.mxu1 }
 0xa60   : > { %v4421_v47 = vadd.f32 %v4377_v21, %v3524_v14  ;;  %v4431_v21 = vsub.f32 1.0, %v8926_v7 }
 0xa62   : > { %6180 = vtanh.f32 %v4421_v47 }
 0xa65   : > { %v4357_v31 = vpop.f32.mrf.mxu0 }
 0xa66   : > { %v4420_v28 = vadd.f32 %v4357_v31, %v3501_v41 }
 0xa68   : > { %v6181_v49 = vpop.eup %6180  ;;  %6182 = vtanh.f32 %v4420_v28 }
 0xa69   : > { %v4453_v33 = vrot.slane %v6181_v49, 4 }
 0xa6b   : > { %v4461_v43 = vmul.f32 %v4453_v33, %v8892_v25  ;;  %v3547_v25 = vadd.f32 %v8866_v40, %v10337_v29  ;;  %v4430_v40 = vsub.f32 1.0, %v8869_v13 }
 0xa6d   : > { %v4465_v32 = vadd.f32 %v4461_v43, %v4445_v15  ;;  %v4446_v33 = vmul.f32 %v4438_v44, %v4430_v40  ;;  %v4439_v15 = vld.sshfl [vmem:[#allocation1 + $0x18] sm:$0xff pattern:$0x75316420] }
 0xa6e   : > { %v6183_v54 = vpop.eup %6182  ;;  %v4447_v43 = vmul.f32 %v4439_v15, %v4431_v21 }
 0xa6f   : > { %4473 = vst.sshfl [vmem:[#allocation1 + $0x8] sm:$0xff pattern:$0x75316420] %v4465_v32  ;;  %v4452_v5 = vrot.slane %v6183_v54, 4 }
 0xa71   : > { %v4460_v63 = vmul.f32 %v4452_v5, %v8902_v26 }
 0xa73   : > { %v4464_v53 = vadd.f32 %v4460_v63, %v4444_v45 }
 0xa75   : > { %4472 = vst.sshfl [vmem:[#allocation1] sm:$0xff pattern:$0x75316420] %v4464_v53 }
 0xa7c   : > { %v9140_v35 = vld [vmem:[#allocation1 + $0x1] ss:$2 sm:$0xff] }
 0xa7d   : > { %4484 = vst.sshfl [vmem:[#allocation1] sm:$0xff pattern:$0x75316420] %v4464_v53 }
 0xa7e   : > { %4485 = vst.sshfl [vmem:[#allocation1 + $0x8] sm:$0xff pattern:$0x75316420] %v4465_v32 }
 0xa7f   : > { %4503 = vst [vmem:[#allocation1] ss:$2 sm:$0xff] %v9143_v2 }
 0xa85   : > { %v4489_v51 = vld [vmem:[#allocation1 + $0x1] ss:$2 sm:$0xff]  ;;  %v4397_v26 = vpop.f32.mrf.mxu2  ;;  %v4417_v18 = vpop.f32.mrf.mxu3 }
 0xa86   : > { %6050 = vst [vmem:[%s6320_s14 + $0x20] sm:$0xff] %v4489_v51  ;;  %v4504_v8 = vld.sshfl [vmem:[#allocation1 + $0x8] sm:$0xff pattern:$0x75316420]  ;;  %v4422_v12 = vadd.f32 %v4397_v26, %v3547_v25  ;;  %v4423_v14 = vadd.f32 %v4417_v18, %v3570_v11 }
 0xa87   : > { %4509 = vst [vmem:[#allocation1] ss:$2 sm:$0xff] %v9151_v57  ;;  %4505 = vrot.lane.b32.xlu1 %v4504_v8, %s6247_s19 }
 0xa88   : > { %6184 = vtanh.f32 %v4422_v12 }
 0xa89   : > { %6186 = vtanh.f32 %v4423_v14 }
 0xa8e   : > { %v6185_v37 = vpop.eup %6184  ;;  %v4512_v47 = vld.sshfl [vmem:[#allocation1] sm:$0xff pattern:$0x75316420]  ;;  %v4513_v41 = vld.sshfl [vmem:[#allocation1 + $0x8] sm:$0xff pattern:$0x75316420] }
 0xa8f   : > { %v6187_v31 = vpop.eup %6186  ;;  %4536 = vst [vmem:[#allocation1] ss:$2 sm:$0xff] %v9143_v2  ;;  %v4454_v28 = vrot.slane %v6185_v37, 4  ;;  %4518 = vrot.lane.b32.xlu0 %v4513_v41, %s6247_s19  ;;  %4516 = vrot.lane.b32.xlu2 %v4512_v47, %s6247_s19 }
 0xa90   : > { %v4455_v49 = vrot.slane %v6187_v31, 4 }
 0xa91   : > { %v4462_v24 = vmul.f32 %v4454_v28, %v8869_v13 }
 0xa92   : > { %v4463_v32 = vmul.f32 %v4455_v49, %v8926_v7 }
 0xa93   : > { %v4466_v58 = vadd.f32 %v4462_v24, %v4446_v33 }
 0xa94   : > { %v4467_v54 = vadd.f32 %v4463_v32, %v4447_v43 }
 0xa95   : > { %4474 = vst.sshfl [vmem:[#allocation1 + $0x10] sm:$0xff pattern:$0x75316420] %v4466_v58 }
 0xa96   : > { %v4537_v5 = vld.sshfl [vmem:[#allocation1 + $0x8] sm:$0xff pattern:$0x75316420]  ;;  %4475 = vst.sshfl [vmem:[#allocation1 + $0x18] sm:$0xff pattern:$0x75316420] %v4467_v54 }
 0xa97   : > { %4541 = vst [vmem:[#allocation1] ss:$2 sm:$0xff] %v9151_v57  ;;  %4538 = vrot.lane.b32.xlu0 %v4537_v5, %s6248_s20 }
 0xa9d   : > { %v9165_v46 = vld [vmem:[#allocation1 + $0x11] ss:$2 sm:$0xff] }
 0xa9e   : > { %v4544_v45 = vld.sshfl [vmem:[#allocation1] sm:$0xff pattern:$0x75316420]  ;;  %v4545_v63 = vld.sshfl [vmem:[#allocation1 + $0x8] sm:$0xff pattern:$0x75316420] }
 0xa9f   : > { %4568 = vst [vmem:[#allocation1] ss:$2 sm:$0xff] %v9143_v2 }
 0xaa0   : > { %4486 = vst.sshfl [vmem:[#allocation1 + $0x10] sm:$0xff pattern:$0x75316420] %v4466_v58 }
 0xaa1   : > { %4487 = vst.sshfl [vmem:[#allocation1 + $0x18] sm:$0xff pattern:$0x75316420] %v4467_v54 }
 0xaa2   : > { %4511 = vst [vmem:[#allocation1 + $0x10] ss:$2 sm:$0xff] %v9143_v2 }
 0xaa6   : > { %v4569_v13 = vld.sshfl [vmem:[#allocation1 + $0x8] sm:$0xff pattern:$0x75316420] }
 0xaa7   : > { %4573 = vst [vmem:[#allocation1] ss:$2 sm:$0xff] %v9151_v57 }
 0xaa8   : > { %v4491_v7 = vld [vmem:[#allocation1 + $0x11] ss:$2 sm:$0xff] }
 0xaa9   : > { %6051 = vst [vmem:[%s6320_s14 + $0x28] sm:$0xff] %v4491_v7  ;;  %v4514_v53 = vld.sshfl [vmem:[#allocation1 + $0x10] sm:$0xff pattern:$0x75316420] }
 0xaaa   : > { %v4515_v25 = vld.sshfl [vmem:[#allocation1 + $0x18] sm:$0xff pattern:$0x75316420]  ;;  %4520 = vrot.lane.b32.xlu1 %v4514_v53, %s6247_s19 }
 0xaab   : > { %4543 = vst [vmem:[#allocation1 + $0x10] ss:$2 sm:$0xff] %v9143_v2  ;;  %4522 = vrot.lane.b32.xlu2 %v4515_v25, %s6247_s19 }
 0xaae   : > { %v4576_v11 = vld.sshfl [vmem:[#allocation1] sm:$0xff pattern:$0x75316420]  ;;  %v4577_v51 = vld.sshfl [vmem:[#allocation1 + $0x8] sm:$0xff pattern:$0x75316420] }
 0xaaf   : > { %4600 = vst [vmem:[#allocation1] ss:$2 sm:$0xff] %v9143_v2 }
 0xab2   : > { %v4546_v26 = vld.sshfl [vmem:[#allocation1 + $0x10] sm:$0xff pattern:$0x75316420]  ;;  %v4547_v18 = vld.sshfl [vmem:[#allocation1 + $0x18] sm:$0xff pattern:$0x75316420] }
 0xab3   : > { %4575 = vst [vmem:[#allocation1 + $0x10] ss:$2 sm:$0xff] %v9143_v2  ;;  %4550 = vrot.lane.b32.xlu2 %v4545_v63, %s6248_s20  ;;  %4554 = vrot.lane.b32.xlu1 %v4547_v18, %s6248_s20 }
 0xab4   : > { %4552 = vrot.lane.b32.xlu0 %v4546_v26, %s6248_s20 }
 0xab6   : > { %v4601_v8 = vld.sshfl [vmem:[#allocation1 + $0x8] sm:$0xff pattern:$0x75316420] }
 0xab7   : > { %4605 = vst [vmem:[#allocation1] ss:$2 sm:$0xff] %v9151_v57 }
 0xaba   : > { %v4578_v12 = vld.sshfl [vmem:[#allocation1 + $0x10] sm:$0xff pattern:$0x75316420]  ;;  %v4579_v14 = vld.sshfl [vmem:[#allocation1 + $0x18] sm:$0xff pattern:$0x75316420] }
 0xabb   : > { %4607 = vst [vmem:[#allocation1 + $0x10] ss:$2 sm:$0xff] %v9143_v2  ;;  %4570 = vrot.lane.b32.xlu2 %v4569_v13, %s6249_s21  ;;  %4548 = vrot.lane.b32.xlu1 %v4544_v45, %s6248_s20 }
 0xabc   : > { %4584 = vrot.lane.b32.xlu0 %v4578_v12, %s6249_s21 }
 0xabe   : > { %v4608_v40 = vld.sshfl [vmem:[#allocation1] sm:$0xff pattern:$0x75316420]  ;;  %v4609_v21 = vld.sshfl [vmem:[#allocation1 + $0x8] sm:$0xff pattern:$0x75316420] }
 0xabf   : > { %4632 = vst [vmem:[#allocation1] ss:$2 sm:$0xff] %v9151_v57 }
 0xac2   : > { %v4610_v37 = vld.sshfl [vmem:[#allocation1 + $0x10] sm:$0xff pattern:$0x75316420]  ;;  %v4611_v47 = vld.sshfl [vmem:[#allocation1 + $0x18] sm:$0xff pattern:$0x75316420] }
 0xac3   : > { %4634 = vst [vmem:[#allocation1 + $0x10] ss:$2 sm:$0xff] %v9143_v2  ;;  %4582 = vrot.lane.b32.xlu2 %v4577_v51, %s6249_s21  ;;  %4586 = vrot.lane.b32.xlu1 %v4579_v14, %s6249_s21 }
 0xac4   : > { %4616 = vrot.lane.b32.xlu0 %v4610_v37, %s6250_s22 }
 0xac6   : > { %v4635_v41 = vld.sshfl [vmem:[#allocation1] sm:$0xff pattern:$0x75316420]  ;;  %v4636_v31 = vld.sshfl [vmem:[#allocation1 + $0x8] sm:$0xff pattern:$0x75316420] }
 0xac7   : > { %4654 = vst [vmem:[#allocation1] ss:$2 sm:$0xff] %v9151_v57 }
 0xaca   : > { %v4637_v28 = vld.sshfl [vmem:[#allocation1 + $0x10] sm:$0xff pattern:$0x75316420]  ;;  %v4638_v44 = vld.sshfl [vmem:[#allocation1 + $0x18] sm:$0xff pattern:$0x75316420] }
 0xacb   : > { %4666 = vst [vmem:[#allocation1 + $0x10] ss:$2 sm:$0xff] %v9143_v2  ;;  %4618 = vrot.lane.b32.xlu1 %v4611_v47, %s6250_s22  ;;  %4643 = vrot.lane.b32.xlu2 %v4637_v28, %s6251_s23 }
 0xacc   : > { %4580 = vrot.lane.b32.xlu0 %v4576_v11, %s6249_s21 }
 0xace   : > { %v4655_v49 = vld.sshfl [vmem:[#allocation1] sm:$0xff pattern:$0x75316420] }
 0xacf   : > { %4664 = vst [vmem:[#allocation1] ss:$2 sm:$0xff] %v9151_v57 }
 0xad2   : > { %v4669_v33 = vld.sshfl [vmem:[#allocation1 + $0x10] sm:$0xff pattern:$0x75316420]  ;;  %v4670_v24 = vld.sshfl [vmem:[#allocation1 + $0x18] sm:$0xff pattern:$0x75316420] }
 0xad3   : > { %4698 = vst [vmem:[#allocation1 + $0x10] ss:$2 sm:$0xff] %v9143_v2  ;;  %4602 = vrot.lane.b32.xlu1 %v4601_v8, %s6250_s22  ;;  %4675 = vrot.lane.b32.xlu2 %v4669_v33, %s6252_s24 }
 0xad4   : > { %4645 = vrot.lane.b32.xlu0 %v4638_v44, %s6251_s23 }
 0xad6   : > { %v4667_v15 = vld.sshfl [vmem:[#allocation1] sm:$0xff pattern:$0x75316420]  ;;  %v4668_v43 = vld.sshfl [vmem:[#allocation1 + $0x8] sm:$0xff pattern:$0x75316420] }
 0xad7   : > { %4686 = vst [vmem:[#allocation1] ss:$2 sm:$0xff] %v9151_v57 }
 0xada   : > { %v4701_v32 = vld.sshfl [vmem:[#allocation1 + $0x10] sm:$0xff pattern:$0x75316420]  ;;  %v4702_v58 = vld.sshfl [vmem:[#allocation1 + $0x18] sm:$0xff pattern:$0x75316420] }
 0xadb   : > { %4730 = vst [vmem:[#allocation1 + $0x10] ss:$2 sm:$0xff] %v9143_v2  ;;  %4641 = vrot.lane.b32.xlu1 %v4636_v31, %s6251_s23  ;;  %4614 = vrot.lane.b32.xlu2 %v4609_v21, %s6250_s22 }
 0xadc   : > { %4677 = vrot.lane.b32.xlu0 %v4670_v24, %s6252_s24 }
 0xade   : > { %v4687_v54 = vld.sshfl [vmem:[#allocation1] sm:$0xff pattern:$0x75316420] }
 0xadf   : > { %4696 = vst [vmem:[#allocation1] ss:$2 sm:$0xff] %v9151_v57 }
 0xae2   : > { %v4733_v5 = vld.sshfl [vmem:[#allocation1 + $0x10] sm:$0xff pattern:$0x75316420]  ;;  %v4734_v45 = vld.sshfl [vmem:[#allocation1 + $0x18] sm:$0xff pattern:$0x75316420] }
 0xae3   : > { %4786 = vst [vmem:[#allocation1 + $0x10] ss:$2 sm:$0xff] %v9143_v2  ;;  %4656 = vrot.lane.b32.xlu1 %v4655_v49, %s6251_s23  ;;  %4612 = vrot.lane.b32.xlu2 %v4608_v40, %s6250_s22 }
 0xae4   : > { %4709 = vrot.lane.b32.xlu0 %v4702_v58, %s6253_s25 }
 0xae6   : > { %v4699_v63 = vld.sshfl [vmem:[#allocation1] sm:$0xff pattern:$0x75316420]  ;;  %v4700_v13 = vld.sshfl [vmem:[#allocation1 + $0x8] sm:$0xff pattern:$0x75316420] }
 0xae7   : > { %4718 = vst [vmem:[#allocation1] ss:$2 sm:$0xff] %v9151_v57 }
 0xae9   : > { %v4517_v18 = vpop.permute.xlu2 %4516 }
 0xaea   : > { %v9210_v7 = vld.sshfl [vmem:[#allocation1 + $0x10] sm:$0xff pattern:$0x75316420]  ;;  %v9212_v53 = vld.sshfl [vmem:[#allocation1 + $0x18] sm:$0xff pattern:$0x75316420] }
 0xaeb   : > { %10338 = vst [vmem:[#allocation31_spill] sm:$0xff] %v9212_v53  ;;  %4688 = vrot.lane.b32.xlu1 %v4687_v54, %s6252_s24  ;;  %4707 = vrot.lane.b32.xlu2 %v4701_v32, %s6253_s25 }
 0xaec   : > { %4948 = vst [vmem:[#allocation1 + $0x10] ss:$2 sm:$0xff] %v9165_v46  ;;  %4639 = vrot.lane.b32.xlu0 %v4635_v41, %s6251_s23 }
 0xaee   : > { %v4719_v2 = vld.sshfl [vmem:[#allocation1] sm:$0xff pattern:$0x75316420] }
 0xaef   : > { %4728 = vst [vmem:[#allocation1] ss:$2 sm:$0xff] %v9151_v57 }
 0xaf3   : > { %v4951_v25 = vld.sshfl [vmem:[#allocation1 + $0x10] sm:$0xff pattern:$0x75316420]  ;;  %v4952_v11 = vld.sshfl [vmem:[#allocation1 + $0x18] sm:$0xff pattern:$0x75316420]  ;;  %4739 = vrot.lane.b32.xlu2 %v4733_v5, %s6254_s26 }
 0xaf4   : > { %4980 = vst [vmem:[#allocation1 + $0x10] ss:$2 sm:$0xff] %v9165_v46  ;;  %4741 = vrot.lane.b32.xlu0 %v4734_v45, %s6254_s26 }
 0xaf6   : > { %v4731_v51 = vld.sshfl [vmem:[#allocation1] sm:$0xff pattern:$0x75316420]  ;;  %v9222_v26 = vld.sshfl [vmem:[#allocation1 + $0x8] sm:$0xff pattern:$0x75316420] }
 0xaf7   : > { %4750 = vst [vmem:[#allocation1] ss:$2 sm:$0xff] %v9151_v57 }
 0xaf9   : > { %v4506_v8 = vpop.permute.xlu1 %4505 }
 0xafa   : > { %v9226_v40 = vsel %vm10132_vm7, %v4506_v8, %v4517_v18 }
 0xafb   : > { %v4983_v12 = vld.sshfl [vmem:[#allocation1 + $0x10] sm:$0xff pattern:$0x75316420]  ;;  %v4984_v14 = vld.sshfl [vmem:[#allocation1 + $0x18] sm:$0xff pattern:$0x75316420]  ;;  %4671 = vrot.lane.b32.xlu2 %v4667_v15, %s6252_s24 }
 0xafc   : > { %5012 = vst [vmem:[#allocation1 + $0x10] ss:$2 sm:$0xff] %v9165_v46  ;;  %4989 = vrot.lane.b32.xlu1 %v4983_v12, %s6248_s20  ;;  %4673 = vrot.lane.b32.xlu0 %v4668_v43, %s6252_s24 }
 0xafe   : > { %v9232_v21 = vld.sshfl [vmem:[#allocation1] sm:$0xff pattern:$0x75316420] }
 0xaff   : > { %4784 = vst [vmem:[#allocation1] ss:$2 sm:$0xff] %v9151_v57 }
 0xb01   : > { %v4519_v37 = vpop.permute.xlu0 %4518 }
 0xb02   : > { %v9236_v31 = vsel %vm10132_vm7, %v4517_v18, %v4519_v37 }
 0xb03   : > { %v5015_v47 = vld.sshfl [vmem:[#allocation1 + $0x10] sm:$0xff pattern:$0x75316420]  ;;  %v5016_v41 = vld.sshfl [vmem:[#allocation1 + $0x18] sm:$0xff pattern:$0x75316420]  ;;  %4957 = vrot.lane.b32.xlu2 %v4951_v25, %s6247_s19 }
 0xb04   : > { %5044 = vst [vmem:[#allocation1 + $0x10] ss:$2 sm:$0xff] %v9165_v46  ;;  %5021 = vrot.lane.b32.xlu1 %v5015_v47, %s6249_s21  ;;  %4959 = vrot.lane.b32.xlu0 %v4952_v11, %s6247_s19 }
 0xb05   : > { %v4523_v28 = vpop.permute.xlu2 %4522 }
 0xb06   : > { %v9242_v44 = vld.sshfl [vmem:[#allocation1] sm:$0xff pattern:$0x75316420]  ;;  %v9244_v49 = vld.sshfl [vmem:[#allocation1 + $0x8] sm:$0xff pattern:$0x75316420] }
 0xb07   : > { %4940 = vst [vmem:[#allocation1] ss:$2 sm:$0xff] %v9165_v46 }
 0xb09   : > { %v4539_v18 = vpop.permute.xlu0 %4538 }
 0xb0b   : > { %v5047_v57 = vld.sshfl [vmem:[#allocation1 + $0x10] sm:$0xff pattern:$0x75316420]  ;;  %v5048_v33 = vld.sshfl [vmem:[#allocation1 + $0x18] sm:$0xff pattern:$0x75316420]  ;;  %4991 = vrot.lane.b32.xlu2 %v4984_v14, %s6248_s20 }
 0xb0c   : > { %5071 = vst [vmem:[#allocation1 + $0x10] ss:$2 sm:$0xff] %v9165_v46  ;;  %4720 = vrot.lane.b32.xlu1 %v4719_v2, %s6253_s25  ;;  %4705 = vrot.lane.b32.xlu0 %v4700_v13, %s6253_s25 }
 0xb0d   : > { %v4551_v24 = vpop.permute.xlu2 %4550 }
 0xb0e   : > { %v9251_v15 = vld.sshfl [vmem:[#allocation1 + $0x8] sm:$0xff pattern:$0x75316420] }
 0xb0f   : > { %4946 = vst [vmem:[#allocation1] ss:$2 sm:$0xff] %v9140_v35 }
 0xb13   : > { %v5074_v43 = vld.sshfl [vmem:[#allocation1 + $0x10] sm:$0xff pattern:$0x75316420]  ;;  %v5075_v32 = vld.sshfl [vmem:[#allocation1 + $0x18] sm:$0xff pattern:$0x75316420]  ;;  %4703 = vrot.lane.b32.xlu2 %v4699_v63, %s6253_s25 }
 0xb14   : > { %5103 = vst [vmem:[#allocation1 + $0x10] ss:$2 sm:$0xff] %v9165_v46  ;;  %5053 = vrot.lane.b32.xlu1 %v5047_v57, %s6250_s22  ;;  %5080 = vrot.lane.b32.xlu0 %v5074_v43, %s6251_s23 }
 0xb15   : > { %v9258_v58 = vpop.permute.xlu2 %4570 }
 0xb16   : > { %v9260_v54 = vld.sshfl [vmem:[#allocation1] sm:$0xff pattern:$0x75316420]  ;;  %v9262_v5 = vld.sshfl [vmem:[#allocation1 + $0x8] sm:$0xff pattern:$0x75316420] }
 0xb17   : > { %4973 = vst [vmem:[#allocation1] ss:$2 sm:$0xff] %v9165_v46 }
 0xb1b   : > { %v5106_v45 = vld.sshfl [vmem:[#allocation1 + $0x10] sm:$0xff pattern:$0x75316420]  ;;  %v5107_v13 = vld.sshfl [vmem:[#allocation1 + $0x18] sm:$0xff pattern:$0x75316420]  ;;  %5023 = vrot.lane.b32.xlu2 %v5016_v41, %s6249_s21 }
 0xb1c   : > { %5135 = vst [vmem:[#allocation1 + $0x10] ss:$2 sm:$0xff] %v9165_v46  ;;  %4735 = vrot.lane.b32.xlu1 %v4731_v51, %s6254_s26  ;;  %5112 = vrot.lane.b32.xlu0 %v5106_v45, %s6252_s24  ;;  %v4521_v63 = vpop.permute.xlu1 %4520 }
 0xb1d   : > { %v9269_v2 = vpop.permute.xlu2 %4582  ;;  %v4525_v25 = vsel %vm10132_vm7, %v4519_v37, %v4521_v63  ;;  %v4526_v11 = vsel %vm10132_vm7, %v4521_v63, %v4523_v28 }
 0xb1e   : > { %v9273_v8 = vld.sshfl [vmem:[#allocation1 + $0x8] sm:$0xff pattern:$0x75316420]  ;;  %v4534_v45 = vmul.f32 %v4525_v25, %v10335_v3  ;;  %v4535_v63 = vmul.f32 %v4526_v11, %v10310_v27 }
 0xb1f   : > { %4978 = vst [vmem:[#allocation1] ss:$2 sm:$0xff] %v9140_v35 }
 0xb23   : > { %v5139_v12 = vld.sshfl [vmem:[#allocation1 + $0x18] sm:$0xff pattern:$0x75316420]  ;;  %v5138_v14 = vld.sshfl [vmem:[#allocation1 + $0x10] sm:$0xff pattern:$0x75316420]  ;;  %5055 = vrot.lane.b32.xlu2 %v5048_v33, %s6250_s22 }
 0xb24   : > { %5082 = vrot.lane.b32.xlu1 %v5075_v32, %s6251_s23  ;;  %5167 = vst [vmem:[#allocation1 + $0x10] ss:$2 sm:$0xff] %v9165_v46  ;;  %5144 = vrot.lane.b32.xlu0 %v5138_v14, %s6253_s25 }
 0xb25   : > { %v9280_v51 = vpop.permute.xlu2 %4643  ;;  %v4555_v37 = vpop.permute.xlu1 %4554 }
 0xb26   : > { %v4553_v47 = vpop.permute.xlu0 %4552  ;;  %v4982_v41 = vld.sshfl [vmem:[#allocation1 + $0x8] sm:$0xff pattern:$0x75316420]  ;;  %v9282_v28 = vld.sshfl [vmem:[#allocation1] sm:$0xff pattern:$0x75316420] }
 0xb27   : > { %v4557_v57 = vsel %vm397_vm4, %v4551_v24, %v4553_v47  ;;  %v4558_v43 = vsel %vm397_vm4, %v4553_v47, %v4555_v37  ;;  %5005 = vst [vmem:[#allocation1] ss:$2 sm:$0xff] %v9165_v46 }
 0xb28   : > { %v4566_v33 = vmul.f32 %v4557_v57, %v10334_v22  ;;  %v4567_v32 = vmul.f32 %v4558_v43, %v10239_v48 }
 0xb2a   : > { %v4766_v14 = vrot.slane %v4566_v33, 4  ;;  %v4767_v29 = vrot.slane %v4567_v32, 4 }
 0xb2b   : > { %v5170_v53 = vld.sshfl [vmem:[#allocation1 + $0x10] sm:$0xff pattern:$0x75316420]  ;;  %4737 = vrot.lane.b32.xlu2 %v9222_v26, %s6254_s26  ;;  %v5171_v37 = vld.sshfl [vmem:[#allocation1 + $0x18] sm:$0xff pattern:$0x75316420] }
 0xb2c   : > { %4752 = vrot.lane.b32.xlu1 %v9232_v21, %s6254_s26  ;;  %5176 = vrot.lane.b32.xlu0 %v5170_v53, %s6254_s26  ;;  %5223 = vst [vmem:[#allocation1 + $0x10] ss:$2 sm:$0xff] %v9165_v46  ;;  %v9298_v47 = vsel %vm695_vm8, %v4534_v45, %v4766_v14  ;;  %v9301_v25 = vsel %vm695_vm8, %v4535_v63, %v4767_v29 }
 0xb2d   : > { %v9303_v11 = vpop.permute.xlu2 %4675  ;;  %v4549_v57 = vpop.permute.xlu1 %4548  ;;  %v4532_v29 = vmul.f32 %v9226_v40, %v10299_v38  ;;  %v4533_v45 = vmul.f32 %v9236_v31, %v10309_v16 }
 0xb2e   : > { %v9305_v43 = vpop.permute.xlu0 %4584  ;;  %v4556_v26 = vsel %vm397_vm4, %v4549_v57, %v4551_v24  ;;  %v4563_v21 = vsel %vm397_vm4, %v4539_v18, %v4549_v57  ;;  %v9309_v33 = vld.sshfl [vmem:[#allocation1 + $0x8] sm:$0xff pattern:$0x75316420] }
 0xb2f   : > { %v4564_v53 = vmul.f32 %v4563_v21, %v10260_v23  ;;  %v4565_v32 = vmul.f32 %v4556_v26, %v10196_v20  ;;  %5010 = vst [vmem:[#allocation1] ss:$2 sm:$0xff] %v9140_v35 }
 0xb31   : > { %v4764_v63 = vrot.slane %v4564_v53, 4  ;;  %v4765_v14 = vrot.slane %v4565_v32, 4 }
 0xb33   : > { %v9320_v24 = vsel %vm695_vm8, %v4533_v45, %v4765_v14  ;;  %v9323_v18 = vsel %vm695_vm8, %v4532_v29, %v4764_v63  ;;  %v9325_v57 = vld.sshfl [vmem:[#allocation1 + $0x10] sm:$0xff pattern:$0x75316420]  ;;  %v9327_v26 = vld.sshfl [vmem:[#allocation1 + $0x18] sm:$0xff pattern:$0x75316420] }
 0xb34   : > { %5114 = vrot.lane.b32.xlu1 %v5107_v13, %s6252_s24  ;;  %10339 = vst [vmem:[#allocation37_spill] sm:$0xff] %v9325_v57  ;;  %4987 = vrot.lane.b32.xlu0 %v4982_v41, %s6248_s20  ;;  %v4589_v57 = vsel %vm434_vm6, %v9269_v2, %v9305_v43 }
 0xb35   : > { %10340 = vst [vmem:[#allocation32_spill] sm:$0xff] %v9327_v26  ;;  %v9331_v40 = vpop.permute.xlu2 %4614  ;;  %v4587_v31 = vpop.permute.xlu1 %4586 }
 0xb36   : > { %5446 = vst [vmem:[#allocation1 + $0x10] ss:$2 sm:$0xff] %v9165_v46  ;;  %v9333_v21 = vpop.permute.xlu0 %4616  ;;  %v4590_v13 = vsel %vm434_vm6, %v9305_v43, %v4587_v31  ;;  %v5014_v53 = vld.sshfl [vmem:[#allocation1 + $0x8] sm:$0xff pattern:$0x75316420] }
 0xb37   : > { %v9337_v32 = vld.sshfl [vmem:[#allocation1] sm:$0xff pattern:$0x75316420] }
 0xb38   : > { %5037 = vst [vmem:[#allocation1] ss:$2 sm:$0xff] %v9165_v46 }
 0xb3c   : > { %5146 = vrot.lane.b32.xlu1 %v5139_v12, %s6253_s25  ;;  %5019 = vrot.lane.b32.xlu0 %v5014_v53, %s6249_s21 }
 0xb3d   : > { %v9341_v29 = vld.sshfl [vmem:[#allocation1 + $0x10] sm:$0xff pattern:$0x75316420]  ;;  %v9343_v41 = vld.sshfl [vmem:[#allocation1 + $0x18] sm:$0xff pattern:$0x75316420]  ;;  %v4613_v45 = vpop.permute.xlu2 %4612  ;;  %v4619_v63 = vpop.permute.xlu1 %4618 }
 0xb3e   : > { %10341 = vst [vmem:[#allocation38_spill] sm:$0xff] %v9341_v29  ;;  %v4581_v14 = vpop.permute.xlu0 %4580  ;;  %v4620_v31 = vsel %vm471_vm3, %v4613_v45, %v9331_v40  ;;  %v4622_v16 = vsel %vm471_vm3, %v9333_v21, %v4619_v63  ;;  %v4599_v29 = vmul.f32 %v4590_v13, %v10306_v9 }
 0xb3f   : > { %10342 = vst [vmem:[#allocation41_spill] sm:$0xff] %v9343_v41  ;;  %v5038_v38 = vld.sshfl [vmem:[#allocation1 + $0x8] sm:$0xff pattern:$0x75316420]  ;;  %v4588_v12 = vsel %vm434_vm6, %v4581_v14, %v9269_v2  ;;  %v4595_v41 = vsel %vm434_vm6, %v9258_v58, %v4581_v14  ;;  %v4629_v53 = vmul.f32 %v4620_v31, %v6693_v56 }
 0xb40   : > { %5802 = vst [vmem:[#allocation1 + $0x11] ss:$2 sm:$0xff] %v9165_v46  ;;  %v4631_v46 = vmul.f32 %v4622_v16, %v10237_v52  ;;  %5039 = vrot.lane.b32.xlu2 %v5038_v38, %s6250_s22  ;;  %v4597_v20 = vmul.f32 %v4588_v12, %v10303_v6 }
 0xb41   : > { %5042 = vst [vmem:[#allocation1] ss:$2 sm:$0xff] %v9140_v35  ;;  %v4777_v63 = vrot.slane %v4629_v53, 4 }
 0xb42   : > { %v4779_v23 = vrot.slane %v4631_v46, 4 }
 0xb43   : > { %v9363_v26 = vsel %vm695_vm8, %v4597_v20, %v4777_v63  ;;  %v4596_v20 = vmul.f32 %v4595_v41, %v10301_v60 }
 0xb44   : > { %5178 = vrot.lane.b32.xlu1 %v5171_v37, %s6254_s26  ;;  %v9366_v58 = vsel %vm695_vm8, %v4599_v29, %v4779_v23 }
 0xb45   : > { %v9368_v14 = vpop.permute.xlu2 %4707  ;;  %v4603_v16 = vpop.permute.xlu1 %4602 }
 0xb46   : > { %v4646_v38 = vpop.permute.xlu0 %4645  ;;  %v4627_v31 = vsel %vm471_vm3, %v4603_v16, %v4613_v45 }
 0xb47   : > { %v4628_v13 = vmul.f32 %v4627_v31, %v10192_v50 }
 0xb48   : > { %v5046_v56 = vld.sshfl [vmem:[#allocation1 + $0x8] sm:$0xff pattern:$0x75316420]  ;;  %v5045_v12 = vld.sshfl [vmem:[#allocation1] sm:$0xff pattern:$0x75316420] }
 0xb49   : > { %5051 = vrot.lane.b32.xlu0 %v5046_v56, %s6250_s22  ;;  %5069 = vst [vmem:[#allocation1] ss:$2 sm:$0xff] %v9140_v35  ;;  %v4776_v37 = vrot.slane %v4628_v13, 4 }
 0xb4b   : > { %v9378_v23 = vsel %vm695_vm8, %v4596_v20, %v4776_v37 }
 0xb4c   : > { %4955 = vrot.lane.b32.xlu1 %v9262_v5, %s6247_s19 }
 0xb4d   : > { %v9380_v29 = vpop.permute.xlu2 %4739  ;;  %v9382_v45 = vpop.permute.xlu1 %4641 }
 0xb4e   : > { %v9384_v53 = vpop.permute.xlu0 %4677 }
 0xb50   : > { %v5073_v46 = vld.sshfl [vmem:[#allocation1 + $0x8] sm:$0xff pattern:$0x75316420]  ;;  %v5072_v63 = vld.sshfl [vmem:[#allocation1] sm:$0xff pattern:$0x75316420] }
 0xb51   : > { %5049 = vrot.lane.b32.xlu0 %v5045_v12, %s6250_s22  ;;  %5078 = vrot.lane.b32.xlu2 %v5073_v46, %s6251_s23  ;;  %5091 = vst [vmem:[#allocation1] ss:$2 sm:$0xff] %v9140_v35  ;;  %v4649_v46 = vsel %vm503_vm0, %v9280_v51, %v4646_v38 }
 0xb54   : > { %4975 = vrot.lane.b32.xlu1 %v9273_v8, %s6248_s20 }
 0xb55   : > { %v9391_v56 = vpop.permute.xlu2 %4671  ;;  %v4657_v5 = vpop.permute.xlu1 %4656 }
 0xb56   : > { %v9393_v41 = vpop.permute.xlu0 %4709  ;;  %v9396_v16 = vsel %vm503_vm0, %v4646_v38, %v4657_v5 }
 0xb57   : > { %v4713_v37 = vsel %vm577_vm1, %v9368_v14, %v9393_v41 }
 0xb58   : > { %v5092_v31 = vld.sshfl [vmem:[#allocation1] sm:$0xff pattern:$0x75316420]  ;;  %v4726_v5 = vmul.f32 %v4713_v37, %v10331_v36 }
 0xb59   : > { %5093 = vrot.lane.b32.xlu2 %v5092_v31, %s6251_s23  ;;  %5101 = vst [vmem:[#allocation1] ss:$2 sm:$0xff] %v9140_v35  ;;  %v4662_v31 = vmul.f32 %v4649_v46, %v10330_v39 }
 0xb5a   : > { %v4813_v3 = vrot.slane %v4726_v5, 4 }
 0xb5c   : > { %5076 = vrot.lane.b32.xlu1 %v5072_v63, %s6251_s23  ;;  %v4621_v63 = vsel %vm471_vm3, %v9331_v40, %v9333_v21  ;;  %v4801_v21 = vrot.slane %v4662_v31, 4 }
 0xb5d   : > { %v9401_v13 = vpop.permute.xlu2 %4957  ;;  %v4689_v60 = vpop.permute.xlu1 %4688  ;;  %v4630_v38 = vmul.f32 %v4621_v63, %v10333_v19  ;;  %v4598_v19 = vmul.f32 %v4589_v57, %v10336_v10 }
 0xb5e   : > { %v9403_v12 = vpop.permute.xlu0 %4639 }
 0xb5f   : > { %v4778_v5 = vrot.slane %v4630_v38, 4 }
 0xb60   : > { %v5105_v8 = vld.sshfl [vmem:[#allocation1 + $0x8] sm:$0xff pattern:$0x75316420]  ;;  %v5104_v20 = vld.sshfl [vmem:[#allocation1] sm:$0xff pattern:$0x75316420] }
 0xb61   : > { %5108 = vrot.lane.b32.xlu0 %v5104_v20, %s6252_s24  ;;  %5123 = vst [vmem:[#allocation1] ss:$2 sm:$0xff] %v9140_v35  ;;  %v4681_v20 = vsel %vm10133_vm2, %v9303_v11, %v9384_v53  ;;  %v4825_v43 = vsel %vm695_vm8, %v4598_v19, %v4778_v5 }
 0xb62   : > { %v4694_v46 = vmul.f32 %v4681_v20, %v10332_v42 }
 0xb64   : > { %5110 = vrot.lane.b32.xlu1 %v5105_v8, %s6252_s24  ;;  %v4833_v63 = vsel %vm695_vm8, %v4694_v46, %v4813_v3  ;;  %v9453_v3 = vld [vmem:[%s10016_s2] sm:$0xff] }
 0xb65   : > { %v4992_v50 = vpop.permute.xlu2 %4991 }
 0xb66   : > { %v9421_v6 = vpop.permute.xlu0 %4741 }
 0xb67   : > { %v4745_v8 = vsel %vm614_vm5, %v9380_v29, %v9421_v6 }
 0xb68   : > { %v5124_v37 = vld.sshfl [vmem:[#allocation1] sm:$0xff pattern:$0x75316420]  ;;  %v4758_v40 = vmul.f32 %v9081_v4, %v4745_v8  ;;  %v4829_v4 = vsel %vm695_vm8, %v9210_v7, %v4801_v21 }
 0xb69   : > { %5125 = vrot.lane.b32.xlu2 %v5124_v37, %s6252_s24  ;;  %5133 = vst [vmem:[#allocation1] ss:$2 sm:$0xff] %v9140_v35 }
 0xb6a   : > { %6060 = vmatpush.msk.msrb.mxu2 %vm695_vm8, %v4758_v40 }
 0xb6c   : > { %4905 = vmatpush.msrb.mxu2 %v4833_v63 }
 0xb6d   : > { %v4704_v8 = vpop.permute.xlu2 %4703 }
 0xb6e   : > { %v9439_v37 = vpop.permute.xlu1 %4989  ;;  %v9441_v31 = vpop.permute.xlu0 %4673  ;;  %4906 = vmatpush.msrb.mxu2 %v4829_v4  ;;  %v9475_v4 = vld [vmem:[%s10016_s2 + $0x8] sm:$0xf] }
 0xb6f   : > { %v4995_v2 = vsel %vm397_vm4, %v9439_v37, %v4992_v50 }
 0xb70   : > { %v5137_v20 = vld.sshfl [vmem:[#allocation1 + $0x8] sm:$0xff pattern:$0x75316420]  ;;  %v5136_v38 = vld.sshfl [vmem:[#allocation1] sm:$0xff pattern:$0x75316420]  ;;  %4907 = vmatpush.msrb.mxu2 %v4825_v43  ;;  %v5004_v50 = vmul.f32 %v4995_v2, %v10239_v48 }
 0xb71   : > { %5142 = vrot.lane.b32.xlu1 %v5137_v20, %s6253_s25  ;;  %5155 = vst [vmem:[#allocation1] ss:$2 sm:$0xff] %v9140_v35  ;;  %5140 = vrot.lane.b32.xlu0 %v5136_v38, %s6253_s25 }
 0xb72   : > { %4908 = vmatpush.msrb.mxu2 %v9298_v47  ;;  %v5204_v46 = vrot.slane %v5004_v50, 4 }
 0xb73   : > { %6061 = vmatmul.msk.f32.vlgmr.msrb.gmra.mxu2 %vm10131_vm9, %v9453_v3 }
 0xb75   : > { %v5024_v19 = vpop.permute.xlu2 %5023 }
 0xb76   : > { %v9458_v7 = vpop.permute.xlu1 %5021  ;;  %v4960_v57 = vpop.permute.xlu0 %4959 }
 0xb77   : > { %v5027_v40 = vsel %vm434_vm6, %v9458_v7, %v5024_v19  ;;  %v4963_v47 = vsel %vm10132_vm7, %v9401_v13, %v4960_v57 }
 0xb78   : > { %v5156_v21 = vld.sshfl [vmem:[#allocation1] sm:$0xff pattern:$0x75316420]  ;;  %v4972_v5 = vmul.f32 %v4963_v47, %v10310_v27 }
 0xb79   : > { %5017 = vrot.lane.b32.xlu1 %v9337_v32, %s6249_s21  ;;  %5157 = vrot.lane.b32.xlu2 %v5156_v21, %s6253_s25  ;;  %5165 = vst [vmem:[#allocation1] ss:$2 sm:$0xff] %v9140_v35  ;;  %v4691_v32 = vsel %vm10133_vm2, %v9384_v53, %v4689_v60  ;;  %v4648_v60 = vsel %vm503_vm0, %v9382_v45, %v9280_v51 }
 0xb7a   : > { %v9470_v63 = vsel %vm695_vm8, %v4972_v5, %v5204_v46  ;;  %v4695_v53 = vmul.f32 %v4691_v32, %v10297_v0  ;;  %v4661_v46 = vmul.f32 %v4648_v60, %v10329_v1  ;;  %v4680_v5 = vsel %vm10133_vm2, %v9441_v31, %v9303_v11 }
 0xb7b   : > { %6062 = vmatmul.msk.f32.gmra.mxu2 %vm10131_vm9, %v9475_v4 }
 0xb7d   : > { %v5056_v2 = vpop.permute.xlu2 %5055 }
 0xb7e   : > { %v4721_v43 = vpop.permute.xlu1 %4720  ;;  %v4706_v20 = vpop.permute.xlu0 %4705 }
 0xb7f   : > { %v4723_v38 = vsel %vm577_vm1, %v9393_v41, %v4721_v43  ;;  %v4712_v50 = vsel %vm577_vm1, %v4706_v20, %v9368_v14 }
 0xb80   : > { %v4727_v19 = vmul.f32 %v4723_v38, %v10238_v17  ;;  %v5169_v57 = vld.sshfl [vmem:[#allocation1 + $0x8] sm:$0xff pattern:$0x75316420]  ;;  %v5168_v47 = vld.sshfl [vmem:[#allocation1] sm:$0xff pattern:$0x75316420]  ;;  %v4725_v21 = vmul.f32 %v4712_v50, %v6730_v59 }
 0xb81   : > { %5174 = vrot.lane.b32.xlu0 %v5169_v57, %s6254_s26  ;;  %5172 = vrot.lane.b32.xlu2 %v5168_v47, %s6254_s26  ;;  %5187 = vst [vmem:[#allocation1] ss:$2 sm:$0xff] %v9140_v35  ;;  %v9513_v47 = vld [vmem:[%s10020_s6 + $0x28] ss:$0 sm:$0xff] }
 0xb82   : > { %v4814_v41 = vrot.slane %v4727_v19, 4  ;;  %v4812_v57 = vrot.slane %v4725_v21, 4  ;;  %v4711_v19 = vsel %vm577_vm1, %v4704_v8, %v4706_v20  ;;  %v4647_v8 = vsel %vm503_vm0, %v9403_v12, %v9382_v45 }
 0xb83   : > { %v4724_v21 = vmul.f32 %v4711_v19, %v6698_v61  ;;  %v4679_v45 = vsel %vm10133_vm2, %v9391_v56, %v9441_v31  ;;  %v9544_v19 = vld [vmem:[%s10020_s6 + $0x20] ss:$0 sm:$0xff] }
 0xb84   : > { %v9495_v14 = vsel %vm695_vm8, %v4695_v53, %v4814_v41  ;;  %v4800_v41 = vrot.slane %v4661_v46, 4  ;;  %v4692_v31 = vmul.f32 %v4679_v45, %v10294_v55 }
 0xb85   : > { %v4738_v43 = vpop.permute.xlu2 %4737 }
 0xb86   : > { %v9501_v38 = vpop.permute.xlu1 %5053  ;;  %v4744_v51 = vsel %vm614_vm5, %v4738_v43, %v9380_v29  ;;  %v9505_v32 = vpop.permute.xlu0 %5080  ;;  %v4693_v29 = vmul.f32 %v4680_v5, %v10293_v30  ;;  %v4660_v5 = vmul.f32 %v4647_v8, %v6727_v62 }
 0xb87   : > { %v5059_v50 = vsel %vm471_vm3, %v9501_v38, %v5056_v2  ;;  %v4757_v11 = vmul.f32 %v9513_v47, %v4744_v51  ;;  %v5036_v2 = vmul.f32 %v5027_v40, %v10306_v9  ;;  %v4828_v51 = vsel %vm695_vm8, %v9244_v49, %v4800_v41 }
 0xb88   : > { %v5068_v60 = vmul.f32 %v5059_v50, %v10237_v52  ;;  %v5188_v53 = vld.sshfl [vmem:[#allocation1] sm:$0xff pattern:$0x75316420]  ;;  %v4832_v46 = vsel %vm695_vm8, %v4693_v29, %v4812_v57  ;;  %v4811_v40 = vrot.slane %v4724_v21, 4  ;;  %v4799_v56 = vrot.slane %v4660_v5, 4 }
 0xb89   : > { %5007 = vrot.lane.b32.xlu0 %v9309_v33, %s6249_s21  ;;  %5189 = vrot.lane.b32.xlu2 %v5188_v53, %s6254_s26  ;;  %5221 = vst [vmem:[#allocation1] ss:$2 sm:$0xff] %v9140_v35 }
 0xb8a   : > { %v5216_v20 = vrot.slane %v5068_v60, 4  ;;  %6057 = vmatpush.msk.msrb.mxu1 %vm695_vm8, %v4757_v11 }
 0xb8c   : > { %4882 = vmatpush.msrb.mxu1 %v4832_v46  ;;  %v9530_v33 = vsel %vm695_vm8, %v5036_v2, %v5216_v20 }
 0xb8e   : > { %4883 = vmatpush.msrb.mxu1 %v4828_v51  ;;  %v4736_v12 = vpop.permute.xlu1 %4735  ;;  %v9538_v50 = vpop.permute.xlu0 %5112 }
 0xb8f   : > { %v4743_v57 = vsel %vm614_vm5, %v4736_v12, %v4738_v43  ;;  %v4827_v43 = vsel %vm695_vm8, %v9242_v44, %v4799_v56  ;;  %v4663_v44 = vmul.f32 %v9396_v16, %v10230_v34  ;;  %v10343_v16 = vld [vmem:[#allocation31_spill] sm:$0xff] }
 0xb90   : > { %v4756_v11 = vmul.f32 %v9544_v19, %v4743_v57  ;;  %4884 = vmatpush.msrb.mxu1 %v9363_v26  ;;  %v9548_v49 = vld.sshfl [vmem:[#allocation1] sm:$0xff pattern:$0x75316420]  ;;  %v9550_v60 = vld.sshfl [vmem:[#allocation1 + $0x8] sm:$0xff pattern:$0x75316420]  ;;  %v4831_v26 = vsel %vm695_vm8, %v4692_v31, %v4811_v40 }
 0xb91   : > { %4953 = vrot.lane.b32.xlu0 %v9260_v54, %s6247_s19  ;;  %4985 = vrot.lane.b32.xlu2 %v9282_v28, %s6248_s20  ;;  %5444 = vst [vmem:[#allocation1] ss:$2 sm:$0xff] %v9140_v35  ;;  %v9626_v40 = vld [vmem:[%s10020_s6 + $0x30] ss:$0 sm:$0xff] }
 0xb92   : > { %6054 = vmatpush.msk.msrb.mxu0 %vm695_vm8, %v4756_v11  ;;  %4885 = vmatpush.msrb.mxu1 %v9320_v24 }
 0xb93   : > { %6058 = vmatmul.msk.f32.vlgmr.msrb.gmra.mxu1 %vm10131_vm9, %v9453_v3 }
 0xb94   : > { %4859 = vmatpush.msrb.mxu0 %v4831_v26 }
 0xb96   : > { %4860 = vmatpush.msrb.mxu0 %v4827_v43  ;;  %v9565_v54 = vpop.permute.xlu1 %5082  ;;  %v9567_v53 = vpop.permute.xlu0 %5144 }
 0xb98   : > { %4861 = vmatpush.msrb.mxu0 %v9378_v23  ;;  %v9570_v28 = vld.sshfl [vmem:[#allocation1] sm:$0xff pattern:$0x75316420]  ;;  %v9572_v41 = vld.sshfl [vmem:[#allocation1 + $0x8] sm:$0xff pattern:$0x75316420] }
 0xb99   : > { %4942 = vrot.lane.b32.xlu2 %v9251_v15, %s6247_s19  ;;  %5800 = vst [vmem:[#allocation1 + $0x1] ss:$2 sm:$0xff] %v9140_v35  ;;  %v9591_v35 = vld [vmem:[%s10020_s6 + $0x38] ss:$0 sm:$0xff] }
 0xb9a   : > { %4862 = vmatpush.msrb.mxu0 %v9323_v18  ;;  %v4802_v18 = vrot.slane %v4663_v44, 4  ;;  %v9608_v46 = vpop.permute.xlu2 %5039 }
 0xb9b   : > { %6055 = vmatmul.msk.f32.vlgmr.msrb.gmra.mxu0 %vm10131_vm9, %v9453_v3  ;;  %6059 = vmatmul.msk.f32.gmra.mxu1 %vm10131_vm9, %v9475_v4 }
 0xb9c   : > { %v4830_v8 = vsel %vm695_vm8, %v10343_v16, %v4802_v18  ;;  %v10345_v16 = vld [vmem:[#allocation37_spill] sm:$0xff] }
 0xb9e   : > { %v4753_v24 = vpop.permute.xlu1 %4752  ;;  %v9584_v23 = vpop.permute.xlu0 %5176 }
 0xb9f   : > { %v4755_v29 = vsel %vm614_vm5, %v9421_v6, %v4753_v24 }
 0xba0   : > { %v4759_v15 = vmul.f32 %v9591_v35, %v4755_v29 }
 0xba2   : > { %6063 = vmatpush.msk.msrb.mxu3 %vm695_vm8, %v4759_v15  ;;  %v10344_v15 = vld [vmem:[#allocation10_spill] sm:$0xff] }
 0xba3   : > { %6056 = vmatmul.msk.f32.gmra.mxu0 %vm10131_vm9, %v9475_v4 }
 0xba4   : > { %4928 = vmatpush.msrb.mxu3 %v9495_v14  ;;  %v5086_v14 = vsel %vm503_vm0, %v9505_v32, %v9565_v54 }
 0xba6   : > { %4929 = vmatpush.msrb.mxu3 %v4830_v8  ;;  %v5115_v6 = vpop.permute.xlu1 %5114  ;;  %v9601_v2 = vpop.permute.xlu0 %4987 }
 0xba7   : > { %v4994_v31 = vsel %vm397_vm4, %v9601_v2, %v9439_v37 }
 0xba8   : > { %4930 = vmatpush.msrb.mxu3 %v9366_v58  ;;  %v5003_v29 = vmul.f32 %v4994_v31, %v10334_v22 }
 0xbaa   : > { %4931 = vmatpush.msrb.mxu3 %v9301_v25  ;;  %v5099_v25 = vmul.f32 %v5086_v14, %v10330_v39 }
 0xbab   : > { %6064 = vmatmul.msk.f32.vlgmr.msrb.gmra.mxu3 %vm10131_vm9, %v9453_v3  ;;  %v5118_v3 = vsel %vm10133_vm2, %v9538_v50, %v5115_v6  ;;  %v5079_v56 = vpop.permute.xlu2 %5078 }
 0xbac   : > { %v5238_v11 = vrot.slane %v5099_v25, 4 }
 0xbae   : > { %v5147_v20 = vpop.permute.xlu1 %5146  ;;  %v9613_v5 = vpop.permute.xlu0 %5019  ;;  %v5266_v37 = vsel %vm695_vm8, %v10345_v16, %v5238_v11 }
 0xbaf   : > { %v5150_v21 = vsel %vm577_vm1, %v9567_v53, %v5147_v20  ;;  %v5026_v44 = vsel %vm434_vm6, %v9613_v5, %v9458_v7 }
 0xbb0   : > { %v5163_v58 = vmul.f32 %v5150_v21, %v10331_v36  ;;  %v5035_v21 = vmul.f32 %v5026_v44, %v10336_v10 }
 0xbb2   : > { %v5250_v45 = vrot.slane %v5163_v58, 4  ;;  %v10346_v58 = vld [vmem:[#allocation14_spill] sm:$0xff] }
 0xbb3   : > { %6065 = vmatmul.msk.f32.gmra.mxu3 %vm10131_vm9, %v9475_v4  ;;  %v5131_v4 = vmul.f32 %v5118_v3, %v10332_v42 }
 0xbb5   : > { %v5270_v26 = vsel %vm695_vm8, %v5131_v4, %v5250_v45  ;;  %v5094_v45 = vpop.permute.xlu2 %5093 }
 0xbb6   : > { %v5179_v51 = vpop.permute.xlu1 %5178 }
 0xbb7   : > { %v5182_v12 = vsel %vm614_vm5, %v9584_v23, %v5179_v51 }
 0xbb8   : > { %v5195_v57 = vmul.f32 %v9626_v40, %v5182_v12 }
 0xbba   : > { %6070 = vmatpush.msk.msra.mxu2 %vm695_vm8, %v5195_v57  ;;  %v9656_v57 = vld [vmem:[%s10018_s4] sm:$0xff] }
 0xbbb   : > { %v5052_v43 = vpop.permute.xlu0 %5051 }
 0xbbc   : > { %5336 = vmatpush.msra.mxu2 %v5270_v26  ;;  %v5058_v24 = vsel %vm471_vm3, %v5052_v43, %v9501_v38  ;;  %v5203_v38 = vrot.slane %v5003_v29, 4  ;;  %v5096_v29 = vsel %vm503_vm0, %v9565_v54, %v5094_v45 }
 0xbbd   : > { %v5067_v18 = vmul.f32 %v5058_v24, %v10344_v15 }
 0xbbe   : > { %5337 = vmatpush.msra.mxu2 %v5266_v37  ;;  %v9644_v8 = vpop.permute.xlu1 %4955  ;;  %v5100_v37 = vmul.f32 %v5096_v29, %v10230_v34 }
 0xbbf   : > { %v5215_v14 = vrot.slane %v5067_v18, 4  ;;  %v4962_v7 = vsel %vm10132_vm7, %v9644_v8, %v9401_v13 }
 0xbc0   : > { %v4971_v25 = vmul.f32 %v4962_v7, %v10346_v58 }
 0xbc1   : > { %v5262_v3 = vsel %vm695_vm8, %v5035_v21, %v5215_v14 }
 0xbc2   : > { %5338 = vmatpush.msra.mxu2 %v5262_v3  ;;  %v5258_v12 = vsel %vm695_vm8, %v4971_v25, %v5203_v38 }
 0xbc3   : > { %v5126_v11 = vpop.permute.xlu2 %5125  ;;  %v5050_v26 = vpop.permute.xlu0 %5049 }
 0xbc4   : > { %5339 = vmatpush.msra.mxu2 %v5258_v12  ;;  %v5128_v14 = vsel %vm10133_vm2, %v5115_v6, %v5126_v11  ;;  %v5239_v12 = vrot.slane %v5100_v37, 4  ;;  %v5085_v6 = vsel %vm503_vm0, %v5079_v56, %v9505_v32 }
 0xbc5   : > { %6071 = vmatmul.msk.f32.vlgmr.msra.gmra.mxu2 %vm10131_vm9, %v9656_v57 }
 0xbc6   : > { %v9660_v13 = vpop.permute.xlu1 %4975 }
 0xbce   : > { %v5077_v31 = vpop.permute.xlu1 %5076 }
 0xbcf   : > { %v5084_v37 = vsel %vm503_vm0, %v5077_v31, %v5079_v56 }
 0xbd0   : > { %v5097_v32 = vmul.f32 %v5084_v37, %v6727_v62 }
 0xbd3   : > { %v5158_v4 = vpop.permute.xlu2 %5157  ;;  %v5109_v21 = vpop.permute.xlu0 %5108 }
 0xbd4   : > { %v5160_v24 = vsel %vm577_vm1, %v5147_v20, %v5158_v4  ;;  %v5132_v20 = vmul.f32 %v5128_v14, %v10297_v0 }
 0xbd5   : > { %v5164_v18 = vmul.f32 %v5160_v24, %v10238_v17  ;;  %v10347_v24 = vld [vmem:[#allocation32_spill] sm:$0xff] }
 0xbd6   : > { %v5111_v16 = vpop.permute.xlu1 %5110  ;;  %v5267_v29 = vsel %vm695_vm8, %v10347_v24, %v5239_v12 }
 0xbd7   : > { %v5251_v25 = vrot.slane %v5164_v18, 4  ;;  %v5098_v18 = vmul.f32 %v5085_v6, %v10329_v1  ;;  %v5117_v56 = vsel %vm10133_vm2, %v5111_v16, %v9538_v50 }
 0xbd9   : > { %v5271_v45 = vsel %vm695_vm8, %v5132_v20, %v5251_v25 }
 0xbdb   : > { %v5173_v44 = vpop.permute.xlu2 %5172 }
 0xbe3   : > { %v5190_v7 = vpop.permute.xlu2 %5189  ;;  %v5143_v54 = vpop.permute.xlu1 %5142 }
 0xbe4   : > { %v5192_v38 = vsel %vm614_vm5, %v5179_v51, %v5190_v7  ;;  %v5141_v4 = vpop.permute.xlu0 %5140  ;;  %v5149_v11 = vsel %vm577_vm1, %v5143_v54, %v9567_v53  ;;  %v5057_v53 = vsel %vm471_vm3, %v5050_v26, %v5052_v43 }
 0xbe5   : > { %v5196_v3 = vmul.f32 %v9591_v35, %v5192_v38  ;;  %v5148_v51 = vsel %vm577_vm1, %v5141_v4, %v5143_v54  ;;  %v5162_v7 = vmul.f32 %v5149_v11, %v6730_v59  ;;  %v5237_v38 = vrot.slane %v5098_v18, 4  ;;  %v10348_v4 = vld [vmem:[#allocation26_spill] sm:$0xff] }
 0xbe6   : > { %v5161_v14 = vmul.f32 %v5148_v51, %v6698_v61  ;;  %v5064_v54 = vsel %vm471_vm3, %v9608_v46, %v5050_v26  ;;  %v5066_v50 = vmul.f32 %v5057_v53, %v10348_v4 }
 0xbe7   : > { %6072 = vmatpush.msk.msra.mxu3 %vm695_vm8, %v5196_v3  ;;  %v5249_v3 = vrot.slane %v5162_v7, 4  ;;  %v5265_v37 = vsel %vm695_vm8, %v9550_v60, %v5237_v38  ;;  %v10352_v60 = vld [vmem:[#allocation22_spill] sm:$0xff] }
 0xbe8   : > { %v5214_v11 = vrot.slane %v5066_v50, 4 }
 0xbe9   : > { %5356 = vmatpush.msra.mxu3 %v5271_v45 }
 0xbeb   : > { %5357 = vmatpush.msra.mxu3 %v5267_v29  ;;  %v5018_v25 = vpop.permute.xlu1 %5017  ;;  %v10350_v29 = vld [vmem:[#allocation28_spill] sm:$0xff]  ;;  %v4986_v51 = vpop.permute.xlu2 %4985 }
 0xbec   : > { %v5025_v45 = vsel %vm434_vm6, %v5018_v25, %v9613_v5  ;;  %v5065_v6 = vmul.f32 %v5064_v54, %v10350_v29 }
 0xbed   : > { %5358 = vmatpush.msra.mxu3 %v9530_v33  ;;  %v5116_v33 = vsel %vm10133_vm2, %v5109_v21, %v5111_v16  ;;  %v5236_v16 = vrot.slane %v5097_v32, 4 }
 0xbee   : > { %v5129_v24 = vmul.f32 %v5116_v33, %v10294_v55  ;;  %v5213_v53 = vrot.slane %v5065_v6, 4  ;;  %v10351_v33 = vld [vmem:[#allocation33_spill] sm:$0xff] }
 0xbef   : > { %5359 = vmatpush.msra.mxu3 %v9470_v63  ;;  %v5248_v63 = vrot.slane %v5161_v14, 4  ;;  %v5264_v18 = vsel %vm695_vm8, %v9548_v49, %v5236_v16  ;;  %v5000_v49 = vsel %vm397_vm4, %v9660_v13, %v4986_v51  ;;  %v10355_v16 = vld [vmem:[#allocation36_spill] sm:$0xff] }
 0xbf0   : > { %6073 = vmatmul.msk.f32.vlgmr.msra.gmra.mxu3 %vm10131_vm9, %v9656_v57  ;;  %v5001_v38 = vmul.f32 %v5000_v49, %v10352_v60 }
 0xbf1   : > { %v5268_v26 = vsel %vm695_vm8, %v5129_v24, %v5248_v63 }
 0xbf3   : > { %v5175_v31 = vpop.permute.xlu0 %5174 }
 0xbf4   : > { %v5180_v12 = vsel %vm614_vm5, %v5173_v44, %v5175_v31  ;;  %v5181_v20 = vsel %vm614_vm5, %v5175_v31, %v9584_v23  ;;  %v5130_v44 = vmul.f32 %v5117_v56, %v10293_v30  ;;  %v10349_v23 = vld [vmem:[#allocation25_spill] sm:$0xff]  ;;  %v4993_v31 = vsel %vm397_vm4, %v4986_v51, %v9601_v2  ;;  %v10354_v2 = vld [vmem:[#allocation35_spill] sm:$0xff] }
 0xbf5   : > { %v5193_v43 = vmul.f32 %v9544_v19, %v5180_v12  ;;  %v5194_v21 = vmul.f32 %v9513_v47, %v5181_v20  ;;  %v5034_v46 = vmul.f32 %v5025_v45, %v10349_v23 }
 0xbf6   : > { %v5269_v5 = vsel %vm695_vm8, %v5130_v44, %v5249_v3  ;;  %v10353_v3 = vld [vmem:[#allocation21_spill] sm:$0xff] }
 0xbf7   : > { %6066 = vmatpush.msk.msra.mxu0 %vm695_vm8, %v5193_v43  ;;  %6068 = vmatpush.msk.msra.mxu1 %vm695_vm8, %v5194_v21  ;;  %v5261_v32 = vsel %vm695_vm8, %v5034_v46, %v5214_v11  ;;  %v5002_v12 = vmul.f32 %v4993_v31, %v10353_v3  ;;  %v5201_v43 = vrot.slane %v5001_v38, 4 }
 0xbf9   : > { %5296 = vmatpush.msra.mxu0 %v5268_v26  ;;  %5316 = vmatpush.msra.mxu1 %v5269_v5  ;;  %v5202_v21 = vrot.slane %v5002_v12, 4  ;;  %v10356_v26 = vld [vmem:[#allocation15_spill] sm:$0xff] }
 0xbfb   : > { %v5008_v14 = vpop.permute.xlu0 %5007  ;;  %5297 = vmatpush.msra.mxu0 %v5264_v18  ;;  %5317 = vmatpush.msra.mxu1 %v5265_v37 }
 0xbfc   : > { %v5032_v7 = vsel %vm434_vm6, %v5008_v14, %v5018_v25  ;;  %v4943_v25 = vpop.permute.xlu2 %4942 }
 0xbfd   : > { %v5033_v56 = vmul.f32 %v5032_v7, %v10351_v33  ;;  %5318 = vmatpush.msra.mxu1 %v5261_v32 }
 0xbff   : > { %v5260_v63 = vsel %vm695_vm8, %v5033_v56, %v5213_v53 }
 0xc00   : > { %5298 = vmatpush.msra.mxu0 %v5260_v63 }
 0xc03   : > { %v4954_v20 = vpop.permute.xlu0 %4953 }
 0xc04   : > { %v4961_v54 = vsel %vm10132_vm7, %v4954_v20, %v9644_v8  ;;  %v4968_v45 = vsel %vm10132_vm7, %v4943_v25, %v4954_v20  ;;  %v4910_v8 = vpop.f32.mrf.mxu2  ;;  %v10357_v25 = vld [vmem:[#allocation38_spill] sm:$0xff] }
 0xc05   : > { %v4969_v50 = vmul.f32 %v4968_v45, %v10354_v2  ;;  %v4970_v13 = vmul.f32 %v4961_v54, %v10355_v16  ;;  %v4911_v5 = vadd.f32 %v4910_v8, %v10356_v26 }
 0xc07   : > { %v5256_v24 = vsel %vm695_vm8, %v4969_v50, %v5201_v43  ;;  %v5257_v44 = vsel %vm695_vm8, %v4970_v13, %v5202_v21 }
 0xc08   : > { %5299 = vmatpush.msra.mxu0 %v5256_v24  ;;  %5319 = vmatpush.msra.mxu1 %v5257_v44 }
 0xc09   : > { %6067 = vmatmul.msk.f32.vlgmr.msra.gmra.mxu0 %vm10131_vm9, %v9656_v57  ;;  %6069 = vmatmul.msk.f32.vlgmr.msra.gmra.mxu1 %vm10131_vm9, %v9656_v57 }
 0xc0c   : > { %v9736_v46 = vpop.f32.mrf.mxu2 }
 0xc10   : > { %v4887_v45 = vpop.f32.mrf.mxu1 }
 0xc18   : > { %v4864_v43 = vpop.f32.mrf.mxu0  ;;  %v9760_v24 = vpop.f32.mrf.mxu1 }
 0xc19   : > { %10358 = vst [vmem:[#allocation30_spill] sm:$0xff] %v9760_v24 }
 0xc20   : > { %v9762_v44 = vpop.f32.mrf.mxu0 }
 0xc21   : > { %10359 = vst [vmem:[#allocation3_spill] sm:$0xff] %v9762_v44 }
 0xc2e   : > { %v4933_v63 = vpop.f32.mrf.mxu3 }
 0xc2f   : > { %v4934_v50 = vadd.f32 %v4933_v63, %v10356_v26 }
 0xc36   : > { %v9749_v54 = vpop.f32.mrf.mxu3 }
 0xc48   : > { %v5341_v6 = vpop.f32.mrf.mxu2 }
 0xc49   : > { %v5366_v51 = vadd.f32 %v5341_v6, %v4911_v5  ;;  %v4888_v5 = vadd.f32 %v4887_v45, %v10356_v26  ;;  %v4865_v6 = vadd.f32 %v4864_v43, %v10356_v26 }
 0xc4b   : > { %v6076_v11 = vmul.f32 -1.442695, %v5366_v51 }
 0xc4d   : > { %6188 = vpow2.f32 %v6076_v11 }
 0xc53   : > { %v6189_v18 = vpop.eup %6188 }
 0xc54   : > { %v5382_v37 = vadd.f32 1.0, %v6189_v18 }
 0xc56   : > { %6190 = vrcp.f32 %v5382_v37  ;;  %v5425_v53 = vand.u32 2147483648, %v5382_v37  ;;  %v5423_v31 = vand.u32 2147483647, %v5382_v37  ;;  %vm5419_vm11 = vweird.f32 %v5382_v37 }
 0xc58   : > { %v5426_v49 = vor.u32 1.1754944e-38, %v5425_v53  ;;  %vm5424_vm13 = vcmp.eq.f32.partialorder %v5423_v31, 8.507059e+37 }
 0xc5c   : > { %v6191_v14 = vpop.eup %6190 }
 0xc5d   : > { %v5415_v7 = vmul.f32 %v6191_v14, %v5382_v37  ;;  %vm5420_vm10 = vweird.f32 %v6191_v14 }
 0xc5e   : > { %vm5421_vm12 = vmor %vm5419_vm11, %vm5420_vm10 }
 0xc5f   : > { %v5416_v32 = vsub.f32 1.0, %v5415_v7 }
 0xc61   : > { %v5417_v56 = vmul.f32 %v6191_v14, %v5416_v32 }
 0xc63   : > { %v5418_v57 = vadd.f32 %v6191_v14, %v5417_v56 }
 0xc65   : > { %v5422_v38 = vsel %vm5421_vm12, %v6191_v14, %v5418_v57 }
 0xc66   : > { %v9739_v12 = vsel %vm5424_vm13, %v5426_v49, %v5422_v38 }
 0xc67   : > { %v9743_v20 = vmul.f32 %v10357_v25, %v9739_v12 }
 0xc69   : > { %5533 = vrot.lane.b32.xlu0 %v9743_v20, %s6250_s22  ;;  %5593 = vrot.lane.b32.xlu2 %v9743_v20, %s6253_s25 }
 0xc71   : > { %5491 = vrot.lane.b32.xlu0 %v9743_v20, %s6248_s20  ;;  %5614 = vrot.lane.b32.xlu2 %v9743_v20, %s6254_s26 }
 0xc73   : > { %v5361_v21 = vpop.f32.mrf.mxu3 }
 0xc74   : > { %v5367_v13 = vadd.f32 %v5361_v21, %v4934_v50 }
 0xc76   : > { %v6077_v8 = vmul.f32 -1.442695, %v5367_v13 }
 0xc78   : > { %6192 = vpow2.f32 %v6077_v8 }
 0xc79   : > { %5512 = vrot.lane.b32.xlu0 %v9743_v20, %s6249_s21  ;;  %5551 = vrot.lane.b32.xlu2 %v9743_v20, %s6251_s23 }
 0xc7e   : > { %v6193_v14 = vpop.eup %6192 }
 0xc7f   : > { %v5383_v53 = vadd.f32 1.0, %v6193_v14 }
 0xc81   : > { %5572 = vrot.lane.b32.xlu2 %v9743_v20, %s6252_s24 }
 0xc86   : > { %v5301_v51 = vpop.f32.mrf.mxu0  ;;  %v5321_v11 = vpop.f32.mrf.mxu1 }
 0xc87   : > { %v5364_v18 = vadd.f32 %v5301_v51, %v4865_v6  ;;  %v5365_v37 = vadd.f32 %v5321_v11, %v4888_v5 }
 0xc89   : > { %v6074_v7 = vmul.f32 -1.442695, %v5364_v18  ;;  %v6075_v32 = vmul.f32 -1.442695, %v5365_v37  ;;  %5470 = vrot.lane.b32.xlu2 %v9743_v20, %s6247_s19 }
 0xc8b   : > { %6194 = vpow2.f32 %v6074_v7 }
 0xc8c   : > { %6196 = vpow2.f32 %v6075_v32 }
 0xc8d   : > { %6198 = vrcp.f32 %v5383_v53 }
 0xc91   : > { %v6195_v56 = vpop.eup %6194 }
 0xc92   : > { %v6197_v31 = vpop.eup %6196  ;;  %v5380_v57 = vadd.f32 1.0, %v6195_v56 }
 0xc93   : > { %v5381_v49 = vadd.f32 1.0, %v6197_v31  ;;  %v6199_v26 = vpop.eup %6198 }
 0xc94   : > { %6200 = vrcp.f32 %v5380_v57  ;;  %v5430_v63 = vmul.f32 %v6199_v26, %v5383_v53  ;;  %v5395_v13 = vand.u32 2147483648, %v5380_v57  ;;  %v5393_v6 = vand.u32 2147483647, %v5380_v57 }
 0xc95   : > { %6202 = vrcp.f32 %v5381_v49  ;;  %v5410_v51 = vand.u32 2147483648, %v5381_v49  ;;  %v5408_v37 = vand.u32 2147483647, %v5381_v49  ;;  %vm5389_vm10 = vweird.f32 %v5380_v57 }
 0xc96   : > { %v5431_v43 = vsub.f32 1.0, %v5430_v63  ;;  %v5396_v7 = vor.u32 1.1754944e-38, %v5395_v13  ;;  %vm5404_vm12 = vweird.f32 %v5381_v49  ;;  %vm5435_vm13 = vweird.f32 %v6199_v26 }
 0xc97   : > { %vm5394_vm9 = vcmp.eq.f32.partialorder %v5393_v6, 8.507059e+37  ;;  %v5411_v31 = vor.u32 1.1754944e-38, %v5410_v51  ;;  %vm5409_vm2 = vcmp.eq.f32.partialorder %v5408_v37, 8.507059e+37  ;;  %v5438_v13 = vand.u32 2147483647, %v5383_v53 }
 0xc98   : > { %v5432_v11 = vmul.f32 %v6199_v26, %v5431_v43  ;;  %v5440_v43 = vand.u32 2147483648, %v5383_v53 }
 0xc9a   : > { %v6201_v38 = vpop.eup %6200  ;;  %v5433_v63 = vadd.f32 %v6199_v26, %v5432_v11 }
 0xc9b   : > { %v6203_v25 = vpop.eup %6202  ;;  %v5385_v45 = vmul.f32 %v6201_v38, %v5380_v57  ;;  %vm5390_vm14 = vweird.f32 %v6201_v38 }
 0xc9c   : > { %v5400_v21 = vmul.f32 %v6203_v25, %v5381_v49  ;;  %vm5405_vm15 = vweird.f32 %v6203_v25  ;;  %vm5391_vm11 = vmor %vm5389_vm10, %vm5390_vm14  ;;  %vm5434_vm14 = vweird.f32 %v5383_v53  ;;  %v10363_v53 = vld [vmem:[#allocation41_spill] sm:$0xff] }
 0xc9d   : > { %v5386_v50 = vsub.f32 1.0, %v5385_v45  ;;  %vm5406_vm7 = vmor %vm5404_vm12, %vm5405_vm15 }
 0xc9e   : > { %v5401_v8 = vsub.f32 1.0, %v5400_v21  ;;  %vm5436_vm15 = vmor %vm5434_vm14, %vm5435_vm13 }
 0xc9f   : > { %v5387_v5 = vmul.f32 %v6201_v38, %v5386_v50 }
 0xca0   : > { %v5402_v18 = vmul.f32 %v6203_v25, %v5401_v8 }
 0xca1   : > { %v5388_v14 = vadd.f32 %v6201_v38, %v5387_v5 }
 0xca2   : > { %v5403_v32 = vadd.f32 %v6203_v25, %v5402_v18 }
 0xca3   : > { %v5392_v56 = vsel %vm5391_vm11, %v6201_v38, %v5388_v14  ;;  %v5437_v38 = vsel %vm5436_vm15, %v6199_v26, %v5433_v63 }
 0xca4   : > { %v9770_v45 = vsel %vm5394_vm9, %v5396_v7, %v5392_v56  ;;  %v5407_v21 = vsel %vm5406_vm7, %v6203_v25, %v5403_v32  ;;  %vm10366_vm9 = vcmask 138240  }
 0xca5   : > { %10360 = vst [vmem:[#allocation20_spill] sm:$0xff] %v9770_v45  ;;  %v9774_v50 = vmul.f32 %v9570_v28, %v9770_v45  ;;  %v9776_v57 = vsel %vm5409_vm2, %v5411_v31, %v5407_v21  ;;  %v5441_v28 = vor.u32 1.1754944e-38, %v5440_v43  ;;  %vm5439_vm2 = vcmp.eq.f32.partialorder %v5438_v13, 8.507059e+37  ;;  %vm10370_vm11 = vmmov %vm10366_vm9 }
 0xca6   : > { %10361 = vst [vmem:[#allocation43_spill] sm:$0xff] %v9776_v57  ;;  %v9780_v49 = vmul.f32 %v9572_v41, %v9776_v57 }
 0xca7   : > { %5589 = vrot.lane.b32.xlu1 %v9774_v50, %s6253_s25  ;;  %v9789_v25 = vsel %vm5439_vm2, %v5441_v28, %v5437_v38 }
 0xca8   : > { %5549 = vrot.lane.b32.xlu0 %v9780_v49, %s6251_s23  ;;  %5531 = vrot.lane.b32.xlu2 %v9780_v49, %s6250_s22  ;;  %10362 = vst [vmem:[#allocation34_spill] sm:$0xff] %v9789_v25  ;;  %v9793_v41 = vmul.f32 %v10363_v53, %v9789_v25 }
 0xcaf   : > { %5610 = vrot.lane.b32.xlu1 %v9774_v50, %s6254_s26 }
 0xcb0   : > { %5595 = vrot.lane.b32.xlu0 %v9793_v41, %s6253_s25  ;;  %5489 = vrot.lane.b32.xlu2 %v9780_v49, %s6248_s20 }
 0xcb7   : > { %5547 = vrot.lane.b32.xlu1 %v9774_v50, %s6251_s23 }
 0xcb8   : > { %5616 = vrot.lane.b32.xlu0 %v9793_v41, %s6254_s26  ;;  %5510 = vrot.lane.b32.xlu2 %v9780_v49, %s6249_s21 }
 0xcbf   : > { %5568 = vrot.lane.b32.xlu1 %v9774_v50, %s6252_s24 }
 0xcc0   : > { %5553 = vrot.lane.b32.xlu0 %v9793_v41, %s6251_s23  ;;  %5612 = vrot.lane.b32.xlu2 %v9780_v49, %s6254_s26 }
 0xcc3   : > { %v9825_v26 = vpop.permute.xlu2 %5593 }
 0xcc7   : > { %5591 = vrot.lane.b32.xlu1 %v9780_v49, %s6253_s25 }
 0xcc8   : > { %5574 = vrot.lane.b32.xlu0 %v9793_v41, %s6252_s24  ;;  %5529 = vrot.lane.b32.xlu2 %v9774_v50, %s6250_s22 }
 0xccb   : > { %v5615_v8 = vpop.permute.xlu2 %5614 }
 0xccf   : > { %5468 = vrot.lane.b32.xlu1 %v9780_v49, %s6247_s19 }
 0xcd0   : > { %5460 = vrot.lane.b32.xlu0 %v9793_v41, %s6247_s19  ;;  %5466 = vrot.lane.b32.xlu2 %v9774_v50, %s6247_s19 }
 0xcd3   : > { %v9833_v5 = vpop.permute.xlu2 %5551 }
 0xcd7   : > { %5570 = vrot.lane.b32.xlu1 %v9780_v49, %s6252_s24 }
 0xcd8   : > { %5487 = vrot.lane.b32.xlu0 %v9774_v50, %s6248_s20 }
 0xcdb   : > { %v9839_v6 = vpop.permute.xlu2 %5572  ;;  %v9845_v11 = vpop.permute.xlu0 %5533 }
 0xcdf   : > { %5526 = vrot.lane.b32.xlu1 %v9793_v41, %s6250_s22 }
 0xce3   : > { %v9843_v51 = vpop.permute.xlu2 %5470  ;;  %v9849_v37 = vpop.permute.xlu0 %5491 }
 0xce7   : > { %5484 = vrot.lane.b32.xlu1 %v9793_v41, %s6248_s20 }
 0xceb   : > { %v9853_v7 = vpop.permute.xlu0 %5512 }
 0xcef   : > { %5505 = vrot.lane.b32.xlu1 %v9793_v41, %s6249_s21 }
 0xcf7   : > { %5508 = vrot.lane.b32.xlu1 %v9774_v50, %s6249_s21 }
 0xd02   : > { %v9847_v18 = vpop.permute.xlu2 %5531 }
 0xd0a   : > { %v9851_v14 = vpop.permute.xlu2 %5489 }
 0xd12   : > { %v9855_v32 = vpop.permute.xlu2 %5510 }
 0xd19   : > { %v9857_v56 = vpop.permute.xlu1 %5589 }
 0xd1a   : > { %v5550_v31 = vpop.permute.xlu0 %5549  ;;  %v5613_v63 = vpop.permute.xlu2 %5612 }
 0xd1b   : > { %v5619_v21 = vsel %vm614_vm5, %v5613_v63, %v5615_v8 }
 0xd1c   : > { %v5628_v43 = vmul.f32 %v9513_v47, %v5619_v21 }
 0xd1e   : > { %6080 = vmatpush.msk.msrb.mxu1 %vm695_vm8, %v5628_v43 }
 0xd21   : > { %v5611_v13 = vpop.permute.xlu1 %5610 }
 0xd22   : > { %v5618_v38 = vsel %vm614_vm5, %v5611_v13, %v5613_v63  ;;  %v5596_v28 = vpop.permute.xlu0 %5595 }
 0xd23   : > { %v5627_v53 = vmul.f32 %v9544_v19, %v5618_v38  ;;  %v5599_v19 = vsel %vm577_vm1, %v9825_v26, %v5596_v28  ;;  %v5605_v43 = vsel %vm577_vm1, %v5596_v28, %v9857_v56  ;;  %v5494_v28 = vsel %vm397_vm4, %v9851_v14, %v9849_v37 }
 0xd25   : > { %6078 = vmatpush.msk.msrb.mxu0 %vm695_vm8, %v5627_v53  ;;  %v5515_v53 = vsel %vm434_vm6, %v9855_v32, %v9853_v7 }
 0xd29   : > { %v5548_v57 = vpop.permute.xlu1 %5547 }
 0xd2a   : > { %v5617_v45 = vpop.permute.xlu0 %5616 }
 0xd2b   : > { %v5620_v25 = vsel %vm614_vm5, %v5615_v8, %v5617_v45  ;;  %v5626_v44 = vsel %vm614_vm5, %v5617_v45, %v5611_v13  ;;  %vm10364_vm5 = vcmask 924672  }
 0xd2c   : > { %v5629_v24 = vmul.f32 %v9626_v40, %v5620_v25  ;;  %v5630_v47 = vmul.f32 %v9591_v35, %v5626_v44  ;;  %v5536_v35 = vsel %vm471_vm3, %v9847_v18, %v9845_v11  ;;  %v5608_v40 = vmul.f32 %v5599_v19, %v10331_v36  ;;  %vm10365_vm7 = vmmov %vm10364_vm5 }
 0xd2d   : > { %v5545_v38 = vmul.f32 %v5536_v35, %v10344_v15 }
 0xd2e   : > { %6082 = vmatpush.msk.msrb.mxu2 %vm695_vm8, %v5629_v24  ;;  %6084 = vmatpush.msk.msrb.mxu3 %vm695_vm8, %v5630_v47  ;;  %v5609_v24 = vmul.f32 %v5605_v43, %v10238_v17 }
 0xd30   : > { %v5674_v36 = vrot.slane %v5609_v24, 4  ;;  %v5649_v24 = vrot.slane %v5545_v38, 4  ;;  %v5555_v38 = vsel %vm503_vm0, %v5548_v57, %v5550_v31 }
 0xd31   : > { %v5569_v63 = vpop.permute.xlu1 %5568 }
 0xd32   : > { %v5554_v21 = vpop.permute.xlu0 %5553 }
 0xd33   : > { %v5557_v8 = vsel %vm503_vm0, %v9833_v5, %v5554_v21  ;;  %v5563_v45 = vsel %vm503_vm0, %v5554_v21, %v5548_v57  ;;  %v5673_v21 = vrot.slane %v5608_v40, 4  ;;  %v5503_v40 = vmul.f32 %v5494_v28, %v10334_v22 }
 0xd34   : > { %v5566_v44 = vmul.f32 %v5557_v8, %v10330_v39  ;;  %v5567_v25 = vmul.f32 %v5563_v45, %v10230_v34  ;;  %v5524_v8 = vmul.f32 %v5515_v53, %v10336_v10 }
 0xd35   : > { %v5637_v22 = vrot.slane %v5503_v40, 4 }
 0xd36   : > { %v5661_v34 = vrot.slane %v5566_v44, 4  ;;  %v5662_v19 = vrot.slane %v5567_v25, 4  ;;  %v5685_v10 = vsel %vm695_vm8, %v5524_v8, %v5649_v24  ;;  %v5556_v25 = vsel %vm503_vm0, %v5550_v31, %v9833_v5  ;;  %v5530_v8 = vpop.permute.xlu2 %5529 }
 0xd37   : > { %vm10367_vm0 = vcmask 293888  }
 0xd38   : > { %v5690_v44 = vsel %vm695_vm8, %v9793_v41, %v5662_v19  ;;  %vm10375_vm13 = vmmov %vm10367_vm0 }
 0xd39   : > { %v5592_v13 = vpop.permute.xlu1 %5591 }
 0xd3a   : > { %v5575_v47 = vpop.permute.xlu0 %5574  ;;  %v5597_v41 = vsel %vm577_vm1, %v9857_v56, %v5592_v13  ;;  %v5598_v28 = vsel %vm577_vm1, %v5592_v13, %v9825_v26  ;;  %vm10368_vm1 = vmmov %vm10364_vm5 }
 0xd3b   : > { %v5578_v17 = vsel %vm10364_vm5, %v9839_v6, %v5575_v47  ;;  %v5584_v39 = vsel %vm10365_vm7, %v5575_v47, %v5569_v63  ;;  %v5689_v47 = vsel %vm695_vm8, %v9743_v20, %v5661_v34  ;;  %v5606_v5 = vmul.f32 %v5597_v41, %v6698_v61  ;;  %vm10369_vm10 = vmmov %vm10368_vm1 }
 0xd3c   : > { %v5587_v15 = vmul.f32 %v5578_v17, %v10332_v42  ;;  %v5588_v43 = vmul.f32 %v5584_v39, %v10297_v0  ;;  %v5607_v57 = vmul.f32 %v5598_v28, %v6730_v59 }
 0xd3d   : > { %v5671_v13 = vrot.slane %v5606_v5, 4 }
 0xd3e   : > { %v5693_v45 = vsel %vm695_vm8, %v5587_v15, %v5673_v21  ;;  %v5694_v35 = vsel %vm695_vm8, %v5588_v43, %v5674_v36  ;;  %v5565_v21 = vmul.f32 %v5556_v25, %v10329_v1  ;;  %v5564_v36 = vmul.f32 %v5555_v38, %v6727_v62 }
 0xd3f   : > { %5759 = vmatpush.msrb.mxu2 %v5693_v45  ;;  %5779 = vmatpush.msrb.mxu3 %v5694_v35  ;;  %v5672_v61 = vrot.slane %v5607_v57, 4 }
 0xd40   : > { %v5660_v56 = vrot.slane %v5565_v21, 4  ;;  %v5659_v31 = vrot.slane %v5564_v36, 4 }
 0xd41   : > { %5760 = vmatpush.msrb.mxu2 %v5689_v47  ;;  %5780 = vmatpush.msrb.mxu3 %v5690_v44  ;;  %v9905_v0 = vpop.permute.xlu1 %5468 }
 0xd42   : > { %v5473_v42 = vsel %vm10366_vm9, %v9905_v0, %v9843_v51  ;;  %v5687_v19 = vsel %vm695_vm8, %v9774_v50, %v5659_v31  ;;  %v5461_v15 = vpop.permute.xlu0 %5460 }
 0xd43   : > { %v5482_v20 = vmul.f32 %v5473_v42, %v10346_v58  ;;  %5761 = vmatpush.msrb.mxu2 %v5685_v10  ;;  %v9927_v58 = vld [vmem:[%s10019_s5] sm:$0xf]  ;;  %v5474_v24 = vsel %vm10370_vm11, %v9843_v51, %v5461_v15 }
 0xd45   : > { %v5681_v53 = vsel %vm695_vm8, %v5482_v20, %v5637_v22 }
 0xd46   : > { %5762 = vmatpush.msrb.mxu2 %v5681_v53 }
 0xd47   : > { %6083 = vmatmul.msk.f32.vlgmr.msrb.gmra.mxu2 %vm10367_vm0, %v9927_v58 }
 0xd49   : > { %v5571_v26 = vpop.permute.xlu1 %5570 }
 0xd4a   : > { %v5576_v1 = vsel %vm10368_vm1, %v5569_v63, %v5571_v26  ;;  %v5577_v62 = vsel %vm10369_vm10, %v5571_v26, %v9839_v6  ;;  %v5688_v63 = vsel %vm695_vm8, %v9780_v49, %v5660_v56  ;;  %v5488_v50 = vpop.permute.xlu0 %5487  ;;  %v5535_v49 = vsel %vm471_vm3, %v5530_v8, %v9847_v18 }
 0xd4b   : > { %v5585_v59 = vmul.f32 %v5576_v1, %v10294_v55  ;;  %v5586_v17 = vmul.f32 %v5577_v62, %v10293_v30  ;;  %v5544_v10 = vmul.f32 %v5535_v49, %v10348_v4  ;;  %v5483_v18 = vmul.f32 %v5474_v24, %v10310_v27  ;;  %v5805_v62 = vld.sshfl [vmem:[#allocation1 + $0x10] sm:$0xff pattern:$0x75316420]  ;;  %v10381_v49 = vld [vmem:[#allocation43_spill] sm:$0xff] }
 0xd4c   : > { %v5797_v56 = vsub.f32 1.0, %v9739_v12  ;;  %v5796_v24 = vsub.f32 1.0, %v10381_v49 }
 0xd4d   : > { %v5691_v39 = vsel %vm695_vm8, %v5585_v59, %v5671_v13  ;;  %v5692_v34 = vsel %vm695_vm8, %v5586_v17, %v5672_v61  ;;  %v5648_v38 = vrot.slane %v5544_v10, 4 }
 0xd4e   : > { %5719 = vmatpush.msrb.mxu0 %v5691_v39  ;;  %5739 = vmatpush.msrb.mxu1 %v5692_v34  ;;  %v5813_v13 = vmul.f32 %v5805_v62, %v5797_v56  ;;  %v10377_v39 = vld [vmem:[#allocation30_spill] sm:$0xff]  ;;  %v10378_v34 = vld [vmem:[#allocation3_spill] sm:$0xff] }
 0xd50   : > { %5720 = vmatpush.msrb.mxu0 %v5687_v19  ;;  %5740 = vmatpush.msrb.mxu1 %v5688_v63 }
 0xd51   : > { %v5527_v6 = vpop.permute.xlu1 %5526 }
 0xd52   : > { %v5537_v30 = vsel %vm471_vm3, %v9845_v11, %v5527_v6  ;;  %v5493_v11 = vsel %vm397_vm4, %v5488_v50, %v9851_v14 }
 0xd53   : > { %v5546_v45 = vmul.f32 %v5537_v30, %v10237_v52  ;;  %v5502_v22 = vmul.f32 %v5493_v11, %v10353_v3 }
 0xd55   : > { %v5636_v3 = vrot.slane %v5502_v22, 4 }
 0xd59   : > { %v5485_v43 = vpop.permute.xlu1 %5484 }
 0xd5a   : > { %v5495_v55 = vsel %vm397_vm4, %v9849_v37, %v5485_v43  ;;  %v5650_v37 = vrot.slane %v5546_v45, 4  ;;  %v5500_v42 = vsel %vm397_vm4, %v5485_v43, %v5488_v50  ;;  %vm10372_vm4 = vmmov %vm10367_vm0 }
 0xd5b   : > { %v5504_v35 = vmul.f32 %v5495_v55, %v10239_v48  ;;  %v5542_v48 = vsel %vm471_vm3, %v5527_v6, %v5530_v8  ;;  %v5501_v14 = vmul.f32 %v5500_v42, %v10352_v60  ;;  %vm10371_vm3 = vmmov %vm10366_vm9 }
 0xd5c   : > { %vm10373_vm12 = vmmov %vm10371_vm3 }
 0xd5d   : > { %v5638_v44 = vrot.slane %v5504_v35, 4  ;;  %v5635_v28 = vrot.slane %v5501_v14, 4 }
 0xd5f   : > { %v5682_v25 = vsel %vm695_vm8, %v5483_v18, %v5638_v44 }
 0xd61   : > { %v5506_v40 = vpop.permute.xlu1 %5505 }
 0xd62   : > { %v5516_v47 = vsel %vm434_vm6, %v9853_v7, %v5506_v40  ;;  %v5543_v7 = vmul.f32 %v5542_v48, %v10350_v29 }
 0xd63   : > { %v5525_v52 = vmul.f32 %v5516_v47, %v10306_v9  ;;  %v5467_v9 = vpop.permute.xlu2 %5466 }
 0xd64   : > { %v5472_v20 = vsel %vm10371_vm3, %v5467_v9, %v9905_v0  ;;  %v5479_v4 = vsel %vm10373_vm12, %v5461_v15, %v5467_v9  ;;  %v5647_v41 = vrot.slane %v5543_v7, 4 }
 0xd65   : > { %v5686_v51 = vsel %vm695_vm8, %v5525_v52, %v5650_v37  ;;  %v5480_v0 = vmul.f32 %v5479_v4, %v10354_v2  ;;  %v5481_v36 = vmul.f32 %v5472_v20, %v10355_v16  ;;  %v5803_v52 = vld.sshfl [vmem:[#allocation1] sm:$0xff pattern:$0x75316420] }
 0xd66   : > { %5781 = vmatpush.msrb.mxu3 %v5686_v51  ;;  %v5804_v51 = vld.sshfl [vmem:[#allocation1 + $0x8] sm:$0xff pattern:$0x75316420] }
 0xd67   : > { %v5680_v26 = vsel %vm695_vm8, %v5481_v36, %v5636_v3  ;;  %v5812_v22 = vmul.f32 %v5804_v51, %v5796_v24 }
 0xd68   : > { %5782 = vmatpush.msrb.mxu3 %v5682_v25 }
 0xd69   : > { %6085 = vmatmul.msk.f32.vlgmr.msrb.gmra.mxu3 %vm10372_vm4, %v9927_v58  ;;  %v5509_v27 = vpop.permute.xlu1 %5508 }
 0xd6a   : > { %v5514_v29 = vsel %vm434_vm6, %v5509_v27, %v9855_v32  ;;  %v5521_v60 = vsel %vm434_vm6, %v5506_v40, %v5509_v27  ;;  %v5679_v32 = vsel %vm695_vm8, %v5480_v0, %v5635_v28  ;;  %vm10374_vm6 = vmmov %vm10367_vm0  ;;  %v5806_v40 = vld.sshfl [vmem:[#allocation1 + $0x18] sm:$0xff pattern:$0x75316420] }
 0xd6b   : > { %v5522_v53 = vmul.f32 %v5521_v60, %v10351_v33  ;;  %v5523_v21 = vmul.f32 %v5514_v29, %v10349_v23  ;;  %v10376_v23 = vld [vmem:[#allocation5_spill] sm:$0xff] }
 0xd6c   : > { %v4914_v33 = vadd.f32 %v9736_v46, %v10376_v23  ;;  %v4937_v17 = vadd.f32 %v9749_v54, %v10376_v23  ;;  %v4891_v46 = vadd.f32 %v10377_v39, %v10376_v23  ;;  %v4868_v19 = vadd.f32 %v10378_v34, %v10376_v23  ;;  %v10380_v54 = vld [vmem:[#allocation20_spill] sm:$0xff] }
 0xd6d   : > { %v5683_v5 = vsel %vm695_vm8, %v5522_v53, %v5647_v41  ;;  %v5684_v57 = vsel %vm695_vm8, %v5523_v21, %v5648_v38  ;;  %v5795_v35 = vsub.f32 1.0, %v10380_v54 }
 0xd6e   : > { %5721 = vmatpush.msrb.mxu0 %v5683_v5  ;;  %5741 = vmatpush.msrb.mxu1 %v5684_v57 }
 0xd6f   : > { %v5811_v10 = vmul.f32 %v5803_v52, %v5795_v35 }
 0xd70   : > { %5722 = vmatpush.msrb.mxu0 %v5679_v32  ;;  %5742 = vmatpush.msrb.mxu1 %v5680_v26 }
 0xd71   : > { %6079 = vmatmul.msk.f32.vlgmr.msrb.gmra.mxu0 %vm10374_vm6, %v9927_v58  ;;  %6081 = vmatmul.msk.f32.vlgmr.msrb.gmra.mxu1 %vm10375_vm13, %v9927_v58 }
 0xdca   : > { %v5764_v2 = vpop.f32.mrf.mxu2 }
 0xdcb   : > { %v5789_v16 = vadd.f32 %v5764_v2, %v4914_v33 }
 0xdcd   : > { %6204 = vtanh.f32 %v5789_v16 }
 0xdd3   : > { %v6205_v31 = vpop.eup %6204 }
 0xdd4   : > { %v5821_v1 = vrot.slane %v6205_v31, 4 }
 0xdd6   : > { %v5829_v61 = vmul.f32 %v5821_v1, %v9739_v12  ;;  %v10379_v12 = vld [vmem:[#allocation34_spill] sm:$0xff] }
 0xdd7   : > { %v5798_v55 = vsub.f32 1.0, %v10379_v12 }
 0xdd8   : > { %v5833_v59 = vadd.f32 %v5829_v61, %v5813_v13 }
 0xdd9   : > { %v5814_v11 = vmul.f32 %v5806_v40, %v5798_v55 }
 0xdda   : > { %5841 = vst.sshfl [vmem:[#allocation1 + $0x10] sm:$0xff pattern:$0x75316420] %v5833_v59 }
 0xdec   : > { %v5784_v58 = vpop.f32.mrf.mxu3 }
 0xded   : > { %v5790_v63 = vadd.f32 %v5784_v58, %v4937_v17 }
 0xdee   : > { %v5724_v6 = vpop.f32.mrf.mxu0  ;;  %v5744_v15 = vpop.f32.mrf.mxu1 }
 0xdef   : > { %6206 = vtanh.f32 %v5790_v63  ;;  %v5787_v43 = vadd.f32 %v5724_v6, %v4868_v19  ;;  %v5788_v30 = vadd.f32 %v5744_v15, %v4891_v46 }
 0xdf1   : > { %6208 = vtanh.f32 %v5787_v43 }
 0xdf2   : > { %6210 = vtanh.f32 %v5788_v30 }
 0xdf5   : > { %v6207_v8 = vpop.eup %6206 }
 0xdf6   : > { %v5822_v45 = vrot.slane %v6207_v8, 4 }
 0xdf7   : > { %v6209_v50 = vpop.eup %6208 }
 0xdf8   : > { %v6211_v47 = vpop.eup %6210  ;;  %v5830_v37 = vmul.f32 %v5822_v45, %v10379_v12  ;;  %v5819_v44 = vrot.slane %v6209_v50, 4 }
 0xdf9   : > { %v5820_v48 = vrot.slane %v6211_v47, 4 }
 0xdfa   : > { %v5834_v42 = vadd.f32 %v5830_v37, %v5814_v11  ;;  %v5827_v18 = vmul.f32 %v5819_v44, %v10380_v54 }
 0xdfb   : > { %v5828_v7 = vmul.f32 %v5820_v48, %v10381_v49 }
 0xdfc   : > { %5842 = vst.sshfl [vmem:[#allocation1 + $0x18] sm:$0xff pattern:$0x75316420] %v5834_v42  ;;  %v5831_v14 = vadd.f32 %v5827_v18, %v5811_v10 }
 0xdfd   : > { %v5832_v25 = vadd.f32 %v5828_v7, %v5812_v22 }
 0xdfe   : > { %5839 = vst.sshfl [vmem:[#allocation1] sm:$0xff pattern:$0x75316420] %v5831_v14 }
 0xdff   : > { %5840 = vst.sshfl [vmem:[#allocation1 + $0x8] sm:$0xff pattern:$0x75316420] %v5832_v25 }
 0xe03   : > { %v5846_v9 = vld [vmem:[#allocation1 + $0x11] ss:$2 sm:$0xff] }
 0xe04   : > { %5850 = vst [vmem:[#allocation2 + $0x8] sm:$0xff] %v5846_v9 }
 0xe05   : > { %5853 = vst.sshfl [vmem:[#allocation1 + $0x10] sm:$0xff pattern:$0x75316420] %v5833_v59 }
 0xe06   : > { %5854 = vst.sshfl [vmem:[#allocation1 + $0x18] sm:$0xff pattern:$0x75316420] %v5834_v42  ;;  %v5844_v38 = vld [vmem:[#allocation1 + $0x1] ss:$2 sm:$0xff] }
 0xe07   : > { %5849 = vst [vmem:[#allocation2] sm:$0xff] %v5844_v38 }
 0xe08   : > { %5851 = vst.sshfl [vmem:[#allocation1] sm:$0xff pattern:$0x75316420] %v5831_v14 }
 0xe09   : > { %5852 = vst.sshfl [vmem:[#allocation1 + $0x8] sm:$0xff pattern:$0x75316420] %v5832_v25 }
 0xe0d   : > { %v5858_v20 = vld [vmem:[#allocation1 + $0x11] ss:$2 sm:$0xff]  ;;  %5867 = sbr.rel (%p6088_p5) target bundleno = 3605 (0xe15), region = 56 }
 0xe0e   : > { %6087 = vst [vmem:[%s6320_s14 + $0x38] sm:$0xff] %v5858_v20 }
 0xe10   : > { %v5856_v27 = vld [vmem:[#allocation1 + $0x1] ss:$2 sm:$0xff] }
 0xe11   : > { %6086 = vst [vmem:[%s6320_s14 + $0x30] sm:$0xff] %v5856_v27 }
 0xe12   : > { %v5868_v4 = vld [vmem:[#allocation2] sm:$0xff]  ;;  %v5869_v3 = vld [vmem:[#allocation2 + $0x8] sm:$0xff] }
 0xe13   : > { %5870 = vst [vmem:[%s10022_s8] sm:$0xff] %v5868_v4 }
 0xe14   : > { %5871 = vst [vmem:[%s10022_s8 + $0x8] sm:$0xff] %v5869_v3 }
 0xe15 PF: > { %s19_s27 = sadd.s32 1, %s6245_s27  }
 0xe16   : > { %p16_p6 = scmp.ge.s32.totalorder %s19_s27, 4  }
 0xe18   :  { %18 = sbr.rel (!%p16_p6) target bundleno = 1 (0x1), region = 200 }

</bundles_post_ra>
